<compile_context>
chip_gen: v7x
topology: tpu7x:2x2x1
jax: 0.10.0
libtpu: 0.0.40
codegen_flags: <defaults>
</compile_context>

<pallas_src>
import functools

import jax
import jax.numpy as jnp
import numpy as np
from jax.experimental import pallas as pl
from jax.experimental.pallas import tpu as pltpu

_LANE = 128
# Explicit scoped-VMEM budget: per-step footprints here are ~1-2 MiB, so double-buffering fits
# comfortably on v5e/v6e (128 MiB physical) and v7x (64 MiB physical).
_VMEM_LIMIT = 32 * 1024 * 1024


# ---------------------------------------------------------------------------
# small helpers
# ---------------------------------------------------------------------------
def _pad_dim(a, axis, mult=_LANE):
    pad = (-a.shape[axis]) % mult
    if pad == 0:
        return a
    widths = [(0, 0)] * a.ndim
    widths[axis] = (0, pad)
    return jnp.pad(a, widths)


def _nbytes(a):
    return int(a.size) * int(a.dtype.itemsize)


# ---------------------------------------------------------------------------
# Fused ResBlock kernel (optionally fused with the expand conv and/or pool+head)
# ---------------------------------------------------------------------------
def _resblock_kernel(*refs, stride, H, W, Cin, Cop, first, proj, last):
    """One fused ResBlock per image, entirely in VMEM:
       [1x1 expand conv + BN] -> zero-pad into VMEM scratch ->
       3x3 conv as 3 accumulated K=3*Cin MXU matmuls + BN + ReLU -> 1x1 conv + BN ->
       + skip (identity or fused 1x1 projection + BN) -> ReLU ->
       [global avg-pool + linear head]."""
    it = iter(refs)
    x_ref = next(it)
    if first:
        we_ref, se_ref, be_ref = next(it), next(it), next(it)
    w1_ref, s1_ref, b1_ref = next(it), next(it), next(it)
    w2_ref, s2_ref, b2_ref = next(it), next(it), next(it)
    if proj:
        wsk_ref, ssk_ref, bsk_ref = next(it), next(it), next(it)
    if last:
        wh_ref, bh_ref = next(it), next(it)
    o_ref = next(it)
    xpad = next(it)                                     # VMEM scratch: zero-padded conv input

    Ho, Wo = H // stride, W // stride
    M = Ho * Wo

    # ---- conv input (fused 1x1 expand conv + BN for the first block) ----
    skip_f32 = None
    xsk2 = None
    if first:                                           # first block: stride 1, identity skip
        xr = x_ref[0].reshape(H * W, x_ref.shape[-1])   # (H*W, Craw) bf16
        e = jnp.dot(xr, we_ref[...], preferred_element_type=jnp.float32)
        e = e * se_ref[...] + be_ref[...]               # expand conv + BN (no ReLU), f32
        skip_f32 = e                                    # identity skip rides the f32 copy
        xin2 = e.astype(jnp.bfloat16)                   # (H*W, Cin)
    elif stride == 1:
        xin2 = x_ref[0].reshape(H * W, Cin)             # (H*W, Cin) bf16

    # ---- zero-pad (spatial pad = 1) into the VMEM scratch; never touches HBM ----
    xpad[...] = jnp.zeros_like(xpad)
    if stride == 1:
        xpad[1:H + 1, 1:W + 1, :] = xin2.reshape(H, W, Cin)

        def tap(dy, dx):                                # unit-stride window -> (M, Cin)
            return xpad[dy:dy + Ho, dx:dx + Wo, :].reshape(M, Cin)

        if proj:
            xsk2 = xin2                                 # stride-1 projection: 1x1 conv of x
        elif skip_f32 is None:
            skip_f32 = xin2.astype(jnp.float32)         # identity skip
    else:
        # x_ref is the free reshape (H/2, 2, W/2, 2*Cin) of the producer's NHWC output:
        #   x4[p, m, q, n*Cin + c] == x[2p + m, 2q + n, c]
        Hh, Wh = H // 2, W // 2
        xpad[1:Hh + 1, :, 1:Wh + 1, :] = x_ref[0]
        # tap (dy, dx) needs x[2i + dy - 1, 2j + dx - 1]:
        rowsel = ((0, 1), (1, 0), (1, 1))               # dy -> (row-plane offset, pair member m)
        colsel = ((0, 1), (1, 0), (1, 1))               # dx -> (col offset, channel half n)

        def tap(dy, dx):
            rp, m = rowsel[dy]
            cq, n = colsel[dx]
            win = xpad[rp:rp + Ho, m, cq:cq + Wo, n * Cin:(n + 1) * Cin]
            return win.reshape(M, Cin)

        # stride-2 1x1 skip-conv input is exactly x[::2, ::2]:
        xsk2 = xpad[1:Ho + 1, 0, 1:Wo + 1, 0:Cin].reshape(M, Cin)

    # ---- 3x3 conv: 3 accumulated MXU matmuls with K = 3*Cin (256-deep-MXU friendly) ----
    acc = jnp.zeros((M, Cop), jnp.float32)
    for dy in range(3):
        win = jnp.concatenate([tap(dy, 0), tap(dy, 1), tap(dy, 2)], axis=-1)   # (M, 3*Cin)
        acc = acc + jnp.dot(win, w1_ref[dy], preferred_element_type=jnp.float32)
    h = jnp.maximum(acc * s1_ref[...] + b1_ref[...], 0.0)       # folded BN + ReLU (f32)

    # ---- second 1x1 conv + BN (h never leaves VMEM) ----
    y = jnp.dot(h.astype(jnp.bfloat16), w2_ref[...], preferred_element_type=jnp.float32)
    y = y * s2_ref[...] + b2_ref[...]

    # ---- skip path (fused) ----
    if proj:
        sk = jnp.dot(xsk2, wsk_ref[...], preferred_element_type=jnp.float32)
        sk = sk * ssk_ref[...] + bsk_ref[...]
    else:
        sk = skip_f32
    out = jnp.maximum(y + sk, 0.0)                              # (M, Cop) f32

    # ---- epilogue: fused global-avg-pool + linear head, or store the feature map ----
    if last:
        pooled = jnp.mean(out, axis=0, keepdims=True)           # (1, Cop)
        logits = jnp.dot(pooled.astype(jnp.bfloat16), wh_ref[...],
                         preferred_element_type=jnp.float32) + bh_ref[...]
        o_ref[...] = logits.reshape(1, 1, -1).astype(o_ref.dtype)
    else:
        o_ref[...] = out.astype(o_ref.dtype)


# ---------------------------------------------------------------------------
# Pallas wrapper: one fused pallas_call per ResBlock (grid over images)
# ---------------------------------------------------------------------------
def res_block_forward(x, bp, expand=None, head=None):
    """x: (N, H, W, C) bf16 NHWC with 128-padded channels (raw padded input when `expand`).
    Returns (N, Ho, Wo, Cout) bf16, or (N, 1, NCp) f32 logits when `head` is given."""
    N, H, W, Cx = x.shape
    stride = bp["stride"]
    Cin = bp["w1p"].shape[1] // 3            # conv input channels (128-padded)
    Cop = bp["w1p"].shape[2]
    proj = bp["skip"] is not None
    first = expand is not None
    last = head is not None
    assert stride in (1, 2) and H % stride == 0 and W % stride == 0
    assert not (first and stride != 1), "first ResBlock always has cin == cout, stride 1"
    assert proj or stride == 1
    assert first or Cx == Cin
    Ho, Wo = H // stride, W // stride
    M = Ho * Wo

    args, in_specs = [], []

    def add(a, spec):
        args.append(a)
        in_specs.append(spec)

    def wspec(shape):
        nd = len(shape)
        return pl.BlockSpec(shape, lambda n: (0,) * nd)

    if stride == 1:
        add(x, pl.BlockSpec((1, H, W, Cx), lambda n: (n, 0, 0, 0)))
        scratch_shape = (H + 2, W + 2, Cin)
    else:
        # metadata-only reshape: row/column pair packing -> every in-kernel tap is unit-stride.
        xp = x.reshape(N, H // 2, 2, W // 2, 2 * Cin)
        add(xp, pl.BlockSpec((1, H // 2, 2, W // 2, 2 * Cin), lambda n: (n, 0, 0, 0, 0)))
        scratch_shape = (H // 2 + 1, 2, W // 2 + 1, 2 * Cin)

    if first:
        add(expand["w"], wspec(expand["w"].shape))
        add(expand["s"], wspec(expand["s"].shape))
        add(expand["b"], wspec(expand["b"].shape))
    for key in ("w1p", "s1", "b1", "w2m", "s2", "b2"):
        add(bp[key], wspec(bp[key].shape))
    if proj:
        for key in ("w", "s", "b"):
            add(bp["skip"][key], wspec(bp["skip"][key].shape))
    if last:
        add(head["w"], wspec(head["w"].shape))
        add(head["b"], wspec(head["b"].shape))

    if last:
        NCp = head["w"].shape[1]
        out_shape = jax.ShapeDtypeStruct((N, 1, NCp), jnp.float32)
        out_spec = pl.BlockSpec((1, 1, NCp), lambda n: (n, 0, 0))
    else:
        out_shape = jax.ShapeDtypeStruct((N * M, Cop), jnp.bfloat16)
        out_spec = pl.BlockSpec((M, Cop), lambda n: (n, 0))

    # Crude per-grid-step working-set check: fail loudly instead of silently blowing VMEM.
    weight_bytes = sum(_nbytes(a) for a in args[1:])
    out_block_bytes = (int(np.prod(out_shape.shape)) // N) * int(out_shape.dtype.itemsize)
    vmem_est = (2 * (_nbytes(args[0]) // N + out_block_bytes) + 2 * weight_bytes
                + int(np.prod(scratch_shape)) * 2 + 8 * M * max(Cin, Cop) * 4)
    if vmem_est > _VMEM_LIMIT:
        raise ValueError(f"ResBlock per-image working set ~{vmem_est >> 20} MiB exceeds the "
                         f"scoped VMEM budget; add an Ho row-tile grid axis for this shape.")

    flops = 2 * N * M * Cop * (9 * Cin + Cop + (Cin if proj else 0))
    if first:
        flops += 2 * N * H * W * Cx * Cin
    if last:
        flops += 2 * N * Cop * head["w"].shape[1]
    cost = pl.CostEstimate(
        flops=flops, transcendentals=0,
        bytes_accessed=sum(_nbytes(a) for a in args)
        + int(np.prod(out_shape.shape)) * int(out_shape.dtype.itemsize))

    out = pl.pallas_call(
        functools.partial(_resblock_kernel, stride=stride, H=H, W=W, Cin=Cin, Cop=Cop,
                          first=first, proj=proj, last=last),
        out_shape=out_shape,
        grid=(N,),
        in_specs=in_specs,
        out_specs=out_spec,
        scratch_shapes=[pltpu.VMEM(scratch_shape, jnp.bfloat16)],
        compiler_params=pltpu.CompilerParams(
            dimension_semantics=("parallel",), vmem_limit_bytes=_VMEM_LIMIT),
        cost_estimate=cost,
    )(*args)

    if last:
        return out                                     # (N, 1, NCp) f32 logits (padded classes)
    return out.reshape(N, Ho, Wo, Cop)                 # free reshape back to NHWC


# ---------------------------------------------------------------------------
# ResNet forward (Pallas path)
# ---------------------------------------------------------------------------
def resnet_forward(x_nchw, PP):
    x = jnp.transpose(x_nchw, (0, 2, 3, 1)).astype(jnp.bfloat16)   # NCHW -> NHWC, bf16
    x = _pad_dim(x, 3)                                             # lane-pad raw channels to 128
    nb = len(PP["blocks"])
    for i, bp in enumerate(PP["blocks"]):
        x = res_block_forward(x, bp,
                              expand=PP["expand"] if i == 0 else None,
                              head=PP["head"] if i == nb - 1 else None)
    return x[:, 0, :PP["num_classes"]]                             # (N, num_classes) f32


def prepare_pallas_params(P):
    """Pad channels to multiples of 128 (lane-dense), fold conv weights into matmul layouts,
    pack the 3x3 weights to (3, 3*Cin, Cout) for K=3*Cin matmuls, cast weights to bf16
    (scale/bias stay f32 — the epilogue runs on the VPU in f32)."""
    def vec(v):                                                    # (C,) -> (1, Cp) f32
        return _pad_dim(v.reshape(1, -1), 1).astype(jnp.float32)

    def mat(w2d):                                                  # (K, N) -> (Kp, Np) bf16
        return _pad_dim(_pad_dim(w2d, 0), 1).astype(jnp.bfloat16)

    PP = {"num_classes": int(P["head"]["b"].shape[0])}
    PP["expand"] = {"w": mat(P["expand"]["w"][:, :, 0, 0].T),
                    "s": vec(P["expand"]["s"]), "b": vec(P["expand"]["b"])}
    blocks = []
    for bp in P["blocks"]:
        # w1 (cout, cin, 3, 3) -> (kh, kw, cin, cout), pad cin/cout to 128 -> (3, 3*Cp, Cop)
        w1 = jnp.transpose(bp["w1"], (2, 3, 1, 0))
        w1 = _pad_dim(_pad_dim(w1, 2), 3)
        kh, kw, cp, cop = w1.shape
        w1p = w1.reshape(kh, kw * cp, cop).astype(jnp.bfloat16)
        nbp = {"stride": bp["stride"],
               "w1p": w1p, "s1": vec(bp["s1"]), "b1": vec(bp["b1"]),
               "w2m": mat(bp["w2"][:, :, 0, 0].T), "s2": vec(bp["s2"]), "b2": vec(bp["b2"]),
               "skip": None}
        if bp["skip"] is not None:
            nbp["skip"] = {"w": mat(bp["skip"]["w"][:, :, 0, 0].T),
                           "s": vec(bp["skip"]["s"]), "b": vec(bp["skip"]["b"])}
        blocks.append(nbp)
    PP["blocks"] = blocks
    # head weights bf16 (f32 accumulation in-kernel), bias f32
    PP["head"] = {"w": mat(P["head"]["w"].T), "b": vec(P["head"]["b"])}
    return PP


# ---------------------------------------------------------------------------
# Pure-JAX reference (mirrors the PyTorch module, eval-mode BN, f32)
# ---------------------------------------------------------------------------
def _ref_conv(x, w, stride, padding):
    return jax.lax.conv_general_dilated(
        x, w, (stride, stride), padding, dimension_numbers=("NCHW", "OIHW", "NCHW"))


def _ref_bn(x, scale, bias):
    return x * scale[None, :, None, None] + bias[None, :, None, None]


def ref_forward(x, P):
    h = _ref_bn(_ref_conv(x, P["expand"]["w"], 1, [(0, 0), (0, 0)]),
                P["expand"]["s"], P["expand"]["b"])
    for bp in P["blocks"]:
        s = bp["stride"]
        y = jnp.maximum(_ref_bn(_ref_conv(h, bp["w1"], s, [(1, 1), (1, 1)]),
                                bp["s1"], bp["b1"]), 0.0)
        y = _ref_bn(_ref_conv(y, bp["w2"], 1, [(0, 0), (0, 0)]), bp["s2"], bp["b2"])
        if bp["skip"] is None:
            sk = h
        else:
            sk = _ref_bn(_ref_conv(h, bp["skip"]["w"], s, [(0, 0), (0, 0)]),
                         bp["skip"]["s"], bp["skip"]["b"])
        h = jnp.maximum(y + sk, 0.0)
    pooled = jnp.mean(h, axis=(2, 3))
    return pooled @ P["head"]["w"].T + P["head"]["b"]


# ---------------------------------------------------------------------------
# Deterministic parameter init (eval-mode BN folded into scale/bias)
# ---------------------------------------------------------------------------
def _init_conv(key, cout, cin, k):
    return 0.1 * jax.random.normal(key, (cout, cin, k, k), jnp.float32)


def _init_bn(key, c, eps=1e-5):
    k1, k2, k3, k4 = jax.random.split(key, 4)
    gamma = 1.0 + 0.1 * jax.random.normal(k1, (c,), jnp.float32)
    beta = 0.1 * jax.random.normal(k2, (c,), jnp.float32)
    mean = 0.1 * jax.random.normal(k3, (c,), jnp.float32)
    var = jax.random.uniform(k4, (c,), jnp.float32, 0.5, 1.5)
    scale = gamma / jnp.sqrt(var + eps)
    bias = beta - mean * scale
    return scale, bias


def build_params(key, in_channels, block_features, num_classes):
    bf = [block_features[0]] + list(block_features)   # headless=False path
    keys = iter(jax.random.split(key, 128))
    P = {}
    s, b = _init_bn(next(keys), bf[0])
    P["expand"] = {"w": _init_conv(next(keys), bf[0], in_channels, 1), "s": s, "b": b}
    blocks = []
    for i in range(len(bf) - 1):
        cin, cout = bf[i], bf[i + 1]
        stride = 1 if cin >= cout else 2
        s1, b1 = _init_bn(next(keys), cout)
        s2, b2 = _init_bn(next(keys), cout)
        bp = {"stride": stride,
              "w1": _init_conv(next(keys), cout, cin, 3), "s1": s1, "b1": b1,
              "w2": _init_conv(next(keys), cout, cout, 1), "s2": s2, "b2": b2}
        if stride == 1 and cin == cout:
            bp["skip"] = None
        else:
            ss, sb = _init_bn(next(keys), cout)
            bp["skip"] = {"w": _init_conv(next(keys), cout, cin, 1), "s": ss, "b": sb}
        blocks.append(bp)
    P["blocks"] = blocks
    P["head"] = {"w": 0.1 * jax.random.normal(next(keys), (num_classes, bf[-1]), jnp.float32),
                 "b": 0.1 * jax.random.normal(next(keys), (num_classes,), jnp.float32)}
    return P


# ---------------------------------------------------------------------------
if __name__ == "__main__":
    key = jax.random.PRNGKey(0)
    k_param, k_x = jax.random.split(key)

    in_channels, block_features, num_classes = 4, [8, 16], 10
    N, H, W = 2, 16, 16

    params = build_params(k_param, in_channels, block_features, num_classes)
    pallas_params = prepare_pallas_params(params)
    x = jax.random.normal(k_x, (N, in_channels, H, W), jnp.float32)   # NCHW like PyTorch

    run = jax.jit(lambda inp: resnet_forward(inp, pallas_params))
    out = jax.block_until_ready(run(x))
    ref = jax.block_until_ready(ref_forward(x, params))

    assert out.shape == (N, num_classes), out.shape
    # bf16 weights/activations (incl. bf16 head weights) with f32 accumulation vs f32 reference.
    if not np.allclose(np.asarray(out), np.asarray(ref), rtol=3e-2, atol=3e-2):
        err = float(np.max(np.abs(np.asarray(out) - np.asarray(ref))))
        raise AssertionError(f"Pallas output does not match reference (max abs err {err})")

    print("KERNEL_OK")
</pallas_src>

<mosaic_0001>
module attributes {stable_mosaic.version = 11 : i64} {
  func.func @_resblock_kernel(%arg0: i32, %arg1: memref<1x16x16x128xbf16, #tpu.memory_space<vmem>>, %arg2: memref<128x128xbf16, #tpu.memory_space<vmem>>, %arg3: memref<1x128xf32, #tpu.memory_space<vmem>>, %arg4: memref<1x128xf32, #tpu.memory_space<vmem>>, %arg5: memref<3x384x128xbf16, #tpu.memory_space<vmem>>, %arg6: memref<1x128xf32, #tpu.memory_space<vmem>>, %arg7: memref<1x128xf32, #tpu.memory_space<vmem>>, %arg8: memref<128x128xbf16, #tpu.memory_space<vmem>>, %arg9: memref<1x128xf32, #tpu.memory_space<vmem>>, %arg10: memref<1x128xf32, #tpu.memory_space<vmem>>, %arg11: memref<256x128xbf16, #tpu.memory_space<vmem>>, %arg12: memref<18x18x128xbf16, #tpu.memory_space<vmem>>) attributes {dimension_semantics = [#tpu.dimension_semantics<parallel>], iteration_bounds = array<i64: 2>, scalar_prefetch = 0 : i64, scratch_operands = 1 : i64, tpu.core_type = #tpu.core_type<tc>, window_params = [{transform_indices = @transform_0, window_bounds = array<i64: 1, 16, 16, 128>}, {pipeline_mode = #tpu.pipeline_mode<synchronous>, transform_indices = @transform_1, window_bounds = array<i64: 128, 128>}, {pipeline_mode = #tpu.pipeline_mode<synchronous>, transform_indices = @transform_2, window_bounds = array<i64: 1, 128>}, {pipeline_mode = #tpu.pipeline_mode<synchronous>, transform_indices = @transform_3, window_bounds = array<i64: 1, 128>}, {pipeline_mode = #tpu.pipeline_mode<synchronous>, transform_indices = @transform_4, window_bounds = array<i64: 3, 384, 128>}, {pipeline_mode = #tpu.pipeline_mode<synchronous>, transform_indices = @transform_5, window_bounds = array<i64: 1, 128>}, {pipeline_mode = #tpu.pipeline_mode<synchronous>, transform_indices = @transform_6, window_bounds = array<i64: 1, 128>}, {pipeline_mode = #tpu.pipeline_mode<synchronous>, transform_indices = @transform_7, window_bounds = array<i64: 128, 128>}, {pipeline_mode = #tpu.pipeline_mode<synchronous>, transform_indices = @transform_8, window_bounds = array<i64: 1, 128>}, {pipeline_mode = #tpu.pipeline_mode<synchronous>, transform_indices = @transform_9, window_bounds = array<i64: 1, 128>}, {transform_indices = @transform_10, window_bounds = array<i64: 256, 128>}]} {
    %c0 = arith.constant 0 : index
    %c0_0 = arith.constant 0 : index
    %c0_1 = arith.constant 0 : index
    %c0_2 = arith.constant 0 : index
    %0 = vector.load %arg1[%c0, %c0_0, %c0_1, %c0_2] : memref<1x16x16x128xbf16, #tpu.memory_space<vmem>>, vector<1x16x16x128xbf16>
    %1 = vector.shape_cast %0 : vector<1x16x16x128xbf16> to vector<16x16x128xbf16>
    %2 = vector.shape_cast %1 : vector<16x16x128xbf16> to vector<256x128xbf16>
    %c0_3 = arith.constant 0 : index
    %c0_4 = arith.constant 0 : index
    %3 = vector.load %arg2[%c0_3, %c0_4] : memref<128x128xbf16, #tpu.memory_space<vmem>>, vector<128x128xbf16>
    %cst = arith.constant dense<0.000000e+00> : vector<256x128xf32>
    %4 = tpu.matmul %2, %3, %cst {dimension_numbers = #tpu.dot_dimension_numbers<[1], [0], [0], [1], [0, 0, 1, 1], [], []>} : vector<256x128xbf16>, vector<128x128xbf16>, vector<256x128xf32> -> vector<256x128xf32>
    %c0_5 = arith.constant 0 : index
    %c0_6 = arith.constant 0 : index
    %5 = vector.load %arg3[%c0_5, %c0_6] : memref<1x128xf32, #tpu.memory_space<vmem>>, vector<1x128xf32>
    %6 = vector.broadcast %5 : vector<1x128xf32> to vector<256x128xf32>
    %7 = arith.mulf %4, %6 : vector<256x128xf32>
    %c0_7 = arith.constant 0 : index
    %c0_8 = arith.constant 0 : index
    %8 = vector.load %arg4[%c0_7, %c0_8] : memref<1x128xf32, #tpu.memory_space<vmem>>, vector<1x128xf32>
    %9 = vector.broadcast %8 : vector<1x128xf32> to vector<256x128xf32>
    %10 = arith.addf %7, %9 : vector<256x128xf32>
    %11 = arith.truncf %10 : vector<256x128xf32> to vector<256x128xbf16>
    %cst_9 = arith.constant 0.000000e+00 : bf16
    %12 = vector.broadcast %cst_9 : bf16 to vector<18x18x128xbf16>
    %c0_10 = arith.constant 0 : index
    %c0_11 = arith.constant 0 : index
    %c0_12 = arith.constant 0 : index
    %13 = vector.load %arg12[%c0_10, %c0_11, %c0_12] : memref<18x18x128xbf16, #tpu.memory_space<vmem>>, vector<18x18x128xbf16>
    tpu.vector_store %arg12[%c0_10, %c0_11, %c0_12], %12 {strides = array<i32>} : memref<18x18x128xbf16, #tpu.memory_space<vmem>>, vector<18x18x128xbf16>,
    %14 = vector.shape_cast %11 : vector<256x128xbf16> to vector<16x16x128xbf16>
    %c1 = arith.constant 1 : index
    %c1_13 = arith.constant 1 : index
    %c0_14 = arith.constant 0 : index
    %15 = vector.load %arg12[%c1, %c1_13, %c0_14] : memref<18x18x128xbf16, #tpu.memory_space<vmem>>, vector<16x16x128xbf16>
    tpu.vector_store %arg12[%c1, %c1_13, %c0_14], %14 {strides = array<i32>} : memref<18x18x128xbf16, #tpu.memory_space<vmem>>, vector<16x16x128xbf16>,
    %cst_15 = arith.constant 0.000000e+00 : f32
    %16 = vector.broadcast %cst_15 : f32 to vector<256x128xf32>
    %c0_16 = arith.constant 0 : index
    %c0_17 = arith.constant 0 : index
    %c0_18 = arith.constant 0 : index
    %17 = vector.load %arg12[%c0_16, %c0_17, %c0_18] : memref<18x18x128xbf16, #tpu.memory_space<vmem>>, vector<16x16x128xbf16>
    %18 = vector.shape_cast %17 : vector<16x16x128xbf16> to vector<256x128xbf16>
    %c0_19 = arith.constant 0 : index
    %c1_20 = arith.constant 1 : index
    %c0_21 = arith.constant 0 : index
    %19 = vector.load %arg12[%c0_19, %c1_20, %c0_21] : memref<18x18x128xbf16, #tpu.memory_space<vmem>>, vector<16x16x128xbf16>
    %20 = vector.shape_cast %19 : vector<16x16x128xbf16> to vector<256x128xbf16>
    %c0_22 = arith.constant 0 : index
    %c2 = arith.constant 2 : index
    %c0_23 = arith.constant 0 : index
    %21 = vector.load %arg12[%c0_22, %c2, %c0_23] : memref<18x18x128xbf16, #tpu.memory_space<vmem>>, vector<16x16x128xbf16>
    %22 = vector.shape_cast %21 : vector<16x16x128xbf16> to vector<256x128xbf16>
    %23 = tpu.concatenate %18, %20, %22 in 1 : vector<256x128xbf16>, vector<256x128xbf16>, vector<256x128xbf16> -> vector<256x384xbf16>
    %c0_24 = arith.constant 0 : index
    %c0_25 = arith.constant 0 : index
    %c0_26 = arith.constant 0 : index
    %24 = vector.load %arg5[%c0_24, %c0_25, %c0_26] : memref<3x384x128xbf16, #tpu.memory_space<vmem>>, vector<1x384x128xbf16>
    %25 = vector.shape_cast %24 : vector<1x384x128xbf16> to vector<384x128xbf16>
    %cst_27 = arith.constant dense<0.000000e+00> : vector<256x128xf32>
    %26 = tpu.matmul %23, %25, %cst_27 {dimension_numbers = #tpu.dot_dimension_numbers<[1], [0], [0], [1], [0, 0, 1, 1], [], []>} : vector<256x384xbf16>, vector<384x128xbf16>, vector<256x128xf32> -> vector<256x128xf32>
    %27 = arith.addf %16, %26 : vector<256x128xf32>
    %c1_28 = arith.constant 1 : index
    %c0_29 = arith.constant 0 : index
    %c0_30 = arith.constant 0 : index
    %28 = vector.load %arg12[%c1_28, %c0_29, %c0_30] : memref<18x18x128xbf16, #tpu.memory_space<vmem>>, vector<16x16x128xbf16>
    %29 = vector.shape_cast %28 : vector<16x16x128xbf16> to vector<256x128xbf16>
    %c1_31 = arith.constant 1 : index
    %c1_32 = arith.constant 1 : index
    %c0_33 = arith.constant 0 : index
    %30 = vector.load %arg12[%c1_31, %c1_32, %c0_33] : memref<18x18x128xbf16, #tpu.memory_space<vmem>>, vector<16x16x128xbf16>
    %31 = vector.shape_cast %30 : vector<16x16x128xbf16> to vector<256x128xbf16>
    %c1_34 = arith.constant 1 : index
    %c2_35 = arith.constant 2 : index
    %c0_36 = arith.constant 0 : index
    %32 = vector.load %arg12[%c1_34, %c2_35, %c0_36] : memref<18x18x128xbf16, #tpu.memory_space<vmem>>, vector<16x16x128xbf16>
    %33 = vector.shape_cast %32 : vector<16x16x128xbf16> to vector<256x128xbf16>
    %34 = tpu.concatenate %29, %31, %33 in 1 : vector<256x128xbf16>, vector<256x128xbf16>, vector<256x128xbf16> -> vector<256x384xbf16>
    %c1_37 = arith.constant 1 : index
    %c0_38 = arith.constant 0 : index
    %c0_39 = arith.constant 0 : index
    %35 = vector.load %arg5[%c1_37, %c0_38, %c0_39] : memref<3x384x128xbf16, #tpu.memory_space<vmem>>, vector<1x384x128xbf16>
    %36 = vector.shape_cast %35 : vector<1x384x128xbf16> to vector<384x128xbf16>
    %cst_40 = arith.constant dense<0.000000e+00> : vector<256x128xf32>
    %37 = tpu.matmul %34, %36, %cst_40 {dimension_numbers = #tpu.dot_dimension_numbers<[1], [0], [0], [1], [0, 0, 1, 1], [], []>} : vector<256x384xbf16>, vector<384x128xbf16>, vector<256x128xf32> -> vector<256x128xf32>
    %38 = arith.addf %27, %37 : vector<256x128xf32>
    %c2_41 = arith.constant 2 : index
    %c0_42 = arith.constant 0 : index
    %c0_43 = arith.constant 0 : index
    %39 = vector.load %arg12[%c2_41, %c0_42, %c0_43] : memref<18x18x128xbf16, #tpu.memory_space<vmem>>, vector<16x16x128xbf16>
    %40 = vector.shape_cast %39 : vector<16x16x128xbf16> to vector<256x128xbf16>
    %c2_44 = arith.constant 2 : index
    %c1_45 = arith.constant 1 : index
    %c0_46 = arith.constant 0 : index
    %41 = vector.load %arg12[%c2_44, %c1_45, %c0_46] : memref<18x18x128xbf16, #tpu.memory_space<vmem>>, vector<16x16x128xbf16>
    %42 = vector.shape_cast %41 : vector<16x16x128xbf16> to vector<256x128xbf16>
    %c2_47 = arith.constant 2 : index
    %c2_48 = arith.constant 2 : index
    %c0_49 = arith.constant 0 : index
    %43 = vector.load %arg12[%c2_47, %c2_48, %c0_49] : memref<18x18x128xbf16, #tpu.memory_space<vmem>>, vector<16x16x128xbf16>
    %44 = vector.shape_cast %43 : vector<16x16x128xbf16> to vector<256x128xbf16>
    %45 = tpu.concatenate %40, %42, %44 in 1 : vector<256x128xbf16>, vector<256x128xbf16>, vector<256x128xbf16> -> vector<256x384xbf16>
    %c2_50 = arith.constant 2 : index
    %c0_51 = arith.constant 0 : index
    %c0_52 = arith.constant 0 : index
    %46 = vector.load %arg5[%c2_50, %c0_51, %c0_52] : memref<3x384x128xbf16, #tpu.memory_space<vmem>>, vector<1x384x128xbf16>
    %47 = vector.shape_cast %46 : vector<1x384x128xbf16> to vector<384x128xbf16>
    %cst_53 = arith.constant dense<0.000000e+00> : vector<256x128xf32>
    %48 = tpu.matmul %45, %47, %cst_53 {dimension_numbers = #tpu.dot_dimension_numbers<[1], [0], [0], [1], [0, 0, 1, 1], [], []>} : vector<256x384xbf16>, vector<384x128xbf16>, vector<256x128xf32> -> vector<256x128xf32>
    %49 = arith.addf %38, %48 : vector<256x128xf32>
    %c0_54 = arith.constant 0 : index
    %c0_55 = arith.constant 0 : index
    %50 = vector.load %arg6[%c0_54, %c0_55] : memref<1x128xf32, #tpu.memory_space<vmem>>, vector<1x128xf32>
    %51 = vector.broadcast %50 : vector<1x128xf32> to vector<256x128xf32>
    %52 = arith.mulf %49, %51 : vector<256x128xf32>
    %c0_56 = arith.constant 0 : index
    %c0_57 = arith.constant 0 : index
    %53 = vector.load %arg7[%c0_56, %c0_57] : memref<1x128xf32, #tpu.memory_space<vmem>>, vector<1x128xf32>
    %54 = vector.broadcast %53 : vector<1x128xf32> to vector<256x128xf32>
    %55 = arith.addf %52, %54 : vector<256x128xf32>
    %cst_58 = arith.constant 0.000000e+00 : f32
    %56 = vector.broadcast %cst_58 : f32 to vector<256x128xf32>
    %57 = arith.maximumf %55, %56 : vector<256x128xf32>
    %58 = arith.truncf %57 : vector<256x128xf32> to vector<256x128xbf16>
    %c0_59 = arith.constant 0 : index
    %c0_60 = arith.constant 0 : index
    %59 = vector.load %arg8[%c0_59, %c0_60] : memref<128x128xbf16, #tpu.memory_space<vmem>>, vector<128x128xbf16>
    %cst_61 = arith.constant dense<0.000000e+00> : vector<256x128xf32>
    %60 = tpu.matmul %58, %59, %cst_61 {dimension_numbers = #tpu.dot_dimension_numbers<[1], [0], [0], [1], [0, 0, 1, 1], [], []>} : vector<256x128xbf16>, vector<128x128xbf16>, vector<256x128xf32> -> vector<256x128xf32>
    %c0_62 = arith.constant 0 : index
    %c0_63 = arith.constant 0 : index
    %61 = vector.load %arg9[%c0_62, %c0_63] : memref<1x128xf32, #tpu.memory_space<vmem>>, vector<1x128xf32>
    %62 = vector.broadcast %61 : vector<1x128xf32> to vector<256x128xf32>
    %63 = arith.mulf %60, %62 : vector<256x128xf32>
    %c0_64 = arith.constant 0 : index
    %c0_65 = arith.constant 0 : index
    %64 = vector.load %arg10[%c0_64, %c0_65] : memref<1x128xf32, #tpu.memory_space<vmem>>, vector<1x128xf32>
    %65 = vector.broadcast %64 : vector<1x128xf32> to vector<256x128xf32>
    %66 = arith.addf %63, %65 : vector<256x128xf32>
    %67 = arith.addf %66, %10 : vector<256x128xf32>
    %cst_66 = arith.constant 0.000000e+00 : f32
    %68 = vector.broadcast %cst_66 : f32 to vector<256x128xf32>
    %69 = arith.maximumf %67, %68 : vector<256x128xf32>
    %70 = arith.truncf %69 : vector<256x128xf32> to vector<256x128xbf16>
    %c0_67 = arith.constant 0 : index
    %c0_68 = arith.constant 0 : index
    %71 = vector.load %arg11[%c0_67, %c0_68] : memref<256x128xbf16, #tpu.memory_space<vmem>>, vector<256x128xbf16>
    tpu.vector_store %arg11[%c0_67, %c0_68], %70 {strides = array<i32>} : memref<256x128xbf16, #tpu.memory_space<vmem>>, vector<256x128xbf16>,
    return
  }
  func.func @transform_0(%arg0: i32) -> (i32, i32, i32, i32) {
    %c0_i32 = arith.constant 0 : i32
    %c0_i32_0 = arith.constant 0 : i32
    %c0_i32_1 = arith.constant 0 : i32
    %c0_i32_2 = arith.constant 0 : i32
    return %arg0, %c0_i32, %c0_i32_0, %c0_i32_1 : i32, i32, i32, i32
  }
  func.func @transform_1(%arg0: i32) -> (i32, i32) {
    %c0_i32 = arith.constant 0 : i32
    %c0_i32_0 = arith.constant 0 : i32
    %c0_i32_1 = arith.constant 0 : i32
    return %c0_i32, %c0_i32_0 : i32, i32
  }
  func.func @transform_2(%arg0: i32) -> (i32, i32) {
    %c0_i32 = arith.constant 0 : i32
    %c0_i32_0 = arith.constant 0 : i32
    %c0_i32_1 = arith.constant 0 : i32
    return %c0_i32, %c0_i32_0 : i32, i32
  }
  func.func @transform_3(%arg0: i32) -> (i32, i32) {
    %c0_i32 = arith.constant 0 : i32
    %c0_i32_0 = arith.constant 0 : i32
    %c0_i32_1 = arith.constant 0 : i32
    return %c0_i32, %c0_i32_0 : i32, i32
  }
  func.func @transform_4(%arg0: i32) -> (i32, i32, i32) {
    %c0_i32 = arith.constant 0 : i32
    %c0_i32_0 = arith.constant 0 : i32
    %c0_i32_1 = arith.constant 0 : i32
    %c0_i32_2 = arith.constant 0 : i32
    return %c0_i32, %c0_i32_0, %c0_i32_1 : i32, i32, i32
  }
  func.func @transform_5(%arg0: i32) -> (i32, i32) {
    %c0_i32 = arith.constant 0 : i32
    %c0_i32_0 = arith.constant 0 : i32
    %c0_i32_1 = arith.constant 0 : i32
    return %c0_i32, %c0_i32_0 : i32, i32
  }
  func.func @transform_6(%arg0: i32) -> (i32, i32) {
    %c0_i32 = arith.constant 0 : i32
    %c0_i32_0 = arith.constant 0 : i32
    %c0_i32_1 = arith.constant 0 : i32
    return %c0_i32, %c0_i32_0 : i32, i32
  }
  func.func @transform_7(%arg0: i32) -> (i32, i32) {
    %c0_i32 = arith.constant 0 : i32
    %c0_i32_0 = arith.constant 0 : i32
    %c0_i32_1 = arith.constant 0 : i32
    return %c0_i32, %c0_i32_0 : i32, i32
  }
  func.func @transform_8(%arg0: i32) -> (i32, i32) {
    %c0_i32 = arith.constant 0 : i32
    %c0_i32_0 = arith.constant 0 : i32
    %c0_i32_1 = arith.constant 0 : i32
    return %c0_i32, %c0_i32_0 : i32, i32
  }
  func.func @transform_9(%arg0: i32) -> (i32, i32) {
    %c0_i32 = arith.constant 0 : i32
    %c0_i32_0 = arith.constant 0 : i32
    %c0_i32_1 = arith.constant 0 : i32
    return %c0_i32, %c0_i32_0 : i32, i32
  }
  func.func @transform_10(%arg0: i32) -> (i32, i32) {
    %c0_i32 = arith.constant 0 : i32
    %c0_i32_0 = arith.constant 0 : i32
    return %arg0, %c0_i32 : i32, i32
  }
}

module attributes {stable_mosaic.version = 11 : i64} {
  func.func @_resblock_kernel(%arg0: i32, %arg1: memref<1x8x2x8x256xbf16, #tpu.memory_space<vmem>>, %arg2: memref<3x384x128xbf16, #tpu.memory_space<vmem>>, %arg3: memref<1x128xf32, #tpu.memory_space<vmem>>, %arg4: memref<1x128xf32, #tpu.memory_space<vmem>>, %arg5: memref<128x128xbf16, #tpu.memory_space<vmem>>, %arg6: memref<1x128xf32, #tpu.memory_space<vmem>>, %arg7: memref<1x128xf32, #tpu.memory_space<vmem>>, %arg8: memref<128x128xbf16, #tpu.memory_space<vmem>>, %arg9: memref<1x128xf32, #tpu.memory_space<vmem>>, %arg10: memref<1x128xf32, #tpu.memory_space<vmem>>, %arg11: memref<128x128xbf16, #tpu.memory_space<vmem>>, %arg12: memref<1x128xf32, #tpu.memory_space<vmem>>, %arg13: memref<1x1x128xf32, #tpu.memory_space<vmem>>, %arg14: memref<9x2x9x256xbf16, #tpu.memory_space<vmem>>) attributes {dimension_semantics = [#tpu.dimension_semantics<parallel>], iteration_bounds = array<i64: 2>, scalar_prefetch = 0 : i64, scratch_operands = 1 : i64, tpu.core_type = #tpu.core_type<tc>, window_params = [{transform_indices = @transform_0, window_bounds = array<i64: 1, 8, 2, 8, 256>}, {pipeline_mode = #tpu.pipeline_mode<synchronous>, transform_indices = @transform_1, window_bounds = array<i64: 3, 384, 128>}, {pipeline_mode = #tpu.pipeline_mode<synchronous>, transform_indices = @transform_2, window_bounds = array<i64: 1, 128>}, {pipeline_mode = #tpu.pipeline_mode<synchronous>, transform_indices = @transform_3, window_bounds = array<i64: 1, 128>}, {pipeline_mode = #tpu.pipeline_mode<synchronous>, transform_indices = @transform_4, window_bounds = array<i64: 128, 128>}, {pipeline_mode = #tpu.pipeline_mode<synchronous>, transform_indices = @transform_5, window_bounds = array<i64: 1, 128>}, {pipeline_mode = #tpu.pipeline_mode<synchronous>, transform_indices = @transform_6, window_bounds = array<i64: 1, 128>}, {pipeline_mode = #tpu.pipeline_mode<synchronous>, transform_indices = @transform_7, window_bounds = array<i64: 128, 128>}, {pipeline_mode = #tpu.pipeline_mode<synchronous>, transform_indices = @transform_8, window_bounds = array<i64: 1, 128>}, {pipeline_mode = #tpu.pipeline_mode<synchronous>, transform_indices = @transform_9, window_bounds = array<i64: 1, 128>}, {pipeline_mode = #tpu.pipeline_mode<synchronous>, transform_indices = @transform_10, window_bounds = array<i64: 128, 128>}, {pipeline_mode = #tpu.pipeline_mode<synchronous>, transform_indices = @transform_11, window_bounds = array<i64: 1, 128>}, {transform_indices = @transform_12, window_bounds = array<i64: 1, 1, 128>}]} {
    %cst = arith.constant 0.000000e+00 : bf16
    %0 = vector.broadcast %cst : bf16 to vector<9x2x9x256xbf16>
    %c0 = arith.constant 0 : index
    %c0_0 = arith.constant 0 : index
    %c0_1 = arith.constant 0 : index
    %c0_2 = arith.constant 0 : index
    %1 = vector.load %arg14[%c0, %c0_0, %c0_1, %c0_2] : memref<9x2x9x256xbf16, #tpu.memory_space<vmem>>, vector<9x2x9x256xbf16>
    tpu.vector_store %arg14[%c0, %c0_0, %c0_1, %c0_2], %0 {strides = array<i32>} : memref<9x2x9x256xbf16, #tpu.memory_space<vmem>>, vector<9x2x9x256xbf16>,
    %c0_3 = arith.constant 0 : index
    %c0_4 = arith.constant 0 : index
    %c0_5 = arith.constant 0 : index
    %c0_6 = arith.constant 0 : index
    %c0_7 = arith.constant 0 : index
    %2 = vector.load %arg1[%c0_3, %c0_4, %c0_5, %c0_6, %c0_7] : memref<1x8x2x8x256xbf16, #tpu.memory_space<vmem>>, vector<1x8x2x8x256xbf16>
    %3 = vector.shape_cast %2 : vector<1x8x2x8x256xbf16> to vector<8x2x8x256xbf16>
    %c1 = arith.constant 1 : index
    %c0_8 = arith.constant 0 : index
    %c1_9 = arith.constant 1 : index
    %c0_10 = arith.constant 0 : index
    %4 = vector.load %arg14[%c1, %c0_8, %c1_9, %c0_10] : memref<9x2x9x256xbf16, #tpu.memory_space<vmem>>, vector<8x2x8x256xbf16>
    tpu.vector_store %arg14[%c1, %c0_8, %c1_9, %c0_10], %3 {strides = array<i32>} : memref<9x2x9x256xbf16, #tpu.memory_space<vmem>>, vector<8x2x8x256xbf16>,
    %c1_11 = arith.constant 1 : index
    %c0_12 = arith.constant 0 : index
    %c1_13 = arith.constant 1 : index
    %c0_14 = arith.constant 0 : index
    %5 = vector.load %arg14[%c1_11, %c0_12, %c1_13, %c0_14] : memref<9x2x9x256xbf16, #tpu.memory_space<vmem>>, vector<8x1x8x128xbf16>
    %6 = vector.shape_cast %5 : vector<8x1x8x128xbf16> to vector<8x8x128xbf16>
    %7 = vector.shape_cast %6 : vector<8x8x128xbf16> to vector<64x128xbf16>
    %cst_15 = arith.constant 0.000000e+00 : f32
    %8 = vector.broadcast %cst_15 : f32 to vector<64x128xf32>
    %c0_16 = arith.constant 0 : index
    %c1_17 = arith.constant 1 : index
    %c0_18 = arith.constant 0 : index
    %c128 = arith.constant 128 : index
    %9 = vector.load %arg14[%c0_16, %c1_17, %c0_18, %c128] : memref<9x2x9x256xbf16, #tpu.memory_space<vmem>>, vector<8x1x8x128xbf16>
    %10 = vector.shape_cast %9 : vector<8x1x8x128xbf16> to vector<8x8x128xbf16>
    %11 = vector.shape_cast %10 : vector<8x8x128xbf16> to vector<64x128xbf16>
    %c0_19 = arith.constant 0 : index
    %c1_20 = arith.constant 1 : index
    %c1_21 = arith.constant 1 : index
    %c0_22 = arith.constant 0 : index
    %12 = vector.load %arg14[%c0_19, %c1_20, %c1_21, %c0_22] : memref<9x2x9x256xbf16, #tpu.memory_space<vmem>>, vector<8x1x8x128xbf16>
    %13 = vector.shape_cast %12 : vector<8x1x8x128xbf16> to vector<8x8x128xbf16>
    %14 = vector.shape_cast %13 : vector<8x8x128xbf16> to vector<64x128xbf16>
    %c0_23 = arith.constant 0 : index
    %c1_24 = arith.constant 1 : index
    %c1_25 = arith.constant 1 : index
    %c128_26 = arith.constant 128 : index
    %15 = vector.load %arg14[%c0_23, %c1_24, %c1_25, %c128_26] : memref<9x2x9x256xbf16, #tpu.memory_space<vmem>>, vector<8x1x8x128xbf16>
    %16 = vector.shape_cast %15 : vector<8x1x8x128xbf16> to vector<8x8x128xbf16>
    %17 = vector.shape_cast %16 : vector<8x8x128xbf16> to vector<64x128xbf16>
    %18 = tpu.concatenate %11, %14, %17 in 1 : vector<64x128xbf16>, vector<64x128xbf16>, vector<64x128xbf16> -> vector<64x384xbf16>
    %c0_27 = arith.constant 0 : index
    %c0_28 = arith.constant 0 : index
    %c0_29 = arith.constant 0 : index
    %19 = vector.load %arg2[%c0_27, %c0_28, %c0_29] : memref<3x384x128xbf16, #tpu.memory_space<vmem>>, vector<1x384x128xbf16>
    %20 = vector.shape_cast %19 : vector<1x384x128xbf16> to vector<384x128xbf16>
    %cst_30 = arith.constant dense<0.000000e+00> : vector<64x128xf32>
    %21 = tpu.matmul %18, %20, %cst_30 {dimension_numbers = #tpu.dot_dimension_numbers<[1], [0], [0], [1], [0, 0, 1, 1], [], []>} : vector<64x384xbf16>, vector<384x128xbf16>, vector<64x128xf32> -> vector<64x128xf32>
    %22 = arith.addf %8, %21 : vector<64x128xf32>
    %c1_31 = arith.constant 1 : index
    %c0_32 = arith.constant 0 : index
    %c0_33 = arith.constant 0 : index
    %c128_34 = arith.constant 128 : index
    %23 = vector.load %arg14[%c1_31, %c0_32, %c0_33, %c128_34] : memref<9x2x9x256xbf16, #tpu.memory_space<vmem>>, vector<8x1x8x128xbf16>
    %24 = vector.shape_cast %23 : vector<8x1x8x128xbf16> to vector<8x8x128xbf16>
    %25 = vector.shape_cast %24 : vector<8x8x128xbf16> to vector<64x128xbf16>
    %c1_35 = arith.constant 1 : index
    %c0_36 = arith.constant 0 : index
    %c1_37 = arith.constant 1 : index
    %c0_38 = arith.constant 0 : index
    %26 = vector.load %arg14[%c1_35, %c0_36, %c1_37, %c0_38] : memref<9x2x9x256xbf16, #tpu.memory_space<vmem>>, vector<8x1x8x128xbf16>
    %27 = vector.shape_cast %26 : vector<8x1x8x128xbf16> to vector<8x8x128xbf16>
    %28 = vector.shape_cast %27 : vector<8x8x128xbf16> to vector<64x128xbf16>
    %c1_39 = arith.constant 1 : index
    %c0_40 = arith.constant 0 : index
    %c1_41 = arith.constant 1 : index
    %c128_42 = arith.constant 128 : index
    %29 = vector.load %arg14[%c1_39, %c0_40, %c1_41, %c128_42] : memref<9x2x9x256xbf16, #tpu.memory_space<vmem>>, vector<8x1x8x128xbf16>
    %30 = vector.shape_cast %29 : vector<8x1x8x128xbf16> to vector<8x8x128xbf16>
    %31 = vector.shape_cast %30 : vector<8x8x128xbf16> to vector<64x128xbf16>
    %32 = tpu.concatenate %25, %28, %31 in 1 : vector<64x128xbf16>, vector<64x128xbf16>, vector<64x128xbf16> -> vector<64x384xbf16>
    %c1_43 = arith.constant 1 : index
    %c0_44 = arith.constant 0 : index
    %c0_45 = arith.constant 0 : index
    %33 = vector.load %arg2[%c1_43, %c0_44, %c0_45] : memref<3x384x128xbf16, #tpu.memory_space<vmem>>, vector<1x384x128xbf16>
    %34 = vector.shape_cast %33 : vector<1x384x128xbf16> to vector<384x128xbf16>
    %cst_46 = arith.constant dense<0.000000e+00> : vector<64x128xf32>
    %35 = tpu.matmul %32, %34, %cst_46 {dimension_numbers = #tpu.dot_dimension_numbers<[1], [0], [0], [1], [0, 0, 1, 1], [], []>} : vector<64x384xbf16>, vector<384x128xbf16>, vector<64x128xf32> -> vector<64x128xf32>
    %36 = arith.addf %22, %35 : vector<64x128xf32>
    %c1_47 = arith.constant 1 : index
    %c1_48 = arith.constant 1 : index
    %c0_49 = arith.constant 0 : index
    %c128_50 = arith.constant 128 : index
    %37 = vector.load %arg14[%c1_47, %c1_48, %c0_49, %c128_50] : memref<9x2x9x256xbf16, #tpu.memory_space<vmem>>, vector<8x1x8x128xbf16>
    %38 = vector.shape_cast %37 : vector<8x1x8x128xbf16> to vector<8x8x128xbf16>
    %39 = vector.shape_cast %38 : vector<8x8x128xbf16> to vector<64x128xbf16>
    %c1_51 = arith.constant 1 : index
    %c1_52 = arith.constant 1 : index
    %c1_53 = arith.constant 1 : index
    %c0_54 = arith.constant 0 : index
    %40 = vector.load %arg14[%c1_51, %c1_52, %c1_53, %c0_54] : memref<9x2x9x256xbf16, #tpu.memory_space<vmem>>, vector<8x1x8x128xbf16>
    %41 = vector.shape_cast %40 : vector<8x1x8x128xbf16> to vector<8x8x128xbf16>
    %42 = vector.shape_cast %41 : vector<8x8x128xbf16> to vector<64x128xbf16>
    %c1_55 = arith.constant 1 : index
    %c1_56 = arith.constant 1 : index
    %c1_57 = arith.constant 1 : index
    %c128_58 = arith.constant 128 : index
    %43 = vector.load %arg14[%c1_55, %c1_56, %c1_57, %c128_58] : memref<9x2x9x256xbf16, #tpu.memory_space<vmem>>, vector<8x1x8x128xbf16>
    %44 = vector.shape_cast %43 : vector<8x1x8x128xbf16> to vector<8x8x128xbf16>
    %45 = vector.shape_cast %44 : vector<8x8x128xbf16> to vector<64x128xbf16>
    %46 = tpu.concatenate %39, %42, %45 in 1 : vector<64x128xbf16>, vector<64x128xbf16>, vector<64x128xbf16> -> vector<64x384xbf16>
    %c2 = arith.constant 2 : index
    %c0_59 = arith.constant 0 : index
    %c0_60 = arith.constant 0 : index
    %47 = vector.load %arg2[%c2, %c0_59, %c0_60] : memref<3x384x128xbf16, #tpu.memory_space<vmem>>, vector<1x384x128xbf16>
    %48 = vector.shape_cast %47 : vector<1x384x128xbf16> to vector<384x128xbf16>
    %cst_61 = arith.constant dense<0.000000e+00> : vector<64x128xf32>
    %49 = tpu.matmul %46, %48, %cst_61 {dimension_numbers = #tpu.dot_dimension_numbers<[1], [0], [0], [1], [0, 0, 1, 1], [], []>} : vector<64x384xbf16>, vector<384x128xbf16>, vector<64x128xf32> -> vector<64x128xf32>
    %50 = arith.addf %36, %49 : vector<64x128xf32>
    %c0_62 = arith.constant 0 : index
    %c0_63 = arith.constant 0 : index
    %51 = vector.load %arg3[%c0_62, %c0_63] : memref<1x128xf32, #tpu.memory_space<vmem>>, vector<1x128xf32>
    %52 = vector.broadcast %51 : vector<1x128xf32> to vector<64x128xf32>
    %53 = arith.mulf %50, %52 : vector<64x128xf32>
    %c0_64 = arith.constant 0 : index
    %c0_65 = arith.constant 0 : index
    %54 = vector.load %arg4[%c0_64, %c0_65] : memref<1x128xf32, #tpu.memory_space<vmem>>, vector<1x128xf32>
    %55 = vector.broadcast %54 : vector<1x128xf32> to vector<64x128xf32>
    %56 = arith.addf %53, %55 : vector<64x128xf32>
    %cst_66 = arith.constant 0.000000e+00 : f32
    %57 = vector.broadcast %cst_66 : f32 to vector<64x128xf32>
    %58 = arith.maximumf %56, %57 : vector<64x128xf32>
    %59 = arith.truncf %58 : vector<64x128xf32> to vector<64x128xbf16>
    %c0_67 = arith.constant 0 : index
    %c0_68 = arith.constant 0 : index
    %60 = vector.load %arg5[%c0_67, %c0_68] : memref<128x128xbf16, #tpu.memory_space<vmem>>, vector<128x128xbf16>
    %cst_69 = arith.constant dense<0.000000e+00> : vector<64x128xf32>
    %61 = tpu.matmul %59, %60, %cst_69 {dimension_numbers = #tpu.dot_dimension_numbers<[1], [0], [0], [1], [0, 0, 1, 1], [], []>} : vector<64x128xbf16>, vector<128x128xbf16>, vector<64x128xf32> -> vector<64x128xf32>
    %c0_70 = arith.constant 0 : index
    %c0_71 = arith.constant 0 : index
    %62 = vector.load %arg6[%c0_70, %c0_71] : memref<1x128xf32, #tpu.memory_space<vmem>>, vector<1x128xf32>
    %63 = vector.broadcast %62 : vector<1x128xf32> to vector<64x128xf32>
    %64 = arith.mulf %61, %63 : vector<64x128xf32>
    %c0_72 = arith.constant 0 : index
    %c0_73 = arith.constant 0 : index
    %65 = vector.load %arg7[%c0_72, %c0_73] : memref<1x128xf32, #tpu.memory_space<vmem>>, vector<1x128xf32>
    %66 = vector.broadcast %65 : vector<1x128xf32> to vector<64x128xf32>
    %67 = arith.addf %64, %66 : vector<64x128xf32>
    %c0_74 = arith.constant 0 : index
    %c0_75 = arith.constant 0 : index
    %68 = vector.load %arg8[%c0_74, %c0_75] : memref<128x128xbf16, #tpu.memory_space<vmem>>, vector<128x128xbf16>
    %cst_76 = arith.constant dense<0.000000e+00> : vector<64x128xf32>
    %69 = tpu.matmul %7, %68, %cst_76 {dimension_numbers = #tpu.dot_dimension_numbers<[1], [0], [0], [1], [0, 0, 1, 1], [], []>} : vector<64x128xbf16>, vector<128x128xbf16>, vector<64x128xf32> -> vector<64x128xf32>
    %c0_77 = arith.constant 0 : index
    %c0_78 = arith.constant 0 : index
    %70 = vector.load %arg9[%c0_77, %c0_78] : memref<1x128xf32, #tpu.memory_space<vmem>>, vector<1x128xf32>
    %71 = vector.broadcast %70 : vector<1x128xf32> to vector<64x128xf32>
    %72 = arith.mulf %69, %71 : vector<64x128xf32>
    %c0_79 = arith.constant 0 : index
    %c0_80 = arith.constant 0 : index
    %73 = vector.load %arg10[%c0_79, %c0_80] : memref<1x128xf32, #tpu.memory_space<vmem>>, vector<1x128xf32>
    %74 = vector.broadcast %73 : vector<1x128xf32> to vector<64x128xf32>
    %75 = arith.addf %72, %74 : vector<64x128xf32>
    %76 = arith.addf %67, %75 : vector<64x128xf32>
    %cst_81 = arith.constant 0.000000e+00 : f32
    %77 = vector.broadcast %cst_81 : f32 to vector<64x128xf32>
    %78 = arith.maximumf %76, %77 : vector<64x128xf32>
    %cst_82 = arith.constant dense<0.000000e+00> : vector<128xf32>
    %79 = vector.multi_reduction <add>, %78, %cst_82 [0] : vector<64x128xf32> to vector<128xf32>
    %80 = vector.shape_cast %79 : vector<128xf32> to vector<1x128xf32>
    %cst_83 = arith.constant 6.400000e+01 : f32
    %81 = vector.broadcast %cst_83 : f32 to vector<1x128xf32>
    %82 = arith.divf %80, %81 : vector<1x128xf32>
    %83 = arith.truncf %82 : vector<1x128xf32> to vector<1x128xbf16>
    %c0_84 = arith.constant 0 : index
    %c0_85 = arith.constant 0 : index
    %84 = vector.load %arg11[%c0_84, %c0_85] : memref<128x128xbf16, #tpu.memory_space<vmem>>, vector<128x128xbf16>
    %cst_86 = arith.constant dense<0.000000e+00> : vector<1x128xf32>
    %85 = tpu.matmul %83, %84, %cst_86 {dimension_numbers = #tpu.dot_dimension_numbers<[1], [0], [0], [1], [0, 0, 1, 1], [], []>} : vector<1x128xbf16>, vector<128x128xbf16>, vector<1x128xf32> -> vector<1x128xf32>
    %c0_87 = arith.constant 0 : index
    %c0_88 = arith.constant 0 : index
    %86 = vector.load %arg12[%c0_87, %c0_88] : memref<1x128xf32, #tpu.memory_space<vmem>>, vector<1x128xf32>
    %87 = arith.addf %85, %86 : vector<1x128xf32>
    %88 = vector.shape_cast %87 : vector<1x128xf32> to vector<1x1x128xf32>
    %c0_89 = arith.constant 0 : index
    %c0_90 = arith.constant 0 : index
    %c0_91 = arith.constant 0 : index
    %89 = vector.load %arg13[%c0_89, %c0_90, %c0_91] : memref<1x1x128xf32, #tpu.memory_space<vmem>>, vector<1x1x128xf32>
    tpu.vector_store %arg13[%c0_89, %c0_90, %c0_91], %88 {strides = array<i32>} : memref<1x1x128xf32, #tpu.memory_space<vmem>>, vector<1x1x128xf32>,
    return
  }
  func.func @transform_0(%arg0: i32) -> (i32, i32, i32, i32, i32) {
    %c0_i32 = arith.constant 0 : i32
    %c0_i32_0 = arith.constant 0 : i32
    %c0_i32_1 = arith.constant 0 : i32
    %c0_i32_2 = arith.constant 0 : i32
    %c0_i32_3 = arith.constant 0 : i32
    return %arg0, %c0_i32, %c0_i32_0, %c0_i32_1, %c0_i32_2 : i32, i32, i32, i32, i32
  }
  func.func @transform_1(%arg0: i32) -> (i32, i32, i32) {
    %c0_i32 = arith.constant 0 : i32
    %c0_i32_0 = arith.constant 0 : i32
    %c0_i32_1 = arith.constant 0 : i32
    %c0_i32_2 = arith.constant 0 : i32
    return %c0_i32, %c0_i32_0, %c0_i32_1 : i32, i32, i32
  }
  func.func @transform_2(%arg0: i32) -> (i32, i32) {
    %c0_i32 = arith.constant 0 : i32
    %c0_i32_0 = arith.constant 0 : i32
    %c0_i32_1 = arith.constant 0 : i32
    return %c0_i32, %c0_i32_0 : i32, i32
  }
  func.func @transform_3(%arg0: i32) -> (i32, i32) {
    %c0_i32 = arith.constant 0 : i32
    %c0_i32_0 = arith.constant 0 : i32
    %c0_i32_1 = arith.constant 0 : i32
    return %c0_i32, %c0_i32_0 : i32, i32
  }
  func.func @transform_4(%arg0: i32) -> (i32, i32) {
    %c0_i32 = arith.constant 0 : i32
    %c0_i32_0 = arith.constant 0 : i32
    %c0_i32_1 = arith.constant 0 : i32
    return %c0_i32, %c0_i32_0 : i32, i32
  }
  func.func @transform_5(%arg0: i32) -> (i32, i32) {
    %c0_i32 = arith.constant 0 : i32
    %c0_i32_0 = arith.constant 0 : i32
    %c0_i32_1 = arith.constant 0 : i32
    return %c0_i32, %c0_i32_0 : i32, i32
  }
  func.func @transform_6(%arg0: i32) -> (i32, i32) {
    %c0_i32 = arith.constant 0 : i32
    %c0_i32_0 = arith.constant 0 : i32
    %c0_i32_1 = arith.constant 0 : i32
    return %c0_i32, %c0_i32_0 : i32, i32
  }
  func.func @transform_7(%arg0: i32) -> (i32, i32) {
    %c0_i32 = arith.constant 0 : i32
    %c0_i32_0 = arith.constant 0 : i32
    %c0_i32_1 = arith.constant 0 : i32
    return %c0_i32, %c0_i32_0 : i32, i32
  }
  func.func @transform_8(%arg0: i32) -> (i32, i32) {
    %c0_i32 = arith.constant 0 : i32
    %c0_i32_0 = arith.constant 0 : i32
    %c0_i32_1 = arith.constant 0 : i32
    return %c0_i32, %c0_i32_0 : i32, i32
  }
  func.func @transform_9(%arg0: i32) -> (i32, i32) {
    %c0_i32 = arith.constant 0 : i32
    %c0_i32_0 = arith.constant 0 : i32
    %c0_i32_1 = arith.constant 0 : i32
    return %c0_i32, %c0_i32_0 : i32, i32
  }
  func.func @transform_10(%arg0: i32) -> (i32, i32) {
    %c0_i32 = arith.constant 0 : i32
    %c0_i32_0 = arith.constant 0 : i32
    %c0_i32_1 = arith.constant 0 : i32
    return %c0_i32, %c0_i32_0 : i32, i32
  }
  func.func @transform_11(%arg0: i32) -> (i32, i32) {
    %c0_i32 = arith.constant 0 : i32
    %c0_i32_0 = arith.constant 0 : i32
    %c0_i32_1 = arith.constant 0 : i32
    return %c0_i32, %c0_i32_0 : i32, i32
  }
  func.func @transform_12(%arg0: i32) -> (i32, i32, i32) {
    %c0_i32 = arith.constant 0 : i32
    %c0_i32_0 = arith.constant 0 : i32
    %c0_i32_1 = arith.constant 0 : i32
    return %arg0, %c0_i32, %c0_i32_0 : i32, i32, i32
  }
}

</mosaic_0001>

<bundles_post_ra>
// kernel: _lambda_.3
= control target key start
LH: loop header
LB: loop body
LE: loop exit
PB: predicated region body
PF: predicated region fallthrough
CT: control target
= control target key end

     0   :  { %17 = vsyncpa [#allocation4], 0  ;;  %s5000_s0 = inlined_call_operand.vmem [shape: bf16[2,8,2,8,256], index: 0, kind: input, shape index: {}]   ;;  %s5001_s1 = inlined_call_operand.vmem [shape: bf16[3,384,128], index: 1, kind: input, shape index: {}]   ;;  %s5002_s2 = inlined_call_operand.vmem [shape: f32[1,128], index: 2, kind: input, shape index: {}]   ;;  %s5003_s3 = inlined_call_operand.vmem [shape: f32[1,128], index: 3, kind: input, shape index: {}]   ;;  %s5004_s4 = inlined_call_operand.vmem [shape: bf16[128,128], index: 4, kind: input, shape index: {}]   ;;  %s5005_s5 = inlined_call_operand.vmem [shape: f32[1,128], index: 5, kind: input, shape index: {}]   ;;  %s5006_s6 = inlined_call_operand.vmem [shape: f32[1,128], index: 6, kind: input, shape index: {}]   ;;  %s5007_s7 = inlined_call_operand.vmem [shape: bf16[128,128], index: 7, kind: input, shape index: {}]   ;;  %s5008_s8 = inlined_call_operand.vmem [shape: f32[1,128], index: 8, kind: input, shape index: {}]   ;;  %s5009_s9 = inlined_call_operand.vmem [shape: f32[1,128], index: 9, kind: input, shape index: {}]   ;;  %s5010_s10 = inlined_call_operand.vmem [shape: bf16[128,128], index: 10, kind: input, shape index: {}]   ;;  %s5011_s11 = inlined_call_operand.vmem [shape: f32[1,128], index: 11, kind: input, shape index: {}]   ;;  %s5012_s12 = inlined_call_operand.hbm [shape: f32[2,1,128], index: 12, kind: output, shape index: {}]  }
   0x1   :  { %19 = vsyncpa [#allocation4 + $0x1], 0  ;;  %s4140_s21 = smov 0   ;;  %s4142_s22 = smov 0  }
   0x2   :  { %s4144_s23 = smov 0   ;;  %s4146_s24 = smov 0  }
   0x3 LB: > { %5014 = sst [smem:[#allocation6_spill]] %s4065_s23  ;;  %s4161_s25 = sadd.s32 4294967295, %s4069_s24   ;;  %s4069_s24 = sphi %s4146_s24, %s5028_s24   ;;  %s4065_s23 = sphi %s4144_s23, %s5025_s23   ;;  %s4061_s22 = sphi %s4142_s22, %s5027_s22   ;;  %s4057_s21 = sphi %s4140_s21, %s5026_s21  }
   0x4   : > { %s3254_s26 = sadd.s32 4294967294, %s4069_s24   ;;  %s4165_s27 = sadd.s32 1, %s4069_s24  }
   0x5   : > { %s289_s28 = sadd.s32 1, %s4065_s23  ;;  %s286_s29 = ssub.s32 %s4069_s24, %s4165_s27 }
   0x6   : > { %p299_p0 = scmp.ne.s32.totalorder %s4065_s23, %s4061_s22  ;;  %p287_p1 = scmp.eq.s32.totalorder %s286_s29, 0 }
   0x7   : > { %p300_p2 = scmp.eq.s32.totalorder %s4161_s25, 1  ;;  %p305_p3 = scmp.ne.s32.totalorder %s4061_s22, %s4057_s21 }
   0x8   : > { %p306_p4 = scmp.eq.s32.totalorder %s3254_s26, 1  ;;  %p3257_p7 = scmp.ge.s32.totalorder %s4069_s24, 1 }
   0x9   : > { %s4176_s30 = scalar_select %p287_p1, %s4065_s23, %s289_s28  }
   0xa   : > { %p4178_p5 = por %p300_p2, %p299_p0  ;;  %p4182_p6 = por %p306_p4, %p305_p3 }
   0xb   : > { %5015 = sst [smem:[#allocation7_spill]] %s4176_s30  ;;  %p365_p8 = scmp.lt.s32.totalorder %s4069_s24, 3 }
   0xd   : > { %p366_p9 = pnand %p3257_p7, %p365_p8 }
   0xe   : > { %v3909_v0 = vld [vmem:[%s5001_s1 + $0x100] sm:$0xff] (!%p366_p9)   ;;  %v4071_v3 = vmov (!%p366_p9), 0   ;;  %v3912_v4 = vld [vmem:[%s5001_s1 + $0x108] sm:$0xff] (!%p366_p9)   ;;  %v3915_v7 = vld [vmem:[%s5001_s1 + $0x110] sm:$0xff] (!%p366_p9)   ;;  %p406_p10 = scmp.lt.s32.totalorder (!%p366_p9), %s4161_s25, 1  ;;  %vm413_vm0 = vcmask (!%p366_p9), 1040384  }
   0xf   : > { %369 = sbr.rel (%p366_p9) target bundleno = 910 (0x38e), region = 68  ;;  %v3910_v1 = vld [vmem:[%s5001_s1 + $0x140] sm:$0xff] (!%p366_p9)   ;;  %3498 = vmatprep.subr.bf16.mxu0 (!%p366_p9), %v3909_v0  ;;  %412 = vst [vmem:[#allocation2] sm:$0xff] (!%p366_p9), %v4071_v3  ;;  %423 = vst [vmem:[#allocation2 + $0x10] sm:$0xff] (!%p366_p9), %v4071_v3  ;;  %v3913_v5 = vld [vmem:[%s5001_s1 + $0x148] sm:$0xff] (!%p366_p9)   ;;  %vm416_vm1 = vcmask (!%p366_p9), 1044484  }
  0x10   : > { %v3911_v2 = vld [vmem:[%s5001_s1 + $0xc0] sm:$0xff] (!%p366_p9)   ;;  %3687 = vmatprep.subr.bf16.mxu1 (!%p366_p9), %v3910_v1  ;;  %v3914_v6 = vld [vmem:[%s5001_s1 + $0xc8] sm:$0xff] (!%p366_p9)   ;;  %v3916_v8 = vld [vmem:[%s5001_s1 + $0x150] sm:$0xff] (!%p366_p9)   ;;  %vm668_vm2 = vcmask (!%p366_p9), 1043456   ;;  %vm671_vm3 = vcmask (!%p366_p9), 1047556   ;;  %s3494_s29 = sshll.u32 (!%p366_p9), %s4161_s25, 4 }
  0x11   : > { %3499 = vmatpush3.bf16.msra.mxu0 (!%p366_p9), %v3911_v2  ;;  %3688 = vmatpush3.bf16.msra.mxu1 (!%p366_p9), %v3910_v1  ;;  %v3917_v9 = vld [vmem:[%s5001_s1 + $0xd0] sm:$0xff] (!%p366_p9)   ;;  %v3918_v10 = vld [vmem:[%s5001_s1 + $0x118] sm:$0xff] (!%p366_p9)   ;;  %v3921_v13 = vld [vmem:[%s5001_s1 + $0x120] sm:$0xff] (!%p366_p9)   ;;  %vm414_vm4 = vsmask.f32 (!%p366_p9), 256  ;;  %s4958_s17 = scalar_lea.hbm (!%p366_p9), %s5012_s12, %s3494_s29  ;;  %s4074_s19 = smov (!%p366_p9), [#allocation3]  }
  0x12   : > { %3500 = vmatprep.subr.bf16.mxu0 (!%p366_p9), %v3912_v4  ;;  %3689 = vmatprep.subr.bf16.mxu1 (!%p366_p9), %v3913_v5  ;;  %v3919_v11 = vld [vmem:[%s5001_s1 + $0x158] sm:$0xff] (!%p366_p9)   ;;  %v3922_v14 = vld [vmem:[%s5001_s1 + $0x160] sm:$0xff] (!%p366_p9)   ;;  %v3924_v16 = vld [vmem:[%s5001_s1 + $0x128] sm:$0xff] (!%p366_p9)   ;;  %vm417_vm5 = vsmask.f32 (!%p366_p9), 4352  ;;  %s4011_s20 = sshll.u32 (!%p366_p9), %s4074_s19, 4  ;;  %s4012_s20 = int_to_ptr.vmem [resolvable:$false] %s4011_s20 }
  0x13   : > { %v3920_v12 = vld [vmem:[%s5001_s1 + $0xd8] sm:$0xff] (!%p366_p9)   ;;  %v3923_v15 = vld [vmem:[%s5001_s1 + $0xe0] sm:$0xff] (!%p366_p9)   ;;  %v3925_v17 = vld [vmem:[%s5001_s1 + $0x168] sm:$0xff] (!%p366_p9)   ;;  %vm669_vm8 = vsmask.f32 (!%p366_p9), 7938  ;;  %s4013_s26 = scalar_lea.vmem (!%p366_p9), %s4012_s20, 32 }
  0x14   : > { %v3926_v18 = vld [vmem:[%s5001_s1 + $0xe8] sm:$0xff] (!%p366_p9)   ;;  %v3927_v19 = vld [vmem:[%s5001_s1 + $0x130] sm:$0xff] (!%p366_p9)   ;;  %v3930_v23 = vld [vmem:[%s5001_s1 + $0x138] sm:$0xff] (!%p366_p9)   ;;  %vm672_vm9 = vsmask.f32 (!%p366_p9), 7954 }
  0x15   : > { %3501 = vmatpush3.bf16.msra.mxu0 (!%p366_p9), %v3914_v6  ;;  %3690 = vmatpush3.bf16.msra.mxu1 (!%p366_p9), %v3913_v5  ;;  %v3928_v20 = vld [vmem:[%s5001_s1 + $0x170] sm:$0xff] (!%p366_p9)   ;;  %v420_v21 = vld [vmem:[#allocation2 + $0x8] sm:$0x11] (!%p366_p9)  ;;  %vm415_vm6 = vmand (!%p366_p9), %vm413_vm0, %vm414_vm4  ;;  %vm787_vm14 = vsmask.f32 (!%p366_p9), 3328 }
  0x16   : > { %3502 = vmatprep.subr.bf16.mxu0 %v3915_v7  ;;  %3691 = vmatprep.subr.bf16.mxu1 %v3916_v8  ;;  %s407_s16 = scalar_select %p406_p10, %s4161_s25, 1  ;;  %v3929_v22 = vld [vmem:[%s5001_s1 + $0xf0] sm:$0xff]   ;;  %v428_v25 = vld [vmem:[#allocation2 + $0x28] sm:$0x11]  ;;  %v3931_v29 = vld [vmem:[%s5001_s1 + $0x178] sm:$0xff]  }
  0x17   : > { %v436_v26 = vld [vmem:[#allocation2 + $0x48] sm:$0x11]  ;;  %vm418_vm7 = vmand %vm416_vm1, %vm417_vm5  ;;  %v3932_v31 = vld [vmem:[%s5001_s1 + $0xf8] sm:$0xff]   ;;  %vm788_vm15 = vsmask.f32 7440  ;;  %vm4073_vm1 = vmmov 0  }
  0x18   : > { %s3497_s28 = sshll.u32 %s407_s16, 7  ;;  %vm4271_vm10 = vmor %vm418_vm7, %vm415_vm6  ;;  %v3933_v39 = vld [vmem:[%s5001_s1 + $0x40] sm:$0xff]   ;;  %v444_v50 = vld [vmem:[#allocation2 + $0x68] sm:$0x11]  ;;  %s404_s16 = sand.u32 1, %s4061_s22  }
  0x19   : > { %3503 = vmatpush3.bf16.msra.mxu0 %v3917_v9  ;;  %3692 = vmatpush3.bf16.msra.mxu1 %v3916_v8  ;;  %s4250_s23 = scalar_lea.vmem %s5000_s0, %s3497_s28  ;;  %v421_v36 = vsel %vm4271_vm10, 0, %v420_v21  ;;  %v429_v37 = vsel %vm4271_vm10, 0, %v428_v25  ;;  %v437_v38 = vsel %vm4271_vm10, 0, %v436_v26  ;;  %vm670_vm11 = vmand %vm668_vm2, %vm669_vm8  ;;  %v4288_v40 = vld [vmem:[%s5001_s1 + $0x80] sm:$0xff]   ;;  %v452_v51 = vld [vmem:[#allocation2 + $0x88] sm:$0x11] }
  0x1a   : > { %3504 = vmatprep.subr.bf16.mxu0 %v3918_v10  ;;  %3693 = vmatprep.subr.bf16.mxu1 %v3919_v11  ;;  %v491_v24 = vld [vmem:[%s4250_s23] sm:$0xff]  ;;  %v493_v30 = vld [vmem:[%s4250_s23 + $0x10] sm:$0xff]  ;;  %422 = vst [vmem:[#allocation2 + $0x8] sm:$0x11] %v421_v36  ;;  %430 = vst [vmem:[#allocation2 + $0x28] sm:$0x11] %v429_v37 }
  0x1b   : > { %v508_v27 = vshrl.u32 %v491_v24, 16  ;;  %v511_v28 = vshll.u32 %v491_v24, 16  ;;  %v524_v34 = vshrl.u32 %v493_v30, 16  ;;  %v527_v35 = vshll.u32 %v493_v30, 16  ;;  %v495_v41 = vld [vmem:[%s4250_s23 + $0x20] sm:$0xff]  ;;  %vm673_vm12 = vmand %vm671_vm3, %vm672_vm9  ;;  %v497_v54 = vld [vmem:[%s4250_s23 + $0x30] sm:$0xff] }
  0x1c   : > { %438 = vst [vmem:[#allocation2 + $0x48] sm:$0x11] %v437_v38  ;;  %vm4293_vm13 = vmor %vm673_vm12, %vm670_vm11  ;;  %v540_v45 = vshrl.u32 %v495_v41, 16  ;;  %v543_v46 = vshll.u32 %v495_v41, 16  ;;  %v445_v52 = vsel %vm4271_vm10, 0, %v444_v50  ;;  %v453_v53 = vsel %vm4271_vm10, 0, %v452_v51 }
  0x1d   : > { %3505 = vmatpush3.bf16.msra.mxu0 %v3920_v12  ;;  %3694 = vmatpush3.bf16.msra.mxu1 %v3919_v11  ;;  %v510_v33 = vrot.slane %v508_v27, 7  ;;  %v526_v43 = vrot.slane %v524_v34, 7  ;;  %446 = vst [vmem:[#allocation2 + $0x68] sm:$0x11] %v445_v52  ;;  %454 = vst [vmem:[#allocation2 + $0x88] sm:$0x11] %v453_v53 }
  0x1e   : > { %3506 = vmatprep.subr.bf16.mxu0 %v3921_v13  ;;  %3695 = vmatprep.subr.bf16.mxu1 %v3922_v14  ;;  %v542_v55 = vrot.slane %v540_v45, 7  ;;  %v556_v58 = vshrl.u32 %v497_v54, 16  ;;  %v559_v59 = vshll.u32 %v497_v54, 16  ;;  %vm4333_vm0 = vmor %vm787_vm14, %vm788_vm15  ;;  %s405_s15 = scalar_lea.vmem [#allocation3], %s404_s16  ;;  %s3187_s18 = scalar_lea.sflag [#allocation4], %s404_s16 }
  0x1f   : > { %v513_v42 = vor.u32 %v511_v28, %v510_v33  ;;  %v514_v47 = vrot.slane %v510_v33, 4  ;;  %v529_v48 = vor.u32 %v527_v35, %v526_v43  ;;  %v530_v56 = vrot.slane %v526_v43, 4  ;;  %v3983_v43 = vld [vmem:[%s5004_s4 + $0x8] sm:$0xff]   ;;  %s3199_s30 = sshll.u32 %s405_s15, 4  ;;  %s4960_s30 = int_to_ptr.vmem [resolvable:$true] %s3199_s30 }
  0x20   : > { %v545_v60 = vor.u32 %v543_v46, %v542_v55  ;;  %v558_v61 = vrot.slane %v556_v58, 7  ;;  %v546_v3 = vrot.slane %v542_v55, 4  ;;  %s4007_s25 = scalar_lea.vmem %s4960_s30, 16  ;;  %p4014_p0 = scmp.lt.s32.totalorder %s4960_s30, %s4012_s20 }
  0x21   : > { %3507 = vmatpush3.bf16.msra.mxu0 %v3923_v15  ;;  %3696 = vmatpush3.bf16.msra.mxu1 %v3922_v14  ;;  %v676_v49 = vsel %vm4293_vm13, %v513_v42, 0  ;;  %v688_v57 = vsel %vm4293_vm13, %v529_v48, 0  ;;  %v678_v62 = vld [vmem:[#allocation2 + $0x28] sm:$0x11]  ;;  %p4008_p11 = scmp.ne.s32.totalorder %s4960_s30, %s4007_s25  ;;  %p4015_p1 = scmp.lt.s32.totalorder %s4013_s26, %s4007_s25 }
  0x22   : > { %3508 = vmatprep.subr.bf16.mxu0 %v3924_v16  ;;  %3697 = vmatprep.subr.bf16.mxu1 %v3925_v17  ;;  %677 = vst [vmem:[#allocation2 + $0x20] sm:$0xff] %v676_v49  ;;  %689 = vst [vmem:[#allocation2 + $0x40] sm:$0xff] %v688_v57  ;;  %v700_v0 = vsel %vm4293_vm13, %v545_v60, 0  ;;  %v679_v1 = vsel %vm4271_vm10, %v514_v47, %v678_v62  ;;  %v561_v4 = vor.u32 %v559_v59, %v558_v61  ;;  %v3935_v59 = vld [vmem:[%s5001_s1] sm:$0xff]  }
  0x23   : > { %v690_v63 = vld [vmem:[#allocation2 + $0x48] sm:$0x11]  ;;  %701 = vst [vmem:[#allocation2 + $0x60] sm:$0xff] %v700_v0  ;;  %680 = vst [vmem:[#allocation2 + $0x28] sm:$0x11] %v679_v1  ;;  %v562_v7 = vrot.slane %v558_v61, 4  ;;  %p4009_p12 = pnand %p4008_p11, %p4178_p5  ;;  %p4016_p2 = por %p4015_p1, %p4014_p0 }
  0x24   : > { %v691_v2 = vsel %vm4271_vm10, %v530_v56, %v690_v63  ;;  %v712_v8 = vsel %vm4293_vm13, %v561_v4, 0  ;;  %v702_v13 = vld [vmem:[#allocation2 + $0x68] sm:$0x11] }
  0x25   : > { %3509 = vmatpush3.bf16.msra.mxu0 %v3926_v18  ;;  %3698 = vmatpush3.bf16.msra.mxu1 %v3925_v17  ;;  %692 = vst [vmem:[#allocation2 + $0x48] sm:$0x11] %v691_v2  ;;  %713 = vst [vmem:[#allocation2 + $0x80] sm:$0xff] %v712_v8  ;;  %v703_v16 = vsel %vm4271_vm10, %v546_v3, %v702_v13  ;;  %v714_v17 = vld [vmem:[#allocation2 + $0x88] sm:$0x11]  ;;  %p4010_p13 = pneg %p4009_p12 }
  0x26   : > { %3510 = vmatprep.subr.bf16.mxu0 %v3927_v19  ;;  %3699 = vmatprep.subr.bf16.mxu1 %v3928_v20  ;;  %704 = vst [vmem:[#allocation2 + $0x68] sm:$0x11] %v703_v16  ;;  %v715_v36 = vsel %vm4271_vm10, %v562_v7, %v714_v17  ;;  %v3936_v0 = vld [vmem:[%s5001_s1 + $0x48] sm:$0xff]  }
  0x27   : > { %716 = vst [vmem:[#allocation2 + $0x88] sm:$0x11] %v715_v36  ;;  %p4017_p3 = pnand %p4016_p2, %p4010_p13 }
  0x29   : > { %3511 = vmatpush3.bf16.msra.mxu0 %v3929_v22  ;;  %3700 = vmatpush3.bf16.msra.mxu1 %v3928_v20  ;;  %v771_v5 = vld [vmem:[#allocation2 + $0x20] sm:$0xf]  ;;  %v4313_v6 = vld [vmem:[#allocation2 + $0x24] sm:$0xf] }
  0x2a   : > { %3512 = vmatprep.subr.bf16.mxu0 %v3930_v23  ;;  %3701 = vmatprep.subr.bf16.mxu1 %v3931_v29  ;;  %v791_v9 = vshrl.u32 %v771_v5, 16  ;;  %v794_v10 = vshll.u32 %v771_v5, 16  ;;  %v1280_v11 = vshrl.u32 %v4313_v6, 16  ;;  %v1283_v12 = vshll.u32 %v4313_v6, 16  ;;  %v773_v14 = vld [vmem:[#allocation2 + $0x40] sm:$0xf] }
  0x2b   : > { %v4319_v15 = vld [vmem:[#allocation2 + $0x44] sm:$0xf]  ;;  %v805_v20 = vshrl.u32 %v773_v14, 16  ;;  %v808_v21 = vshll.u32 %v773_v14, 16  ;;  %v772_v30 = vld [vmem:[#allocation2 + $0x28] sm:$0x1] }
  0x2c   : > { %v793_v18 = vrot.slane %v791_v9, 4  ;;  %v796_v19 = vrot.slane %v794_v10, 5  ;;  %v1282_v22 = vrot.slane %v1280_v11, 4  ;;  %v1285_v23 = vrot.slane %v1283_v12, 5  ;;  %v1271_v34 = vld [vmem:[#allocation2 + $0x2c] sm:$0x1] }
  0x2d   : > { %3513 = vmatpush3.bf16.msra.mxu0 %v3932_v31  ;;  %3702 = vmatpush3.bf16.msra.mxu1 %v3931_v29  ;;  %v1294_v24 = vshrl.u32 %v4319_v15, 16  ;;  %v807_v26 = vrot.slane %v805_v20, 4  ;;  %v810_v27 = vrot.slane %v808_v21, 5  ;;  %v1297_v28 = vshll.u32 %v4319_v15, 16  ;;  %v4325_v29 = vld [vmem:[#allocation2 + $0x64] sm:$0xf] }
  0x2e   : > { %3550 = vmatprep.subr.bf16.mxu0 %v3933_v39  ;;  %3711 = vmatprep.subr.bf16.mxu1 %v4288_v40  ;;  %v797_v25 = vor.u32 %v796_v19, %v793_v18  ;;  %v774_v31 = vld [vmem:[#allocation2 + $0x48] sm:$0x1]  ;;  %v3272_v33 = vcombine.low %v4313_v6, %v4319_v15  ;;  %v1286_v35 = vor.u32 %v1285_v23, %v1282_v22  ;;  %v800_v38 = vshll.u32 %v772_v30, 16  ;;  %v1272_v42 = vld [vmem:[#allocation2 + $0x4c] sm:$0x1] }
  0x2f   : > { %v811_v39 = vor.u32 %v810_v27, %v807_v26  ;;  %v814_v41 = vshll.u32 %v774_v31, 16  ;;  %v1289_v46 = vshll.u32 %v1271_v34, 16  ;;  %v1296_v47 = vrot.slane %v1294_v24, 4  ;;  %v4337_v53 = vld [vmem:[#allocation2 + $0x84] sm:$0xf]  ;;  %v3938_v14 = vld [vmem:[%s5001_s1 + $0x8] sm:$0xff]  }
  0x30   : > { %v798_v37 = vrot.slane %v797_v25, 4  ;;  %v1287_v45 = vrot.slane %v1286_v35, 4  ;;  %v1299_v48 = vrot.slane %v1297_v28, 5  ;;  %v802_v49 = vrot.slane %v800_v38, 5  ;;  %v1273_v56 = vld [vmem:[#allocation2 + $0x6c] sm:$0x1] }
  0x31   : > { %v812_v50 = vrot.slane %v811_v39, 4  ;;  %v816_v51 = vrot.slane %v814_v41, 5  ;;  %v1303_v52 = vshll.u32 %v1272_v42, 16  ;;  %v1291_v54 = vrot.slane %v1289_v46, 5  ;;  %v775_v1 = vld [vmem:[#allocation2 + $0x60] sm:$0xf] }
  0x32   : > { %v1300_v55 = vor.u32 %v1299_v48, %v1296_v47  ;;  %v1308_v57 = vshrl.u32 %v4325_v29, 16  ;;  %v1311_v58 = vshll.u32 %v4325_v29, 16  ;;  %v803_v60 = vsel %vm4333_vm0, %v798_v37, %v802_v49  ;;  %v776_v2 = vld [vmem:[#allocation2 + $0x68] sm:$0x1]  ;;  %v777_v7 = vld [vmem:[#allocation2 + $0x80] sm:$0xf] }
  0x33   : > { %v817_v61 = vsel %vm4333_vm0, %v812_v50, %v816_v51  ;;  %v1305_v62 = vrot.slane %v1303_v52, 5  ;;  %v1317_v63 = vshll.u32 %v1273_v56, 16  ;;  %v1292_v4 = vsel %vm4333_vm0, %v1287_v45, %v1291_v54  ;;  %v1274_v13 = vld [vmem:[#allocation2 + $0x8c] sm:$0x1]  ;;  %v778_v15 = vld [vmem:[#allocation2 + $0x88] sm:$0x1] }
  0x34   : > { %v4351_v3 = vcombine.low %v803_v60, %v817_v61  ;;  %v1301_v5 = vrot.slane %v1300_v55, 4  ;;  %v1310_v6 = vrot.slane %v1308_v57, 4  ;;  %v1313_v8 = vrot.slane %v1311_v58, 5  ;;  %v3939_v31 = vld [vmem:[%s5001_s1 + $0x50] sm:$0xff]   ;;  %v468_v39 = vld [vmem:[#allocation2 + $0xc8] sm:$0x11] }
  0x35   : > { %v1319_v9 = vrot.slane %v1317_v63, 5  ;;  %v1322_v10 = vshrl.u32 %v4337_v53, 16  ;;  %v1325_v11 = vshll.u32 %v4337_v53, 16  ;;  %v819_v16 = vshrl.u32 %v775_v1, 16  ;;  %v3941_v38 = vld [vmem:[%s5001_s1 + $0x10] sm:$0xff]   ;;  %v499_v41 = vld [vmem:[%s4250_s23 + $0x40] sm:$0xff] }
  0x36   : > { %1672 = vmatprep.mubr.bf16.mxu0 %v4351_v3  ;;  %v1306_v12 = vsel %vm4333_vm0, %v1301_v5, %v1305_v62  ;;  %v822_v17 = vshll.u32 %v775_v1, 16  ;;  %v1314_v19 = vor.u32 %v1313_v8, %v1310_v6  ;;  %v1331_v22 = vshll.u32 %v1274_v13, 16  ;;  %v3942_v48 = vld [vmem:[%s5001_s1 + $0x58] sm:$0xff]   ;;  %v501_v49 = vld [vmem:[%s4250_s23 + $0x50] sm:$0xff]  ;;  %v3937_v60 = vld [vmem:[%s5001_s1 + $0x88] sm:$0xff]  }
  0x37   : > { %1673 = vmatmul.mubr.bf16.vlgmr.msra.gmra.mrb[0].mxu0 %v3272_v33  ;;  %v3280_v18 = vcombine.low %v1292_v4, %v1306_v12  ;;  %v1324_v20 = vrot.slane %v1322_v10, 4  ;;  %v1327_v21 = vrot.slane %v1325_v11, 5  ;;  %v821_v23 = vrot.slane %v819_v16, 4  ;;  %v460_v33 = vld [vmem:[#allocation2 + $0xa8] sm:$0x11]  ;;  %v3944_v4 = vld [vmem:[%s5001_s1 + $0x18] sm:$0xff]  }
  0x38   : > { %3551 = vmatpush3.bf16.msra.mxu0 %v3935_v59  ;;  %v824_v24 = vrot.slane %v822_v17, 5  ;;  %v828_v25 = vshll.u32 %v776_v2, 16  ;;  %v1315_v26 = vrot.slane %v1314_v19, 4  ;;  %v833_v28 = vshrl.u32 %v777_v7, 16  ;;  %v3940_v2 = vld [vmem:[%s5001_s1 + $0x90] sm:$0xff]   ;;  %v3945_v10 = vld [vmem:[%s5001_s1 + $0x60] sm:$0xff]  }
  0x39   : > { %3703 = vmatprep.mubr.bf16.mxu1 %v3280_v18  ;;  %v1328_v27 = vor.u32 %v1327_v21, %v1324_v20  ;;  %3552 = vmatprep.subr.bf16.mxu0 %v3936_v0  ;;  %v836_v30 = vshll.u32 %v777_v7, 16  ;;  %v1333_v34 = vrot.slane %v1331_v22, 5  ;;  %v842_v37 = vshll.u32 %v778_v15, 16  ;;  %v3947_v13 = vld [vmem:[%s5001_s1 + $0x20] sm:$0xff]   ;;  %v484_v16 = vld [vmem:[#allocation2 + $0x108] sm:$0x11] }
  0x3a   : > { %v825_v35 = vor.u32 %v824_v24, %v821_v23  ;;  %v830_v36 = vrot.slane %v828_v25, 5  ;;  %v1320_v42 = vsel %vm4333_vm0, %v1315_v26, %v1319_v9  ;;  %v835_v46 = vrot.slane %v833_v28, 4  ;;  %v503_v17 = vld [vmem:[%s4250_s23 + $0x60] sm:$0xff]  ;;  %v505_v18 = vld [vmem:[%s4250_s23 + $0x70] sm:$0xff]  ;;  %v3943_v28 = vld [vmem:[%s5001_s1 + $0x98] sm:$0xff]  }
  0x3b   : > { %v1329_v45 = vrot.slane %v1328_v27, 4  ;;  %v838_v47 = vrot.slane %v836_v30, 5  ;;  %v844_v51 = vrot.slane %v842_v37, 5  ;;  %v461_v52 = vsel %vm4271_vm10, 0, %v460_v33 }
  0x3c   : > { %3553 = vmatpush3.bf16.msra.mxu0 %v3938_v14  ;;  %v826_v50 = vrot.slane %v825_v35, 4  ;;  %v469_v54 = vsel %vm4271_vm10, 0, %v468_v39  ;;  %462 = vst [vmem:[#allocation2 + $0xa8] sm:$0x11] %v461_v52  ;;  %v572_v57 = vshrl.u32 %v499_v41, 16  ;;  %v575_v58 = vshll.u32 %v499_v41, 16 }
  0x3d   : > { %v1334_v55 = vsel %vm4333_vm0, %v1329_v45, %v1333_v34  ;;  %v839_v56 = vor.u32 %v838_v47, %v835_v46  ;;  %3554 = vmatprep.subr.bf16.mxu0 %v3939_v31  ;;  %470 = vst [vmem:[#allocation2 + $0xc8] sm:$0x11] %v469_v54  ;;  %v588_v61 = vshrl.u32 %v501_v49, 16  ;;  %v591_v62 = vshll.u32 %v501_v49, 16  ;;  %v476_v14 = vld [vmem:[#allocation2 + $0xe8] sm:$0x11] }
  0x3e   : > { %v3281_v59 = vcombine.low %v1320_v42, %v1334_v55  ;;  %v831_v63 = vsel %vm4333_vm0, %v826_v50, %v830_v36  ;;  %v574_v1 = vrot.slane %v572_v57, 7  ;;  %v3273_v7 = vcombine.low %v4325_v29, %v4337_v53  ;;  %v3948_v53 = vld [vmem:[%s5001_s1 + $0x68] sm:$0xff]   ;;  %v3946_v34 = vld [vmem:[%s5001_s1 + $0xa0] sm:$0xff]   ;;  %v3951_v41 = vld [vmem:[%s5001_s1 + $0x70] sm:$0xff]  }
  0x3f   : > { %v840_v0 = vrot.slane %v839_v56, 4  ;;  %v590_v5 = vrot.slane %v588_v61, 7  ;;  %v477_v15 = vsel %vm4271_vm10, 0, %v476_v14  ;;  %v485_v22 = vsel %vm4271_vm10, 0, %v484_v16  ;;  %v3950_v35 = vld [vmem:[%s5001_s1 + $0x28] sm:$0xff]   ;;  %v3953_v45 = vld [vmem:[%s5001_s1 + $0x30] sm:$0xff]  }
  0x40   : > { %3704 = vmatmul.mubr.bf16.vlgmr.msra.gmra.mrb[0].mxu1 %v3281_v59  ;;  %3555 = vmatpush3.bf16.msra.mxu0 %v3941_v38  ;;  %v577_v8 = vor.u32 %v575_v58, %v574_v1  ;;  %v578_v9 = vrot.slane %v574_v1, 4  ;;  %478 = vst [vmem:[#allocation2 + $0xe8] sm:$0x11] %v477_v15  ;;  %v604_v23 = vshrl.u32 %v503_v17, 16  ;;  %486 = vst [vmem:[#allocation2 + $0x108] sm:$0x11] %v485_v22 }
  0x41   : > { %3712 = vmatpush3.bf16.msra.mxu1 %v4288_v40  ;;  %v845_v6 = vsel %vm4333_vm0, %v840_v0, %v844_v51  ;;  %3556 = vmatprep.subr.bf16.mxu0 %v3942_v48  ;;  %v593_v12 = vor.u32 %v591_v62, %v590_v5  ;;  %v594_v40 = vrot.slane %v590_v5, 4  ;;  %v607_v26 = vshll.u32 %v503_v17, 16  ;;  %v3954_v50 = vld [vmem:[%s5001_s1 + $0x78] sm:$0xff]   ;;  %v3949_v1 = vld [vmem:[%s5001_s1 + $0xa8] sm:$0xff]   ;;  %v3952_v15 = vld [vmem:[%s5001_s1 + $0xb0] sm:$0xff]  }
  0x42   : > { %3713 = vmatprep.subr.bf16.mxu1 %v3937_v60  ;;  %v4401_v11 = vcombine.low %v831_v63, %v845_v6  ;;  %v724_v29 = vsel %vm4293_vm13, %v577_v8, 0  ;;  %v620_v27 = vshrl.u32 %v505_v18, 16  ;;  %v606_v30 = vrot.slane %v604_v23, 7 }
  0x43   : > { %725 = vst [vmem:[#allocation2 + $0xa0] sm:$0xff] %v724_v29  ;;  %v726_v19 = vld [vmem:[#allocation2 + $0xa8] sm:$0x11]  ;;  %v736_v20 = vsel %vm4293_vm13, %v593_v12, 0  ;;  %v623_v31 = vshll.u32 %v505_v18, 16 }
  0x44   : > { %1680 = vmatprep.mubr.bf16.mxu0 %v4401_v11  ;;  %3557 = vmatpush3.bf16.msra.mxu0 %v3944_v4  ;;  %v738_v21 = vld [vmem:[#allocation2 + $0xc8] sm:$0x11]  ;;  %v727_v24 = vsel %vm4271_vm10, %v578_v9, %v726_v19  ;;  %737 = vst [vmem:[#allocation2 + $0xc0] sm:$0xff] %v736_v20  ;;  %v4427_v33 = vrot.slane %v620_v27, 7  ;;  %v609_v36 = vor.u32 %v607_v26, %v606_v30  ;;  %v610_v37 = vrot.slane %v606_v30, 4 }
  0x45   : > { %3714 = vmatpush3.bf16.msra.mxu1 %v3937_v60  ;;  %1681 = vmatmul.mubr.bf16.gmra.mrb[4].mxu0 %v3273_v7  ;;  %v739_v25 = vsel %vm4271_vm10, %v594_v40, %v738_v21  ;;  %728 = vst [vmem:[#allocation2 + $0xa8] sm:$0x11] %v727_v24  ;;  %v3956_v40 = vld [vmem:[%s5001_s1 + $0x38] sm:$0xff]  }
  0x46   : > { %3715 = vmatprep.subr.bf16.mxu1 %v3940_v2  ;;  %740 = vst [vmem:[#allocation2 + $0xc8] sm:$0x11] %v739_v25  ;;  %3558 = vmatprep.subr.bf16.mxu0 %v3945_v10  ;;  %v625_v38 = vor.u32 %v623_v31, %v4427_v33  ;;  %v626_v39 = vrot.slane %v4427_v33, 4  ;;  %v748_v42 = vsel %vm4293_vm13, %v609_v36, 0 }
  0x47   : > { %749 = vst [vmem:[#allocation2 + $0xe0] sm:$0xff] %v748_v42  ;;  %v750_v48 = vld [vmem:[#allocation2 + $0xe8] sm:$0x11] }
  0x48   : > { %3559 = vmatpush3.bf16.msra.mxu0 %v3947_v13  ;;  %v760_v49 = vsel %vm4293_vm13, %v625_v38, 0  ;;  %v751_v56 = vsel %vm4271_vm10, %v610_v37, %v750_v48  ;;  %v762_v7 = vld [vmem:[#allocation2 + $0x108] sm:$0x11]  ;;  %v3955_v48 = vld [vmem:[%s5001_s1 + $0xb8] sm:$0xff]  }
  0x49   : > { %3716 = vmatpush3.bf16.msra.mxu1 %v3940_v2  ;;  %3560 = vmatprep.subr.bf16.mxu0 %v3948_v53  ;;  %761 = vst [vmem:[#allocation2 + $0x100] sm:$0xff] %v760_v49  ;;  %752 = vst [vmem:[#allocation2 + $0xe8] sm:$0x11] %v751_v56  ;;  %v763_v19 = vsel %vm4271_vm10, %v626_v39, %v762_v7  ;;  %v3957_v39 = vld [vmem:[%s5001_s1 + $0x1c0] sm:$0xff]   ;;  %v432_v7 = vld [vmem:[#allocation2 + $0x38] sm:$0x11] }
  0x4a   : > { %3717 = vmatprep.subr.bf16.mxu1 %v3943_v28  ;;  %v779_v46 = vld [vmem:[#allocation2 + $0xa0] sm:$0xf]  ;;  %v4445_v47 = vld [vmem:[#allocation2 + $0xa4] sm:$0xf]  ;;  %764 = vst [vmem:[#allocation2 + $0x108] sm:$0x11] %v763_v19 }
  0x4b   : > { %v781_v51 = vld [vmem:[#allocation2 + $0xc0] sm:$0xf]  ;;  %v847_v52 = vshrl.u32 %v779_v46, 16  ;;  %v850_v54 = vshll.u32 %v779_v46, 16  ;;  %v4452_v55 = vld [vmem:[#allocation2 + $0xc4] sm:$0xf] }
  0x4c   : > { %3561 = vmatpush3.bf16.msra.mxu0 %v3950_v35  ;;  %v780_v57 = vld [vmem:[#allocation2 + $0xa8] sm:$0x1]  ;;  %v861_v59 = vshrl.u32 %v781_v51, 16  ;;  %v864_v60 = vshll.u32 %v781_v51, 16  ;;  %v1336_v5 = vshrl.u32 %v4445_v47, 16  ;;  %v1339_v6 = vshll.u32 %v4445_v47, 16 }
  0x4d   : > { %3718 = vmatpush3.bf16.msra.mxu1 %v3943_v28  ;;  %v782_v58 = vld [vmem:[#allocation2 + $0xc8] sm:$0x1]  ;;  %3562 = vmatprep.subr.bf16.mxu0 %v3951_v41  ;;  %v849_v61 = vrot.slane %v847_v52, 4  ;;  %v852_v62 = vrot.slane %v850_v54, 5  ;;  %v856_v63 = vshll.u32 %v780_v57, 16  ;;  %v1350_v12 = vshrl.u32 %v4452_v55, 16 }
  0x4e   : > { %v870_v0 = vshll.u32 %v782_v58, 16  ;;  %3719 = vmatprep.subr.bf16.mxu1 %v3946_v34  ;;  %v863_v2 = vrot.slane %v861_v59, 4  ;;  %v866_v4 = vrot.slane %v864_v60, 5  ;;  %v1338_v14 = vrot.slane %v1336_v5, 4  ;;  %v783_v20 = vld [vmem:[#allocation2 + $0xe0] sm:$0xf] }
  0x4f   : > { %v853_v8 = vor.u32 %v852_v62, %v849_v61  ;;  %v858_v9 = vrot.slane %v856_v63, 5  ;;  %v1341_v29 = vrot.slane %v1339_v6, 5  ;;  %v1353_v53 = vshll.u32 %v4452_v55, 16  ;;  %v4475_v21 = vld [vmem:[#allocation2 + $0xe4] sm:$0xf] }
  0x50   : > { %v872_v10 = vrot.slane %v870_v0, 5  ;;  %3563 = vmatpush3.bf16.msra.mxu0 %v3953_v45  ;;  %v867_v13 = vor.u32 %v866_v4, %v863_v2  ;;  %v4469_v17 = vrot.slane %v1350_v12, 4  ;;  %v3274_v18 = vcombine.low %v4445_v47, %v4452_v55  ;;  %v785_v24 = vld [vmem:[#allocation2 + $0x100] sm:$0xf]  ;;  %v784_v28 = vld [vmem:[#allocation2 + $0xe8] sm:$0x1] }
  0x51   : > { %3720 = vmatpush3.bf16.msra.mxu1 %v3946_v34  ;;  %3564 = vmatprep.subr.bf16.mxu0 %v3954_v50  ;;  %v854_v16 = vrot.slane %v853_v8, 4  ;;  %v1355_v23 = vrot.slane %v1353_v53, 5  ;;  %v875_v25 = vshrl.u32 %v783_v20, 16  ;;  %v878_v26 = vshll.u32 %v783_v20, 16  ;;  %v4479_v33 = vld [vmem:[#allocation2 + $0x104] sm:$0xf] }
  0x52   : > { %3721 = vmatprep.subr.bf16.mxu1 %v3949_v1  ;;  %v868_v22 = vrot.slane %v867_v13, 4  ;;  %v889_v30 = vshrl.u32 %v785_v24, 16  ;;  %v892_v31 = vshll.u32 %v785_v24, 16  ;;  %v1342_v34 = vor.u32 %v1341_v29, %v1338_v14  ;;  %v1275_v47 = vld [vmem:[#allocation2 + $0xac] sm:$0x1]  ;;  %v4502_v8 = vld [vmem:[%s5001_s1 + $0x200] sm:$0xff]  }
  0x53   : > { %v859_v27 = vsel %vm4333_vm0, %v854_v16, %v858_v9  ;;  %v877_v36 = vrot.slane %v875_v25, 4  ;;  %v880_v37 = vrot.slane %v878_v26, 5  ;;  %v884_v38 = vshll.u32 %v784_v28, 16  ;;  %v1276_v54 = vld [vmem:[#allocation2 + $0xcc] sm:$0x1] }
  0x54   : > { %3565 = vmatpush3.bf16.msra.mxu0 %v3956_v40  ;;  %v873_v35 = vsel %vm4333_vm0, %v868_v22, %v872_v10  ;;  %v891_v42 = vrot.slane %v889_v30, 4  ;;  %v894_v45 = vrot.slane %v892_v31, 5  ;;  %v1364_v46 = vshrl.u32 %v4475_v21, 16  ;;  %v1277_v59 = vld [vmem:[#allocation2 + $0xec] sm:$0x1] }
  0x55   : > { %3722 = vmatpush3.bf16.msra.mxu1 %v3949_v1  ;;  %v4486_v41 = vcombine.low %v859_v27, %v873_v35  ;;  %v881_v49 = vor.u32 %v880_v37, %v877_v36  ;;  %v886_v50 = vrot.slane %v884_v38, 5  ;;  %v1367_v51 = vshll.u32 %v4475_v21, 16  ;;  %3602 = vmatprep.subr.bf16.mxu0 %v3957_v39  ;;  %v424_v0 = vld [vmem:[#allocation2 + $0x18] sm:$0x11]  ;;  %v786_v1 = vld [vmem:[#allocation2 + $0x108] sm:$0x1] }
  0x56   : > { %3723 = vmatprep.subr.bf16.mxu1 %v3952_v15  ;;  %v1378_v52 = vshrl.u32 %v4479_v33, 16  ;;  %v895_v55 = vor.u32 %v894_v45, %v891_v42  ;;  %v1366_v56 = vrot.slane %v1364_v46, 4  ;;  %v1381_v57 = vshll.u32 %v4479_v33, 16  ;;  %v1278_v40 = vld [vmem:[#allocation2 + $0x10c] sm:$0x1] }
  0x57   : > { %1688 = vmatprep.mubr.bf16.mxu0 %v4486_v41  ;;  %v3275_v58 = vcombine.low %v4475_v21, %v4479_v33  ;;  %v882_v60 = vrot.slane %v881_v49, 4  ;;  %v1369_v61 = vrot.slane %v1367_v51, 5  ;;  %v1343_v63 = vrot.slane %v1342_v34, 4  ;;  %v492_v16 = vld [vmem:[%s4250_s23 + $0x8] sm:$0xff]  ;;  %v4507_v22 = vld [vmem:[#allocation2 + $0x14] sm:$0xf] }
  0x58   : > { %1689 = vmatmul.mubr.bf16.gmra.mrb[8].mxu0 %v3274_v18  ;;  %v1380_v62 = vrot.slane %v1378_v52, 4  ;;  %v896_v2 = vrot.slane %v895_v55, 4  ;;  %v1383_v4 = vrot.slane %v1381_v57, 5  ;;  %v1345_v5 = vshll.u32 %v1275_v47, 16  ;;  %v440_v27 = vld [vmem:[#allocation2 + $0x58] sm:$0x11] }
  0x59   : > { %3724 = vmatpush3.bf16.msra.mxu1 %v3952_v15  ;;  %v1356_v6 = vor.u32 %v1355_v23, %v4469_v17  ;;  %v887_v9 = vsel %vm4333_vm0, %v882_v60, %v886_v50  ;;  %v898_v10 = vshll.u32 %v786_v1, 16  ;;  %v1359_v12 = vshll.u32 %v1276_v54, 16  ;;  %v911_v17 = vld [vmem:[#allocation2 + $0x10] sm:$0xf]  ;;  %v448_v28 = vld [vmem:[#allocation2 + $0x78] sm:$0x11] }
  0x5a   : > { %3725 = vmatprep.subr.bf16.mxu1 %v3955_v48  ;;  %v1370_v13 = vor.u32 %v1369_v61, %v1366_v56  ;;  %v1347_v14 = vrot.slane %v1345_v5, 5  ;;  %v1373_v53 = vshll.u32 %v1277_v59, 16  ;;  %v1384_v15 = vor.u32 %v1383_v4, %v1380_v62  ;;  %v494_v47 = vld [vmem:[%s4250_s23 + $0x18] sm:$0xff]  ;;  %v496_v52 = vld [vmem:[%s4250_s23 + $0x28] sm:$0xff] }
  0x5b   : > { %v1357_v29 = vrot.slane %v1356_v6, 4  ;;  %v900_v18 = vrot.slane %v898_v10, 5  ;;  %v1361_v19 = vrot.slane %v1359_v12, 5  ;;  %v1387_v21 = vshll.u32 %v1278_v40, 16 }
  0x5c   : > { %v1371_v20 = vrot.slane %v1370_v13, 4  ;;  %v1348_v23 = vsel %vm4333_vm0, %v1343_v63, %v1347_v14  ;;  %v1375_v24 = vrot.slane %v1373_v53, 5  ;;  %v1385_v25 = vrot.slane %v1384_v15, 4 }
  0x5d   : > { %3726 = vmatpush3.bf16.msra.mxu1 %v3955_v48  ;;  %v425_v26 = vsel %vm4271_vm10, 0, %v424_v0  ;;  %v901_v30 = vsel %vm4333_vm0, %v896_v2, %v900_v18  ;;  %v1362_v31 = vsel %vm4333_vm0, %v1357_v29, %v1361_v19  ;;  %v1389_v33 = vrot.slane %v1387_v21, 5 }
  0x5e   : > { %3735 = vmatprep.subr.bf16.mxu1 %v4502_v8  ;;  %426 = vst [vmem:[#allocation2 + $0x18] sm:$0x11] %v425_v26  ;;  %v433_v34 = vsel %vm4271_vm10, 0, %v432_v7  ;;  %v4520_v35 = vcombine.low %v887_v9, %v901_v30  ;;  %v3282_v36 = vcombine.low %v1348_v23, %v1362_v31  ;;  %v1376_v37 = vsel %vm4333_vm0, %v1371_v20, %v1375_v24  ;;  %v456_v30 = vld [vmem:[#allocation2 + $0x98] sm:$0x11] }
  0x5f   : > { %434 = vst [vmem:[#allocation2 + $0x38] sm:$0x11] %v433_v34  ;;  %v516_v38 = vshrl.u32 %v492_v16, 16  ;;  %v1390_v39 = vsel %vm4333_vm0, %v1385_v25, %v1389_v33  ;;  %v519_v42 = vshll.u32 %v492_v16, 16  ;;  %v928_v45 = vshrl.u32 %v911_v17, 16 }
  0x60   : > { %v931_v46 = vshll.u32 %v911_v17, 16  ;;  %1696 = vmatprep.mubr.bf16.mxu0 %v4520_v35  ;;  %3707 = vmatprep.mubr.bf16.mxu1 %v3282_v36  ;;  %v3283_v48 = vcombine.low %v1376_v37, %v1390_v39  ;;  %v1048_v50 = vshrl.u32 %v4507_v22, 16  ;;  %v1051_v51 = vshll.u32 %v4507_v22, 16  ;;  %v4565_v36 = vld [vmem:[%s4250_s23 + $0x38] sm:$0xff] }
  0x61   : > { %v518_v49 = vrot.slane %v516_v38, 7  ;;  %1697 = vmatmul.mubr.bf16.gmra.mrb[12].mxu0 %v3275_v58  ;;  %v930_v54 = vrot.slane %v928_v45, 4  ;;  %v441_v56 = vsel %vm4271_vm10, 0, %v440_v27  ;;  %v449_v57 = vsel %vm4271_vm10, 0, %v448_v28  ;;  %v4535_v58 = vld [vmem:[#allocation2] sm:$0xff]  ;;  %v4569_v45 = vld [vmem:[%s4250_s23 + $0x48] sm:$0xff] }
  0x62   : > { %v933_v55 = vrot.slane %v931_v46, 5  ;;  %3708 = vmatmul.mubr.bf16.gmra.mrb[4].mxu1 %v3283_v48  ;;  %v1050_v61 = vrot.slane %v1048_v50, 4  ;;  %v1053_v62 = vrot.slane %v1051_v51, 5  ;;  %442 = vst [vmem:[#allocation2 + $0x58] sm:$0x11] %v441_v56  ;;  %v532_v0 = vshrl.u32 %v494_v47, 16 }
  0x63   : > { %v521_v59 = vor.u32 %v519_v42, %v518_v49  ;;  %v522_v60 = vrot.slane %v518_v49, 4  ;;  %450 = vst [vmem:[#allocation2 + $0x78] sm:$0x11] %v449_v57  ;;  %v535_v1 = vshll.u32 %v494_v47, 16  ;;  %v548_v2 = vshrl.u32 %v496_v52, 16 }
  0x64   : > { %v934_v63 = vor.u32 %v933_v55, %v930_v54  ;;  %v1054_v7 = vor.u32 %v1053_v62, %v1050_v61  ;;  %v551_v9 = vshll.u32 %v496_v52, 16  ;;  %v534_v13 = vrot.slane %v532_v0, 7  ;;  %v464_v42 = vld [vmem:[#allocation2 + $0xb8] sm:$0x11] }
  0x65   : > { %v682_v4 = vsel %vm4293_vm13, %v521_v59, %v4535_v58  ;;  %v912_v5 = vld [vmem:[#allocation2 + $0x18] sm:$0x1]  ;;  %v1039_v6 = vld [vmem:[#allocation2 + $0x1c] sm:$0x1]  ;;  %v550_v53 = vrot.slane %v548_v2, 7  ;;  %v457_v34 = vsel %vm4271_vm10, 0, %v456_v30 }
  0x66   : > { %683 = vst [vmem:[#allocation2 + $0x30] sm:$0xff] %v682_v4  ;;  %v684_v10 = vld [vmem:[#allocation2 + $0x38] sm:$0x11]  ;;  %v937_v12 = vshll.u32 %v912_v5, 16  ;;  %v1057_v40 = vshll.u32 %v1039_v6, 16  ;;  %v4542_v29 = vrot.slane %v934_v63, 4  ;;  %v537_v17 = vor.u32 %v535_v1, %v534_v13 }
  0x67   : > { %v685_v14 = vsel %vm4271_vm10, %v522_v60, %v684_v10  ;;  %v4546_v16 = vrot.slane %v1054_v7, 4  ;;  %v538_v18 = vrot.slane %v534_v13, 4  ;;  %v553_v20 = vor.u32 %v551_v9, %v550_v53  ;;  %458 = vst [vmem:[#allocation2 + $0x98] sm:$0x11] %v457_v34 }
  0x68   : > { %686 = vst [vmem:[#allocation2 + $0x38] sm:$0x11] %v685_v14  ;;  %v4544_v15 = vrot.slane %v937_v12, 5  ;;  %v4548_v19 = vrot.slane %v1057_v40, 5  ;;  %v554_v21 = vrot.slane %v550_v53, 4  ;;  %v694_v23 = vsel %vm4293_vm13, %v537_v17, %v4535_v58 }
  0x69   : > { %v696_v24 = vld [vmem:[#allocation2 + $0x58] sm:$0x11]  ;;  %695 = vst [vmem:[#allocation2 + $0x50] sm:$0xff] %v694_v23  ;;  %v706_v27 = vsel %vm4293_vm13, %v553_v20, %v4535_v58  ;;  %v465_v49 = vsel %vm4271_vm10, 0, %v464_v42  ;;  %v564_v63 = vshrl.u32 %v4565_v36, 16  ;;  %v580_v0 = vshrl.u32 %v4569_v45, 16 }
  0x6a   : > { %v708_v25 = vld [vmem:[#allocation2 + $0x78] sm:$0x11]  ;;  %v697_v26 = vsel %vm4271_vm10, %v538_v18, %v696_v24  ;;  %707 = vst [vmem:[#allocation2 + $0x70] sm:$0xff] %v706_v27  ;;  %466 = vst [vmem:[#allocation2 + $0xb8] sm:$0x11] %v465_v49  ;;  %v940_v55 = vsel %vm4333_vm0, %v4542_v29, %v4544_v15  ;;  %v1060_v56 = vsel %vm4333_vm0, %v4546_v16, %v4548_v19  ;;  %v3959_v27 = vld [vmem:[%s5001_s1 + $0x180] sm:$0xff]  }
  0x6b   : > { %v709_v28 = vsel %vm4271_vm10, %v554_v21, %v708_v25  ;;  %698 = vst [vmem:[#allocation2 + $0x58] sm:$0x11] %v697_v26 }
  0x6c   : > { %710 = vst [vmem:[#allocation2 + $0x78] sm:$0x11] %v709_v28 }
  0x6d   : > { %v913_v31 = vld [vmem:[#allocation2 + $0x30] sm:$0xf]  ;;  %v4560_v33 = vld [vmem:[#allocation2 + $0x34] sm:$0xf] }
  0x6e   : > { %v942_v37 = vshrl.u32 %v913_v31, 16  ;;  %v945_v38 = vshll.u32 %v913_v31, 16  ;;  %v1062_v39 = vshrl.u32 %v4560_v33, 16  ;;  %v1065_v48 = vshll.u32 %v4560_v33, 16 }
  0x6f   : > { %v914_v46 = vld [vmem:[#allocation2 + $0x38] sm:$0x1]  ;;  %v1040_v47 = vld [vmem:[#allocation2 + $0x3c] sm:$0x1]  ;;  %v3260_v1 = vcombine.low %v4507_v22, %v4560_v33  ;;  %v3960_v33 = vld [vmem:[%s5001_s1 + $0x1c8] sm:$0xff]  }
  0x70   : > { %v944_v50 = vrot.slane %v942_v37, 4  ;;  %v947_v51 = vrot.slane %v945_v38, 5  ;;  %v951_v52 = vshll.u32 %v914_v46, 16  ;;  %v1064_v54 = vrot.slane %v1062_v39, 4  ;;  %v4582_v62 = vld [vmem:[#allocation2 + $0x54] sm:$0xf] }
  0x71   : > { %v1067_v57 = vrot.slane %v1065_v48, 5  ;;  %v1071_v59 = vshll.u32 %v1040_v47, 16  ;;  %v4588_v5 = vld [vmem:[#allocation2 + $0x74] sm:$0xf]  ;;  %v1076_v7 = vshrl.u32 %v4582_v62, 16  ;;  %v1079_v40 = vshll.u32 %v4582_v62, 16 }
  0x72   : > { %v948_v60 = vor.u32 %v947_v51, %v944_v50  ;;  %v953_v61 = vrot.slane %v951_v52, 5  ;;  %v1041_v6 = vld [vmem:[#allocation2 + $0x5c] sm:$0x1]  ;;  %v915_v9 = vld [vmem:[#allocation2 + $0x50] sm:$0xf]  ;;  %v1090_v14 = vshrl.u32 %v4588_v5, 16 }
  0x73   : > { %v1068_v2 = vor.u32 %v1067_v57, %v1064_v54  ;;  %v1073_v4 = vrot.slane %v1071_v59, 5  ;;  %v1042_v12 = vld [vmem:[#allocation2 + $0x7c] sm:$0x1]  ;;  %v1085_v13 = vshll.u32 %v1041_v6, 16  ;;  %v1078_v53 = vrot.slane %v1076_v7, 4  ;;  %v3962_v39 = vld [vmem:[%s5001_s1 + $0x188] sm:$0xff]  }
  0x74   : > { %v949_v10 = vrot.slane %v948_v60, 4  ;;  %v1093_v15 = vshll.u32 %v4588_v5, 16  ;;  %v1099_v22 = vshll.u32 %v1042_v12, 16  ;;  %v916_v16 = vld [vmem:[#allocation2 + $0x58] sm:$0x1]  ;;  %v1081_v18 = vrot.slane %v1079_v40, 5 }
  0x75   : > { %v1069_v29 = vrot.slane %v1068_v2, 4  ;;  %v1087_v19 = vrot.slane %v1085_v13, 5  ;;  %v1092_v20 = vrot.slane %v1090_v14, 4  ;;  %v917_v21 = vld [vmem:[#allocation2 + $0x70] sm:$0xf]  ;;  %v956_v34 = vshrl.u32 %v915_v9, 16 }
  0x76   : > { %v954_v17 = vsel %vm4333_vm0, %v949_v10, %v953_v61  ;;  %v1095_v25 = vrot.slane %v1093_v15, 5  ;;  %v1101_v26 = vrot.slane %v1099_v22, 5  ;;  %v918_v28 = vld [vmem:[#allocation2 + $0x78] sm:$0x1]  ;;  %v1082_v31 = vor.u32 %v1081_v18, %v1078_v53  ;;  %v3963_v52 = vld [vmem:[%s5001_s1 + $0x1d0] sm:$0xff]   ;;  %v3961_v60 = vld [vmem:[%s5001_s1 + $0x208] sm:$0xff]  }
  0x77   : > { %v3264_v23 = vcombine.low %v940_v55, %v954_v17  ;;  %v1074_v24 = vsel %vm4333_vm0, %v1069_v29, %v1073_v4  ;;  %v959_v37 = vshll.u32 %v915_v9, 16  ;;  %v965_v42 = vshll.u32 %v916_v16, 16  ;;  %v720_v4 = vld [vmem:[#allocation2 + $0x98] sm:$0x11] }
  0x78   : > { %v3268_v30 = vcombine.low %v1060_v56, %v1074_v24  ;;  %v1096_v38 = vor.u32 %v1095_v25, %v1092_v20  ;;  %v970_v46 = vshrl.u32 %v917_v21, 16  ;;  %v973_v47 = vshll.u32 %v917_v21, 16  ;;  %v732_v12 = vld [vmem:[#allocation2 + $0xb8] sm:$0x11] }
  0x79   : > { %1946 = vmatprep.mubr.bf16.mxu0 %v3264_v23  ;;  %v1083_v48 = vrot.slane %v1082_v31, 4  ;;  %v958_v49 = vrot.slane %v956_v34, 4  ;;  %v961_v50 = vrot.slane %v959_v37, 5  ;;  %v979_v51 = vshll.u32 %v918_v28, 16  ;;  %v3966_v53 = vld [vmem:[%s5001_s1 + $0x1d8] sm:$0xff]   ;;  %v3969_v37 = vld [vmem:[%s5001_s1 + $0x1e0] sm:$0xff]  }
  0x7a   : > { %1947 = vmatmul.mubr.bf16.vlgmr.msra.gmra.mrb[16].mxu0 %v3260_v1  ;;  %3727 = vmatprep.mubr.bf16.mxu1 %v3268_v30  ;;  %v1097_v54 = vrot.slane %v1096_v38, 4  ;;  %v972_v55 = vrot.slane %v970_v46, 4  ;;  %v975_v56 = vrot.slane %v973_v47, 5  ;;  %v567_v57 = vshll.u32 %v4565_v36, 16  ;;  %v3965_v36 = vld [vmem:[%s5001_s1 + $0x190] sm:$0xff]   ;;  %v3968_v25 = vld [vmem:[%s5001_s1 + $0x198] sm:$0xff]  }
  0x7b   : > { %3603 = vmatpush3.bf16.msra.mxu0 %v3959_v27  ;;  %v1088_v59 = vsel %vm4333_vm0, %v1083_v48, %v1087_v19  ;;  %v962_v61 = vor.u32 %v961_v50, %v958_v49  ;;  %v967_v1 = vrot.slane %v965_v42, 5  ;;  %v981_v2 = vrot.slane %v979_v51, 5  ;;  %v480_v18 = vld [vmem:[#allocation2 + $0xf8] sm:$0x11]  ;;  %v3971_v46 = vld [vmem:[%s5001_s1 + $0x1a0] sm:$0xff]   ;;  %v3972_v50 = vld [vmem:[%s5001_s1 + $0x1e8] sm:$0xff]  }
  0x7c   : > { %3604 = vmatprep.subr.bf16.mxu0 %v3960_v33  ;;  %v1102_v6 = vsel %vm4333_vm0, %v1097_v54, %v1101_v26  ;;  %v976_v7 = vor.u32 %v975_v56, %v972_v55  ;;  %v566_v9 = vrot.slane %v564_v63, 7  ;;  %v582_v10 = vrot.slane %v580_v0, 7  ;;  %v502_v19 = vld [vmem:[%s4250_s23 + $0x58] sm:$0xff]  ;;  %v3970_v49 = vld [vmem:[%s5001_s1 + $0x220] sm:$0xff]   ;;  %v3974_v56 = vld [vmem:[%s5001_s1 + $0x1a8] sm:$0xff]  }
  0x7d   : > { %v3269_v40 = vcombine.low %v1088_v59, %v1102_v6  ;;  %v963_v13 = vrot.slane %v962_v61, 4  ;;  %v583_v14 = vshll.u32 %v4569_v45, 16  ;;  %v3261_v0 = vcombine.low %v4582_v62, %v4588_v5  ;;  %v472_v45 = vld [vmem:[#allocation2 + $0xd8] sm:$0x11]  ;;  %v504_v5 = vld [vmem:[%s4250_s23 + $0x68] sm:$0xff]  ;;  %v3975_v6 = vld [vmem:[%s5001_s1 + $0x1f0] sm:$0xff]  }
  0x7e   : > { %v977_v29 = vrot.slane %v976_v7, 4  ;;  %v569_v15 = vor.u32 %v567_v57, %v566_v9  ;;  %v570_v22 = vrot.slane %v566_v9, 4  ;;  %v586_v16 = vrot.slane %v582_v10, 4  ;;  %v3967_v42 = vld [vmem:[%s5001_s1 + $0x218] sm:$0xff]  }
  0x7f   : > { %3605 = vmatpush3.bf16.msra.mxu0 %v3962_v39  ;;  %3728 = vmatmul.mubr.bf16.vlgmr.msra.gmra.mrb[0].mxu1 %v3269_v40  ;;  %v968_v63 = vsel %vm4333_vm0, %v963_v13, %v967_v1  ;;  %v585_v17 = vor.u32 %v583_v14, %v582_v10  ;;  %v473_v27 = vsel %vm4271_vm10, 0, %v472_v45  ;;  %v481_v28 = vsel %vm4271_vm10, 0, %v480_v18  ;;  %v3973_v18 = vld [vmem:[%s5001_s1 + $0x228] sm:$0xff]  }
  0x80   : > { %3606 = vmatprep.subr.bf16.mxu0 %v3963_v52  ;;  %3736 = vmatpush3.bf16.msra.mxu1 %v4502_v8  ;;  %v982_v20 = vsel %vm4333_vm0, %v977_v29, %v981_v2  ;;  %v718_v21 = vsel %vm4293_vm13, %v569_v15, %v4535_v58  ;;  %v721_v23 = vsel %vm4271_vm10, %v570_v22, %v720_v4  ;;  %v3964_v8 = vld [vmem:[%s5001_s1 + $0x210] sm:$0xff]   ;;  %v596_v30 = vshrl.u32 %v502_v19, 16 }
  0x81   : > { %v733_v62 = vsel %vm4271_vm10, %v586_v16, %v732_v12  ;;  %3737 = vmatprep.subr.bf16.mxu1 %v3961_v60  ;;  %v3265_v24 = vcombine.low %v968_v63, %v982_v20  ;;  %719 = vst [vmem:[#allocation2 + $0x90] sm:$0xff] %v718_v21  ;;  %722 = vst [vmem:[#allocation2 + $0x98] sm:$0x11] %v721_v23  ;;  %v730_v26 = vsel %vm4293_vm13, %v585_v17, %v4535_v58 }
  0x82   : > { %734 = vst [vmem:[#allocation2 + $0xb8] sm:$0x11] %v733_v62  ;;  %731 = vst [vmem:[#allocation2 + $0xb0] sm:$0xff] %v730_v26  ;;  %v599_v31 = vshll.u32 %v502_v19, 16  ;;  %v612_v33 = vshrl.u32 %v504_v5, 16  ;;  %v615_v34 = vshll.u32 %v504_v5, 16 }
  0x83   : > { %3607 = vmatpush3.bf16.msra.mxu0 %v3965_v36  ;;  %474 = vst [vmem:[#allocation2 + $0xd8] sm:$0x11] %v473_v27  ;;  %482 = vst [vmem:[#allocation2 + $0xf8] sm:$0x11] %v481_v28  ;;  %1954 = vmatprep.mubr.bf16.mxu0 %v3265_v24  ;;  %v598_v38 = vrot.slane %v596_v30, 7  ;;  %v3977_v5 = vld [vmem:[%s5001_s1 + $0x1b0] sm:$0xff]  }
  0x84   : > { %3608 = vmatprep.subr.bf16.mxu0 %v3966_v53  ;;  %3738 = vmatpush3.bf16.msra.mxu1 %v3961_v60  ;;  %v4657_v39 = vrot.slane %v612_v33, 7  ;;  %v3978_v28 = vld [vmem:[%s5001_s1 + $0x1f8] sm:$0xff]  }
  0x85   : > { %1955 = vmatmul.mubr.bf16.gmra.mrb[20].mxu0 %v3261_v0  ;;  %3739 = vmatprep.subr.bf16.mxu1 %v3964_v8  ;;  %v601_v47 = vor.u32 %v599_v31, %v598_v38  ;;  %v602_v51 = vrot.slane %v598_v38, 4 }
  0x86   : > { %v617_v48 = vor.u32 %v615_v34, %v4657_v39  ;;  %v618_v13 = vrot.slane %v4657_v39, 4 }
  0x87   : > { %3609 = vmatpush3.bf16.msra.mxu0 %v3968_v25  ;;  %v742_v57 = vsel %vm4293_vm13, %v601_v47, %v4535_v58 }
  0x88   : > { %3610 = vmatprep.subr.bf16.mxu0 %v3969_v37  ;;  %3740 = vmatpush3.bf16.msra.mxu1 %v3964_v8  ;;  %v919_v52 = vld [vmem:[#allocation2 + $0x90] sm:$0xf]  ;;  %v920_v54 = vld [vmem:[#allocation2 + $0x98] sm:$0x1]  ;;  %v754_v59 = vsel %vm4293_vm13, %v617_v48, %v4535_v58  ;;  %743 = vst [vmem:[#allocation2 + $0xd0] sm:$0xff] %v742_v57 }
  0x89   : > { %v922_v55 = vld [vmem:[#allocation2 + $0xb8] sm:$0x1]  ;;  %3741 = vmatprep.subr.bf16.mxu1 %v3967_v42  ;;  %v921_v60 = vld [vmem:[#allocation2 + $0xb0] sm:$0xf]  ;;  %v984_v61 = vshrl.u32 %v919_v52, 16  ;;  %v987_v1 = vshll.u32 %v919_v52, 16 }
  0x8a   : > { %v993_v2 = vshll.u32 %v920_v54, 16  ;;  %v1007_v4 = vshll.u32 %v922_v55, 16  ;;  %755 = vst [vmem:[#allocation2 + $0xf0] sm:$0xff] %v754_v59  ;;  %v998_v7 = vshrl.u32 %v921_v60, 16  ;;  %v1001_v36 = vshll.u32 %v921_v60, 16 }
  0x8b   : > { %v4684_v9 = vld [vmem:[#allocation2 + $0x94] sm:$0xf]  ;;  %3611 = vmatpush3.bf16.msra.mxu0 %v3971_v46  ;;  %v986_v58 = vrot.slane %v984_v61, 4  ;;  %v989_v12 = vrot.slane %v987_v1, 5  ;;  %v744_v14 = vld [vmem:[#allocation2 + $0xd8] sm:$0x11] }
  0x8c   : > { %v4686_v10 = vld [vmem:[#allocation2 + $0xb4] sm:$0xf]  ;;  %v995_v40 = vrot.slane %v993_v2, 5  ;;  %3612 = vmatprep.subr.bf16.mxu0 %v3972_v50  ;;  %3742 = vmatpush3.bf16.msra.mxu1 %v3967_v42  ;;  %v1000_v29 = vrot.slane %v998_v7, 4  ;;  %v1003_v53 = vrot.slane %v1001_v36, 5  ;;  %v1104_v15 = vshrl.u32 %v4684_v9, 16 }
  0x8d   : > { %v1107_v22 = vshll.u32 %v4684_v9, 16  ;;  %v756_v16 = vld [vmem:[#allocation2 + $0xf8] sm:$0x11]  ;;  %v990_v63 = vor.u32 %v989_v12, %v986_v58  ;;  %v1009_v0 = vrot.slane %v1007_v4, 5  ;;  %v1118_v17 = vshrl.u32 %v4686_v10, 16  ;;  %3743 = vmatprep.subr.bf16.mxu1 %v3970_v49  ;;  %v3976_v50 = vld [vmem:[%s5001_s1 + $0x230] sm:$0xff]  }
  0x8e   : > { %v1121_v45 = vshll.u32 %v4686_v10, 16  ;;  %v1043_v19 = vld [vmem:[#allocation2 + $0x9c] sm:$0x1]  ;;  %v1004_v20 = vor.u32 %v1003_v53, %v1000_v29  ;;  %v1106_v21 = vrot.slane %v1104_v15, 4  ;;  %v745_v62 = vsel %vm4271_vm10, %v602_v51, %v744_v14  ;;  %v2053_v53 = vld [vmem:[#allocation2 + $0x30] sm:$0xf] }
  0x8f   : > { %v1109_v23 = vrot.slane %v1107_v22, 5  ;;  %3613 = vmatpush3.bf16.msra.mxu0 %v3974_v56  ;;  %v991_v24 = vrot.slane %v990_v63, 4  ;;  %v1120_v8 = vrot.slane %v1118_v17, 4  ;;  %746 = vst [vmem:[#allocation2 + $0xd8] sm:$0x11] %v745_v62  ;;  %v757_v26 = vsel %vm4271_vm10, %v618_v13, %v756_v16  ;;  %v3980_v61 = vld [vmem:[%s5001_s1 + $0x1b8] sm:$0xff]  }
  0x90   : > { %v1123_v25 = vrot.slane %v1121_v45, 5  ;;  %v1044_v27 = vld [vmem:[#allocation2 + $0xbc] sm:$0x1]  ;;  %3614 = vmatprep.subr.bf16.mxu0 %v3975_v6  ;;  %v1005_v30 = vrot.slane %v1004_v20, 4  ;;  %v3262_v31 = vcombine.low %v4684_v9, %v4686_v10  ;;  %3744 = vmatpush3.bf16.msra.mxu1 %v3970_v49  ;;  %758 = vst [vmem:[#allocation2 + $0xf8] sm:$0x11] %v757_v26 }
  0x91   : > { %v923_v33 = vld [vmem:[#allocation2 + $0xd0] sm:$0xf]  ;;  %v1110_v37 = vor.u32 %v1109_v23, %v1106_v21  ;;  %v1113_v38 = vshll.u32 %v1043_v19, 16  ;;  %v996_v39 = vsel %vm4333_vm0, %v991_v24, %v995_v40  ;;  %3745 = vmatprep.subr.bf16.mxu1 %v3973_v18  ;;  %v4710_v48 = vld [vmem:[#allocation2 + $0xd4] sm:$0xf]  ;;  %v1127_v6 = vshll.u32 %v1044_v27, 16 }
  0x92   : > { %v925_v34 = vld [vmem:[#allocation2 + $0xf0] sm:$0xf]  ;;  %v1012_v42 = vshrl.u32 %v923_v33, 16  ;;  %v1015_v46 = vshll.u32 %v923_v33, 16  ;;  %v1010_v49 = vsel %vm4333_vm0, %v1005_v30, %v1009_v0  ;;  %v4717_v55 = vld [vmem:[#allocation2 + $0xf4] sm:$0xf]  ;;  %v1124_v4 = vor.u32 %v1123_v25, %v1120_v8 }
  0x93   : > { %v1026_v47 = vshrl.u32 %v925_v34, 16  ;;  %v1029_v51 = vshll.u32 %v925_v34, 16  ;;  %v1111_v52 = vrot.slane %v1110_v37, 4  ;;  %v1115_v54 = vrot.slane %v1113_v38, 5  ;;  %3615 = vmatpush3.bf16.msra.mxu0 %v3977_v5  ;;  %v3979_v58 = vld [vmem:[%s5001_s1 + $0x238] sm:$0xff]  }
  0x94   : > { %v3266_v56 = vcombine.low %v996_v39, %v1010_v49  ;;  %v1014_v57 = vrot.slane %v1012_v42, 4  ;;  %v1017_v59 = vrot.slane %v1015_v46, 5  ;;  %3616 = vmatprep.subr.bf16.mxu0 %v3978_v28  ;;  %3746 = vmatpush3.bf16.msra.mxu1 %v3973_v18  ;;  %v1132_v36 = vshrl.u32 %v4710_v48, 16  ;;  %v2054_v28 = vld [vmem:[#allocation2 + $0x38] sm:$0x1] }
  0x95   : > { %v1028_v60 = vrot.slane %v1026_v47, 4  ;;  %v1031_v1 = vrot.slane %v1029_v51, 5  ;;  %v1116_v2 = vsel %vm4333_vm0, %v1111_v52, %v1115_v54  ;;  %v1135_v9 = vshll.u32 %v4710_v48, 16  ;;  %3747 = vmatprep.subr.bf16.mxu1 %v3976_v50  ;;  %v2055_v33 = vld [vmem:[#allocation2 + $0x50] sm:$0xf] }
  0x96   : > { %1962 = vmatprep.mubr.bf16.mxu0 %v3266_v56  ;;  %v1018_v7 = vor.u32 %v1017_v59, %v1014_v57  ;;  %v1146_v10 = vshrl.u32 %v4717_v55, 16  ;;  %v924_v12 = vld [vmem:[#allocation2 + $0xd8] sm:$0x1]  ;;  %v1125_v13 = vrot.slane %v1124_v4, 4  ;;  %v1129_v14 = vrot.slane %v1127_v6, 5 }
  0x97   : > { %1963 = vmatmul.mubr.bf16.gmra.mrb[24].mxu0 %v3262_v31  ;;  %v1032_v40 = vor.u32 %v1031_v1, %v1028_v60  ;;  %v1149_v29 = vshll.u32 %v4717_v55, 16  ;;  %v926_v15 = vld [vmem:[#allocation2 + $0xf8] sm:$0x1]  ;;  %v1021_v16 = vshll.u32 %v924_v12, 16  ;;  %v1134_v63 = vrot.slane %v1132_v36, 4 }
  0x98   : > { %v1019_v22 = vrot.slane %v1018_v7, 4  ;;  %v1137_v0 = vrot.slane %v1135_v9, 5  ;;  %3617 = vmatpush3.bf16.msra.mxu0 %v3980_v61  ;;  %v1035_v45 = vshll.u32 %v926_v15, 16  ;;  %v1130_v18 = vsel %vm4333_vm0, %v1125_v13, %v1129_v14  ;;  %v1045_v20 = vld [vmem:[#allocation2 + $0xdc] sm:$0x1]  ;;  %3748 = vmatpush3.bf16.msra.mxu1 %v3976_v50 }
  0x99   : > { %v1033_v17 = vrot.slane %v1032_v40, 4  ;;  %v1148_v19 = vrot.slane %v1146_v10, 4  ;;  %v1023_v21 = vrot.slane %v1021_v16, 5  ;;  %v3270_v23 = vcombine.low %v1116_v2, %v1130_v18  ;;  %v1046_v24 = vld [vmem:[#allocation2 + $0xfc] sm:$0x1]  ;;  %3749 = vmatprep.subr.bf16.mxu1 %v3979_v58 }
  0x9a   : > { %v1151_v62 = vrot.slane %v1149_v29, 5  ;;  %v3263_v5 = vcombine.low %v4710_v48, %v4717_v55  ;;  %v1037_v8 = vrot.slane %v1035_v45, 5  ;;  %v1138_v25 = vor.u32 %v1137_v0, %v1134_v63  ;;  %v2056_v34 = vld [vmem:[#allocation2 + $0x58] sm:$0x1]  ;;  %v4739_v48 = vld [vmem:[#allocation2 + $0x34] sm:$0xf] }
  0x9b   : > { %v1141_v26 = vshll.u32 %v1045_v20, 16  ;;  %v1155_v27 = vshll.u32 %v1046_v24, 16  ;;  %v1024_v30 = vsel %vm4333_vm0, %v1019_v22, %v1023_v21  ;;  %3731 = vmatprep.mubr.bf16.mxu1 %v3270_v23  ;;  %v2070_v37 = vshrl.u32 %v2053_v53, 16  ;;  %v2046_v1 = vld [vmem:[#allocation2 + $0x54] sm:$0xf] }
  0x9c   : > { %v1152_v31 = vor.u32 %v1151_v62, %v1148_v19  ;;  %v2073_v38 = vshll.u32 %v2053_v53, 16  ;;  %v1038_v39 = vsel %vm4333_vm0, %v1033_v17, %v1037_v8  ;;  %v1139_v42 = vrot.slane %v1138_v25, 4  ;;  %3750 = vmatpush3.bf16.msra.mxu1 %v3979_v58  ;;  %v2181_v2 = vld [vmem:[#allocation2 + $0x3c] sm:$0x1]  ;;  %v4747_v22 = vld [vmem:[#allocation2 + $0x74] sm:$0xf] }
  0x9d   : > { %v1143_v46 = vrot.slane %v1141_v26, 5  ;;  %v1157_v47 = vrot.slane %v1155_v27, 5  ;;  %v3267_v50 = vcombine.low %v1024_v30, %v1038_v39  ;;  %v2072_v51 = vrot.slane %v2070_v37, 4  ;;  %v2182_v10 = vld [vmem:[#allocation2 + $0x5c] sm:$0x1] }
  0x9e   : > { %v1153_v49 = vrot.slane %v1152_v31, 4  ;;  %v2075_v52 = vrot.slane %v2073_v38, 5  ;;  %v2079_v55 = vshll.u32 %v2054_v28, 16  ;;  %v2084_v56 = vshrl.u32 %v2055_v33, 16  ;;  %v4752_v45 = vld [vmem:[#allocation2 + $0x94] sm:$0xf] }
  0x9f   : > { %v1144_v54 = vsel %vm4333_vm0, %v1139_v42, %v1143_v46  ;;  %v2087_v57 = vshll.u32 %v2055_v33, 16  ;;  %1970 = vmatprep.mubr.bf16.mxu0 %v3267_v50  ;;  %v2093_v61 = vshll.u32 %v2056_v34, 16  ;;  %v2190_v4 = vshrl.u32 %v4739_v48, 16  ;;  %v2183_v18 = vld [vmem:[#allocation2 + $0x7c] sm:$0x1] }
  0xa0   : > { %v1158_v59 = vsel %vm4333_vm0, %v1153_v49, %v1157_v47  ;;  %v2076_v60 = vor.u32 %v2075_v52, %v2072_v51  ;;  %1971 = vmatmul.mubr.bf16.gmra.mrb[28].mxu0 %v3263_v5  ;;  %v2081_v7 = vrot.slane %v2079_v55, 5  ;;  %v2086_v36 = vrot.slane %v2084_v56, 4  ;;  %v2184_v24 = vld [vmem:[#allocation2 + $0x9c] sm:$0x1]  ;;  %v2057_v31 = vld [vmem:[#allocation2 + $0x70] sm:$0xf] }
  0xa1   : > { %v3271_v6 = vcombine.low %v1144_v54, %v1158_v59  ;;  %v2089_v9 = vrot.slane %v2087_v57, 5  ;;  %v2095_v12 = vrot.slane %v2093_v61, 5  ;;  %v2192_v40 = vrot.slane %v2190_v4, 4  ;;  %v2058_v33 = vld [vmem:[#allocation2 + $0x78] sm:$0x1] }
  0xa2   : > { %v2077_v58 = vrot.slane %v2076_v60, 4  ;;  %v2193_v13 = vshll.u32 %v4739_v48, 16  ;;  %v2199_v29 = vshll.u32 %v2181_v2, 16  ;;  %v2204_v53 = vshrl.u32 %v2046_v1, 16  ;;  %v2059_v42 = vld [vmem:[#allocation2 + $0x90] sm:$0xf] }
  0xa3   : > { %3732 = vmatmul.mubr.bf16.gmra.mrb[4].mxu1 %v3271_v6  ;;  %v2090_v14 = vor.u32 %v2089_v9, %v2086_v36  ;;  %v2207_v15 = vshll.u32 %v2046_v1, 16  ;;  %v2213_v0 = vshll.u32 %v2182_v10, 16  ;;  %v3380_v17 = vcombine.low %v4739_v48, %v2046_v1  ;;  %v2060_v49 = vld [vmem:[#allocation2 + $0x98] sm:$0x1]  ;;  %v4760_v51 = vld [vmem:[#allocation2 + $0xb4] sm:$0xf] }
  0xa4   : > { %v2082_v16 = vsel %vm4333_vm0, %v2077_v58, %v2081_v7  ;;  %v2195_v63 = vrot.slane %v2193_v13, 5  ;;  %v2201_v20 = vrot.slane %v2199_v29, 5  ;;  %v2206_v21 = vrot.slane %v2204_v53, 4  ;;  %v2185_v1 = vld [vmem:[#allocation2 + $0xbc] sm:$0x1] }
  0xa5   : > { %v2091_v19 = vrot.slane %v2090_v14, 4  ;;  %v2209_v23 = vrot.slane %v2207_v15, 5  ;;  %v2215_v5 = vrot.slane %v2213_v0, 5  ;;  %v2218_v8 = vshrl.u32 %v4747_v22, 16  ;;  %v4766_v36 = vld [vmem:[#allocation2 + $0xd4] sm:$0xf] }
  0xa6   : > { %v2196_v62 = vor.u32 %v2195_v63, %v2192_v40  ;;  %v2221_v25 = vshll.u32 %v4747_v22, 16  ;;  %v2227_v28 = vshll.u32 %v2183_v18, 16  ;;  %v2232_v30 = vshrl.u32 %v4752_v45, 16  ;;  %v2186_v29 = vld [vmem:[#allocation2 + $0xdc] sm:$0x1] }
  0xa7   : > { %v2096_v26 = vsel %vm4333_vm0, %v2091_v19, %v2095_v12  ;;  %v2210_v27 = vor.u32 %v2209_v23, %v2206_v21  ;;  %v2220_v38 = vrot.slane %v2218_v8, 4  ;;  %v2235_v50 = vshll.u32 %v4752_v45, 16  ;;  %v506_v8 = vld [vmem:[%s4250_s23 + $0x78] sm:$0xff] }
  0xa8   : > { %v3384_v34 = vcombine.low %v2082_v16, %v2096_v26  ;;  %v2197_v37 = vrot.slane %v2196_v62, 4  ;;  %v2223_v39 = vrot.slane %v2221_v25, 5  ;;  %v2229_v47 = vrot.slane %v2227_v28, 5  ;;  %v4776_v25 = vld [vmem:[#allocation2 + $0xf4] sm:$0xf] }
  0xa9   : > { %v2211_v46 = vrot.slane %v2210_v27, 4  ;;  %v2234_v48 = vrot.slane %v2232_v30, 4  ;;  %v2241_v55 = vshll.u32 %v2184_v24, 16  ;;  %v2098_v56 = vshrl.u32 %v2057_v31, 16 }
  0xaa   : > { %2582 = vmatprep.mubr.bf16.mxu0 %v3384_v34  ;;  %v2202_v52 = vsel %vm4333_vm0, %v2197_v37, %v2201_v20  ;;  %v2224_v54 = vor.u32 %v2223_v39, %v2220_v38  ;;  %v2237_v59 = vrot.slane %v2235_v50, 5  ;;  %v2101_v60 = vshll.u32 %v2057_v31, 16  ;;  %v2187_v38 = vld [vmem:[#allocation2 + $0xfc] sm:$0x1]  ;;  %v2061_v39 = vld [vmem:[#allocation2 + $0xb0] sm:$0xf] }
  0xab   : > { %v2216_v57 = vsel %vm4333_vm0, %v2211_v46, %v2215_v5  ;;  %2583 = vmatmul.mubr.bf16.vlgmr.msra.gmra.mrb[32].mxu0 %v3380_v17  ;;  %v2107_v61 = vshll.u32 %v2058_v33, 16  ;;  %v2243_v6 = vrot.slane %v2241_v55, 5  ;;  %v2100_v7 = vrot.slane %v2098_v56, 4  ;;  %v488_v17 = vld [vmem:[#allocation2 + $0x118] sm:$0x11] }
  0xac   : > { %v3388_v2 = vcombine.low %v2202_v52, %v2216_v57  ;;  %v2225_v4 = vrot.slane %v2224_v54, 4  ;;  %v2238_v9 = vor.u32 %v2237_v59, %v2234_v48  ;;  %v2103_v10 = vrot.slane %v2101_v60, 5  ;;  %v2062_v55 = vld [vmem:[#allocation2 + $0xb8] sm:$0x1] }
  0xad   : > { %v2109_v58 = vrot.slane %v2107_v61, 5  ;;  %v2112_v12 = vshrl.u32 %v2059_v42, 16  ;;  %v2115_v13 = vshll.u32 %v2059_v42, 16  ;;  %v2121_v14 = vshll.u32 %v2060_v49, 16  ;;  %v2063_v61 = vld [vmem:[#allocation2 + $0xd0] sm:$0xf] }
  0xae   : > { %3751 = vmatprep.mubr.bf16.mxu1 %v3388_v2  ;;  %v2230_v40 = vsel %vm4333_vm0, %v2225_v4, %v2229_v47  ;;  %v2246_v53 = vshrl.u32 %v4760_v51, 16  ;;  %v2239_v15 = vrot.slane %v2238_v9, 4  ;;  %v2104_v16 = vor.u32 %v2103_v10, %v2100_v7  ;;  %v2064_v2 = vld [vmem:[#allocation2 + $0xd8] sm:$0x1] }
  0xaf   : > { %v2114_v63 = vrot.slane %v2112_v12, 4  ;;  %v2249_v0 = vshll.u32 %v4760_v51, 16  ;;  %v2117_v18 = vrot.slane %v2115_v13, 5  ;;  %v2123_v19 = vrot.slane %v2121_v14, 5  ;;  %v2065_v13 = vld [vmem:[#allocation2 + $0xf0] sm:$0xf] }
  0xb0   : > { %v2248_v20 = vrot.slane %v2246_v53, 4  ;;  %v2255_v21 = vshll.u32 %v2185_v1, 16  ;;  %v2244_v23 = vsel %vm4333_vm0, %v2239_v15, %v2243_v6  ;;  %v2105_v62 = vrot.slane %v2104_v16, 4  ;;  %v4006_v16 = vld [vmem:[#allocation2] sm:$0xff] }
  0xb1   : > { %v2251_v5 = vrot.slane %v2249_v0, 5  ;;  %v2260_v24 = vshrl.u32 %v4766_v36, 16  ;;  %v3389_v26 = vcombine.low %v2230_v40, %v2244_v23  ;;  %v2118_v27 = vor.u32 %v2117_v18, %v2114_v63 }
  0xb2   : > { %v2257_v28 = vrot.slane %v2255_v21, 5  ;;  %v2263_v30 = vshll.u32 %v4766_v36, 16  ;;  %v2110_v31 = vsel %vm4333_vm0, %v2105_v62, %v2109_v58  ;;  %v2269_v37 = vshll.u32 %v2186_v29, 16  ;;  %v2066_v21 = vld [vmem:[#allocation2 + $0xf8] sm:$0x1] }
  0xb3   : > { %v2252_v33 = vor.u32 %v2251_v5, %v2248_v20  ;;  %v2262_v34 = vrot.slane %v2260_v24, 4  ;;  %3752 = vmatmul.mubr.bf16.vlgmr.msra.gmra.mrb[0].mxu1 %v3389_v26  ;;  %v2119_v42 = vrot.slane %v2118_v27, 4  ;;  %v3381_v47 = vcombine.low %v4747_v22, %v4752_v45 }
  0xb4   : > { %v2265_v46 = vrot.slane %v2263_v30, 5  ;;  %v489_v48 = vsel %vm4271_vm10, 0, %v488_v17  ;;  %v2271_v49 = vrot.slane %v2269_v37, 5  ;;  %v628_v52 = vshrl.u32 %v506_v8, 16 }
  0xb5   : > { %v2253_v50 = vrot.slane %v2252_v33, 4  ;;  %490 = vst [vmem:[#allocation2 + $0x118] sm:$0x11] %v489_v48  ;;  %v631_v54 = vshll.u32 %v506_v8, 16  ;;  %v2124_v56 = vsel %vm4333_vm0, %v2119_v42, %v2123_v19  ;;  %v2274_v59 = vshrl.u32 %v4776_v25, 16 }
  0xb6   : > { %v2266_v57 = vor.u32 %v2265_v46, %v2262_v34  ;;  %v2277_v60 = vshll.u32 %v4776_v25, 16  ;;  %v3385_v1 = vcombine.low %v2110_v31, %v2124_v56  ;;  %v630_v45 = vrot.slane %v628_v52, 7 }
  0xb7   : > { %v2258_v22 = vsel %vm4333_vm0, %v2253_v50, %v2257_v28  ;;  %v2276_v6 = vrot.slane %v2274_v59, 4  ;;  %v2283_v7 = vshll.u32 %v2187_v38, 16  ;;  %v2126_v9 = vshrl.u32 %v2061_v39, 16 }
  0xb8   : > { %v2267_v4 = vrot.slane %v2266_v57, 4  ;;  %2590 = vmatprep.mubr.bf16.mxu0 %v3385_v1  ;;  %v633_v10 = vor.u32 %v631_v54, %v630_v45  ;;  %v634_v58 = vrot.slane %v630_v45, 4  ;;  %v2279_v12 = vrot.slane %v2277_v60, 5 }
  0xb9   : > { %v2129_v40 = vshll.u32 %v2061_v39, 16  ;;  %2591 = vmatmul.mubr.bf16.gmra.mrb[36].mxu0 %v3381_v47  ;;  %v2128_v29 = vrot.slane %v2126_v9, 4  ;;  %v2135_v53 = vshll.u32 %v2062_v55, 16  ;;  %v2140_v17 = vshrl.u32 %v2063_v61, 16 }
  0xba   : > { %v2272_v14 = vsel %vm4333_vm0, %v2267_v4, %v2271_v49  ;;  %v766_v63 = vsel %vm4293_vm13, %v633_v10, %v4006_v16  ;;  %v2143_v19 = vshll.u32 %v2063_v61, 16  ;;  %v2149_v20 = vshll.u32 %v2064_v2, 16 }
  0xbb   : > { %v3390_v15 = vcombine.low %v2258_v22, %v2272_v14  ;;  %v2131_v0 = vrot.slane %v2129_v40, 5  ;;  %767 = vst [vmem:[#allocation2 + $0x110] sm:$0xff] %v766_v63  ;;  %v2280_v62 = vor.u32 %v2279_v12, %v2276_v6  ;;  %v2142_v24 = vrot.slane %v2140_v17, 4  ;;  %v3981_v63 = vld [vmem:[%s5004_s4] sm:$0xff]  }
  0xbc   : > { %v768_v18 = vld [vmem:[#allocation2 + $0x118] sm:$0x11]  ;;  %v2137_v8 = vrot.slane %v2135_v53, 5  ;;  %v2145_v26 = vrot.slane %v2143_v19, 5  ;;  %v2154_v27 = vshrl.u32 %v2065_v13, 16  ;;  %v2285_v44 = vrot.slane %v2283_v7, 5  ;;  %3759 = vmatprep.subr.bf16.mxu0 %v3981_v63 }
  0xbd   : > { %3755 = vmatprep.mubr.bf16.mxu1 %v3390_v15  ;;  %v769_v23 = vsel %vm4271_vm10, %v634_v58, %v768_v18  ;;  %v2132_v5 = vor.u32 %v2131_v0, %v2128_v29  ;;  %v2157_v30 = vshll.u32 %v2065_v13, 16  ;;  %v2163_v31 = vshll.u32 %v2066_v21, 16  ;;  %v3982_v0 = vld [vmem:[%s5007_s7] sm:$0xff]   ;;  %3760 = vmatpush3.bf16.msra.mxu0 %v3981_v63 }
  0xbe   : > { %770 = vst [vmem:[#allocation2 + $0x118] sm:$0x11] %v769_v23  ;;  %v2146_v33 = vor.u32 %v2145_v26, %v2142_v24  ;;  %v2151_v34 = vrot.slane %v2149_v20, 5  ;;  %v2156_v37 = vrot.slane %v2154_v27, 4  ;;  %v2281_v38 = vrot.slane %v2280_v62, 4  ;;  %3783 = vmatprep.subr.bf16.mxu1 %v3982_v0  ;;  %3761 = vmatprep.subr.bf16.mxu0 %v3983_v43  ;;  %v3985_v23 = vld [vmem:[%s5004_s4 + $0x10] sm:$0xff]  }
  0xbf   : > { %v2133_v28 = vrot.slane %v2132_v5, 4  ;;  %v2159_v39 = vrot.slane %v2157_v30, 5  ;;  %v2165_v46 = vrot.slane %v2163_v31, 5  ;;  %v3382_v48 = vcombine.low %v4760_v51, %v4766_v36  ;;  %3784 = vmatpush3.bf16.msra.mxu1 %v3982_v0  ;;  %v3986_v62 = vld [vmem:[%s5007_s7 + $0x10] sm:$0xff]   ;;  %v3987_v5 = vld [vmem:[%s5004_s4 + $0x18] sm:$0xff]   ;;  %v3989_v31 = vld [vmem:[%s5004_s4 + $0x20] sm:$0xff]  }
  0xc0   : > { %v2147_v42 = vrot.slane %v2146_v33, 4  ;;  %v2286_v58 = vsel %vm4333_vm0, %v2281_v38, %v2285_v44  ;;  %v3988_v24 = vld [vmem:[%s5007_s7 + $0x18] sm:$0xff]   ;;  %v3990_v33 = vld [vmem:[%s5007_s7 + $0x20] sm:$0xff]   ;;  %v3993_v38 = vld [vmem:[%s5004_s4 + $0x30] sm:$0xff]  }
  0xc1   : > { %v2138_v32 = vsel %vm4333_vm0, %v2133_v28, %v2137_v8  ;;  %v2160_v49 = vor.u32 %v2159_v39, %v2156_v37  ;;  %3762 = vmatpush3.bf16.msra.mxu0 %v3983_v43  ;;  %v3992_v37 = vld [vmem:[%s5007_s7 + $0x28] sm:$0xff]   ;;  %v3994_v39 = vld [vmem:[%s5007_s7 + $0x30] sm:$0xff]  }
  0xc2   : > { %v2052_v47 = vld [vmem:[#allocation2 + $0x114] sm:$0xf]  ;;  %v2067_v50 = vld [vmem:[#allocation2 + $0x110] sm:$0xf]  ;;  %v2152_v55 = vsel %vm4333_vm0, %v2147_v42, %v2151_v34  ;;  %3763 = vmatprep.subr.bf16.mxu0 %v3985_v23  ;;  %v3991_v34 = vld [vmem:[%s5004_s4 + $0x28] sm:$0xff]  }
  0xc3   : > { %v2288_v52 = vshrl.u32 %v2052_v47, 16  ;;  %v2291_v54 = vshll.u32 %v2052_v47, 16  ;;  %v2168_v56 = vshrl.u32 %v2067_v50, 16  ;;  %v3386_v59 = vcombine.low %v2138_v32, %v2152_v55  ;;  %v3995_v32 = vld [vmem:[%s5004_s4 + $0x38] sm:$0xff]  }
  0xc4   : > { %v2161_v61 = vrot.slane %v2160_v49, 4  ;;  %v2171_v1 = vshll.u32 %v2067_v50, 16  ;;  %v3383_v15 = vcombine.low %v4776_v25, %v2052_v47  ;;  %v3984_v25 = vld [vmem:[%s5007_s7 + $0x8] sm:$0xff]   ;;  %v3996_v42 = vld [vmem:[%s5007_s7 + $0x38] sm:$0xff]  }
  0xc5   : > { %v2188_v57 = vld [vmem:[#allocation2 + $0x11c] sm:$0x1]  ;;  %v2068_v60 = vld [vmem:[#allocation2 + $0x118] sm:$0x1]  ;;  %v2290_v22 = vrot.slane %v2288_v52, 4  ;;  %v2293_v45 = vrot.slane %v2291_v54, 5  ;;  %2598 = vmatprep.mubr.bf16.mxu0 %v3386_v59  ;;  %3785 = vmatprep.subr.bf16.mxu1 %v3984_v25 }
  0xc6   : > { %v2297_v2 = vshll.u32 %v2188_v57, 16  ;;  %v2170_v4 = vrot.slane %v2168_v56, 4  ;;  %v2173_v6 = vrot.slane %v2171_v1, 5  ;;  %v2177_v51 = vshll.u32 %v2068_v60, 16  ;;  %2599 = vmatmul.mubr.bf16.gmra.mrb[40].mxu0 %v3382_v48  ;;  %3786 = vmatpush3.bf16.msra.mxu1 %v3984_v25 }
  0xc7   : > { %v2294_v36 = vor.u32 %v2293_v45, %v2290_v22  ;;  %v2166_v40 = vsel %vm4333_vm0, %v2161_v61, %v2165_v46  ;;  %3787 = vmatprep.subr.bf16.mxu1 %v3986_v62  ;;  %3764 = vmatpush3.bf16.msra.mxu0 %v3985_v23 }
  0xc8   : > { %v2299_v7 = vrot.slane %v2297_v2, 5  ;;  %v2174_v9 = vor.u32 %v2173_v6, %v2170_v4  ;;  %v2179_v10 = vrot.slane %v2177_v51, 5  ;;  %3765 = vmatprep.subr.bf16.mxu0 %v3987_v5 }
  0xc9   : > { %v2295_v12 = vrot.slane %v2294_v36, 4 }
  0xca   : > { %v2175_v13 = vrot.slane %v2174_v9, 4  ;;  %3788 = vmatpush3.bf16.msra.mxu1 %v3986_v62 }
  0xcb   : > { %v2300_v14 = vsel %vm4333_vm0, %v2295_v12, %v2299_v7  ;;  %3789 = vmatprep.subr.bf16.mxu1 %v3988_v24  ;;  %3766 = vmatpush3.bf16.msra.mxu0 %v3987_v5 }
  0xcc   : > { %v3391_v29 = vcombine.low %v2286_v58, %v2300_v14  ;;  %v2180_v53 = vsel %vm4333_vm0, %v2175_v13, %v2179_v10  ;;  %3767 = vmatprep.subr.bf16.mxu0 %v3989_v31 }
  0xcd   : > { %v3387_v16 = vcombine.low %v2166_v40, %v2180_v53 }
  0xce   : > { %3756 = vmatmul.mubr.bf16.gmra.mrb[4].mxu1 %v3391_v29 }
  0xcf   : > { %2606 = vmatprep.mubr.bf16.mxu0 %v3387_v16  ;;  %3799 = vmatprep.mubr.bf16.mxu1 %v4351_v3 }
  0xd0   : > { %2607 = vmatmul.mubr.bf16.gmra.mrb[44].mxu0 %v3383_v15  ;;  %3790 = vmatpush3.bf16.msra.mxu1 %v3988_v24 }
  0xd1   : > { %3791 = vmatprep.subr.bf16.mxu1 %v3990_v33  ;;  %3768 = vmatpush3.bf16.msra.mxu0 %v3989_v31 }
  0xd2   : > { %3769 = vmatprep.subr.bf16.mxu0 %v3991_v34 }
  0xd4   : > { %3792 = vmatpush3.bf16.msra.mxu1 %v3990_v33  ;;  %v4882_v33 = vld [vmem:[%s5003_s3] ss:$0 sm:$0xff] }
  0xd5   : > { %3793 = vmatprep.subr.bf16.mxu1 %v3992_v37  ;;  %3770 = vmatpush3.bf16.msra.mxu0 %v3991_v34 }
  0xd6   : > { %3771 = vmatprep.subr.bf16.mxu0 %v3993_v38 }
  0xd8   : > { %3794 = vmatpush3.bf16.msra.mxu1 %v3992_v37 }
  0xd9   : > { %3795 = vmatprep.subr.bf16.mxu1 %v3994_v39  ;;  %3772 = vmatpush3.bf16.msra.mxu0 %v3993_v38 }
  0xda   : > { %3773 = vmatprep.subr.bf16.mxu0 %v3995_v32 }
  0xdc   : > { %3796 = vmatpush3.bf16.msra.mxu1 %v3994_v39 }
  0xdd   : > { %3797 = vmatprep.subr.bf16.mxu1 %v3996_v42  ;;  %3774 = vmatpush3.bf16.msra.mxu0 %v3995_v32 }
  0xe0   : > { %3798 = vmatpush3.bf16.msra.mxu1 %v3996_v42 }
  0xe3   : > { %3800 = vmatmul.mubr.bf16.vlgmr.msra.gmra.mrb[8].mxu1 %v4401_v11 }
  0xe4   : > { %3803 = vmatprep.mubr.bf16.mxu1 %v4486_v41 }
  0xeb   : > { %3804 = vmatmul.mubr.bf16.gmra.mrb[12].mxu1 %v4520_v35 }
 0x10a   : > { %v3514_v3 = vpop.f32.mrb[0].mxu0 }
 0x10b   : > { %v3515_v17 = vpop.f32.mrb[1].mxu0 }
 0x10c   : > { %v4825_v18 = vadd.f32 %v3515_v17, %v3514_v3  ;;  %v3517_v19 = vpop.f32.mrb[2].mxu0 }
 0x10d   : > { %v3518_v20 = vpop.f32.mrb[3].mxu0 }
 0x10e   : > { %v4827_v21 = vadd.f32 %v3518_v20, %v3517_v19 }
 0x118   : > { %v3520_v8 = vpop.f32.mrb[4].mxu0 }
 0x119   : > { %v3521_v26 = vpop.f32.mrb[5].mxu0 }
 0x11a   : > { %v3522_v27 = vadd.f32 %v3521_v26, %v3520_v8  ;;  %v3523_v44 = vpop.f32.mrb[6].mxu0 }
 0x11b   : > { %v3524_v28 = vpop.f32.mrb[7].mxu0 }
 0x11c   : > { %v3525_v30 = vadd.f32 %v3524_v28, %v3523_v44  ;;  %v4877_v28 = vld [vmem:[%s5002_s2] ss:$0 sm:$0xff] }
 0x12b   : > { %v3526_v46 = vpop.f32.mrb[8].mxu0 }
 0x12c   : > { %v3527_v47 = vpop.f32.mrb[9].mxu0 }
 0x12d   : > { %v3528_v48 = vadd.f32 %v3527_v47, %v3526_v46  ;;  %v3529_v50 = vpop.f32.mrb[10].mxu0 }
 0x12e   : > { %v3530_v49 = vpop.f32.mrb[11].mxu0 }
 0x12f   : > { %v3531_v52 = vadd.f32 %v3530_v49, %v3529_v50 }
 0x134   : > { %v3532_v54 = vpop.f32.mrb[12].mxu0 }
 0x135   : > { %v3533_v55 = vpop.f32.mrb[13].mxu0 }
 0x136   : > { %v3534_v56 = vadd.f32 %v3533_v55, %v3532_v54  ;;  %v3535_v57 = vpop.f32.mrb[14].mxu0 }
 0x137   : > { %v3536_v59 = vpop.f32.mrb[15].mxu0 }
 0x138   : > { %v3537_v60 = vadd.f32 %v3536_v59, %v3535_v57 }
 0x14d   : > { %v3566_v61 = vpop.f32.mrb[16].mxu0 }
 0x14e   : > { %v3567_v1 = vpop.f32.mrb[17].mxu0 }
 0x14f   : > { %v3568_v22 = vadd.f32 %v3567_v1, %v3566_v61  ;;  %v3569_v45 = vpop.f32.mrb[18].mxu0 }
 0x150   : > { %v3570_v2 = vpop.f32.mrb[19].mxu0 }
 0x151   : > { %v3830_v4 = vadd.f32 %v3568_v22, %v4825_v18  ;;  %v3571_v6 = vadd.f32 %v3570_v2, %v3569_v45 }
 0x153   : > { %v3836_v11 = vadd.f32 %v3571_v6, %v4827_v21 }
 0x158   : > { %v3572_v51 = vpop.f32.mrb[20].mxu0 }
 0x159   : > { %v3573_v36 = vpop.f32.mrb[21].mxu0 }
 0x15a   : > { %v3574_v41 = vadd.f32 %v3573_v36, %v3572_v51  ;;  %v3575_v7 = vpop.f32.mrb[22].mxu0 }
 0x15b   : > { %v3576_v9 = vpop.f32.mrb[23].mxu0 }
 0x15c   : > { %v3827_v10 = vadd.f32 %v3574_v41, %v3522_v27  ;;  %v3577_v58 = vadd.f32 %v3576_v9, %v3575_v7 }
 0x15e   : > { %v3833_v12 = vadd.f32 %v3577_v58, %v3525_v30 }
 0x16a   : > { %v3578_v40 = vpop.f32.mrb[24].mxu0 }
 0x16b   : > { %v3579_v35 = vpop.f32.mrb[25].mxu0 }
 0x16c   : > { %v3580_v13 = vadd.f32 %v3579_v35, %v3578_v40  ;;  %v3581_v14 = vpop.f32.mrb[26].mxu0 }
 0x16d   : > { %v3582_v29 = vpop.f32.mrb[27].mxu0 }
 0x16e   : > { %v3842_v53 = vadd.f32 %v3580_v13, %v3528_v48  ;;  %v3583_v15 = vadd.f32 %v3582_v29, %v3581_v14 }
 0x170   : > { %v3848_v16 = vadd.f32 %v3583_v15, %v3531_v52 }
 0x173   : > { %v3584_v63 = vpop.f32.mrb[28].mxu0 }
 0x174   : > { %v3585_v0 = vpop.f32.mrb[29].mxu0 }
 0x175   : > { %v3586_v43 = vadd.f32 %v3585_v0, %v3584_v63  ;;  %v3587_v25 = vpop.f32.mrb[30].mxu0 }
 0x176   : > { %v3588_v3 = vpop.f32.mrb[31].mxu0 }
 0x177   : > { %v4870_v17 = vadd.f32 %v3586_v43, %v3534_v56  ;;  %v3589_v18 = vadd.f32 %v3588_v3, %v3587_v25 }
 0x179   : > { %v4872_v19 = vadd.f32 %v3589_v18, %v3537_v60 }
 0x17e   : > { %v3618_v20 = vpop.f32.mrb[32].mxu0 }
 0x17f   : > { %v3619_v21 = vpop.f32.mrb[33].mxu0 }
 0x180   : > { %v3620_v23 = vadd.f32 %v3619_v21, %v3618_v20  ;;  %v3621_v62 = vpop.f32.mrb[34].mxu0 }
 0x181   : > { %v3622_v5 = vpop.f32.mrb[35].mxu0 }
 0x182   : > { %v3831_v24 = vadd.f32 %v3830_v4, %v3620_v23  ;;  %v3623_v8 = vadd.f32 %v3622_v5, %v3621_v62 }
 0x184   : > { %v3837_v26 = vadd.f32 %v3836_v11, %v3623_v8 }
 0x186   : > { %v3753_v27 = vpop.f32.mrb[0].mxu1 }
 0x187   : > { %v2649_v44 = vpop.f32.mrb[1].mxu1 }
 0x188   : > { %v3832_v30 = vadd.f32 %v3831_v24, %v2649_v44  ;;  %v3754_v31 = vpop.f32.mrb[2].mxu1 }
 0x189   : > { %v2652_v34 = vpop.f32.mrb[3].mxu1 }
 0x18a   : > { %v2695_v37 = vmul.f32 %v3832_v30, %v4877_v28  ;;  %v3838_v38 = vadd.f32 %v3837_v26, %v2652_v34 }
 0x18c   : > { %v2710_v39 = vadd.f32 %v4882_v33, %v2695_v37  ;;  %v2696_v32 = vmul.f32 %v3838_v38, %v4877_v28  ;;  %v3624_v42 = vpop.f32.mrb[36].mxu0 }
 0x18d   : > { %v3625_v46 = vpop.f32.mrb[37].mxu0 }
 0x18e   : > { %v2711_v47 = vadd.f32 %v4882_v33, %v2696_v32  ;;  %v3626_v48 = vadd.f32 %v3625_v46, %v3624_v42  ;;  %v3627_v50 = vpop.f32.mrb[38].mxu0  ;;  %v2718_v52 = vmax.f32 %v2710_v39, 0.0 }
 0x18f   : > { %v3628_v49 = vpop.f32.mrb[39].mxu0 }
 0x190   : > { %v2719_v54 = vmax.f32 %v2711_v47, 0.0  ;;  %v3828_v55 = vadd.f32 %v3827_v10, %v3626_v48  ;;  %v3629_v56 = vadd.f32 %v3628_v49, %v3627_v50  ;;  %v4072_v50 = vmov 0.0   ;;  %v3998_v49 = vld [vmem:[%s5010_s10 + $0x8] sm:$0xff]  }
 0x191   : > { %3807 = vmatprep.subr.bf16.mxu0 %v4072_v50 }
 0x192   : > { %v3829_v57 = vadd.f32 %v3828_v55, %v3753_v27  ;;  %v3834_v59 = vadd.f32 %v3833_v12, %v3629_v56  ;;  %v2726_v60 = vpack.c.bf16 %v2719_v54, %v2718_v52  ;;  %v3999_v52 = vld [vmem:[%s5010_s10 + $0x10] sm:$0xff]   ;;  %v4000_v54 = vld [vmem:[%s5010_s10 + $0x18] sm:$0xff]   ;;  %v4001_v55 = vld [vmem:[%s5010_s10 + $0x20] sm:$0xff]  }
 0x193   : > { %v4002_v56 = vld [vmem:[%s5010_s10 + $0x28] sm:$0xff]  }
 0x194   : > { %v2697_v61 = vmul.f32 %v3829_v57, %v4877_v28  ;;  %v3835_v1 = vadd.f32 %v3834_v59, %v3754_v31  ;;  %3775 = vmatprep.mubr.bf16.mxu0 %v2726_v60  ;;  %v4003_v57 = vld [vmem:[%s5010_s10 + $0x30] sm:$0xff]   ;;  %v4004_v59 = vld [vmem:[%s5010_s10 + $0x38] sm:$0xff]   ;;  %v3484_v60 = vld [vmem:[%s5008_s8] ss:$0 sm:$0xff] }
 0x196   : > { %v2712_v22 = vadd.f32 %v4882_v33, %v2697_v61  ;;  %v2698_v45 = vmul.f32 %v3835_v1, %v4877_v28  ;;  %v3474_v1 = vld [vmem:[%s5005_s5] ss:$0 sm:$0xff] }
 0x198   : > { %v2713_v2 = vadd.f32 %v4882_v33, %v2698_v45  ;;  %v2720_v4 = vmax.f32 %v2712_v22, 0.0  ;;  %v3485_v22 = vld [vmem:[%s5009_s9] ss:$0 sm:$0xff] }
 0x199   : > { %v3630_v11 = vpop.f32.mrb[40].mxu0 }
 0x19a   : > { %v2721_v6 = vmax.f32 %v2713_v2, 0.0  ;;  %v3631_v51 = vpop.f32.mrb[41].mxu0 }
 0x19b   : > { %v3632_v41 = vadd.f32 %v3631_v51, %v3630_v11  ;;  %v3633_v7 = vpop.f32.mrb[42].mxu0 }
 0x19c   : > { %v2727_v36 = vpack.c.bf16 %v2721_v6, %v2720_v4  ;;  %v3634_v9 = vpop.f32.mrb[43].mxu0  ;;  %v3475_v6 = vld [vmem:[%s5006_s6] ss:$0 sm:$0xff] }
 0x19d   : > { %v3843_v10 = vadd.f32 %v3842_v53, %v3632_v41  ;;  %v3635_v58 = vadd.f32 %v3634_v9, %v3633_v7 }
 0x19e   : > { %3776 = vmatmul.mubr.bf16.vlgmr.msra.gmra.mrb[48].mxu0 %v2727_v36 }
 0x19f   : > { %v3849_v12 = vadd.f32 %v3848_v16, %v3635_v58 }
 0x1a1   : > { %v3757_v40 = vpop.f32.mrb[4].mxu1 }
 0x1a2   : > { %v2665_v35 = vpop.f32.mrb[5].mxu1 }
 0x1a3   : > { %v3758_v13 = vpop.f32.mrb[6].mxu1  ;;  %v3844_v14 = vadd.f32 %v3843_v10, %v2665_v35  ;;  %v3636_v29 = vpop.f32.mrb[44].mxu0 }
 0x1a4   : > { %v2668_v15 = vpop.f32.mrb[7].mxu1  ;;  %v3637_v63 = vpop.f32.mrb[45].mxu0 }
 0x1a5   : > { %v2699_v0 = vmul.f32 %v3844_v14, %v4877_v28  ;;  %v3850_v43 = vadd.f32 %v3849_v12, %v2668_v15  ;;  %v3638_v25 = vadd.f32 %v3637_v63, %v3636_v29  ;;  %v3639_v3 = vpop.f32.mrb[46].mxu0 }
 0x1a6   : > { %v3640_v18 = vpop.f32.mrb[47].mxu0 }
 0x1a7   : > { %v2700_v20 = vmul.f32 %v3850_v43, %v4877_v28  ;;  %v3840_v53 = vadd.f32 %v4870_v17, %v3638_v25  ;;  %v3641_v21 = vadd.f32 %v3640_v18, %v3639_v3  ;;  %v2714_v16 = vadd.f32 %v4882_v33, %v2699_v0 }
 0x1a9   : > { %v3841_v23 = vadd.f32 %v3840_v53, %v3757_v40  ;;  %v3846_v62 = vadd.f32 %v4872_v19, %v3641_v21  ;;  %v2715_v5 = vadd.f32 %v4882_v33, %v2700_v20  ;;  %v2722_v26 = vmax.f32 %v2714_v16, 0.0 }
 0x1ab   : > { %v2701_v24 = vmul.f32 %v3841_v23, %v4877_v28  ;;  %v3847_v8 = vadd.f32 %v3846_v62, %v3758_v13  ;;  %v2723_v27 = vmax.f32 %v2715_v5, 0.0 }
 0x1ad   : > { %v2702_v44 = vmul.f32 %v3847_v8, %v4877_v28  ;;  %v2728_v30 = vpack.c.bf16 %v2723_v27, %v2722_v26  ;;  %v2716_v31 = vadd.f32 %v4882_v33, %v2701_v24 }
 0x1af   : > { %3779 = vmatprep.mubr.bf16.mxu0 %v2728_v30  ;;  %v2717_v17 = vadd.f32 %v4882_v33, %v2702_v44  ;;  %v2724_v34 = vmax.f32 %v2716_v31, 0.0  ;;  %v3997_v33 = vld [vmem:[%s5010_s10] sm:$0xff]  }
 0x1b0   : > { %3808 = vmatpush3.bf16.msra.mxu0 %v3997_v33 }
 0x1b1   : > { %v2725_v37 = vmax.f32 %v2717_v17, 0.0  ;;  %3809 = vmatprep.subr.bf16.mxu0 %v4072_v50 }
 0x1b3   : > { %v2729_v38 = vpack.c.bf16 %v2725_v37, %v2724_v34 }
 0x1b4   : > { %3810 = vmatpush3.bf16.msra.mxu0 %v3998_v49 }
 0x1b5   : > { %3780 = vmatmul.mubr.bf16.gmra.mrb[52].mxu0 %v2729_v38  ;;  %3811 = vmatprep.subr.bf16.mxu0 %v4072_v50 }
 0x1b6   : > { %v3801_v19 = vpop.f32.mrb[8].mxu1  ;;  %3823 = vmatprep.mubr.msk.bf16.mxu0 %vm4073_vm1, %v4072_v50 }
 0x1b7   : > { %v2987_v39 = vpop.f32.mrb[9].mxu1  ;;  %v3027_v61 = vmul.f32 %v3801_v19, %v3484_v60 }
 0x1b8   : > { %v3802_v32 = vpop.f32.mrb[10].mxu1  ;;  %3812 = vmatpush3.bf16.msra.mxu0 %v3999_v52  ;;  %v3025_v45 = vmul.f32 %v3484_v60, %v2987_v39 }
 0x1b9   : > { %v2990_v42 = vpop.f32.mrb[11].mxu1  ;;  %3813 = vmatprep.subr.bf16.mxu0 %v4072_v50  ;;  %v3028_v2 = vmul.f32 %v3802_v32, %v3484_v60  ;;  %v3042_v36 = vadd.f32 %v3485_v22, %v3027_v61 }
 0x1ba   : > { %v3026_v11 = vmul.f32 %v3484_v60, %v2990_v42  ;;  %v3040_v9 = vadd.f32 %v3485_v22, %v3025_v45 }
 0x1bb   : > { %v3043_v40 = vadd.f32 %v3485_v22, %v3028_v2 }
 0x1bc   : > { %3814 = vmatpush3.bf16.msra.mxu0 %v4000_v54  ;;  %v3041_v29 = vadd.f32 %v3485_v22, %v3026_v11 }
 0x1bd   : > { %3815 = vmatprep.subr.bf16.mxu0 %v4072_v50 }
 0x1be   : > { %v4902_v46 = vpop.f32.mrb[12].mxu1 }
 0x1bf   : > { %v4904_v47 = vpop.f32.mrb[13].mxu1  ;;  %v3031_v5 = vmul.f32 %v4902_v46, %v3484_v60 }
 0x1c0   : > { %v4906_v48 = vpop.f32.mrb[14].mxu1  ;;  %3816 = vmatpush3.bf16.msra.mxu0 %v4001_v55  ;;  %v3029_v24 = vmul.f32 %v3484_v60, %v4904_v47 }
 0x1c1   : > { %v4908_v28 = vpop.f32.mrb[15].mxu1  ;;  %3817 = vmatprep.subr.bf16.mxu0 %v4072_v50  ;;  %v3046_v26 = vadd.f32 %v3485_v22, %v3031_v5  ;;  %v3032_v44 = vmul.f32 %v4906_v48, %v3484_v60 }
 0x1c2   : > { %v3044_v31 = vadd.f32 %v3485_v22, %v3029_v24  ;;  %v3030_v34 = vmul.f32 %v3484_v60, %v4908_v28 }
 0x1c3   : > { %v3047_v46 = vadd.f32 %v3485_v22, %v3032_v44 }
 0x1c4   : > { %3818 = vmatpush3.bf16.msra.mxu0 %v4002_v56  ;;  %v3045_v49 = vadd.f32 %v3485_v22, %v3030_v34 }
 0x1c5   : > { %3819 = vmatprep.subr.bf16.mxu0 %v4072_v50 }
 0x1c8   : > { %3820 = vmatpush3.bf16.msra.mxu0 %v4003_v57 }
 0x1c9   : > { %3821 = vmatprep.subr.bf16.mxu0 %v4072_v50 }
 0x1cc   : > { %3822 = vmatpush3.bf16.msra.mxu0 %v4004_v59 }
 0x271   : > { %v3777_v4 = vpop.f32.mrb[48].mxu0 }
 0x272   : > { %v2868_v51 = vmul.f32 %v3777_v4, %v3474_v1  ;;  %v2828_v41 = vpop.f32.mrb[49].mxu0 }
 0x273   : > { %v2866_v7 = vmul.f32 %v3474_v1, %v2828_v41  ;;  %v3778_v10 = vpop.f32.mrb[50].mxu0  ;;  %v3096_v41 = vld [vmem:[%s5011_s11] sm:$0x1] }
 0x274   : > { %v2883_v58 = vadd.f32 %v3475_v6, %v2868_v51  ;;  %v2869_v12 = vmul.f32 %v3778_v10, %v3474_v1  ;;  %v2831_v35 = vpop.f32.mrb[51].mxu0 }
 0x275   : > { %v2881_v13 = vadd.f32 %v3475_v6, %v2866_v7  ;;  %v2867_v14 = vmul.f32 %v3474_v1, %v2831_v35 }
 0x276   : > { %v3050_v15 = vadd.f32 %v3042_v36, %v2883_v58  ;;  %v2884_v63 = vadd.f32 %v3475_v6, %v2869_v12 }
 0x277   : > { %v3048_v0 = vadd.f32 %v3040_v9, %v2881_v13  ;;  %v2882_v43 = vadd.f32 %v3475_v6, %v2867_v14 }
 0x278   : > { %v3051_v25 = vadd.f32 %v3043_v40, %v2884_v63  ;;  %v3058_v53 = vmax.f32 %v3050_v15, 0.0 }
 0x279   : > { %v3049_v3 = vadd.f32 %v3041_v29, %v2882_v43  ;;  %v3056_v18 = vmax.f32 %v3048_v0, 0.0 }
 0x27a   : > { %v3059_v16 = vmax.f32 %v3051_v25, 0.0 }
 0x27b   : > { %v3057_v20 = vmax.f32 %v3049_v3, 0.0 }
 0x27d   : > { %v3064_v21 = vadd.f32 %v3057_v20, %v3056_v18 }
 0x27f   : > { %v3065_v23 = vadd.f32 %v3064_v21, %v3058_v53 }
 0x281   : > { %v3066_v62 = vadd.f32 %v3065_v23, %v3059_v16 }
 0x288   : > { %v3781_v8 = vpop.f32.mrb[52].mxu0 }
 0x289   : > { %v2872_v27 = vmul.f32 %v3781_v8, %v3474_v1  ;;  %v2844_v30 = vpop.f32.mrb[53].mxu0 }
 0x28a   : > { %v2870_v17 = vmul.f32 %v3474_v1, %v2844_v30  ;;  %v3782_v37 = vpop.f32.mrb[54].mxu0 }
 0x28b   : > { %v2887_v38 = vadd.f32 %v3475_v6, %v2872_v27  ;;  %v2873_v19 = vmul.f32 %v3782_v37, %v3474_v1  ;;  %v2847_v39 = vpop.f32.mrb[55].mxu0 }
 0x28c   : > { %v2885_v32 = vadd.f32 %v3475_v6, %v2870_v17  ;;  %v2871_v42 = vmul.f32 %v3474_v1, %v2847_v39 }
 0x28d   : > { %v3054_v50 = vadd.f32 %v3046_v26, %v2887_v38  ;;  %v2888_v33 = vadd.f32 %v3475_v6, %v2873_v19 }
 0x28e   : > { %v3052_v47 = vadd.f32 %v3044_v31, %v2885_v32  ;;  %v2886_v52 = vadd.f32 %v3475_v6, %v2871_v42 }
 0x28f   : > { %v3055_v54 = vadd.f32 %v3047_v46, %v2888_v33  ;;  %v3062_v59 = vmax.f32 %v3054_v50, 0.0 }
 0x290   : > { %v3060_v55 = vmax.f32 %v3052_v47, 0.0  ;;  %v3053_v48 = vadd.f32 %v3045_v49, %v2886_v52 }
 0x291   : > { %v3063_v60 = vmax.f32 %v3055_v54, 0.0 }
 0x292   : > { %v3067_v56 = vadd.f32 %v3066_v62, %v3060_v55  ;;  %v3061_v57 = vmax.f32 %v3053_v48, 0.0 }
 0x294   : > { %v3068_v28 = vadd.f32 %v3067_v56, %v3061_v57 }
 0x296   : > { %v3069_v61 = vadd.f32 %v3068_v28, %v3062_v59 }
 0x298   : > { %v3070_v45 = vadd.f32 %v3069_v61, %v3063_v60 }
 0x29a   : > { %v3071_v2 = vrot.slane %v3070_v45, 4 }
 0x29c   : > { %v3072_v1 = vadd.f32 %v3071_v2, %v3070_v45 }
 0x29e   : > { %v3073_v4 = vrot.slane %v3072_v1, 2 }
 0x2a0   : > { %v3074_v11 = vadd.f32 %v3073_v4, %v3072_v1 }
 0x2a2   : > { %v3075_v51 = vrot.slane %v3074_v11, 1 }
 0x2a4   : > { %v3076_v36 = vadd.f32 %v3075_v51, %v3074_v11 }
 0x2a6   : > { %v3078_v22 = vmul.f32 0.015625, %v3076_v36 }
 0x2a8   : > { %v3079_v6 = vpack.c.bf16 %v3078_v22, %v3078_v22 }
 0x2aa   : > { %3824 = vmatmul.mubr.bf16.vlgmr.msra.gmra.mrb[56].mxu0 %v3079_v6 }
 0x37d   : > { %v3179_v7 = vpop.f32.mrb[56].mxu0 }
 0x37e   : > { %v3180_v9 = vadd.f32 %v3179_v7, %v3096_v41  ;;  %v3825_v10 = vpop.f32.mrb[57].mxu0 }
 0x37f   : > { %v3182_v58 = vpop.f32.mrb[58].mxu0 }
 0x380   : > { %3185 = vst [vmem:[%s405_s15] sm:$0x1] %v3180_v9  ;;  %v3826_v12 = vpop.f32.mrb[59].mxu0 }
 0x381   : > { %4020 = shalt.err (!%p4017_p3)
}
 0x382   : > { %s4021_s16 = scalar_lea.hbm %s4958_s17, 16  ;;  %s4025_s23 = scalar_lea.hbm %s5012_s12, 32 }
 0x383   : > { %p4022_p4 = scmp.ne.s32.totalorder %s4958_s17, %s4021_s16  ;;  %p4026_p9 = scmp.lt.u32.totalorder %s4958_s17, %s5012_s12 }
 0x384   : > { %p4027_p10 = scmp.lt.u32.totalorder %s4025_s23, %s4021_s16  ;;  %p4029_p12 = scmp.lt.u32.totalorder %s4021_s16, %s4958_s17 }
 0x385   : > { %p4023_p7 = pnand %p4022_p4, %p4178_p5 }
 0x386   : > { %p4028_p11 = por %p4027_p10, %p4026_p9 }
 0x387   : > { %p4024_p8 = pneg %p4023_p7 }
 0x388   : > { %p4030_p13 = por %p4029_p12, %p4028_p11 }
 0x38a   : > { %p4031_p0 = pnand %p4030_p13, %p4024_p8 }
 0x38c   : > { %4034 = shalt.err (!%p4031_p0)
}
 0x38d   : > { %3867 = dma.vmem_to_hbm [thread:$0]  (%p4178_p5), %s4960_s30, 16, %s4958_s17, %s3187_s18  }
 0x38e PF: > { %p3873_p1 = scmp.ge.s32.totalorder %s4069_s24, 2  ;;  %s3211_s25 = sand.u32 1, %s4057_s21  }
 0x38f   : > { %s3212_s20 = scalar_lea.sflag [#allocation4], %s3211_s25 }
 0x390   : > { %p3870_p2 = pnand %p3873_p1, %p4182_p6 }
 0x392   : > { %4052 = dma.done.wait (!%p3870_p2), %s3212_s20, 16  }
 0x393   : > { %4054 = vsyncadd (!%p3870_p2), %s3212_s20, 4294967280  ;;  %s5024_s26 = sld [smem:[#allocation6_spill]]  ;;  %s5025_s23 = sld [smem:[#allocation7_spill]] }
 0x394   : > { %p22_p3 = scmp.ge.s32.totalorder %s4165_s27, 4   ;;  %s5026_s21 = smov %s4061_s22 }
 0x395   : > { %s5028_s24 = smov %s4165_s27 }
 0x396   :  { %24 = sbr.rel (!%p22_p3) target bundleno = 3 (0x3), region = 108 }
 0x399   : > { %s5027_s22 = smov %s5024_s26 }
 0x39d   :  { %3216 = vsyncpa [#allocation4], 1 }
 0x39e   :  { %3218 = vsyncpa [#allocation4 + $0x1], 1 }

// kernel: _lambda_.2
= control target key start
LH: loop header
LB: loop body
LE: loop exit
PB: predicated region body
PF: predicated region fallthrough
CT: control target
= control target key end

     0   :  { %s7896_s13 = smov 0   ;;  %s10246_s0 = inlined_call_operand.vmem [shape: bf16[2,16,16,128], index: 0, kind: input, shape index: {}]   ;;  %s10247_s1 = inlined_call_operand.vmem [shape: bf16[128,128], index: 1, kind: input, shape index: {}]   ;;  %s10248_s2 = inlined_call_operand.vmem [shape: f32[1,128], index: 2, kind: input, shape index: {}]   ;;  %s10249_s3 = inlined_call_operand.vmem [shape: f32[1,128], index: 3, kind: input, shape index: {}]   ;;  %s10250_s4 = inlined_call_operand.vmem [shape: bf16[3,384,128], index: 4, kind: input, shape index: {}]   ;;  %s10251_s5 = inlined_call_operand.vmem [shape: f32[1,128], index: 5, kind: input, shape index: {}]   ;;  %s10252_s6 = inlined_call_operand.vmem [shape: f32[1,128], index: 6, kind: input, shape index: {}]   ;;  %s10253_s7 = inlined_call_operand.vmem [shape: bf16[128,128], index: 7, kind: input, shape index: {}]   ;;  %s10254_s8 = inlined_call_operand.vmem [shape: f32[1,128], index: 8, kind: input, shape index: {}]   ;;  %s10255_s9 = inlined_call_operand.vmem [shape: f32[1,128], index: 9, kind: input, shape index: {}]   ;;  %s10256_s10 = inlined_call_operand.vmem [shape: bf16[512,128], index: 10, kind: output, shape index: {}]  }
   0x1 LB: > { %s7902_s14 = sadd.s32 4294967295, %s7838_s13   ;;  %p6128_p0 = scmp.ge.s32.totalorder %s7838_s13, 1  ;;  %s7838_s13 = sphi %s7896_s13, %s20_s13  }
   0x2   : > { %p312_p1 = scmp.lt.s32.totalorder %s7838_s13, 3 }
   0x4   : > { %p313_p2 = pnand %p6128_p0, %p312_p1 }
   0x6   : > { %316 = sbr.rel (%p313_p2) target bundleno = 1130 (0x46a), region = 60 }
   0xd   : > { %v7638_v0 = vld [vmem:[%s10247_s1] sm:$0xff]   ;;  %p350_p3 = scmp.lt.s32.totalorder %s7902_s14, 1  ;;  %v7639_v1 = vld [vmem:[%s10247_s1 + $0x8] sm:$0xff]   ;;  %v7640_v2 = vld [vmem:[%s10247_s1 + $0x10] sm:$0xff]   ;;  %v7840_v27 = vmov 0   ;;  %vm1267_vm0 = vcmask 1043456  }
   0xe   : > { %7213 = vmatprep.subr.bf16.mxu0 %v7638_v0  ;;  %7453 = vmatprep.subr.bf16.mxu1 %v7638_v0  ;;  %v7641_v3 = vld [vmem:[%s10247_s1 + $0x18] sm:$0xff]   ;;  %v7642_v5 = vld [vmem:[%s10247_s1 + $0x20] sm:$0xff]   ;;  %v7643_v7 = vld [vmem:[%s10247_s1 + $0x28] sm:$0xff]   ;;  %815 = vst [vmem:[#allocation2 + $0x18] sm:$0xf] %v7840_v27  ;;  %vm1274_vm4 = vcmask 1040384  }
   0xf   : > { %s351_s19 = scalar_select %p350_p3, %s7902_s14, 1  ;;  %7214 = vmatpush3.bf16.msra.mxu0 %v7638_v0  ;;  %7461 = vmatpush3.bf16.msra.mxu1 %v7638_v0  ;;  %v7644_v8 = vld [vmem:[%s10247_s1 + $0x30] sm:$0xff]   ;;  %v7645_v9 = vld [vmem:[%s10247_s1 + $0x38] sm:$0xff]   ;;  %v7662_v24 = vld [vmem:[%s10250_s4 + $0x140] sm:$0xff]   ;;  %809 = vst [vmem:[#allocation2] sm:$0xf] %v7840_v27 }
  0x10   : > { %7215 = vmatprep.subr.bf16.mxu0 %v7639_v1  ;;  %7454 = vmatprep.subr.bf16.mxu1 %v7639_v1  ;;  %v7663_v25 = vld [vmem:[%s10250_s4 + $0x148] sm:$0xff]   ;;  %v7664_v26 = vld [vmem:[%s10250_s4 + $0x100] sm:$0xff]   ;;  %810 = vst [vmem:[#allocation2 + $0x4] sm:$0xf] %v7840_v27  ;;  %811 = vst [vmem:[#allocation2 + $0x8] sm:$0x1] %v7840_v27 }
  0x11   : > { %s6597_s22 = sshll.u32 %s351_s19, 7  ;;  %812 = vst [vmem:[#allocation2 + $0xc] sm:$0xf] %v7840_v27  ;;  %813 = vst [vmem:[#allocation2 + $0x10] sm:$0xf] %v7840_v27  ;;  %v7665_v28 = vld [vmem:[%s10250_s4 + $0xc0] sm:$0xff]  }
  0x12   : > { %s7920_s25 = scalar_lea.vmem %s10246_s0, %s6597_s22  ;;  %814 = vst [vmem:[#allocation2 + $0x14] sm:$0x1] %v7840_v27  ;;  %816 = vst [vmem:[#allocation2 + $0x1c] sm:$0xf] %v7840_v27  ;;  %v7666_v29 = vld [vmem:[%s10250_s4 + $0x150] sm:$0xff]   ;;  %v7667_v30 = vld [vmem:[%s10250_s4 + $0x108] sm:$0xff]  }
  0x13   : > { %7216 = vmatpush3.bf16.msra.mxu0 %v7639_v1  ;;  %7462 = vmatpush3.bf16.msra.mxu1 %v7639_v1  ;;  %v7646_v4 = vld [vmem:[%s7920_s25] sm:$0xff]   ;;  %v7647_v10 = vld [vmem:[%s7920_s25 + $0x8] sm:$0xff]   ;;  %v7648_v12 = vld [vmem:[%s7920_s25 + $0x10] sm:$0xff]   ;;  %817 = vst [vmem:[#allocation2 + $0x20] sm:$0x1] %v7840_v27  ;;  %vm1883_vm8 = vcmask 1042432  }
  0x14   : > { %7217 = vmatprep.subr.bf16.mxu0 %v7640_v2  ;;  %7455 = vmatprep.subr.bf16.mxu1 %v7640_v2  ;;  %v7652_v6 = vld [vmem:[%s7920_s25 + $0x40] sm:$0xff]   ;;  %v7654_v11 = vld [vmem:[%s7920_s25 + $0x48] sm:$0xff]   ;;  %v7656_v13 = vld [vmem:[%s7920_s25 + $0x50] sm:$0xff]   ;;  %818 = vst [vmem:[#allocation2 + $0x24] sm:$0xf] %v7840_v27  ;;  %vm1884_vm9 = vcmask 1046532  }
  0x15   : > { %7229 = vmatprep.mubr.bf16.mxu0 %v7646_v4  ;;  %7245 = vmatprep.mubr.bf16.mxu1 %v7652_v6  ;;  %v7649_v14 = vld [vmem:[%s7920_s25 + $0x18] sm:$0xff]   ;;  %v7650_v16 = vld [vmem:[%s7920_s25 + $0x20] sm:$0xff]   ;;  %v7651_v18 = vld [vmem:[%s7920_s25 + $0x28] sm:$0xff]   ;;  %819 = vst [vmem:[#allocation2 + $0x28] sm:$0xf] %v7840_v27  ;;  %s6131_s30 = sshll.u32 %s7902_s14, 5 }
  0x16   : > { %v7657_v15 = vld [vmem:[%s7920_s25 + $0x58] sm:$0xff]   ;;  %v7658_v17 = vld [vmem:[%s7920_s25 + $0x60] sm:$0xff]   ;;  %v7659_v19 = vld [vmem:[%s7920_s25 + $0x68] sm:$0xff]   ;;  %820 = vst [vmem:[#allocation2 + $0x2c] sm:$0x1] %v7840_v27  ;;  %p356_p4 = scmp.lt.s32.totalorder %s6131_s30, 63 }
  0x17   : > { %7218 = vmatpush3.bf16.msra.mxu0 %v7640_v2  ;;  %7463 = vmatpush3.bf16.msra.mxu1 %v7640_v2  ;;  %v7653_v20 = vld [vmem:[%s7920_s25 + $0x30] sm:$0xff]   ;;  %v7655_v22 = vld [vmem:[%s7920_s25 + $0x38] sm:$0xff]   ;;  %821 = vst [vmem:[#allocation2 + $0x30] sm:$0xf] %v7840_v27  ;;  %822 = vst [vmem:[#allocation2 + $0x34] sm:$0xf] %v7840_v27 }
  0x18   : > { %7219 = vmatprep.subr.bf16.mxu0 %v7641_v3  ;;  %7456 = vmatprep.subr.bf16.mxu1 %v7641_v3  ;;  %v7660_v21 = vld [vmem:[%s7920_s25 + $0x70] sm:$0xff]   ;;  %v7661_v23 = vld [vmem:[%s7920_s25 + $0x78] sm:$0xff]   ;;  %823 = vst [vmem:[#allocation2 + $0x38] sm:$0x1] %v7840_v27  ;;  %824 = vst [vmem:[#allocation2 + $0x3c] sm:$0xf] %v7840_v27 }
  0x19   : > { %825 = vst [vmem:[#allocation2 + $0x40] sm:$0xf] %v7840_v27  ;;  %826 = vst [vmem:[#allocation2 + $0x44] sm:$0x1] %v7840_v27  ;;  %v7668_v31 = vld [vmem:[%s10250_s4 + $0xc8] sm:$0xff]   ;;  %v7669_v32 = vld [vmem:[%s10250_s4 + $0x158] sm:$0xff]  }
  0x1a   : > { %827 = vst [vmem:[#allocation2 + $0x48] sm:$0xf] %v7840_v27  ;;  %828 = vst [vmem:[#allocation2 + $0x4c] sm:$0xf] %v7840_v27  ;;  %v7670_v33 = vld [vmem:[%s10250_s4 + $0x110] sm:$0xff]   ;;  %v7672_v35 = vld [vmem:[%s10250_s4 + $0x160] sm:$0xff]  }
  0x1b   : > { %7220 = vmatpush3.bf16.msra.mxu0 %v7641_v3  ;;  %7464 = vmatpush3.bf16.msra.mxu1 %v7641_v3  ;;  %829 = vst [vmem:[#allocation2 + $0x50] sm:$0x1] %v7840_v27  ;;  %830 = vst [vmem:[#allocation2 + $0x54] sm:$0xf] %v7840_v27  ;;  %v7671_v34 = vld [vmem:[%s10250_s4 + $0xd0] sm:$0xff]   ;;  %v7673_v36 = vld [vmem:[%s10250_s4 + $0x118] sm:$0xff]  }
  0x1c   : > { %7221 = vmatprep.subr.bf16.mxu0 %v7642_v5  ;;  %7457 = vmatprep.subr.bf16.mxu1 %v7642_v5  ;;  %831 = vst [vmem:[#allocation2 + $0x58] sm:$0xf] %v7840_v27  ;;  %832 = vst [vmem:[#allocation2 + $0x5c] sm:$0x1] %v7840_v27  ;;  %v7674_v37 = vld [vmem:[%s10250_s4 + $0xd8] sm:$0xff]   ;;  %v7675_v38 = vld [vmem:[%s10250_s4 + $0x168] sm:$0xff]  }
  0x1d   : > { %833 = vst [vmem:[#allocation2 + $0x60] sm:$0xf] %v7840_v27  ;;  %834 = vst [vmem:[#allocation2 + $0x64] sm:$0xf] %v7840_v27  ;;  %v7676_v39 = vld [vmem:[%s10250_s4 + $0x120] sm:$0xff]   ;;  %v7678_v41 = vld [vmem:[%s10250_s4 + $0x170] sm:$0xff]  }
  0x1e   : > { %835 = vst [vmem:[#allocation2 + $0x68] sm:$0x1] %v7840_v27  ;;  %836 = vst [vmem:[#allocation2 + $0x6c] sm:$0xf] %v7840_v27  ;;  %v7677_v40 = vld [vmem:[%s10250_s4 + $0xe0] sm:$0xff]   ;;  %v7679_v42 = vld [vmem:[%s10250_s4 + $0x128] sm:$0xff]  }
  0x1f   : > { %7222 = vmatpush3.bf16.msra.mxu0 %v7642_v5  ;;  %7465 = vmatpush3.bf16.msra.mxu1 %v7642_v5  ;;  %837 = vst [vmem:[#allocation2 + $0x70] sm:$0xf] %v7840_v27  ;;  %838 = vst [vmem:[#allocation2 + $0x74] sm:$0x1] %v7840_v27  ;;  %v7680_v43 = vld [vmem:[%s10250_s4 + $0xe8] sm:$0xff]   ;;  %v7681_v44 = vld [vmem:[%s10250_s4 + $0x178] sm:$0xff]  }
  0x20   : > { %7223 = vmatprep.subr.bf16.mxu0 %v7643_v7  ;;  %7458 = vmatprep.subr.bf16.mxu1 %v7643_v7  ;;  %839 = vst [vmem:[#allocation2 + $0x78] sm:$0xf] %v7840_v27  ;;  %840 = vst [vmem:[#allocation2 + $0x7c] sm:$0xf] %v7840_v27  ;;  %v7682_v45 = vld [vmem:[%s10250_s4 + $0x130] sm:$0xff]   ;;  %v7685_v47 = vld [vmem:[%s10250_s4 + $0x138] sm:$0xff]  }
  0x21   : > { %841 = vst [vmem:[#allocation2 + $0x80] sm:$0x1] %v7840_v27  ;;  %842 = vst [vmem:[#allocation2 + $0x84] sm:$0xf] %v7840_v27  ;;  %v7683_v46 = vld [vmem:[%s10250_s4 + $0xf0] sm:$0xff]   ;;  %v7684_v48 = vld [vmem:[%s10250_s4 + $0x40] sm:$0xff]  }
  0x22   : > { %843 = vst [vmem:[#allocation2 + $0x88] sm:$0xf] %v7840_v27  ;;  %844 = vst [vmem:[#allocation2 + $0x8c] sm:$0x1] %v7840_v27  ;;  %v7687_v49 = vld [vmem:[%s10250_s4 + $0xf8] sm:$0xff]   ;;  %s10361_s30 = smov (!%p356_p4, %s6131_s30), 63 }
  0x23   : > { %7224 = vmatpush3.bf16.msra.mxu0 %v7643_v7  ;;  %7466 = vmatpush3.bf16.msra.mxu1 %v7643_v7  ;;  %845 = vst [vmem:[#allocation2 + $0x90] sm:$0xf] %v7840_v27  ;;  %846 = vst [vmem:[#allocation2 + $0x94] sm:$0xf] %v7840_v27  ;;  %v8031_v50 = vld [vmem:[%s10248_s2] ss:$0 sm:$0xff] }
  0x24   : > { %7225 = vmatprep.subr.bf16.mxu0 %v7644_v8  ;;  %7459 = vmatprep.subr.bf16.mxu1 %v7644_v8  ;;  %847 = vst [vmem:[#allocation2 + $0x98] sm:$0x1] %v7840_v27  ;;  %848 = vst [vmem:[#allocation2 + $0x9c] sm:$0xf] %v7840_v27  ;;  %v8036_v52 = vld [vmem:[%s10249_s3] ss:$0 sm:$0xff] }
  0x25   : > { %849 = vst [vmem:[#allocation2 + $0xa0] sm:$0xf] %v7840_v27  ;;  %850 = vst [vmem:[#allocation2 + $0xa4] sm:$0x1] %v7840_v27  ;;  %vm1268_vm1 = vsmask.f32 7938 }
  0x26   : > { %851 = vst [vmem:[#allocation2 + $0xa8] sm:$0xf] %v7840_v27  ;;  %852 = vst [vmem:[#allocation2 + $0xac] sm:$0xf] %v7840_v27  ;;  %vm943_vm2 = vsmask.f32 256 }
  0x27   : > { %7226 = vmatpush3.bf16.msra.mxu0 %v7644_v8  ;;  %7467 = vmatpush3.bf16.msra.mxu1 %v7644_v8  ;;  %853 = vst [vmem:[#allocation2 + $0xb0] sm:$0x1] %v7840_v27  ;;  %854 = vst [vmem:[#allocation2 + $0xb4] sm:$0xf] %v7840_v27  ;;  %vm944_vm3 = vsmask.f32 4368 }
  0x28   : > { %7227 = vmatprep.subr.bf16.mxu0 %v7645_v9  ;;  %7460 = vmatprep.subr.bf16.mxu1 %v7645_v9  ;;  %855 = vst [vmem:[#allocation2 + $0xb8] sm:$0xf] %v7840_v27  ;;  %856 = vst [vmem:[#allocation2 + $0xbc] sm:$0x1] %v7840_v27  ;;  %vm1432_vm11 = vsmask.f32 3328 }
  0x29   : > { %857 = vst [vmem:[#allocation2 + $0xc0] sm:$0xf] %v7840_v27  ;;  %858 = vst [vmem:[#allocation2 + $0xc4] sm:$0xf] %v7840_v27  ;;  %vm1433_vm12 = vsmask.f32 7440 }
  0x2a   : > { %859 = vst [vmem:[#allocation2 + $0xc8] sm:$0x1] %v7840_v27  ;;  %860 = vst [vmem:[#allocation2 + $0xcc] sm:$0xf] %v7840_v27  ;;  %s6132_s14 = sshll.u32 %s10361_s30, 2 }
  0x2b   : > { %7228 = vmatpush3.bf16.msra.mxu0 %v7645_v9  ;;  %7468 = vmatpush3.bf16.msra.mxu1 %v7645_v9  ;;  %861 = vst [vmem:[#allocation2 + $0xd0] sm:$0xf] %v7840_v27  ;;  %862 = vst [vmem:[#allocation2 + $0xd4] sm:$0x1] %v7840_v27  ;;  %s10142_s19 = scalar_lea.vmem %s10256_s10, %s6132_s14 }
  0x2c   : > { %7261 = vmatprep.subr.bf16.mxu0 %v7662_v24  ;;  %6781 = vmatprep.subr.bf16.mxu1 %v7664_v26  ;;  %vm8095_vm5 = vmand %vm1267_vm0, %vm1268_vm1 }
  0x2d   : > { %vm8104_vm6 = vmor %vm943_vm2, %vm944_vm3 }
  0x2e   : > { %7230 = vmatmul.mubr.bf16.vlgmr.msra.gmra.mrb[0].mxu0 %v7647_v10  ;;  %7246 = vmatmul.mubr.bf16.vlgmr.msra.gmra.mrb[0].mxu1 %v7654_v11  ;;  %vm8115_vm7 = vmand %vm1274_vm4, %vm943_vm2 }
  0x2f   : > { %7233 = vmatprep.mubr.bf16.mxu0 %v7648_v12  ;;  %7249 = vmatprep.mubr.bf16.mxu1 %v7656_v13  ;;  %vm8310_vm10 = vmor %vm1883_vm8, %vm1884_vm9 }
  0x30   : > { %7262 = vmatpush3.bf16.msra.mxu0 %v7662_v24  ;;  %6782 = vmatpush3.bf16.msra.mxu1 %v7665_v28  ;;  %vm8395_vm13 = vmor %vm1432_vm11, %vm1433_vm12 }
  0x31   : > { %7263 = vmatprep.subr.bf16.mxu0 %v7663_v25  ;;  %6783 = vmatprep.subr.bf16.mxu1 %v7667_v30 }
  0x34   : > { %7264 = vmatpush3.bf16.msra.mxu0 %v7663_v25  ;;  %6784 = vmatpush3.bf16.msra.mxu1 %v7668_v31 }
  0x35   : > { %7265 = vmatprep.subr.bf16.mxu0 %v7666_v29  ;;  %6785 = vmatprep.subr.bf16.mxu1 %v7670_v33  ;;  %v7743_v33 = vld [vmem:[%s10250_s4 + $0x1b0] sm:$0xff]  }
  0x36   : > { %7234 = vmatmul.mubr.bf16.gmra.mrb[4].mxu0 %v7649_v14  ;;  %7250 = vmatmul.mubr.bf16.gmra.mrb[4].mxu1 %v7657_v15 }
  0x37   : > { %7237 = vmatprep.mubr.bf16.mxu0 %v7650_v16  ;;  %7253 = vmatprep.mubr.bf16.mxu1 %v7658_v17 }
  0x38   : > { %7266 = vmatpush3.bf16.msra.mxu0 %v7666_v29  ;;  %6786 = vmatpush3.bf16.msra.mxu1 %v7671_v34 }
  0x39   : > { %7267 = vmatprep.subr.bf16.mxu0 %v7669_v32  ;;  %6787 = vmatprep.subr.bf16.mxu1 %v7673_v36 }
  0x3c   : > { %7268 = vmatpush3.bf16.msra.mxu0 %v7669_v32  ;;  %6788 = vmatpush3.bf16.msra.mxu1 %v7674_v37 }
  0x3d   : > { %7269 = vmatprep.subr.bf16.mxu0 %v7672_v35  ;;  %6789 = vmatprep.subr.bf16.mxu1 %v7676_v39 }
  0x3e   : > { %7238 = vmatmul.mubr.bf16.gmra.mrb[8].mxu0 %v7651_v18  ;;  %7254 = vmatmul.mubr.bf16.gmra.mrb[8].mxu1 %v7659_v19 }
  0x3f   : > { %7241 = vmatprep.mubr.bf16.mxu0 %v7653_v20  ;;  %7257 = vmatprep.mubr.bf16.mxu1 %v7660_v21  ;;  %v1279_v20 = vld [vmem:[#allocation2 + $0x18] sm:$0xf] }
  0x40   : > { %7270 = vmatpush3.bf16.msra.mxu0 %v7672_v35  ;;  %6790 = vmatpush3.bf16.msra.mxu1 %v7677_v40 }
  0x41   : > { %7271 = vmatprep.subr.bf16.mxu0 %v7675_v38  ;;  %6791 = vmatprep.subr.bf16.mxu1 %v7679_v42  ;;  %v1270_v42 = vld [vmem:[#allocation2 + $0xc] sm:$0xf] }
  0x44   : > { %7272 = vmatpush3.bf16.msra.mxu0 %v7675_v38  ;;  %6792 = vmatpush3.bf16.msra.mxu1 %v7680_v43 }
  0x45   : > { %7273 = vmatprep.subr.bf16.mxu0 %v7678_v41  ;;  %6793 = vmatprep.subr.bf16.mxu1 %v7682_v45 }
  0x46   : > { %7242 = vmatmul.mubr.bf16.gmra.mrb[12].mxu0 %v7655_v22  ;;  %7258 = vmatmul.mubr.bf16.gmra.mrb[12].mxu1 %v7661_v23 }
  0x48   : > { %7274 = vmatpush3.bf16.msra.mxu0 %v7678_v41  ;;  %6794 = vmatpush3.bf16.msra.mxu1 %v7683_v46 }
  0x49   : > { %7275 = vmatprep.subr.bf16.mxu0 %v7681_v44  ;;  %6795 = vmatprep.subr.bf16.mxu1 %v7685_v47 }
  0x4c   : > { %7276 = vmatpush3.bf16.msra.mxu0 %v7681_v44  ;;  %6796 = vmatpush3.bf16.msra.mxu1 %v7687_v49 }
  0x4d   : > { %6917 = vmatprep.subr.bf16.mxu0 %v7684_v48 }
 0x101   : > { %v7231_v51 = vpop.f32.mrb[0].mxu0  ;;  %v7247_v53 = vpop.f32.mrb[0].mxu1 }
 0x102   : > { %v724_v54 = vmul.f32 %v7231_v51, %v8031_v50  ;;  %v588_v55 = vpop.f32.mrb[1].mxu0  ;;  %v740_v56 = vmul.f32 %v7247_v53, %v8031_v50  ;;  %v652_v57 = vpop.f32.mrb[1].mxu1  ;;  %v1283_v53 = vld [vmem:[#allocation2 + $0x20] sm:$0x1] }
 0x103   : > { %v722_v58 = vmul.f32 %v8031_v50, %v588_v55  ;;  %v7232_v59 = vpop.f32.mrb[2].mxu0  ;;  %v738_v60 = vmul.f32 %v8031_v50, %v652_v57  ;;  %v7248_v61 = vpop.f32.mrb[2].mxu1 }
 0x104   : > { %v8043_v62 = vadd.f32 %v8036_v52, %v724_v54  ;;  %v725_v63 = vmul.f32 %v7232_v59, %v8031_v50  ;;  %v591_v0 = vpop.f32.mrb[3].mxu0  ;;  %v8047_v1 = vadd.f32 %v8036_v52, %v740_v56  ;;  %v741_v2 = vmul.f32 %v7248_v61, %v8031_v50  ;;  %v655_v3 = vpop.f32.mrb[3].mxu1  ;;  %v1276_v59 = vld [vmem:[#allocation2 + $0x14] sm:$0x1] }
 0x105   : > { %v8051_v4 = vadd.f32 %v8036_v52, %v722_v58  ;;  %v723_v5 = vmul.f32 %v8031_v50, %v591_v0  ;;  %v8055_v6 = vadd.f32 %v8036_v52, %v738_v60  ;;  %v739_v7 = vmul.f32 %v8031_v50, %v655_v3 }
 0x106   : > { %10286 = vst [vmem:[#allocation3_spill] sm:$0xff] %v8047_v1  ;;  %v6600_v8 = vpack.c.bf16 %v8043_v62, %v8043_v62  ;;  %v8061_v9 = vadd.f32 %v8036_v52, %v725_v63  ;;  %v8065_v10 = vpack.c.bf16 %v8047_v1, %v8047_v1  ;;  %v8068_v11 = vadd.f32 %v8036_v52, %v741_v2 }
 0x107   : > { %10287 = vst [vmem:[#allocation4_spill] sm:$0xff] %v8055_v6  ;;  %v6598_v12 = vpack.c.bf16 %v8051_v4, %v8051_v4  ;;  %v8073_v13 = vadd.f32 %v8036_v52, %v723_v5  ;;  %v8077_v14 = vpack.c.bf16 %v8055_v6, %v8055_v6  ;;  %v8080_v15 = vadd.f32 %v8036_v52, %v739_v7 }
 0x108   : > { %10288 = vst [vmem:[#allocation5_spill] sm:$0xff] %v8068_v11  ;;  %v964_v16 = vshrl.u32 %v6600_v8, 16  ;;  %v967_v17 = vshll.u32 %v6600_v8, 16  ;;  %v6601_v18 = vpack.c.bf16 %v8061_v9, %v8061_v9  ;;  %v1100_v19 = vshrl.u32 %v8065_v10, 16 }
 0x109   : > { %10289 = vst [vmem:[#allocation6_spill] sm:$0xff] %v8073_v13  ;;  %10290 = vst [vmem:[#allocation7_spill] sm:$0xff] %v8080_v15  ;;  %v947_v21 = vshrl.u32 %v6598_v12, 16  ;;  %v950_v22 = vshll.u32 %v6598_v12, 16  ;;  %v6599_v23 = vpack.c.bf16 %v8073_v13, %v8073_v13  ;;  %v7235_v24 = vpop.f32.mrb[4].mxu0  ;;  %v1103_v25 = vshll.u32 %v8065_v10, 16 }
 0x10a   : > { %v8088_v26 = vpop.f32.mrb[4].mxu1  ;;  %v966_v27 = vrot.slane %v964_v16, 7  ;;  %v972_v28 = vshrl.u32 %v6601_v18, 16  ;;  %v975_v29 = vshll.u32 %v6601_v18, 16  ;;  %v728_v30 = vmul.f32 %v7235_v24, %v8031_v50  ;;  %v604_v31 = vpop.f32.mrb[5].mxu0 }
 0x10b   : > { %v8091_v32 = vpop.f32.mrb[5].mxu1  ;;  %v949_v34 = vrot.slane %v947_v21, 7  ;;  %v955_v35 = vshrl.u32 %v6599_v23, 16  ;;  %v958_v36 = vshll.u32 %v6599_v23, 16  ;;  %v726_v37 = vmul.f32 %v8031_v50, %v604_v31  ;;  %v7236_v38 = vpop.f32.mrb[6].mxu0 }
 0x10c   : > { %v8100_v39 = vpop.f32.mrb[6].mxu1  ;;  %v969_v40 = vor.u32 %v967_v17, %v966_v27  ;;  %v970_v41 = vrot.slane %v966_v27, 4  ;;  %v974_v44 = vrot.slane %v972_v28, 7  ;;  %v8109_v45 = vadd.f32 %v8036_v52, %v728_v30  ;;  %v607_v46 = vpop.f32.mrb[7].mxu0  ;;  %v1293_v23 = vld [vmem:[#allocation2 + $0x30] sm:$0xf] }
 0x10d   : > { %v8111_v47 = vpop.f32.mrb[7].mxu1  ;;  %v952_v48 = vor.u32 %v950_v22, %v949_v34  ;;  %v953_v49 = vrot.slane %v949_v34, 4  ;;  %v957_v54 = vrot.slane %v955_v35, 7  ;;  %v8120_v55 = vadd.f32 %v8036_v52, %v726_v37 }
 0x10e   : > { %10295 = vst [vmem:[#allocation8_spill] sm:$0xff] %v8109_v45  ;;  %v1280_v56 = vsel %vm8095_vm5, %v969_v40, %v1279_v20  ;;  %v977_v57 = vor.u32 %v975_v29, %v974_v44  ;;  %v979_v58 = vrot.slane %v974_v44, 4  ;;  %v6604_v60 = vpack.c.bf16 %v8109_v45, %v8109_v45 }
 0x10f   : > { %10298 = vst [vmem:[#allocation9_spill] sm:$0xff] %v8120_v55  ;;  %1281 = vst [vmem:[#allocation2 + $0x18] sm:$0xf] %v1280_v56  ;;  %v1271_v61 = vsel %vm8095_vm5, %v952_v48, %v1270_v42  ;;  %v960_v63 = vor.u32 %v958_v36, %v957_v54  ;;  %v962_v0 = vrot.slane %v957_v54, 4  ;;  %v6602_v2 = vpack.c.bf16 %v8120_v55, %v8120_v55  ;;  %v1286_v42 = vld [vmem:[#allocation2 + $0x24] sm:$0xf] }
 0x110   : > { %1272 = vst [vmem:[#allocation2 + $0xc] sm:$0xf] %v1271_v61  ;;  %v978_v3 = vsel %vm8104_vm6, %v970_v41, %v977_v57  ;;  %v1284_v5 = vsel %vm8115_vm7, %v979_v58, %v1283_v53  ;;  %v998_v7 = vshrl.u32 %v6604_v60, 16  ;;  %v1001_v8 = vshll.u32 %v6604_v60, 16  ;;  %v7710_v61 = vld [vmem:[%s10250_s4 + $0x1c0] sm:$0xff]  }
 0x111   : > { %1282 = vst [vmem:[#allocation2 + $0x1c] sm:$0xf] %v978_v3  ;;  %1285 = vst [vmem:[#allocation2 + $0x20] sm:$0x1] %v1284_v5  ;;  %v961_v12 = vsel %vm8104_vm6, %v953_v49, %v960_v63  ;;  %v1277_v16 = vsel %vm8115_vm7, %v962_v0, %v1276_v59  ;;  %v981_v17 = vshrl.u32 %v6602_v2, 16  ;;  %v984_v18 = vshll.u32 %v6602_v2, 16  ;;  %7053 = vmatprep.subr.bf16.mxu1 %v7710_v61 }
 0x112   : > { %v7239_v20 = vpop.f32.mrb[8].mxu0  ;;  %v8138_v21 = vpop.f32.mrb[8].mxu1  ;;  %1273 = vst [vmem:[#allocation2 + $0x10] sm:$0xf] %v961_v12  ;;  %1278 = vst [vmem:[#allocation2 + $0x14] sm:$0x1] %v1277_v16  ;;  %v729_v24 = vmul.f32 %v7236_v38, %v8031_v50  ;;  %v727_v27 = vmul.f32 %v8031_v50, %v607_v46 }
 0x113   : > { %v8140_v22 = vrot.slane %v998_v7, 7  ;;  %v732_v28 = vmul.f32 %v7239_v20, %v8031_v50  ;;  %v620_v29 = vpop.f32.mrb[9].mxu0  ;;  %v8145_v30 = vpop.f32.mrb[9].mxu1  ;;  %v8147_v31 = vrot.slane %v981_v17, 7  ;;  %v8152_v36 = vrot.slane %v1100_v19, 7 }
 0x114   : > { %v730_v34 = vmul.f32 %v8031_v50, %v620_v29  ;;  %v7240_v35 = vpop.f32.mrb[10].mxu0  ;;  %v1083_v37 = vshrl.u32 %v8077_v14, 16  ;;  %v8155_v40 = vpop.f32.mrb[10].mxu1  ;;  %v8160_v44 = vadd.f32 %v8036_v52, %v729_v24  ;;  %v8163_v46 = vadd.f32 %v8036_v52, %v727_v27  ;;  %v1297_v16 = vld [vmem:[#allocation2 + $0x38] sm:$0x1] }
 0x115   : > { %v1003_v38 = vor.u32 %v1001_v8, %v8140_v22  ;;  %v1004_v41 = vrot.slane %v8140_v22, 4  ;;  %v623_v48 = vpop.f32.mrb[11].mxu0  ;;  %v8165_v49 = vpop.f32.mrb[11].mxu1  ;;  %v986_v19 = vor.u32 %v984_v18, %v8147_v31  ;;  %v987_v53 = vrot.slane %v8147_v31, 4  ;;  %v1290_v29 = vld [vmem:[#allocation2 + $0x2c] sm:$0x1] }
 0x116   : > { %10299 = vst [vmem:[#allocation10_spill] sm:$0xff] %v8160_v44  ;;  %10300 = vst [vmem:[#allocation11_spill] sm:$0xff] %v8163_v46  ;;  %v8170_v54 = vadd.f32 %v8036_v52, %v732_v28  ;;  %v8173_v56 = vadd.f32 %v8036_v52, %v730_v34  ;;  %v6605_v58 = vpack.c.bf16 %v8160_v44, %v8160_v44 }
 0x117   : > { %v1294_v57 = vsel %vm8095_vm5, %v1003_v38, %v1293_v23  ;;  %v6603_v59 = vpack.c.bf16 %v8163_v46, %v8163_v46  ;;  %v733_v60 = vmul.f32 %v7240_v35, %v8031_v50  ;;  %v1287_v63 = vsel %vm8095_vm5, %v986_v19, %v1286_v42 }
 0x118   : > { %10301 = vst [vmem:[#allocation12_spill] sm:$0xff] %v8170_v54  ;;  %10302 = vst [vmem:[#allocation13_spill] sm:$0xff] %v8173_v56  ;;  %v6608_v0 = vpack.c.bf16 %v8170_v54, %v8170_v54  ;;  %v6606_v2 = vpack.c.bf16 %v8173_v56, %v8173_v56  ;;  %v731_v3 = vmul.f32 %v8031_v50, %v623_v48  ;;  %v1006_v5 = vshrl.u32 %v6605_v58, 16  ;;  %v1307_v48 = vld [vmem:[#allocation2 + $0x48] sm:$0xf] }
 0x119   : > { %1295 = vst [vmem:[#allocation2 + $0x30] sm:$0xf] %v1294_v57  ;;  %1288 = vst [vmem:[#allocation2 + $0x24] sm:$0xf] %v1287_v63  ;;  %v1009_v7 = vshll.u32 %v6605_v58, 16  ;;  %v989_v8 = vshrl.u32 %v6603_v59, 16  ;;  %v8195_v31 = vadd.f32 %v8036_v52, %v733_v60  ;;  %v1105_v57 = vor.u32 %v1103_v25, %v8152_v36 }
 0x11a   : > { %v992_v12 = vshll.u32 %v6603_v59, 16  ;;  %v1032_v17 = vshrl.u32 %v6608_v0, 16  ;;  %v1035_v18 = vshll.u32 %v6608_v0, 16  ;;  %v1015_v20 = vshrl.u32 %v6606_v2, 16  ;;  %v7243_v23 = vpop.f32.mrb[12].mxu0  ;;  %v8192_v24 = vpop.f32.mrb[12].mxu1 }
 0x11b   : > { %v1018_v22 = vshll.u32 %v6606_v2, 16  ;;  %v1008_v27 = vrot.slane %v1006_v5, 7  ;;  %v991_v28 = vrot.slane %v989_v8, 7  ;;  %10303 = vst [vmem:[#allocation14_spill] sm:$0xff] %v8195_v31  ;;  %v8198_v34 = vadd.f32 %v8036_v52, %v731_v3  ;;  %v636_v35 = vpop.f32.mrb[13].mxu0  ;;  %v8200_v38 = vpop.f32.mrb[13].mxu1 }
 0x11c   : > { %v8202_v42 = vrot.slane %v1032_v17, 7  ;;  %v8204_v19 = vrot.slane %v1015_v20, 7  ;;  %v7244_v59 = vpop.f32.mrb[14].mxu0  ;;  %v1300_v2 = vld [vmem:[#allocation2 + $0x3c] sm:$0xf]  ;;  %v8212_v5 = vpop.f32.mrb[14].mxu1 }
 0x11d   : > { %10304 = vst [vmem:[#allocation15_spill] sm:$0xff] %v8198_v34  ;;  %v1011_v60 = vor.u32 %v1009_v7, %v1008_v27  ;;  %v1013_v61 = vrot.slane %v1008_v27, 4  ;;  %v994_v63 = vor.u32 %v992_v12, %v991_v28  ;;  %v996_v0 = vrot.slane %v991_v28, 4  ;;  %v8210_v3 = vpop.f32.mrb[15].mxu0  ;;  %v1335_v25 = vld [vmem:[#allocation2 + $0x78] sm:$0xf] }
 0x11e   : > { %v1037_v8 = vor.u32 %v1035_v18, %v8202_v42  ;;  %v1038_v17 = vrot.slane %v8202_v42, 4  ;;  %v1020_v20 = vor.u32 %v1018_v22, %v8204_v19  ;;  %v1021_v10 = vrot.slane %v8204_v19, 4  ;;  %v8218_v58 = vpop.f32.mrb[15].mxu1 }
 0x11f   : > { %v1012_v7 = vsel %vm8104_vm6, %v1004_v41, %v1011_v60  ;;  %v1298_v12 = vsel %vm8115_vm7, %v1013_v61, %v1297_v16  ;;  %v995_v27 = vsel %vm8104_vm6, %v987_v53, %v994_v63  ;;  %v1291_v18 = vsel %vm8115_vm7, %v996_v0, %v1290_v29  ;;  %v1328_v0 = vld [vmem:[#allocation2 + $0x6c] sm:$0xf] }
 0x120   : > { %1296 = vst [vmem:[#allocation2 + $0x34] sm:$0xf] %v1012_v7  ;;  %1299 = vst [vmem:[#allocation2 + $0x38] sm:$0x1] %v1298_v12  ;;  %v1308_v22 = vsel %vm8095_vm5, %v1037_v8, %v1307_v48  ;;  %v1301_v28 = vsel %vm8095_vm5, %v1020_v20, %v1300_v2  ;;  %v6609_v41 = vpack.c.bf16 %v8195_v31, %v8195_v31  ;;  %v8241_v42 = vrot.slane %v1083_v37, 7 }
 0x121   : > { %1289 = vst [vmem:[#allocation2 + $0x28] sm:$0xf] %v995_v27  ;;  %1292 = vst [vmem:[#allocation2 + $0x2c] sm:$0x1] %v1291_v18  ;;  %v6607_v16 = vpack.c.bf16 %v8198_v34, %v8198_v34  ;;  %v1336_v53 = vsel %vm8095_vm5, %v1105_v57, %v1335_v25  ;;  %v736_v29 = vmul.f32 %v7243_v23, %v8031_v50  ;;  %v1086_v48 = vshll.u32 %v8077_v14, 16 }
 0x122   : > { %1309 = vst [vmem:[#allocation2 + $0x48] sm:$0xf] %v1308_v22  ;;  %1302 = vst [vmem:[#allocation2 + $0x3c] sm:$0xf] %v1301_v28  ;;  %v1040_v19 = vshrl.u32 %v6609_v41, 16  ;;  %v1043_v60 = vshll.u32 %v6609_v41, 16  ;;  %v734_v23 = vmul.f32 %v8031_v50, %v636_v35  ;;  %v6617_v14 = vpack.c.bf16 %v8068_v11, %v8068_v11 }
 0x123   : > { %v1023_v61 = vshrl.u32 %v6607_v16, 16  ;;  %v1026_v63 = vshll.u32 %v6607_v16, 16  ;;  %1337 = vst [vmem:[#allocation2 + $0x78] sm:$0xf] %v1336_v53  ;;  %v8245_v2 = vadd.f32 %v8036_v52, %v736_v29  ;;  %v1088_v8 = vor.u32 %v1086_v48, %v8241_v42  ;;  %v1311_v7 = vld [vmem:[#allocation2 + $0x50] sm:$0x1] }
 0x124   : > { %v1042_v20 = vrot.slane %v1040_v19, 7  ;;  %v737_v25 = vmul.f32 %v7244_v59, %v8031_v50  ;;  %v1304_v12 = vld [vmem:[#allocation2 + $0x44] sm:$0x1]  ;;  %v8258_v22 = vadd.f32 %v8036_v52, %v734_v23  ;;  %v6615_v35 = vpack.c.bf16 %v8080_v15, %v8080_v15  ;;  %v1321_v23 = vld [vmem:[#allocation2 + $0x60] sm:$0xf] }
 0x125   : > { %10305 = vst [vmem:[#allocation16_spill] sm:$0xff] %v8245_v2  ;;  %v1025_v37 = vrot.slane %v1023_v61, 7  ;;  %v6612_v27 = vpack.c.bf16 %v8245_v2, %v8245_v2  ;;  %v1329_v18 = vsel %vm8095_vm5, %v1088_v8, %v1328_v0  ;;  %v1108_v19 = vshrl.u32 %v6617_v14, 16 }
 0x126   : > { %10306 = vst [vmem:[#allocation17_spill] sm:$0xff] %v8258_v22  ;;  %v1045_v28 = vor.u32 %v1043_v60, %v1042_v20  ;;  %v1047_v41 = vrot.slane %v1042_v20, 4  ;;  %1330 = vst [vmem:[#allocation2 + $0x6c] sm:$0xf] %v1329_v18  ;;  %v6610_v48 = vpack.c.bf16 %v8258_v22, %v8258_v22  ;;  %v1111_v18 = vshll.u32 %v6617_v14, 16 }
 0x127   : > { %v1028_v16 = vor.u32 %v1026_v63, %v1025_v37  ;;  %v1030_v59 = vrot.slane %v1025_v37, 4  ;;  %v1066_v53 = vshrl.u32 %v6612_v27, 16  ;;  %v1069_v29 = vshll.u32 %v6612_v27, 16 }
 0x128   : > { %v1046_v61 = vsel %vm8104_vm6, %v1038_v17, %v1045_v28  ;;  %v1312_v0 = vsel %vm8115_vm7, %v1047_v41, %v1311_v7  ;;  %v1049_v20 = vshrl.u32 %v6610_v48, 16  ;;  %v1052_v37 = vshll.u32 %v6610_v48, 16  ;;  %v1339_v17 = vld [vmem:[#allocation2 + $0x80] sm:$0x1]  ;;  %v8426_v15 = vld [vmem:[#allocation2 + $0x28] sm:$0xf] }
 0x129   : > { %v1029_v8 = vsel %vm8104_vm6, %v1021_v10, %v1028_v16  ;;  %v1305_v60 = vsel %vm8115_vm7, %v1030_v59, %v1304_v12  ;;  %1310 = vst [vmem:[#allocation2 + $0x4c] sm:$0xf] %v1046_v61  ;;  %1313 = vst [vmem:[#allocation2 + $0x50] sm:$0x1] %v1312_v0  ;;  %v1068_v63 = vrot.slane %v1066_v53, 7  ;;  %v1110_v27 = vrot.slane %v1108_v19, 7 }
 0x12a   : > { %1303 = vst [vmem:[#allocation2 + $0x40] sm:$0xf] %v1029_v8  ;;  %1306 = vst [vmem:[#allocation2 + $0x44] sm:$0x1] %v1305_v60  ;;  %v8273_v28 = vadd.f32 %v8036_v52, %v737_v25  ;;  %v1091_v7 = vshrl.u32 %v6615_v35, 16  ;;  %v1094_v41 = vshll.u32 %v6615_v35, 16  ;;  %v735_v14 = vmul.f32 %v8031_v50, %v8210_v3 }
 0x12b   : > { %v1071_v10 = vor.u32 %v1069_v29, %v1068_v63  ;;  %v1072_v16 = vrot.slane %v1068_v63, 4  ;;  %v8275_v57 = vrot.slane %v1049_v20, 7  ;;  %v1115_v12 = vrot.slane %v1110_v27, 4  ;;  %v1314_v59 = vld [vmem:[#allocation2 + $0x54] sm:$0xf] }
 0x12c   : > { %10307 = vst [vmem:[#allocation18_spill] sm:$0xff] %v8273_v28  ;;  %v1113_v61 = vor.u32 %v1111_v18, %v1110_v27  ;;  %v6613_v53 = vpack.c.bf16 %v8273_v28, %v8273_v28  ;;  %v1093_v0 = vrot.slane %v1091_v7, 7  ;;  %v2686_v19 = vld [vmem:[#allocation2 + $0xc] sm:$0xe]  ;;  %v10308_v8 = vrot.slane %v8152_v36, 4 }
 0x12d   : > { %v1322_v25 = vsel %vm8095_vm5, %v1071_v10, %v1321_v23  ;;  %v1054_v48 = vor.u32 %v1052_v37, %v8275_v57  ;;  %v1340_v29 = vsel %vm8115_vm7, %v1115_v12, %v1339_v17  ;;  %v1332_v27 = vld [vmem:[#allocation2 + $0x74] sm:$0x1]  ;;  %v8291_v23 = vld [vmem:[#allocation2 + $0x10] sm:$0xf]  ;;  %v8296_v17 = vadd.f32 %v8036_v52, %v735_v14 }
 0x12e   : > { %1323 = vst [vmem:[#allocation2 + $0x60] sm:$0xf] %v1322_v25  ;;  %v1114_v60 = vsel %vm8104_vm6, %v10308_v8, %v1113_v61  ;;  %1341 = vst [vmem:[#allocation2 + $0x80] sm:$0x1] %v1340_v29  ;;  %v1074_v63 = vshrl.u32 %v6613_v53, 16  ;;  %v1077_v3 = vshll.u32 %v6613_v53, 16  ;;  %v1096_v20 = vor.u32 %v1094_v41, %v1093_v0 }
 0x12f   : > { %v1315_v37 = vsel %vm8095_vm5, %v1054_v48, %v1314_v59  ;;  %1338 = vst [vmem:[#allocation2 + $0x7c] sm:$0xf] %v1114_v60  ;;  %v1098_v18 = vrot.slane %v1093_v0, 4  ;;  %10309 = vst [vmem:[#allocation19_spill] sm:$0xff] %v8296_v17  ;;  %v744_v36 = vmul.f32 %v8088_v26, %v8031_v50  ;;  %v8300_v7 = vld [vmem:[#allocation2 + $0x14] sm:$0x1]  ;;  %v742_v59 = vmul.f32 %v8031_v50, %v8091_v32 }
 0x130   : > { %1316 = vst [vmem:[#allocation2 + $0x54] sm:$0xf] %v1315_v37  ;;  %v1076_v10 = vrot.slane %v1074_v63, 7  ;;  %v10310_v41 = vrot.slane %v8241_v42, 4  ;;  %v6255_v53 = vrot.slane %v2686_v19, 9  ;;  %v6611_v42 = vpack.c.bf16 %v8296_v17, %v8296_v17 }
 0x131   : > { %v1325_v26 = vld [vmem:[#allocation2 + $0x68] sm:$0x1]  ;;  %v1333_v0 = vsel %vm8115_vm7, %v1098_v18, %v1332_v27  ;;  %v8319_v14 = vadd.f32 %v8036_v52, %v744_v36  ;;  %v2752_v32 = vrot.slane %v8291_v23, 5  ;;  %v8323_v29 = vadd.f32 %v8036_v52, %v742_v59  ;;  %v2687_v27 = vld [vmem:[#allocation2 + $0x18] sm:$0xe] }
 0x132   : > { %v1097_v12 = vsel %vm8104_vm6, %v10310_v41, %v1096_v20  ;;  %v1079_v25 = vor.u32 %v1077_v3, %v1076_v10  ;;  %v1081_v48 = vrot.slane %v1076_v10, 4  ;;  %1334 = vst [vmem:[#allocation2 + $0x74] sm:$0x1] %v1333_v0  ;;  %v2755_v19 = vrot.slane %v8300_v7, 5  ;;  %v8336_v10 = vld [vmem:[#allocation2 + $0x1c] sm:$0xf] }
 0x133   : > { %1331 = vst [vmem:[#allocation2 + $0x70] sm:$0xf] %v1097_v12  ;;  %10313 = vst [vmem:[#allocation20_spill] sm:$0xff] %v8319_v14  ;;  %v1057_v8 = vshrl.u32 %v6611_v42, 16  ;;  %v1060_v60 = vshll.u32 %v6611_v42, 16  ;;  %v6620_v63 = vpack.c.bf16 %v8319_v14, %v8319_v14  ;;  %v2753_v20 = vsel %vm8310_vm10, %v6255_v53, %v2752_v32 }
 0x134   : > { %10314 = vst [vmem:[#allocation21_spill] sm:$0xff] %v8323_v29  ;;  %v1080_v37 = vsel %vm8104_vm6, %v1072_v16, %v1079_v25  ;;  %v1326_v3 = vsel %vm8115_vm7, %v1081_v48, %v1325_v26  ;;  %v6618_v18 = vpack.c.bf16 %v8323_v29, %v8323_v29  ;;  %v2754_v36 = vrot.slane %v2752_v32, 4  ;;  %v8340_v0 = vld [vmem:[#allocation2 + $0x20] sm:$0x1]  ;;  %v1318_v16 = vld [vmem:[#allocation2 + $0x5c] sm:$0x1] }
 0x135   : > { %1324 = vst [vmem:[#allocation2 + $0x64] sm:$0xf] %v1080_v37  ;;  %1327 = vst [vmem:[#allocation2 + $0x68] sm:$0x1] %v1326_v3  ;;  %v1059_v41 = vrot.slane %v1057_v8, 7  ;;  %v1134_v12 = vshrl.u32 %v6620_v63, 16  ;;  %v745_v53 = vmul.f32 %v8100_v39, %v8031_v50 }
 0x136   : > { %v1137_v59 = vshll.u32 %v6620_v63, 16  ;;  %v1117_v42 = vshrl.u32 %v6618_v18, 16  ;;  %v1120_v25 = vshll.u32 %v6618_v18, 16  ;;  %v2756_v26 = vsel %vm8310_vm10, %v2754_v36, %v2755_v19  ;;  %v1349_v8 = vld [vmem:[#allocation2 + $0x90] sm:$0xf] }
 0x137   : > { %v6256_v48 = vrot.slane %v2687_v27, 9  ;;  %v1062_v32 = vor.u32 %v1060_v60, %v1059_v41  ;;  %v1064_v37 = vrot.slane %v1059_v41, 4  ;;  %v1136_v3 = vrot.slane %v1134_v12, 7  ;;  %v8351_v14 = vld [vmem:[#allocation2 + $0xc] sm:$0xf] }
 0x138   : > { %v6303_v35 = vcombine.low %v2753_v20, %v2756_v26  ;;  %v8344_v63 = vrot.slane %v1117_v42, 7  ;;  %v8347_v39 = vadd.f32 %v8036_v52, %v745_v53  ;;  %v2759_v29 = vrot.slane %v8336_v10, 5  ;;  %v1342_v41 = vld [vmem:[#allocation2 + $0x84] sm:$0xf] }
 0x139   : > { %v2762_v18 = vrot.slane %v8340_v0, 5  ;;  %v10316_v19 = vrot.slane %v8275_v57, 4  ;;  %v1319_v27 = vsel %vm8115_vm7, %v1064_v37, %v1318_v16  ;;  %v1139_v20 = vor.u32 %v1137_v59, %v1136_v3 }
 0x13a   : > { %10315 = vst [vmem:[#allocation22_spill] sm:$0xff] %v8347_v39  ;;  %v1140_v36 = vrot.slane %v1136_v3, 4  ;;  %7277 = vmatprep.mubr.bf16.mxu0 %v6303_v35  ;;  %1320 = vst [vmem:[#allocation2 + $0x5c] sm:$0x1] %v1319_v27  ;;  %v1122_v12 = vor.u32 %v1120_v25, %v8344_v63  ;;  %v6621_v42 = vpack.c.bf16 %v8347_v39, %v8347_v39  ;;  %v2761_v16 = vrot.slane %v2759_v29, 4 }
 0x13b   : > { %v1063_v60 = vsel %vm8104_vm6, %v10316_v19, %v1062_v32  ;;  %v2760_v57 = vsel %vm8310_vm10, %v6256_v48, %v2759_v29  ;;  %v1350_v26 = vsel %vm8095_vm5, %v1139_v20, %v1349_v8  ;;  %v743_v59 = vmul.f32 %v8031_v50, %v8111_v47  ;;  %v7686_v29 = vld [vmem:[%s10250_s4] sm:$0xff]  }
 0x13c   : > { %1317 = vst [vmem:[#allocation2 + $0x58] sm:$0xf] %v1063_v60  ;;  %v2303_v35 = vshrl.u32 %v8351_v14, 16  ;;  %1351 = vst [vmem:[#allocation2 + $0x90] sm:$0xf] %v1350_v26  ;;  %v1343_v25 = vsel %vm8095_vm5, %v1122_v12, %v1342_v41  ;;  %v1142_v32 = vshrl.u32 %v6621_v42, 16  ;;  %v2763_v48 = vsel %vm8310_vm10, %v2761_v16, %v2762_v18 }
 0x13d   : > { %v1145_v37 = vshll.u32 %v6621_v42, 16  ;;  %v2306_v3 = vshll.u32 %v8351_v14, 16  ;;  %1344 = vst [vmem:[#allocation2 + $0x84] sm:$0xf] %v1343_v25  ;;  %v8379_v47 = vadd.f32 %v8036_v52, %v743_v59  ;;  %v2312_v19 = vshll.u32 %v8291_v23, 16  ;;  %v7689_v18 = vld [vmem:[%s10250_s4 + $0x48] sm:$0xff]  }
 0x13e   : > { %v2305_v8 = vrot.slane %v2303_v35, 4  ;;  %v1144_v60 = vrot.slane %v1142_v32, 7  ;;  %v6304_v27 = vcombine.low %v2760_v57, %v2763_v48  ;;  %v2316_v41 = vshrl.u32 %v8291_v23, 16  ;;  %v8383_v12 = vld [vmem:[#allocation2 + $0x18] sm:$0xf] }
 0x13f   : > { %10317 = vst [vmem:[#allocation23_spill] sm:$0xff] %v8379_v47  ;;  %v2308_v20 = vrot.slane %v2306_v3, 5  ;;  %v1353_v42 = vld [vmem:[#allocation2 + $0x98] sm:$0x1]  ;;  %v6619_v26 = vpack.c.bf16 %v8379_v47, %v8379_v47  ;;  %v2314_v16 = vrot.slane %v2312_v19, 5  ;;  %v2322_v59 = vshll.u32 %v8300_v7, 16 }
 0x140   : > { %v1147_v57 = vor.u32 %v1145_v37, %v1144_v60  ;;  %v1149_v25 = vrot.slane %v1144_v60, 4  ;;  %7278 = vmatmul.mubr.bf16.vlgmr.msra.gmra.mrb[16].mxu0 %v6304_v27  ;;  %v2318_v3 = vrot.slane %v2316_v41, 4  ;;  %v2327_v7 = vshrl.u32 %v8383_v12, 16  ;;  %v7690_v37 = vld [vmem:[%s10250_s4 + $0x8] sm:$0xff]   ;;  %v7808_v44 = vld [vmem:[#allocation2 + $0x64] sm:$0xf] }
 0x141   : > { %v2309_v32 = vor.u32 %v2308_v20, %v2305_v8  ;;  %6918 = vmatpush3.bf16.msra.mxu0 %v7686_v29  ;;  %v1125_v48 = vshrl.u32 %v6619_v26, 16  ;;  %v1128_v53 = vshll.u32 %v6619_v26, 16  ;;  %v2324_v19 = vrot.slane %v2322_v59, 5  ;;  %v7692_v20 = vld [vmem:[%s10250_s4 + $0x50] sm:$0xff]   ;;  %v1346_v47 = vld [vmem:[#allocation2 + $0x8c] sm:$0x1] }
 0x142   : > { %v1148_v8 = vsel %vm8104_vm6, %v1140_v36, %v1147_v57  ;;  %v1354_v29 = vsel %vm8115_vm7, %v1149_v25, %v1353_v42  ;;  %v2319_v27 = vor.u32 %v2318_v3, %v2314_v16  ;;  %6919 = vmatprep.subr.bf16.mxu0 %v7689_v18  ;;  %v2329_v26 = vrot.slane %v2327_v7, 4  ;;  %v7693_v25 = vld [vmem:[%s10250_s4 + $0x10] sm:$0xff]   ;;  %v7807_v31 = vld [vmem:[#allocation2 + $0x5c] sm:$0x1]  ;;  %v7809_v45 = vld [vmem:[#allocation2 + $0x68] sm:$0x1] }
 0x143   : > { %v2310_v60 = vrot.slane %v2309_v32, 4  ;;  %1352 = vst [vmem:[#allocation2 + $0x94] sm:$0xf] %v1148_v8  ;;  %1355 = vst [vmem:[#allocation2 + $0x98] sm:$0x1] %v1354_v29  ;;  %v1127_v41 = vrot.slane %v1125_v48, 7 }
 0x144   : > { %v2330_v59 = vshll.u32 %v8383_v12, 16  ;;  %v2336_v35 = vshll.u32 %v8336_v10, 16  ;;  %v2320_v42 = vrot.slane %v2319_v27, 4  ;;  %v2340_v57 = vshrl.u32 %v8336_v10, 16  ;;  %v2688_v8 = vld [vmem:[#allocation2 + $0x24] sm:$0xe] }
 0x145   : > { %v2315_v36 = vsel %vm8395_vm13, %v2310_v60, %v2314_v16  ;;  %v2346_v18 = vshll.u32 %v8340_v0, 16  ;;  %v1130_v32 = vor.u32 %v1128_v53, %v1127_v41  ;;  %v1132_v3 = vrot.slane %v1127_v41, 4  ;;  %6920 = vmatpush3.bf16.msra.mxu0 %v7690_v37  ;;  %v7695_v29 = vld [vmem:[%s10250_s4 + $0x58] sm:$0xff]   ;;  %v8428_v53 = vld [vmem:[#allocation2 + $0x2c] sm:$0x1] }
 0x146   : > { %v2332_v48 = vrot.slane %v2330_v59, 5  ;;  %v2338_v7 = vrot.slane %v2336_v35, 5  ;;  %v2325_v16 = vsel %vm8395_vm13, %v2320_v42, %v2324_v19  ;;  %v2342_v60 = vrot.slane %v2340_v57, 4  ;;  %6921 = vmatprep.subr.bf16.mxu0 %v7692_v20  ;;  %v2689_v42 = vld [vmem:[#allocation2 + $0x30] sm:$0xe] }
 0x147   : > { %v2348_v27 = vrot.slane %v2346_v18, 5  ;;  %v748_v0 = vmul.f32 %v8138_v21, %v8031_v50  ;;  %v10320_v35 = vrot.slane %v8344_v63, 4  ;;  %v1347_v41 = vsel %vm8115_vm7, %v1132_v3, %v1346_v47  ;;  %v7711_v21 = vld [vmem:[%s10250_s4 + $0x180] sm:$0xff]   ;;  %v7717_v47 = vld [vmem:[%s10250_s4 + $0x1c8] sm:$0xff]  }
 0x148   : > { %v6287_v59 = vcombine.low %v2315_v36, %v2325_v16  ;;  %v2333_v19 = vor.u32 %v2332_v48, %v2329_v26  ;;  %1348 = vst [vmem:[#allocation2 + $0x8c] sm:$0x1] %v1347_v41  ;;  %v2343_v57 = vor.u32 %v2342_v60, %v2338_v7  ;;  %v746_v63 = vmul.f32 %v8031_v50, %v8145_v30  ;;  %v7696_v48 = vld [vmem:[%s10250_s4 + $0x18] sm:$0xff]   ;;  %v7718_v41 = vld [vmem:[%s10250_s4 + $0x188] sm:$0xff]  }
 0x149   : > { %v1131_v37 = vsel %vm8104_vm6, %v10320_v35, %v1130_v32  ;;  %v8440_v20 = vadd.f32 %v8036_v52, %v748_v0  ;;  %v6257_v18 = vrot.slane %v2688_v8, 9  ;;  %v2766_v36 = vrot.slane %v8426_v15, 5  ;;  %6922 = vmatpush3.bf16.msra.mxu0 %v7693_v25  ;;  %v8462_v0 = vld [vmem:[#allocation2 + $0x34] sm:$0xf] }
 0x14a   : > { %1345 = vst [vmem:[#allocation2 + $0x88] sm:$0xf] %v1131_v37  ;;  %3295 = vmatprep.mubr.bf16.mxu1 %v6287_v59  ;;  %v2334_v26 = vrot.slane %v2333_v19, 4  ;;  %v2769_v32 = vrot.slane %v8428_v53, 5  ;;  %v749_v3 = vmul.f32 %v8155_v40, %v8031_v50  ;;  %v10322_v30 = vcombine.low %v8351_v14, %v8291_v23  ;;  %6923 = vmatprep.subr.bf16.mxu0 %v7695_v29  ;;  %v7698_v40 = vld [vmem:[%s10250_s4 + $0x60] sm:$0xff]  }
 0x14b   : > { %10321 = vst [vmem:[#allocation24_spill] sm:$0xff] %v8440_v20  ;;  %v2344_v8 = vrot.slane %v2343_v57, 4  ;;  %v6624_v16 = vpack.c.bf16 %v8440_v20, %v8440_v20  ;;  %v8460_v60 = vadd.f32 %v8036_v52, %v746_v63  ;;  %v6258_v35 = vrot.slane %v2689_v42, 9  ;;  %v7724_v42 = vld [vmem:[%s10250_s4 + $0x1d0] sm:$0xff]  }
 0x14c   : > { %3296 = vmatmul.mubr.bf16.vlgmr.msra.gmra.mrb[16].mxu1 %v10322_v30  ;;  %v2339_v25 = vsel %vm8395_vm13, %v2334_v26, %v2338_v7  ;;  %v2767_v23 = vsel %vm8310_vm10, %v6257_v18, %v2766_v36  ;;  %v2768_v14 = vrot.slane %v2766_v36, 4  ;;  %v8472_v37 = vadd.f32 %v8036_v52, %v749_v3  ;;  %v8488_v18 = vld [vmem:[#allocation2 + $0x38] sm:$0x1] }
 0x14d   : > { %10323 = vst [vmem:[#allocation25_spill] sm:$0xff] %v8460_v60  ;;  %7054 = vmatpush3.bf16.msra.mxu1 %v7711_v21  ;;  %v2349_v29 = vsel %vm8395_vm13, %v2344_v8, %v2348_v27  ;;  %v1168_v59 = vshrl.u32 %v6624_v16, 16  ;;  %v1171_v19 = vshll.u32 %v6624_v16, 16  ;;  %v6622_v7 = vpack.c.bf16 %v8460_v60, %v8460_v60  ;;  %6924 = vmatpush3.bf16.msra.mxu0 %v7696_v48  ;;  %v8494_v8 = vld [vmem:[#allocation2 + $0x24] sm:$0xf] }
 0x14e   : > { %10324 = vst [vmem:[#allocation26_spill] sm:$0xff] %v8472_v37  ;;  %7055 = vmatprep.subr.bf16.mxu1 %v7717_v47  ;;  %v6288_v57 = vcombine.low %v2339_v25, %v2349_v29  ;;  %v2770_v21 = vsel %vm8310_vm10, %v2768_v14, %v2769_v32  ;;  %v6625_v63 = vpack.c.bf16 %v8472_v37, %v8472_v37  ;;  %v2773_v27 = vrot.slane %v8462_v0, 5  ;;  %v7699_v47 = vld [vmem:[%s10250_s4 + $0x20] sm:$0xff]   ;;  %v7701_v32 = vld [vmem:[%s10250_s4 + $0x68] sm:$0xff]  }
 0x14f   : > { %v1170_v26 = vrot.slane %v1168_v59, 7  ;;  %v1151_v36 = vshrl.u32 %v6622_v7, 16  ;;  %v1154_v3 = vshll.u32 %v6622_v7, 16  ;;  %v6305_v30 = vcombine.low %v2767_v23, %v2770_v21  ;;  %6925 = vmatprep.subr.bf16.mxu0 %v7698_v40  ;;  %v1363_v16 = vld [vmem:[#allocation2 + $0xa8] sm:$0xf]  ;;  %v7725_v23 = vld [vmem:[%s10250_s4 + $0x190] sm:$0xff]  }
 0x150   : > { %3303 = vmatprep.mubr.bf16.mxu1 %v6288_v57  ;;  %v1176_v25 = vshrl.u32 %v6625_v63, 16  ;;  %v1179_v14 = vshll.u32 %v6625_v63, 16  ;;  %v2774_v48 = vsel %vm8310_vm10, %v6258_v35, %v2773_v27  ;;  %v2775_v29 = vrot.slane %v2773_v27, 4  ;;  %v1356_v57 = vld [vmem:[#allocation2 + $0x9c] sm:$0xf] }
 0x151   : > { %7056 = vmatpush3.bf16.msra.mxu1 %v7718_v41  ;;  %v1173_v59 = vor.u32 %v1171_v19, %v1170_v26  ;;  %v1174_v37 = vrot.slane %v1170_v26, 4  ;;  %v8501_v7 = vrot.slane %v1151_v36, 7  ;;  %7281 = vmatprep.mubr.bf16.mxu0 %v6305_v30  ;;  %v2776_v40 = vrot.slane %v8488_v18, 5  ;;  %v7731_v19 = vld [vmem:[%s10250_s4 + $0x1d8] sm:$0xff]   ;;  %v1367_v36 = vld [vmem:[#allocation2 + $0xb0] sm:$0x1] }
 0x152   : > { %7057 = vmatprep.subr.bf16.mxu1 %v7724_v42  ;;  %v1178_v21 = vrot.slane %v1176_v25, 7  ;;  %v747_v63 = vmul.f32 %v8031_v50, %v8165_v49  ;;  %v6272_v35 = vcombine.low %v8383_v12, %v8336_v10  ;;  %v2351_v41 = vshrl.u32 %v8494_v8, 16  ;;  %6926 = vmatpush3.bf16.msra.mxu0 %v7699_v47  ;;  %v7702_v10 = vld [vmem:[%s10250_s4 + $0x28] sm:$0xff]  }
 0x153   : > { %v1364_v42 = vsel %vm8095_vm5, %v1173_v59, %v1363_v16  ;;  %v1156_v27 = vor.u32 %v1154_v3, %v8501_v7  ;;  %v1157_v26 = vrot.slane %v8501_v7, 4  ;;  %v2777_v49 = vsel %vm8310_vm10, %v2775_v29, %v2776_v40  ;;  %6927 = vmatprep.subr.bf16.mxu0 %v7701_v32  ;;  %v7704_v3 = vld [vmem:[%s10250_s4 + $0x70] sm:$0xff]  }
 0x154   : > { %1365 = vst [vmem:[#allocation2 + $0xa8] sm:$0xf] %v1364_v42  ;;  %v1181_v12 = vor.u32 %v1179_v14, %v1178_v21  ;;  %v1183_v47 = vrot.slane %v1178_v21, 4  ;;  %v6306_v30 = vcombine.low %v2774_v48, %v2777_v49  ;;  %v8525_v25 = vadd.f32 %v8036_v52, %v747_v63  ;;  %3304 = vmatmul.mubr.bf16.gmra.mrb[20].mxu1 %v6272_v35  ;;  %v7732_v14 = vld [vmem:[%s10250_s4 + $0x198] sm:$0xff]   ;;  %v7705_v42 = vld [vmem:[%s10250_s4 + $0x30] sm:$0xff]  }
 0x155   : > { %v1357_v16 = vsel %vm8095_vm5, %v1156_v27, %v1356_v57  ;;  %v2353_v32 = vrot.slane %v2351_v41, 4  ;;  %v2354_v29 = vshll.u32 %v8494_v8, 16  ;;  %v2360_v59 = vshll.u32 %v8426_v15, 16  ;;  %7058 = vmatpush3.bf16.msra.mxu1 %v7725_v23  ;;  %v2690_v21 = vld [vmem:[#allocation2 + $0x3c] sm:$0xe] }
 0x156   : > { %10325 = vst [vmem:[#allocation27_spill] sm:$0xff] %v8525_v25  ;;  %1358 = vst [vmem:[#allocation2 + $0x9c] sm:$0xf] %v1357_v16  ;;  %v1182_v52 = vsel %vm8104_vm6, %v1174_v37, %v1181_v12  ;;  %v1368_v48 = vsel %vm8115_vm7, %v1183_v47, %v1367_v36  ;;  %7282 = vmatmul.mubr.bf16.gmra.mrb[20].mxu0 %v6306_v30  ;;  %v6623_v40 = vpack.c.bf16 %v8525_v25, %v8525_v25  ;;  %v8547_v41 = vld [vmem:[#allocation2 + $0x40] sm:$0xf] }
 0x157   : > { %v2364_v57 = vshrl.u32 %v8426_v15, 16  ;;  %7059 = vmatprep.subr.bf16.mxu1 %v7731_v19  ;;  %1366 = vst [vmem:[#allocation2 + $0xac] sm:$0xf] %v1182_v52  ;;  %1369 = vst [vmem:[#allocation2 + $0xb0] sm:$0x1] %v1368_v48  ;;  %v2356_v23 = vrot.slane %v2354_v29, 5  ;;  %v752_v37 = vmul.f32 %v8192_v24, %v8031_v50  ;;  %6928 = vmatpush3.bf16.msra.mxu0 %v7702_v10 }
 0x158   : > { %v2362_v63 = vrot.slane %v2360_v59, 5  ;;  %v2370_v35 = vshll.u32 %v8428_v53, 16  ;;  %v1159_v27 = vshrl.u32 %v6623_v40, 16  ;;  %v1162_v36 = vshll.u32 %v6623_v40, 16  ;;  %v8555_v19 = vld [vmem:[%s10248_s2] ss:$0 sm:$0xff]  ;;  %6929 = vmatprep.subr.bf16.mxu0 %v7704_v3 }
 0x159   : > { %v2366_v49 = vrot.slane %v2364_v57, 4  ;;  %v750_v53 = vmul.f32 %v8555_v19, %v8200_v38  ;;  %v8559_v12 = vld [vmem:[#allocation2 + $0x44] sm:$0x1]  ;;  %v7707_v50 = vld [vmem:[%s10250_s4 + $0x78] sm:$0xff]   ;;  %v2357_v24 = vor.u32 %v2356_v23, %v2353_v32  ;;  %v8567_v47 = vld [vmem:[%s10249_s3] ss:$0 sm:$0xff]  ;;  %7060 = vmatpush3.bf16.msra.mxu1 %v7732_v14  ;;  %v753_v57 = vmul.f32 %v8555_v19, %v8212_v5 }
 0x15a   : > { %v2372_v10 = vrot.slane %v2370_v35, 5  ;;  %v8570_v30 = vadd.f32 %v8567_v47, %v752_v37  ;;  %v6259_v16 = vrot.slane %v2690_v21, 9  ;;  %v1161_v38 = vrot.slane %v1159_v27, 7  ;;  %v1360_v52 = vld [vmem:[#allocation2 + $0xa4] sm:$0x1]  ;;  %v7708_v14 = vld [vmem:[%s10250_s4 + $0x38] sm:$0xff]  }
 0x15b   : > { %v2367_v29 = vor.u32 %v2366_v49, %v2362_v63  ;;  %v8573_v3 = vadd.f32 %v8567_v47, %v750_v53  ;;  %v2780_v59 = vrot.slane %v8547_v41, 5  ;;  %v2358_v32 = vrot.slane %v2357_v24, 4  ;;  %6930 = vmatpush3.bf16.msra.mxu0 %v7705_v42  ;;  %v8589_v27 = vld [vmem:[%s10250_s4 + $0x80] sm:$0xff]   ;;  %v8598_v24 = vld [vmem:[#allocation2 + $0x4c] sm:$0xf] }
 0x15c   : > { %10326 = vst [vmem:[#allocation28_spill] sm:$0xff] %v8570_v30  ;;  %v6628_v48 = vpack.c.bf16 %v8570_v30, %v8570_v30  ;;  %v2783_v40 = vrot.slane %v8559_v12, 5  ;;  %v1164_v21 = vor.u32 %v1162_v36, %v1161_v38  ;;  %v1166_v23 = vrot.slane %v1161_v38, 4  ;;  %6931 = vmatprep.subr.bf16.mxu0 %v7707_v50  ;;  %v7736_v5 = vld [vmem:[%s10250_s4 + $0x1e0] sm:$0xff]   ;;  %v2691_v50 = vld [vmem:[#allocation2 + $0x48] sm:$0xe] }
 0x15d   : > { %10327 = vst [vmem:[#allocation29_spill] sm:$0xff] %v8573_v3  ;;  %v2368_v35 = vrot.slane %v2367_v29, 4  ;;  %v6626_v37 = vpack.c.bf16 %v8573_v3, %v8573_v3  ;;  %v2363_v42 = vsel %vm8395_vm13, %v2358_v32, %v2362_v63  ;;  %v2781_v53 = vsel %vm8310_vm10, %v6259_v16, %v2780_v59  ;;  %v8608_v32 = vld [vmem:[#allocation2 + $0x50] sm:$0x1]  ;;  %7061 = vmatprep.subr.bf16.mxu1 %v7736_v5 }
 0x15e   : > { %v1202_v49 = vshrl.u32 %v6628_v48, 16  ;;  %v1205_v36 = vshll.u32 %v6628_v48, 16  ;;  %v1165_v38 = vsel %vm8104_vm6, %v1157_v26, %v1164_v21  ;;  %v1361_v29 = vsel %vm8115_vm7, %v1166_v23, %v1360_v52  ;;  %v7737_v26 = vld [vmem:[%s10250_s4 + $0x1a0] sm:$0xff]  }
 0x15f   : > { %v2373_v3 = vsel %vm8395_vm13, %v2368_v35, %v2372_v10  ;;  %v1185_v63 = vshrl.u32 %v6626_v37, 16  ;;  %1359 = vst [vmem:[#allocation2 + $0xa0] sm:$0xf] %v1165_v38  ;;  %1362 = vst [vmem:[#allocation2 + $0xa4] sm:$0x1] %v1361_v29  ;;  %v1188_v30 = vshll.u32 %v6626_v37, 16  ;;  %6932 = vmatpush3.bf16.msra.mxu0 %v7708_v14  ;;  %v8621_v23 = vadd.f32 %v8567_v47, %v753_v57 }
 0x160   : > { %v6289_v16 = vcombine.low %v2363_v42, %v2373_v3  ;;  %v8610_v48 = vrot.slane %v1202_v49, 7  ;;  %v2782_v7 = vrot.slane %v2780_v59, 4  ;;  %v7739_v10 = vld [vmem:[%s10250_s4 + $0x1e8] sm:$0xff]   ;;  %v1377_v52 = vld [vmem:[#allocation2 + $0xc0] sm:$0xf]  ;;  %v6260_v3 = vrot.slane %v2691_v50, 9  ;;  %7309 = vmatprep.subr.bf16.mxu0 %v8589_v27  ;;  %7062 = vmatpush3.bf16.msra.mxu1 %v7737_v26 }
 0x161   : > { %v8618_v21 = vrot.slane %v1185_v63, 7  ;;  %10328 = vst [vmem:[#allocation30_spill] sm:$0xff] %v8621_v23  ;;  %v2787_v35 = vrot.slane %v8598_v24, 5  ;;  %v1370_v37 = vld [vmem:[#allocation2 + $0xb4] sm:$0xf]  ;;  %v2790_v42 = vrot.slane %v8608_v32, 5  ;;  %v6629_v38 = vpack.c.bf16 %v8621_v23, %v8621_v23  ;;  %7063 = vmatprep.subr.bf16.mxu1 %v7739_v10 }
 0x162   : > { %3311 = vmatprep.mubr.bf16.mxu1 %v6289_v16  ;;  %v1207_v59 = vor.u32 %v1205_v36, %v8610_v48  ;;  %v1208_v14 = vrot.slane %v8610_v48, 4  ;;  %v2784_v5 = vsel %vm8310_vm10, %v2782_v7, %v2783_v40  ;;  %v8634_v29 = vld [vmem:[#allocation2 + $0x30] sm:$0xf]  ;;  %v751_v16 = vmul.f32 %v8555_v19, %v8218_v58  ;;  %v1381_v58 = vld [vmem:[#allocation2 + $0xc8] sm:$0x1] }
 0x163   : > { %v1190_v57 = vor.u32 %v1188_v30, %v8618_v21  ;;  %v6307_v50 = vcombine.low %v2781_v53, %v2784_v5  ;;  %v2788_v40 = vsel %vm8310_vm10, %v6260_v3, %v2787_v35  ;;  %v2789_v63 = vrot.slane %v2787_v35, 4  ;;  %v7740_v30 = vld [vmem:[%s10250_s4 + $0x1a8] sm:$0xff]   ;;  %v7742_v53 = vld [vmem:[%s10250_s4 + $0x1f0] sm:$0xff]   ;;  %v1374_v49 = vld [vmem:[#allocation2 + $0xbc] sm:$0x1] }
 0x164   : > { %v1378_v36 = vsel %vm8095_vm5, %v1207_v59, %v1377_v52  ;;  %v1210_v7 = vshrl.u32 %v6629_v38, 16  ;;  %v1213_v26 = vshll.u32 %v6629_v38, 16  ;;  %v6273_v10 = vcombine.low %v8494_v8, %v8426_v15  ;;  %7064 = vmatpush3.bf16.msra.mxu1 %v7740_v30  ;;  %v2692_v5 = vld [vmem:[#allocation2 + $0x54] sm:$0xe]  ;;  %v8667_v38 = vld [vmem:[#allocation2 + $0x58] sm:$0xf] }
 0x165   : > { %1379 = vst [vmem:[#allocation2 + $0xc0] sm:$0xf] %v1378_v36  ;;  %v1371_v48 = vsel %vm8095_vm5, %v1190_v57, %v1370_v37  ;;  %7285 = vmatprep.mubr.bf16.mxu0 %v6307_v50  ;;  %v2791_v19 = vsel %vm8310_vm10, %v2789_v63, %v2790_v42  ;;  %v8655_v52 = vadd.f32 %v8567_v47, %v751_v16  ;;  %v2375_v3 = vshrl.u32 %v8634_v29, 16  ;;  %v8669_v36 = vld [vmem:[#allocation2 + $0x64] sm:$0xf] }
 0x166   : > { %1372 = vst [vmem:[#allocation2 + $0xb4] sm:$0xf] %v1371_v48  ;;  %v2378_v35 = vshll.u32 %v8634_v29, 16  ;;  %v1212_v59 = vrot.slane %v1210_v7, 7  ;;  %v6308_v37 = vcombine.low %v2788_v40, %v2791_v19  ;;  %3312 = vmatmul.mubr.bf16.gmra.mrb[24].mxu1 %v6273_v10  ;;  %v2384_v15 = vshll.u32 %v8462_v0, 16  ;;  %7065 = vmatprep.subr.bf16.mxu1 %v7742_v53  ;;  %v7746_v53 = vld [vmem:[%s10250_s4 + $0x1f8] sm:$0xff]  }
 0x167   : > { %10329 = vst [vmem:[#allocation31_spill] sm:$0xff] %v8655_v52  ;;  %v2388_v8 = vshrl.u32 %v8462_v0, 16  ;;  %v6627_v47 = vpack.c.bf16 %v8655_v52, %v8655_v52  ;;  %v2377_v42 = vrot.slane %v2375_v3, 4  ;;  %v2394_v50 = vshll.u32 %v8488_v18, 16  ;;  %v2693_v63 = vld [vmem:[#allocation2 + $0x60] sm:$0xe] }
 0x168   : > { %v2380_v57 = vrot.slane %v2378_v35, 5  ;;  %v1215_v40 = vor.u32 %v1213_v26, %v1212_v59  ;;  %v1217_v16 = vrot.slane %v1212_v59, 4  ;;  %7286 = vmatmul.mubr.bf16.gmra.mrb[24].mxu0 %v6308_v37  ;;  %v2386_v30 = vrot.slane %v2384_v15, 5  ;;  %v8671_v7 = vld [vmem:[#allocation2 + $0x5c] sm:$0x1]  ;;  %7066 = vmatpush3.bf16.msra.mxu1 %v7743_v33 }
 0x169   : > { %v2390_v48 = vrot.slane %v2388_v8, 4  ;;  %v1193_v10 = vshrl.u32 %v6627_v47, 16  ;;  %v1196_v19 = vshll.u32 %v6627_v47, 16  ;;  %v2396_v18 = vrot.slane %v2394_v50, 5  ;;  %v8676_v35 = vld [vmem:[#allocation2 + $0x68] sm:$0x1]  ;;  %7067 = vmatprep.subr.bf16.mxu1 %v7746_v53 }
 0x16a   : > { %v2381_v3 = vor.u32 %v2380_v57, %v2377_v42  ;;  %v1216_v26 = vsel %vm8104_vm6, %v1208_v14, %v1215_v40  ;;  %v1382_v59 = vsel %vm8115_vm7, %v1217_v16, %v1381_v58  ;;  %v6261_v15 = vrot.slane %v2692_v5, 9  ;;  %v2694_v40 = vld [vmem:[#allocation2 + $0x6c] sm:$0xe]  ;;  %v8690_v53 = vld [vmem:[#allocation2 + $0x74] sm:$0x1] }
 0x16b   : > { %v2391_v37 = vor.u32 %v2390_v48, %v2386_v30  ;;  %1380 = vst [vmem:[#allocation2 + $0xc4] sm:$0xf] %v1216_v26  ;;  %1383 = vst [vmem:[#allocation2 + $0xc8] sm:$0x1] %v1382_v59  ;;  %v1195_v8 = vrot.slane %v1193_v10, 7  ;;  %v2794_v47 = vrot.slane %v8667_v38, 5 }
 0x16c   : > { %v2382_v52 = vrot.slane %v2381_v3, 4  ;;  %v2797_v42 = vrot.slane %v8671_v7, 5  ;;  %v6262_v33 = vrot.slane %v2693_v63, 9  ;;  %v2801_v50 = vrot.slane %v8669_v36, 5  ;;  %v7747_v10 = vld [vmem:[%s10250_s4 + $0x1b8] sm:$0xff]  }
 0x16d   : > { %v2392_v57 = vrot.slane %v2391_v37, 4  ;;  %v2804_v14 = vrot.slane %v8676_v35, 5  ;;  %v1198_v58 = vor.u32 %v1196_v19, %v1195_v8  ;;  %v1200_v16 = vrot.slane %v1195_v8, 4  ;;  %v8699_v59 = vld [vmem:[#allocation2 + $0x3c] sm:$0xf]  ;;  %7068 = vmatpush3.bf16.msra.mxu1 %v7747_v10 }
 0x16e   : > { %v2387_v5 = vsel %vm8395_vm13, %v2382_v52, %v2386_v30  ;;  %v2795_v48 = vsel %vm8310_vm10, %v6261_v15, %v2794_v47  ;;  %v2796_v3 = vrot.slane %v2794_v47, 4  ;;  %v2802_v19 = vsel %vm8310_vm10, %v6262_v33, %v2801_v50  ;;  %v8707_v8 = vld [vmem:[#allocation2 + $0x70] sm:$0xf] }
 0x16f   : > { %v2397_v63 = vsel %vm8395_vm13, %v2392_v57, %v2396_v18  ;;  %v2803_v26 = vrot.slane %v2801_v50, 4  ;;  %v10330_v52 = vrot.slane %v8618_v21, 4  ;;  %v1375_v37 = vsel %vm8115_vm7, %v1200_v16, %v1374_v49  ;;  %v2695_v57 = vld [vmem:[#allocation2 + $0x78] sm:$0xe] }
 0x170   : > { %v6290_v15 = vcombine.low %v2387_v5, %v2397_v63  ;;  %v6263_v23 = vrot.slane %v2694_v40, 9  ;;  %1376 = vst [vmem:[#allocation2 + $0xbc] sm:$0x1] %v1375_v37  ;;  %v2798_v18 = vsel %vm8310_vm10, %v2796_v3, %v2797_v42  ;;  %v2808_v21 = vrot.slane %v8707_v8, 5  ;;  %v8718_v40 = vld [vmem:[#allocation2 + $0x7c] sm:$0xf] }
 0x171   : > { %v1199_v30 = vsel %vm8104_vm6, %v10330_v52, %v1198_v58  ;;  %v2805_v47 = vsel %vm8310_vm10, %v2803_v26, %v2804_v14  ;;  %v2811_v43 = vrot.slane %v8690_v53, 5  ;;  %v6309_v51 = vcombine.low %v2795_v48, %v2798_v18  ;;  %v8724_v5 = vld [vmem:[#allocation2 + $0x80] sm:$0x1]  ;;  %v2696_v63 = vld [vmem:[#allocation2 + $0x84] sm:$0xe] }
 0x172   : > { %1373 = vst [vmem:[#allocation2 + $0xb8] sm:$0xf] %v1199_v30  ;;  %3319 = vmatprep.mubr.bf16.mxu1 %v6290_v15  ;;  %v6310_v49 = vcombine.low %v2802_v19, %v2805_v47  ;;  %v6274_v33 = vcombine.low %v8634_v29, %v8462_v0  ;;  %v2399_v50 = vshrl.u32 %v8699_v59, 16  ;;  %v2809_v42 = vsel %vm8310_vm10, %v6263_v23, %v2808_v21  ;;  %v8731_v52 = vld [vmem:[#allocation2 + $0x8c] sm:$0x1] }
 0x173   : > { %v2810_v58 = vrot.slane %v2808_v21, 4  ;;  %v2402_v14 = vshll.u32 %v8699_v59, 16  ;;  %v2408_v16 = vshll.u32 %v8547_v41, 16  ;;  %7289 = vmatprep.mubr.bf16.mxu0 %v6309_v51  ;;  %v2412_v10 = vshrl.u32 %v8547_v41, 16  ;;  %v8734_v47 = vld [vmem:[#allocation2 + $0x48] sm:$0xf] }
 0x174   : > { %3320 = vmatmul.mubr.bf16.gmra.mrb[28].mxu1 %v6274_v33  ;;  %v2401_v48 = vrot.slane %v2399_v50, 4  ;;  %v2418_v0 = vshll.u32 %v8559_v12, 16  ;;  %v6264_v29 = vrot.slane %v2695_v57, 9  ;;  %7290 = vmatmul.mubr.bf16.gmra.mrb[28].mxu0 %v6310_v49  ;;  %v2815_v26 = vrot.slane %v8718_v40, 5  ;;  %v8738_v51 = vld [vmem:[#allocation2 + $0x88] sm:$0xf] }
 0x175   : > { %v2812_v23 = vsel %vm8310_vm10, %v2810_v58, %v2811_v43  ;;  %v2404_v3 = vrot.slane %v2402_v14, 5  ;;  %v2410_v19 = vrot.slane %v2408_v16, 5  ;;  %v2414_v37 = vrot.slane %v2412_v10, 4 }
 0x176   : > { %v6311_v30 = vcombine.low %v2809_v42, %v2812_v23  ;;  %v2420_v15 = vrot.slane %v2418_v0, 5  ;;  %v2818_v18 = vrot.slane %v8724_v5, 5  ;;  %v2816_v21 = vsel %vm8310_vm10, %v6264_v29, %v2815_v26 }
 0x177   : > { %v2405_v12 = vor.u32 %v2404_v3, %v2401_v48  ;;  %v2817_v57 = vrot.slane %v2815_v26, 4  ;;  %v6265_v43 = vrot.slane %v2696_v63, 9  ;;  %v2415_v49 = vor.u32 %v2414_v37, %v2410_v19 }
 0x178   : > { %7293 = vmatprep.mubr.bf16.mxu0 %v6311_v30  ;;  %v2822_v33 = vrot.slane %v8738_v51, 5  ;;  %v2825_v50 = vrot.slane %v8731_v52, 5  ;;  %v6275_v42 = vcombine.low %v8699_v59, %v8547_v41  ;;  %v2423_v16 = vshrl.u32 %v8734_v47, 16  ;;  %v2697_v59 = vld [vmem:[#allocation2 + $0x90] sm:$0xe] }
 0x179   : > { %v2406_v58 = vrot.slane %v2405_v12, 4  ;;  %v2819_v14 = vsel %vm8310_vm10, %v2817_v57, %v2818_v18  ;;  %v2426_v48 = vshll.u32 %v8734_v47, 16  ;;  %v2416_v10 = vrot.slane %v2415_v49, 4  ;;  %v2698_v57 = vld [vmem:[#allocation2 + $0x9c] sm:$0xe] }
 0x17a   : > { %v6312_v0 = vcombine.low %v2816_v21, %v2819_v14  ;;  %v2823_v29 = vsel %vm8310_vm10, %v6265_v43, %v2822_v33  ;;  %v2824_v63 = vrot.slane %v2822_v33, 4  ;;  %v2425_v3 = vrot.slane %v2423_v16, 4  ;;  %v8759_v21 = vld [vmem:[#allocation2 + $0x98] sm:$0x1]  ;;  %v8763_v14 = vld [vmem:[#allocation2 + $0xa4] sm:$0x1] }
 0x17b   : > { %v2411_v23 = vsel %vm8395_vm13, %v2406_v58, %v2410_v19  ;;  %v2428_v26 = vrot.slane %v2426_v48, 5  ;;  %v2432_v41 = vshll.u32 %v8598_v24, 16  ;;  %v2421_v30 = vsel %vm8395_vm13, %v2416_v10, %v2420_v15  ;;  %v8761_v58 = vld [vmem:[#allocation2 + $0x94] sm:$0xf]  ;;  %v8766_v10 = vld [vmem:[#allocation2 + $0xa0] sm:$0xf] }
 0x17c   : > { %v2826_v37 = vsel %vm8310_vm10, %v2824_v63, %v2825_v50  ;;  %v2436_v18 = vshrl.u32 %v8598_v24, 16  ;;  %v2442_v12 = vshll.u32 %v8608_v32, 16  ;;  %v6291_v43 = vcombine.low %v2411_v23, %v2421_v30  ;;  %7294 = vmatmul.mubr.bf16.gmra.mrb[32].mxu0 %v6312_v0  ;;  %v8770_v23 = vld [vmem:[#allocation2 + $0x54] sm:$0xf] }
 0x17d   : > { %v6313_v19 = vcombine.low %v2823_v29, %v2826_v37  ;;  %v2429_v49 = vor.u32 %v2428_v26, %v2425_v3  ;;  %v2434_v33 = vrot.slane %v2432_v41, 5  ;;  %v6266_v48 = vrot.slane %v2697_v59, 9 }
 0x17e   : > { %v2438_v15 = vrot.slane %v2436_v18, 4  ;;  %v2444_v16 = vrot.slane %v2442_v12, 5  ;;  %v2829_v50 = vrot.slane %v8761_v58, 5  ;;  %3327 = vmatprep.mubr.bf16.mxu1 %v6291_v43  ;;  %v2832_v63 = vrot.slane %v8759_v21, 5 }
 0x17f   : > { %7297 = vmatprep.mubr.bf16.mxu0 %v6313_v19  ;;  %v2430_v32 = vrot.slane %v2429_v49, 4  ;;  %v6267_v0 = vrot.slane %v2698_v57, 9  ;;  %v2836_v29 = vrot.slane %v8766_v10, 5  ;;  %3328 = vmatmul.mubr.bf16.gmra.mrb[32].mxu1 %v6275_v42  ;;  %v2839_v59 = vrot.slane %v8763_v14, 5 }
 0x180   : > { %v2439_v3 = vor.u32 %v2438_v15, %v2434_v33  ;;  %v2830_v26 = vsel %vm8310_vm10, %v6266_v48, %v2829_v50  ;;  %v2831_v41 = vrot.slane %v2829_v50, 4  ;;  %v6276_v12 = vcombine.low %v8734_v47, %v8598_v24  ;;  %v8789_v50 = vld [vmem:[#allocation2 + $0xb0] sm:$0x1] }
 0x181   : > { %v2435_v30 = vsel %vm8395_vm13, %v2430_v32, %v2434_v33  ;;  %v2837_v37 = vsel %vm8310_vm10, %v6267_v0, %v2836_v29  ;;  %v2838_v18 = vrot.slane %v2836_v29, 4  ;;  %v2447_v43 = vshrl.u32 %v8770_v23, 16  ;;  %v2699_v32 = vld [vmem:[#allocation2 + $0xa8] sm:$0xe]  ;;  %v8793_v29 = vld [vmem:[#allocation2 + $0xac] sm:$0xf] }
 0x182   : > { %v2440_v57 = vrot.slane %v2439_v3, 4  ;;  %v2833_v42 = vsel %vm8310_vm10, %v2831_v41, %v2832_v63  ;;  %v2450_v19 = vshll.u32 %v8770_v23, 16  ;;  %v2456_v33 = vshll.u32 %v8667_v38, 16  ;;  %v2700_v3 = vld [vmem:[#allocation2 + $0xb4] sm:$0xe] }
 0x183   : > { %v6314_v49 = vcombine.low %v2830_v26, %v2833_v42  ;;  %v2840_v15 = vsel %vm8310_vm10, %v2838_v18, %v2839_v59  ;;  %v2460_v48 = vshrl.u32 %v8667_v38, 16  ;;  %v2449_v63 = vrot.slane %v2447_v43, 4  ;;  %v8796_v42 = vld [vmem:[#allocation2 + $0xbc] sm:$0x1] }
 0x184   : > { %v2445_v24 = vsel %vm8395_vm13, %v2440_v57, %v2444_v16  ;;  %v6315_v47 = vcombine.low %v2837_v37, %v2840_v15  ;;  %v2452_v0 = vrot.slane %v2450_v19, 5  ;;  %v2458_v41 = vrot.slane %v2456_v33, 5  ;;  %v8800_v37 = vld [vmem:[#allocation2 + $0xb8] sm:$0xf] }
 0x185   : > { %v6292_v26 = vcombine.low %v2435_v30, %v2445_v24  ;;  %7298 = vmatmul.mubr.bf16.gmra.mrb[36].mxu0 %v6314_v49  ;;  %v2462_v59 = vrot.slane %v2460_v48, 4  ;;  %v2466_v18 = vshll.u32 %v8671_v7, 16  ;;  %v6268_v60 = vrot.slane %v2699_v32, 9  ;;  %v8803_v49 = vld [vmem:[#allocation2 + $0x60] sm:$0xf] }
 0x186   : > { %7301 = vmatprep.mubr.bf16.mxu0 %v6315_v47  ;;  %v2453_v25 = vor.u32 %v2452_v0, %v2449_v63  ;;  %v2843_v20 = vrot.slane %v8793_v29, 5  ;;  %v2846_v16 = vrot.slane %v8789_v50, 5  ;;  %v6269_v30 = vrot.slane %v2700_v3, 9 }
 0x187   : > { %3335 = vmatprep.mubr.bf16.mxu1 %v6292_v26  ;;  %v2463_v57 = vor.u32 %v2462_v59, %v2458_v41  ;;  %v2468_v43 = vrot.slane %v2466_v18, 5  ;;  %v2850_v19 = vrot.slane %v8800_v37, 5  ;;  %v2853_v48 = vrot.slane %v8796_v42, 5 }
 0x188   : > { %3336 = vmatmul.mubr.bf16.gmra.mrb[36].mxu1 %v6276_v12  ;;  %v2454_v7 = vrot.slane %v2453_v25, 4  ;;  %v2844_v15 = vsel %vm8310_vm10, %v6268_v60, %v2843_v20  ;;  %v2845_v33 = vrot.slane %v2843_v20, 4  ;;  %v6277_v63 = vcombine.low %v8770_v23, %v8667_v38  ;;  %v2701_v60 = vld [vmem:[#allocation2 + $0xc0] sm:$0xe]  ;;  %v8823_v23 = vld [vmem:[#allocation2 + $0xc8] sm:$0x1] }
 0x189   : > { %v2464_v32 = vrot.slane %v2463_v57, 4  ;;  %v2851_v24 = vsel %vm8310_vm10, %v6269_v30, %v2850_v19  ;;  %v2852_v47 = vrot.slane %v2850_v19, 4  ;;  %v2471_v12 = vshrl.u32 %v8803_v49, 16  ;;  %v8825_v30 = vld [vmem:[#allocation2 + $0x6c] sm:$0xf] }
 0x18a   : > { %v2459_v0 = vsel %vm8395_vm13, %v2454_v7, %v2458_v41  ;;  %v2847_v25 = vsel %vm8310_vm10, %v2845_v33, %v2846_v16  ;;  %v2474_v20 = vshll.u32 %v8803_v49, 16  ;;  %v2480_v38 = vshll.u32 %v8669_v36, 16 }
 0x18b   : > { %v2469_v3 = vsel %vm8395_vm13, %v2464_v32, %v2468_v43  ;;  %v6316_v26 = vcombine.low %v2844_v15, %v2847_v25  ;;  %v2854_v59 = vsel %vm8310_vm10, %v2852_v47, %v2853_v48  ;;  %v2473_v57 = vrot.slane %v2471_v12, 4  ;;  %v8829_v15 = vld [vmem:[#allocation2 + $0xc4] sm:$0xf] }
 0x18c   : > { %v6293_v41 = vcombine.low %v2459_v0, %v2469_v3  ;;  %v6317_v18 = vcombine.low %v2851_v24, %v2854_v59  ;;  %v2476_v16 = vrot.slane %v2474_v20, 5  ;;  %v2482_v19 = vrot.slane %v2480_v38, 5  ;;  %v8840_v59 = vld [vmem:[#allocation2] sm:$0xf] }
 0x18d   : > { %7302 = vmatmul.mubr.bf16.gmra.mrb[40].mxu0 %v6316_v26  ;;  %v2484_v7 = vshrl.u32 %v8669_v36, 16  ;;  %v2490_v43 = vshll.u32 %v8676_v35, 16  ;;  %v6270_v33 = vrot.slane %v2701_v60, 9  ;;  %v2857_v32 = vrot.slane %v8829_v15, 5 }
 0x18e   : > { %3343 = vmatprep.mubr.bf16.mxu1 %v6293_v41  ;;  %7305 = vmatprep.mubr.bf16.mxu0 %v6317_v18  ;;  %v2477_v48 = vor.u32 %v2476_v16, %v2473_v57  ;;  %v2860_v24 = vrot.slane %v8823_v23, 5  ;;  %v6278_v47 = vcombine.low %v8803_v49, %v8669_v36  ;;  %v2495_v12 = vshrl.u32 %v8825_v30, 16  ;;  %v8843_v49 = vld [vmem:[#allocation2 + $0x4] sm:$0xf] }
 0x18f   : > { %v2486_v0 = vrot.slane %v2484_v7, 4  ;;  %v2492_v25 = vrot.slane %v2490_v43, 5  ;;  %v2498_v20 = vshll.u32 %v8825_v30, 16  ;;  %v2858_v60 = vsel %vm8310_vm10, %v6270_v33, %v2857_v32 }
 0x190   : > { %3344 = vmatmul.mubr.bf16.gmra.mrb[40].mxu1 %v6277_v63  ;;  %v2478_v35 = vrot.slane %v2477_v48, 4  ;;  %v2859_v3 = vrot.slane %v2857_v32, 4  ;;  %v2504_v26 = vshll.u32 %v8707_v8, 16  ;;  %v2497_v41 = vrot.slane %v2495_v12, 4  ;;  %v1416_v12 = vld [vmem:[#allocation2 + $0x8] sm:$0x1] }
 0x191   : > { %v2487_v38 = vor.u32 %v2486_v0, %v2482_v19  ;;  %v2500_v18 = vrot.slane %v2498_v20, 5  ;;  %v2508_v36 = vshrl.u32 %v8707_v8, 16  ;;  %v2514_v7 = vshll.u32 %v8690_v53, 16 }
 0x192   : > { %v2483_v57 = vsel %vm8395_vm13, %v2478_v35, %v2482_v19  ;;  %v2861_v63 = vsel %vm8310_vm10, %v2859_v3, %v2860_v24  ;;  %v2506_v16 = vrot.slane %v2504_v26, 5  ;;  %v1436_v20 = vshrl.u32 %v8840_v59, 16  ;;  %v8856_v3 = vld [vmem:[#allocation2 + $0xc] sm:$0xf] }
 0x193   : > { %v2488_v43 = vrot.slane %v2487_v38, 4  ;;  %v6318_v33 = vcombine.low %v2858_v60, %v2861_v63  ;;  %v2501_v48 = vor.u32 %v2500_v18, %v2497_v41  ;;  %v2510_v32 = vrot.slane %v2508_v36, 4  ;;  %v8858_v18 = vld [vmem:[#allocation2 + $0x10] sm:$0xf] }
 0x194   : > { %v2516_v0 = vrot.slane %v2514_v7, 5  ;;  %v1439_v11 = vshll.u32 %v8840_v59, 16  ;;  %v1445_v6 = vshll.u32 %v8843_v49, 16  ;;  %v1449_v53 = vshrl.u32 %v8843_v49, 16 }
 0x195   : > { %v2493_v19 = vsel %vm8395_vm13, %v2488_v43, %v2492_v25  ;;  %7306 = vmatmul.mubr.bf16.gmra.mrb[44].mxu0 %v6318_v33  ;;  %v2502_v24 = vrot.slane %v2501_v48, 4  ;;  %v2511_v35 = vor.u32 %v2510_v32, %v2506_v16  ;;  %v1438_v26 = vrot.slane %v1436_v20, 4  ;;  %v8862_v43 = vld [vmem:[#allocation2 + $0x14] sm:$0x1] }
 0x196   : > { %v6294_v60 = vcombine.low %v2483_v57, %v2493_v19  ;;  %v1441_v38 = vrot.slane %v1439_v11, 5  ;;  %v1447_v41 = vrot.slane %v1445_v6, 5  ;;  %v1451_v7 = vrot.slane %v1449_v53, 4 }
 0x197   : > { %v2507_v36 = vsel %vm8395_vm13, %v2502_v24, %v2506_v16  ;;  %v2512_v63 = vrot.slane %v2511_v35, 4  ;;  %v1455_v1 = vshll.u32 %v1416_v12, 16  ;;  %v1460_v33 = vshrl.u32 %v8856_v3, 16  ;;  %v8869_v24 = vld [vmem:[#allocation2 + $0x78] sm:$0xf] }
 0x198   : > { %3351 = vmatprep.mubr.bf16.mxu1 %v6294_v60  ;;  %v1442_v25 = vor.u32 %v1441_v38, %v1438_v26  ;;  %v1463_v48 = vshll.u32 %v8856_v3, 16  ;;  %v1452_v11 = vor.u32 %v1451_v7, %v1447_v41  ;;  %v1469_v32 = vshll.u32 %v8858_v18, 16 }
 0x199   : > { %3352 = vmatmul.mubr.bf16.gmra.mrb[44].mxu1 %v6278_v47  ;;  %v2517_v6 = vsel %vm8395_vm13, %v2512_v63, %v2516_v0  ;;  %v1457_v57 = vrot.slane %v1455_v1, 5  ;;  %v1462_v19 = vrot.slane %v1460_v33, 4  ;;  %v1473_v60 = vshrl.u32 %v8858_v18, 16 }
 0x19a   : > { %v6295_v16 = vcombine.low %v2507_v36, %v2517_v6  ;;  %v1443_v20 = vrot.slane %v1442_v25, 4  ;;  %v1465_v12 = vrot.slane %v1463_v48, 5  ;;  %v1453_v35 = vrot.slane %v1452_v11, 4  ;;  %v8884_v11 = vld [vmem:[#allocation2 + $0x18] sm:$0xf] }
 0x19b   : > { %v1471_v53 = vrot.slane %v1469_v32, 5  ;;  %v1479_v26 = vshll.u32 %v8862_v43, 16  ;;  %v6207_v1 = vcombine.low %v8840_v59, %v8843_v49  ;;  %v6279_v38 = vcombine.low %v8825_v30, %v8707_v8  ;;  %v8888_v30 = vld [vmem:[#allocation2 + $0x1c] sm:$0xf] }
 0x19c   : > { %3359 = vmatprep.mubr.bf16.mxu1 %v6295_v16  ;;  %v1448_v47 = vsel %vm8395_vm13, %v1443_v20, %v1447_v41  ;;  %v1466_v0 = vor.u32 %v1465_v12, %v1462_v19  ;;  %v1458_v36 = vsel %vm8395_vm13, %v1453_v35, %v1457_v57  ;;  %v1475_v63 = vrot.slane %v1473_v60, 4  ;;  %v7719_v57 = vld [vmem:[%s10250_s4 + $0x88] sm:$0xff]   ;;  %v1418_v35 = vld [vmem:[#allocation2 + $0x20] sm:$0x1] }
 0x19d   : > { %v1481_v7 = vrot.slane %v1479_v26, 5  ;;  %v2519_v25 = vshrl.u32 %v8869_v24, 16  ;;  %v6223_v33 = vcombine.low %v1448_v47, %v1458_v36  ;;  %v2522_v6 = vshll.u32 %v8869_v24, 16 }
 0x19e   : > { %v1467_v48 = vrot.slane %v1466_v0, 4  ;;  %v2528_v41 = vshll.u32 %v8718_v40, 16  ;;  %v1476_v59 = vor.u32 %v1475_v63, %v1471_v53  ;;  %v2532_v32 = vshrl.u32 %v8718_v40, 16 }
 0x19f   : > { %v2521_v49 = vrot.slane %v2519_v25, 4  ;;  %v2538_v8 = vshll.u32 %v8724_v5, 16  ;;  %3761 = vmatprep.mubr.bf16.mxu0 %v6223_v33  ;;  %v2524_v20 = vrot.slane %v2522_v6, 5  ;;  %v6208_v12 = vcombine.low %v8856_v3, %v8858_v18 }
 0x1a0   : > { %v1472_v16 = vsel %vm8395_vm13, %v1467_v48, %v1471_v53  ;;  %v2530_v19 = vrot.slane %v2528_v41, 5  ;;  %3762 = vmatmul.mubr.bf16.vlgmr.msra.gmra.mrb[48].mxu0 %v6207_v1  ;;  %v1477_v60 = vrot.slane %v1476_v59, 4  ;;  %v2534_v5 = vrot.slane %v2532_v32, 4 }
 0x1a1   : > { %3360 = vmatmul.mubr.bf16.gmra.mrb[48].mxu1 %v6279_v38  ;;  %v2540_v26 = vrot.slane %v2538_v8, 5  ;;  %v1484_v47 = vshrl.u32 %v8884_v11, 16  ;;  %7310 = vmatpush3.bf16.msra.mxu0 %v8589_v27  ;;  %v2525_v0 = vor.u32 %v2524_v20, %v2521_v49  ;;  %v1487_v36 = vshll.u32 %v8884_v11, 16  ;;  %v8904_v38 = vld [vmem:[#allocation2 + $0x84] sm:$0xf]  ;;  %v7726_v27 = vld [vmem:[%s10250_s4 + $0x90] sm:$0xff]  }
 0x1a2   : > { %v1493_v53 = vshll.u32 %v8888_v30, 16  ;;  %v1497_v63 = vshrl.u32 %v8888_v30, 16  ;;  %v1482_v3 = vsel %vm8395_vm13, %v1477_v60, %v1481_v7  ;;  %v2535_v18 = vor.u32 %v2534_v5, %v2530_v19  ;;  %7311 = vmatprep.subr.bf16.mxu0 %v7719_v57 }
 0x1a3   : > { %v1486_v1 = vrot.slane %v1484_v47, 4  ;;  %v1503_v25 = vshll.u32 %v1418_v35, 16  ;;  %v6224_v33 = vcombine.low %v1472_v16, %v1482_v3  ;;  %v2526_v48 = vrot.slane %v2525_v0, 4 }
 0x1a4   : > { %v1489_v6 = vrot.slane %v1487_v36, 5  ;;  %v1495_v41 = vrot.slane %v1493_v53, 5  ;;  %v2536_v59 = vrot.slane %v2535_v18, 4  ;;  %v1499_v49 = vrot.slane %v1497_v63, 4  ;;  %v8919_v36 = vld [vmem:[#allocation2 + $0x24] sm:$0xf] }
 0x1a5   : > { %v1505_v32 = vrot.slane %v1503_v25, 5  ;;  %v6280_v7 = vcombine.low %v8869_v24, %v8718_v40  ;;  %3769 = vmatprep.mubr.bf16.mxu0 %v6224_v33  ;;  %v2531_v8 = vsel %vm8395_vm13, %v2526_v48, %v2530_v19  ;;  %v2543_v35 = vshrl.u32 %v8904_v38, 16  ;;  %7312 = vmatpush3.bf16.msra.mxu0 %v7719_v57  ;;  %v7733_v40 = vld [vmem:[%s10250_s4 + $0x98] sm:$0xff]  }
 0x1a6   : > { %v1490_v20 = vor.u32 %v1489_v6, %v1486_v1  ;;  %v2546_v60 = vshll.u32 %v8904_v38, 16  ;;  %v2541_v16 = vsel %vm8395_vm13, %v2536_v59, %v2540_v26  ;;  %v1500_v5 = vor.u32 %v1499_v49, %v1495_v41  ;;  %7313 = vmatprep.subr.bf16.mxu0 %v7726_v27  ;;  %v8925_v1 = vld [vmem:[#allocation2 + $0x28] sm:$0xf]  ;;  %v1419_v6 = vld [vmem:[#allocation2 + $0x2c] sm:$0x1] }
 0x1a7   : > { %v2552_v47 = vshll.u32 %v8738_v51, 16  ;;  %v2556_v0 = vshrl.u32 %v8738_v51, 16  ;;  %v6296_v24 = vcombine.low %v2531_v8, %v2541_v16  ;;  %v2545_v53 = vrot.slane %v2543_v35, 4 }
 0x1a8   : > { %v1491_v19 = vrot.slane %v1490_v20, 4  ;;  %v2548_v63 = vrot.slane %v2546_v60, 5  ;;  %3770 = vmatmul.mubr.bf16.gmra.mrb[52].mxu0 %v6208_v12  ;;  %v1501_v57 = vrot.slane %v1500_v5, 4  ;;  %v2562_v18 = vshll.u32 %v8731_v52, 16  ;;  %v8935_v20 = vld [vmem:[#allocation2 + $0x90] sm:$0xf] }
 0x1a9   : > { %v2554_v3 = vrot.slane %v2552_v47, 5  ;;  %v2558_v26 = vrot.slane %v2556_v0, 4  ;;  %3367 = vmatprep.mubr.bf16.mxu1 %v6296_v24  ;;  %v6209_v48 = vcombine.low %v8884_v11, %v8888_v30  ;;  %v1508_v59 = vshrl.u32 %v8919_v36, 16  ;;  %7314 = vmatpush3.bf16.msra.mxu0 %v7726_v27 }
 0x1aa   : > { %v1496_v25 = vsel %vm8395_vm13, %v1491_v19, %v1495_v41  ;;  %v2549_v33 = vor.u32 %v2548_v63, %v2545_v53  ;;  %v1506_v12 = vsel %vm8395_vm13, %v1501_v57, %v1505_v32  ;;  %3368 = vmatmul.mubr.bf16.gmra.mrb[52].mxu1 %v6280_v7  ;;  %v2564_v52 = vrot.slane %v2562_v18, 5  ;;  %7315 = vmatprep.subr.bf16.mxu0 %v7733_v40  ;;  %v7744_v41 = vld [vmem:[%s10250_s4 + $0xa0] sm:$0xff]  }
 0x1ab   : > { %v2559_v49 = vor.u32 %v2558_v26, %v2554_v3  ;;  %v1511_v8 = vshll.u32 %v8919_v36, 16  ;;  %v6225_v11 = vcombine.low %v1496_v25, %v1506_v12  ;;  %v1510_v35 = vrot.slane %v1508_v59, 4  ;;  %v8949_v26 = vld [vmem:[#allocation2 + $0x30] sm:$0xf]  ;;  %v8958_v12 = vld [vmem:[#allocation2 + $0x34] sm:$0xf] }
 0x1ac   : > { %v2550_v30 = vrot.slane %v2549_v33, 4  ;;  %v1517_v27 = vshll.u32 %v8925_v1, 16  ;;  %v1521_v32 = vshrl.u32 %v8925_v1, 16  ;;  %v1527_v7 = vshll.u32 %v1419_v6, 16 }
 0x1ad   : > { %v2560_v60 = vrot.slane %v2559_v49, 4  ;;  %v1513_v16 = vrot.slane %v1511_v8, 5  ;;  %3777 = vmatprep.mubr.bf16.mxu0 %v6225_v11  ;;  %v6281_v0 = vcombine.low %v8904_v38, %v8738_v51  ;;  %v2567_v24 = vshrl.u32 %v8935_v20, 16  ;;  %7316 = vmatpush3.bf16.msra.mxu0 %v7733_v40  ;;  %v1420_v11 = vld [vmem:[#allocation2 + $0x38] sm:$0x1] }
 0x1ae   : > { %v2555_v5 = vsel %vm8395_vm13, %v2550_v30, %v2554_v3  ;;  %v1519_v47 = vrot.slane %v1517_v27, 5  ;;  %v1523_v63 = vrot.slane %v1521_v32, 4  ;;  %v1529_v57 = vrot.slane %v1527_v7, 5  ;;  %7317 = vmatprep.subr.bf16.mxu0 %v7744_v41  ;;  %v7751_v3 = vld [vmem:[%s10250_s4 + $0xa8] sm:$0xff]  }
 0x1af   : > { %v2565_v19 = vsel %vm8395_vm13, %v2560_v60, %v2564_v52  ;;  %v1514_v53 = vor.u32 %v1513_v16, %v1510_v35  ;;  %v2569_v25 = vrot.slane %v2567_v24, 4  ;;  %v2570_v51 = vshll.u32 %v8935_v20, 16 }
 0x1b0   : > { %v6297_v18 = vcombine.low %v2555_v5, %v2565_v19  ;;  %v2576_v38 = vshll.u32 %v8761_v58, 16  ;;  %3778 = vmatmul.mubr.bf16.gmra.mrb[56].mxu0 %v6209_v48  ;;  %v1524_v33 = vor.u32 %v1523_v63, %v1519_v47  ;;  %v2580_v6 = vshrl.u32 %v8761_v58, 16 }
 0x1b1   : > { %v1515_v40 = vrot.slane %v1514_v53, 4  ;;  %v2586_v59 = vshll.u32 %v8759_v21, 16  ;;  %v2572_v49 = vrot.slane %v2570_v51, 5  ;;  %v6210_v8 = vcombine.low %v8919_v36, %v8925_v1  ;;  %7318 = vmatpush3.bf16.msra.mxu0 %v7744_v41  ;;  %v7756_v21 = vld [vmem:[%s10250_s4 + $0xb0] sm:$0xff]  }
 0x1b2   : > { %3375 = vmatprep.mubr.bf16.mxu1 %v6297_v18  ;;  %v2578_v52 = vrot.slane %v2576_v38, 5  ;;  %v1532_v30 = vshrl.u32 %v8949_v26, 16  ;;  %v1525_v35 = vrot.slane %v1524_v33, 4  ;;  %v2582_v27 = vrot.slane %v2580_v6, 4  ;;  %7319 = vmatprep.subr.bf16.mxu0 %v7751_v3 }
 0x1b3   : > { %v1520_v48 = vsel %vm8395_vm13, %v1515_v40, %v1519_v47  ;;  %3376 = vmatmul.mubr.bf16.gmra.mrb[56].mxu1 %v6281_v0  ;;  %v2588_v60 = vrot.slane %v2586_v59, 5  ;;  %v2573_v16 = vor.u32 %v2572_v49, %v2569_v25  ;;  %v1535_v36 = vshll.u32 %v8949_v26, 16  ;;  %v8973_v0 = vld [vmem:[#allocation2 + $0x9c] sm:$0xf] }
 0x1b4   : > { %v1534_v32 = vrot.slane %v1532_v30, 4  ;;  %v1541_v1 = vshll.u32 %v8958_v12, 16  ;;  %v1530_v41 = vsel %vm8395_vm13, %v1525_v35, %v1529_v57  ;;  %v2583_v7 = vor.u32 %v2582_v27, %v2578_v52  ;;  %v7761_v57 = vld [vmem:[%s10250_s4 + $0xb8] sm:$0xff]   ;;  %v8990_v27 = vld [vmem:[#allocation2 + $0x40] sm:$0xf] }
 0x1b5   : > { %v1545_v5 = vshrl.u32 %v8958_v12, 16  ;;  %v1551_v47 = vshll.u32 %v1420_v11, 16  ;;  %v6226_v24 = vcombine.low %v1520_v48, %v1530_v41  ;;  %v2574_v19 = vrot.slane %v2573_v16, 4  ;;  %7320 = vmatpush3.bf16.msra.mxu0 %v7751_v3  ;;  %v8988_v11 = vld [vmem:[#allocation2 + $0x3c] sm:$0xf] }
 0x1b6   : > { %v1537_v53 = vrot.slane %v1535_v36, 5  ;;  %v1543_v63 = vrot.slane %v1541_v1, 5  ;;  %v2584_v18 = vrot.slane %v2583_v7, 4  ;;  %v6282_v38 = vcombine.low %v8935_v20, %v8761_v58  ;;  %7321 = vmatprep.subr.bf16.mxu0 %v7756_v21 }
 0x1b7   : > { %v1547_v25 = vrot.slane %v1545_v5, 4  ;;  %v1553_v51 = vrot.slane %v1551_v47, 5  ;;  %3785 = vmatprep.mubr.bf16.mxu0 %v6226_v24  ;;  %v2579_v40 = vsel %vm8395_vm13, %v2574_v19, %v2578_v52  ;;  %v2591_v6 = vshrl.u32 %v8973_v0, 16  ;;  %v1421_v5 = vld [vmem:[#allocation2 + $0x44] sm:$0x1] }
 0x1b8   : > { %v1538_v33 = vor.u32 %v1537_v53, %v1534_v32  ;;  %v2594_v3 = vshll.u32 %v8973_v0, 16  ;;  %v2589_v59 = vsel %vm8395_vm13, %v2584_v18, %v2588_v60  ;;  %3786 = vmatmul.mubr.bf16.gmra.mrb[60].mxu0 %v6210_v8  ;;  %v2600_v58 = vshll.u32 %v8766_v10, 16  ;;  %v7766_v8 = vld [vmem:[%s10250_s4 + $0x200] sm:$0xff]   ;;  %v9004_v53 = vld [vmem:[#allocation2 + $0xa8] sm:$0xf] }
 0x1b9   : > { %v1548_v49 = vor.u32 %v1547_v25, %v1543_v63  ;;  %v2604_v20 = vshrl.u32 %v8766_v10, 16  ;;  %v6298_v30 = vcombine.low %v2579_v40, %v2589_v59  ;;  %v2593_v35 = vrot.slane %v2591_v6, 4  ;;  %7322 = vmatpush3.bf16.msra.mxu0 %v7756_v21 }
 0x1ba   : > { %v1539_v48 = vrot.slane %v1538_v33, 4  ;;  %v2596_v52 = vrot.slane %v2594_v3, 5  ;;  %v2602_v32 = vrot.slane %v2600_v58, 5  ;;  %v2610_v60 = vshll.u32 %v8763_v14, 16  ;;  %7323 = vmatprep.subr.bf16.mxu0 %v7761_v57 }
 0x1bb   : > { %v1549_v16 = vrot.slane %v1548_v49, 4  ;;  %v2606_v36 = vrot.slane %v2604_v20, 4  ;;  %3383 = vmatprep.mubr.bf16.mxu1 %v6298_v30  ;;  %v6211_v7 = vcombine.low %v8949_v26, %v8958_v12  ;;  %v1556_v21 = vshrl.u32 %v8988_v11, 16  ;;  %v9015_v30 = vld [vmem:[#allocation2 + $0x48] sm:$0xf] }
 0x1bc   : > { %v1544_v1 = vsel %vm8395_vm13, %v1539_v48, %v1543_v63  ;;  %v2597_v41 = vor.u32 %v2596_v52, %v2593_v35  ;;  %3384 = vmatmul.mubr.bf16.gmra.mrb[60].mxu1 %v6282_v38  ;;  %v2612_v24 = vrot.slane %v2610_v60, 5  ;;  %v1559_v19 = vshll.u32 %v8988_v11, 16  ;;  %v9021_v60 = vld [vmem:[#allocation2 + $0x4c] sm:$0xf] }
 0x1bd   : > { %v1554_v47 = vsel %vm8395_vm13, %v1549_v16, %v1553_v51  ;;  %v2607_v14 = vor.u32 %v2606_v36, %v2602_v32  ;;  %v1558_v63 = vrot.slane %v1556_v21, 4  ;;  %v1565_v40 = vshll.u32 %v8990_v27, 16  ;;  %7324 = vmatpush3.bf16.msra.mxu0 %v7761_v57 }
 0x1be   : > { %v6227_v18 = vcombine.low %v1544_v1, %v1554_v47  ;;  %v2598_v25 = vrot.slane %v2597_v41, 4  ;;  %v1561_v12 = vrot.slane %v1559_v19, 5  ;;  %v1569_v33 = vshrl.u32 %v8990_v27, 16  ;;  %7357 = vmatprep.subr.bf16.mxu0 %v7766_v8 }
 0x1bf   : > { %v2608_v26 = vrot.slane %v2607_v14, 4  ;;  %v1575_v6 = vshll.u32 %v1421_v5, 16  ;;  %v1567_v38 = vrot.slane %v1565_v40, 5  ;;  %v6283_v3 = vcombine.low %v8973_v0, %v8766_v10 }
 0x1c0   : > { %3793 = vmatprep.mubr.bf16.mxu0 %v6227_v18  ;;  %v2603_v51 = vsel %vm8395_vm13, %v2598_v25, %v2602_v32  ;;  %v2615_v59 = vshrl.u32 %v9004_v53, 16  ;;  %v1562_v57 = vor.u32 %v1561_v12, %v1558_v63  ;;  %v1571_v58 = vrot.slane %v1569_v33, 4 }
 0x1c1   : > { %v2613_v49 = vsel %vm8395_vm13, %v2608_v26, %v2612_v24  ;;  %3794 = vmatmul.mubr.bf16.gmra.mrb[64].mxu0 %v6211_v7  ;;  %v1577_v20 = vrot.slane %v1575_v6, 5  ;;  %v2618_v52 = vshll.u32 %v9004_v53, 16  ;;  %v2624_v16 = vshll.u32 %v8793_v29, 16  ;;  %v1422_v7 = vld [vmem:[#allocation2 + $0x50] sm:$0x1] }
 0x1c2   : > { %v6299_v48 = vcombine.low %v2603_v51, %v2613_v49  ;;  %v2617_v35 = vrot.slane %v2615_v59, 4  ;;  %v1563_v32 = vrot.slane %v1562_v57, 4  ;;  %v1572_v36 = vor.u32 %v1571_v58, %v1567_v38  ;;  %v9033_v26 = vld [vmem:[#allocation2 + $0xb4] sm:$0xf] }
 0x1c3   : > { %v2628_v10 = vshrl.u32 %v8793_v29, 16  ;;  %v2634_v0 = vshll.u32 %v8789_v50, 16  ;;  %v2620_v8 = vrot.slane %v2618_v52, 5  ;;  %v2626_v1 = vrot.slane %v2624_v16, 5 }
 0x1c4   : > { %3391 = vmatprep.mubr.bf16.mxu1 %v6299_v48  ;;  %v6212_v41 = vcombine.low %v8988_v11, %v8990_v27  ;;  %v1580_v5 = vshrl.u32 %v9015_v30, 16  ;;  %v1568_v21 = vsel %vm8395_vm13, %v1563_v32, %v1567_v38  ;;  %v1573_v47 = vrot.slane %v1572_v36, 4  ;;  %v9045_v36 = vld [vmem:[#allocation2 + $0x54] sm:$0xf] }
 0x1c5   : > { %3392 = vmatmul.mubr.bf16.gmra.mrb[64].mxu1 %v6283_v3  ;;  %v2630_v14 = vrot.slane %v2628_v10, 4  ;;  %v2636_v24 = vrot.slane %v2634_v0, 5  ;;  %v2621_v19 = vor.u32 %v2620_v8, %v2617_v35  ;;  %v1583_v18 = vshll.u32 %v9015_v30, 16 }
 0x1c6   : > { %v1582_v50 = vrot.slane %v1580_v5, 4  ;;  %v1589_v25 = vshll.u32 %v9021_v60, 16  ;;  %v1578_v63 = vsel %vm8395_vm13, %v1573_v47, %v1577_v20  ;;  %v1593_v27 = vshrl.u32 %v9021_v60, 16 }
 0x1c7   : > { %v2631_v11 = vor.u32 %v2630_v14, %v2626_v1  ;;  %v1599_v40 = vshll.u32 %v1422_v7, 16  ;;  %v6228_v12 = vcombine.low %v1568_v21, %v1578_v63  ;;  %v2622_v33 = vrot.slane %v2621_v19, 4  ;;  %v9048_v21 = vld [vmem:[#allocation2 + $0x58] sm:$0xf]  ;;  %v9058_v63 = vld [vmem:[#allocation2 + $0xc0] sm:$0xf] }
 0x1c8   : > { %v1585_v6 = vrot.slane %v1583_v18, 5  ;;  %v1591_v51 = vrot.slane %v1589_v25, 5  ;;  %v1595_v3 = vrot.slane %v1593_v27, 4  ;;  %v6284_v49 = vcombine.low %v9004_v53, %v8793_v29 }
 0x1c9   : > { %v2632_v38 = vrot.slane %v2631_v11, 4  ;;  %v1601_v59 = vrot.slane %v1599_v40, 5  ;;  %3801 = vmatprep.mubr.bf16.mxu0 %v6228_v12  ;;  %v2627_v57 = vsel %vm8395_vm13, %v2622_v33, %v2626_v1  ;;  %v2639_v20 = vshrl.u32 %v9033_v26, 16 }
 0x1ca   : > { %v1586_v58 = vor.u32 %v1585_v6, %v1582_v50  ;;  %v2642_v48 = vshll.u32 %v9033_v26, 16  ;;  %3802 = vmatmul.mubr.bf16.gmra.mrb[68].mxu0 %v6212_v41  ;;  %v1596_v52 = vor.u32 %v1595_v3, %v1591_v51  ;;  %v2648_v16 = vshll.u32 %v8800_v37, 16 }
 0x1cb   : > { %v2637_v35 = vsel %vm8395_vm13, %v2632_v38, %v2636_v24  ;;  %v2652_v32 = vshrl.u32 %v8800_v37, 16  ;;  %v2641_v10 = vrot.slane %v2639_v20, 4  ;;  %v2658_v5 = vshll.u32 %v8796_v42, 16  ;;  %v1423_v24 = vld [vmem:[#allocation2 + $0x5c] sm:$0x1] }
 0x1cc   : > { %v6300_v29 = vcombine.low %v2627_v57, %v2637_v35  ;;  %v1587_v53 = vrot.slane %v1586_v58, 4  ;;  %v2644_v0 = vrot.slane %v2642_v48, 5  ;;  %v1597_v8 = vrot.slane %v1596_v52, 4  ;;  %v9069_v48 = vld [vmem:[#allocation2 + $0x60] sm:$0xf] }
 0x1cd   : > { %v2650_v1 = vrot.slane %v2648_v16, 5  ;;  %v2654_v7 = vrot.slane %v2652_v32, 4  ;;  %v6213_v14 = vcombine.low %v9015_v30, %v9021_v60  ;;  %v1604_v19 = vshrl.u32 %v9045_v36, 16 }
 0x1ce   : > { %3399 = vmatprep.mubr.bf16.mxu1 %v6300_v29  ;;  %v1592_v41 = vsel %vm8395_vm13, %v1587_v53, %v1591_v51  ;;  %v2645_v47 = vor.u32 %v2644_v0, %v2641_v10  ;;  %v1602_v50 = vsel %vm8395_vm13, %v1597_v8, %v1601_v59  ;;  %v2660_v25 = vrot.slane %v2658_v5, 5  ;;  %v9075_v10 = vld [vmem:[#allocation2 + $0x64] sm:$0xf] }
 0x1cf   : > { %3400 = vmatmul.mubr.bf16.gmra.mrb[68].mxu1 %v6284_v49  ;;  %v2655_v18 = vor.u32 %v2654_v7, %v2650_v1  ;;  %v1607_v42 = vshll.u32 %v9045_v36, 16  ;;  %v6229_v11 = vcombine.low %v1592_v41, %v1602_v50  ;;  %v1606_v40 = vrot.slane %v1604_v19, 4  ;;  %v1424_v7 = vld [vmem:[#allocation2 + $0x68] sm:$0x1] }
 0x1d0   : > { %v2646_v27 = vrot.slane %v2645_v47, 4  ;;  %v1613_v12 = vshll.u32 %v9048_v21, 16  ;;  %v1617_v60 = vshrl.u32 %v9048_v21, 16  ;;  %v1623_v6 = vshll.u32 %v1423_v24, 16 }
 0x1d1   : > { %v2656_v33 = vrot.slane %v2655_v18, 4  ;;  %v1609_v30 = vrot.slane %v1607_v42, 5  ;;  %3809 = vmatprep.mubr.bf16.mxu0 %v6229_v11  ;;  %v6285_v3 = vcombine.low %v9033_v26, %v8800_v37  ;;  %v2663_v59 = vshrl.u32 %v9058_v63, 16  ;;  %v9087_v11 = vld [vmem:[#allocation2 + $0x18] sm:$0xf] }
 0x1d2   : > { %v2651_v51 = vsel %vm8395_vm13, %v2646_v27, %v2650_v1  ;;  %v1615_v38 = vrot.slane %v1613_v12, 5  ;;  %3810 = vmatmul.mubr.bf16.gmra.mrb[72].mxu0 %v6213_v14  ;;  %v1619_v58 = vrot.slane %v1617_v60, 4  ;;  %v1625_v20 = vrot.slane %v1623_v6, 5 }
 0x1d3   : > { %v2661_v49 = vsel %vm8395_vm13, %v2656_v33, %v2660_v25  ;;  %v1610_v57 = vor.u32 %v1609_v30, %v1606_v40  ;;  %v2665_v52 = vrot.slane %v2663_v59, 4  ;;  %v2666_v16 = vshll.u32 %v9058_v63, 16  ;;  %v9089_v30 = vld [vmem:[#allocation2 + $0x1c] sm:$0xf] }
 0x1d4   : > { %v6301_v35 = vcombine.low %v2651_v51, %v2661_v49  ;;  %v2672_v32 = vshll.u32 %v8829_v15, 16  ;;  %v1620_v53 = vor.u32 %v1619_v58, %v1615_v38  ;;  %v2676_v37 = vshrl.u32 %v8829_v15, 16  ;;  %v4084_v49 = vld [vmem:[#allocation2 + $0x20] sm:$0x1] }
 0x1d5   : > { %v1611_v29 = vrot.slane %v1610_v57, 4  ;;  %v2682_v26 = vshll.u32 %v8823_v23, 16  ;;  %v2668_v0 = vrot.slane %v2666_v16, 5  ;;  %v6214_v1 = vcombine.low %v9045_v36, %v9048_v21 }
 0x1d6   : > { %3407 = vmatprep.mubr.bf16.mxu1 %v6301_v35  ;;  %v2674_v8 = vrot.slane %v2672_v32, 5  ;;  %v1628_v5 = vshrl.u32 %v9069_v48, 16  ;;  %v1621_v47 = vrot.slane %v1620_v53, 4  ;;  %v2678_v14 = vrot.slane %v2676_v37, 4 }
 0x1d7   : > { %v1616_v41 = vsel %vm8395_vm13, %v1611_v29, %v1615_v38  ;;  %3408 = vmatmul.mubr.bf16.gmra.mrb[72].mxu1 %v6285_v3  ;;  %v2684_v24 = vrot.slane %v2682_v26, 5  ;;  %v2669_v19 = vor.u32 %v2668_v0, %v2665_v52  ;;  %v1631_v50 = vshll.u32 %v9069_v48, 16 }
 0x1d8   : > { %v1630_v23 = vrot.slane %v1628_v5, 4  ;;  %v1637_v18 = vshll.u32 %v9075_v10, 16  ;;  %v1626_v25 = vsel %vm8395_vm13, %v1621_v47, %v1625_v20  ;;  %v2679_v36 = vor.u32 %v2678_v14, %v2674_v8  ;;  %v1425_v47 = vld [vmem:[#allocation2 + $0x74] sm:$0x1] }
 0x1d9   : > { %v1641_v21 = vshrl.u32 %v9075_v10, 16  ;;  %v1647_v42 = vshll.u32 %v1424_v7, 16  ;;  %v6230_v27 = vcombine.low %v1616_v41, %v1626_v25  ;;  %v2670_v40 = vrot.slane %v2669_v19, 4  ;;  %v9103_v7 = vld [vmem:[#allocation2 + $0x70] sm:$0xf] }
 0x1da   : > { %v1633_v12 = vrot.slane %v1631_v50, 5  ;;  %v1639_v33 = vrot.slane %v1637_v18, 5  ;;  %v2680_v60 = vrot.slane %v2679_v36, 4  ;;  %v6286_v38 = vcombine.low %v9058_v63, %v8829_v15  ;;  %v9101_v15 = vld [vmem:[#allocation2 + $0x6c] sm:$0xf] }
 0x1db   : > { %v1643_v6 = vrot.slane %v1641_v21, 4  ;;  %v1649_v51 = vrot.slane %v1647_v42, 5  ;;  %3817 = vmatprep.mubr.bf16.mxu0 %v6230_v27  ;;  %v2675_v3 = vsel %vm8395_vm13, %v2670_v40, %v2674_v8  ;;  %v4101_v57 = vshrl.u32 %v9087_v11, 16  ;;  %v9113_v18 = vld [vmem:[#allocation2 + $0x24] sm:$0xf] }
 0x1dc   : > { %v1634_v59 = vor.u32 %v1633_v12, %v1630_v23  ;;  %v4104_v58 = vshll.u32 %v9087_v11, 16  ;;  %v2685_v20 = vsel %vm8395_vm13, %v2680_v60, %v2684_v24  ;;  %3818 = vmatmul.mubr.bf16.gmra.mrb[76].mxu0 %v6214_v1  ;;  %v4110_v52 = vshll.u32 %v9089_v30, 16  ;;  %v9117_v12 = vld [vmem:[#allocation2 + $0x28] sm:$0xf] }
 0x1dd   : > { %v1644_v35 = vor.u32 %v1643_v6, %v1639_v33  ;;  %v4114_v16 = vshrl.u32 %v9089_v30, 16  ;;  %v6302_v63 = vcombine.low %v2675_v3, %v2685_v20  ;;  %v4103_v29 = vrot.slane %v4101_v57, 4 }
 0x1de   : > { %v1635_v32 = vrot.slane %v1634_v59, 4  ;;  %v4106_v53 = vrot.slane %v4104_v58, 5  ;;  %v4112_v26 = vrot.slane %v4110_v52, 5  ;;  %v4120_v8 = vshll.u32 %v4084_v49, 16 }
 0x1df   : > { %v1645_v37 = vrot.slane %v1644_v35, 4  ;;  %v4116_v0 = vrot.slane %v4114_v16, 4  ;;  %3415 = vmatprep.mubr.bf16.mxu1 %v6302_v63  ;;  %v6215_v41 = vcombine.low %v9069_v48, %v9075_v10  ;;  %v1652_v14 = vshrl.u32 %v9101_v15, 16  ;;  %v9128_v16 = vld [vmem:[#allocation2 + $0x78] sm:$0xf] }
 0x1e0   : > { %v1640_v1 = vsel %vm8395_vm13, %v1635_v32, %v1639_v33  ;;  %v4107_v5 = vor.u32 %v4106_v53, %v4103_v29  ;;  %3416 = vmatmul.mubr.bf16.gmra.mrb[76].mxu1 %v6286_v38  ;;  %v4122_v23 = vrot.slane %v4120_v8, 5  ;;  %v1655_v50 = vshll.u32 %v9101_v15, 16  ;;  %v9131_v29 = vld [vmem:[#allocation2 + $0x7c] sm:$0xf]  ;;  %v1426_v8 = vld [vmem:[#allocation2 + $0x80] sm:$0x1] }
 0x1e1   : > { %v1650_v24 = vsel %vm8395_vm13, %v1645_v37, %v1649_v51  ;;  %v4117_v19 = vor.u32 %v4116_v0, %v4112_v26  ;;  %v1654_v21 = vrot.slane %v1652_v14, 4  ;;  %v1661_v42 = vshll.u32 %v9103_v7, 16  ;;  %v4085_v51 = vld [vmem:[#allocation2 + $0x2c] sm:$0x1] }
 0x1e2   : > { %v6231_v25 = vcombine.low %v1640_v1, %v1650_v24  ;;  %v4108_v36 = vrot.slane %v4107_v5, 4  ;;  %v1657_v48 = vrot.slane %v1655_v50, 5  ;;  %v1665_v10 = vshrl.u32 %v9103_v7, 16 }
 0x1e3   : > { %v4118_v27 = vrot.slane %v4117_v19, 4  ;;  %v1671_v40 = vshll.u32 %v1425_v47, 16  ;;  %v1663_v60 = vrot.slane %v1661_v42, 5  ;;  %v6431_v6 = vcombine.low %v9087_v11, %v9089_v30 }
 0x1e4   : > { %3825 = vmatprep.mubr.bf16.mxu0 %v6231_v25  ;;  %v4113_v33 = vsel %vm8395_vm13, %v4108_v36, %v4112_v26  ;;  %v4125_v38 = vshrl.u32 %v9113_v18, 16  ;;  %v1658_v59 = vor.u32 %v1657_v48, %v1654_v21  ;;  %v1667_v49 = vrot.slane %v1665_v10, 4  ;;  %v9144_v36 = vld [vmem:[#allocation2 + $0x30] sm:$0xf]  ;;  %v9146_v10 = vld [vmem:[#allocation2 + $0x34] sm:$0xf] }
 0x1e5   : > { %v4123_v3 = vsel %vm8395_vm13, %v4118_v27, %v4122_v23  ;;  %3826 = vmatmul.mubr.bf16.gmra.mrb[80].mxu0 %v6215_v41  ;;  %v1673_v57 = vrot.slane %v1671_v40, 5  ;;  %v4128_v35 = vshll.u32 %v9113_v18, 16  ;;  %v4134_v52 = vshll.u32 %v9117_v12, 16 }
 0x1e6   : > { %v6447_v58 = vcombine.low %v4113_v33, %v4123_v3  ;;  %v4127_v20 = vrot.slane %v4125_v38, 4  ;;  %v1659_v63 = vrot.slane %v1658_v59, 4  ;;  %v1668_v11 = vor.u32 %v1667_v49, %v1663_v60  ;;  %v4086_v59 = vld [vmem:[#allocation2 + $0x38] sm:$0x1] }
 0x1e7   : > { %v4138_v30 = vshrl.u32 %v9117_v12, 16  ;;  %v4144_v32 = vshll.u32 %v4085_v51, 16  ;;  %v1898_v53 = vrot.slane %v8862_v43, 5  ;;  %v4130_v37 = vrot.slane %v4128_v35, 5 }
 0x1e8   : > { %5093 = vmatprep.mubr.bf16.mxu1 %v6447_v58  ;;  %v4136_v26 = vrot.slane %v4134_v52, 5  ;;  %v6216_v0 = vcombine.low %v9101_v15, %v9103_v7  ;;  %v1664_v1 = vsel %vm8395_vm13, %v1659_v63, %v1663_v60  ;;  %v1669_v5 = vrot.slane %v1668_v11, 4  ;;  %v9157_v52 = vld [vmem:[#allocation2 + $0x84] sm:$0xf] }
 0x1e9   : > { %5094 = vmatmul.mubr.bf16.vlgmr.msra.gmra.mrb[80].mxu1 %v6431_v6  ;;  %v4140_v41 = vrot.slane %v4138_v30, 4  ;;  %v4146_v47 = vrot.slane %v4144_v32, 5  ;;  %v4131_v14 = vor.u32 %v4130_v37, %v4127_v20  ;;  %v1676_v24 = vshrl.u32 %v9128_v16, 16 }
 0x1ea   : > { %v1679_v19 = vshll.u32 %v9128_v16, 16  ;;  %v1685_v23 = vshll.u32 %v9131_v29, 16  ;;  %v1674_v50 = vsel %vm8395_vm13, %v1669_v5, %v1673_v57  ;;  %v1689_v15 = vshrl.u32 %v9131_v29, 16 }
 0x1eb   : > { %v4141_v25 = vor.u32 %v4140_v41, %v4136_v26  ;;  %v1695_v7 = vshll.u32 %v1426_v8, 16  ;;  %v6232_v21 = vcombine.low %v1664_v1, %v1674_v50  ;;  %v4132_v42 = vrot.slane %v4131_v14, 4  ;;  %v9160_v8 = vld [vmem:[#allocation2 + $0x88] sm:$0xf]  ;;  %v1427_v41 = vld [vmem:[#allocation2 + $0x8c] sm:$0x1] }
 0x1ec   : > { %v1678_v27 = vrot.slane %v1676_v24, 4  ;;  %v1681_v48 = vrot.slane %v1679_v19, 5  ;;  %v1687_v33 = vrot.slane %v1685_v23, 5  ;;  %v1691_v60 = vrot.slane %v1689_v15, 4  ;;  %v9170_v50 = vld [vmem:[#allocation2 + $0x3c] sm:$0xf] }
 0x1ed   : > { %v4142_v40 = vrot.slane %v4141_v25, 4  ;;  %v1697_v6 = vrot.slane %v1695_v7, 5  ;;  %3833 = vmatprep.mubr.bf16.mxu0 %v6232_v21  ;;  %v4137_v51 = vsel %vm8395_vm13, %v4132_v42, %v4136_v26  ;;  %v6432_v3 = vcombine.low %v9113_v18, %v9117_v12 }
 0x1ee   : > { %v1682_v38 = vor.u32 %v1681_v48, %v1678_v27  ;;  %v4149_v49 = vshrl.u32 %v9144_v36, 16  ;;  %3834 = vmatmul.mubr.bf16.gmra.mrb[84].mxu0 %v6216_v0  ;;  %v1692_v58 = vor.u32 %v1691_v60, %v1687_v33  ;;  %v4152_v20 = vshll.u32 %v9144_v36, 16  ;;  %v9174_v48 = vld [vmem:[#allocation2 + $0x40] sm:$0xf] }
 0x1ef   : > { %v4147_v57 = vsel %vm8395_vm13, %v4142_v40, %v4146_v47  ;;  %v4158_v35 = vshll.u32 %v9146_v10, 16  ;;  %v4162_v32 = vshrl.u32 %v9146_v10, 16  ;;  %v4168_v26 = vshll.u32 %v4086_v59, 16 }
 0x1f0   : > { %v6448_v63 = vcombine.low %v4137_v51, %v4147_v57  ;;  %v1683_v11 = vrot.slane %v1682_v38, 4  ;;  %v4151_v30 = vrot.slane %v4149_v49, 4  ;;  %v1693_v18 = vrot.slane %v1692_v58, 4  ;;  %v4087_v49 = vld [vmem:[#allocation2 + $0x44] sm:$0x1] }
 0x1f1   : > { %v4154_v12 = vrot.slane %v4152_v20, 5  ;;  %v4160_v37 = vrot.slane %v4158_v35, 5  ;;  %v4164_v1 = vrot.slane %v4162_v32, 4  ;;  %v6217_v5 = vcombine.low %v9128_v16, %v9131_v29  ;;  %v9188_v32 = vld [vmem:[#allocation2 + $0x94] sm:$0xf] }
 0x1f2   : > { %5101 = vmatprep.mubr.bf16.mxu1 %v6448_v63  ;;  %v1688_v0 = vsel %vm8395_vm13, %v1683_v11, %v1687_v33  ;;  %v1700_v47 = vshrl.u32 %v9157_v52, 16  ;;  %v1698_v14 = vsel %vm8395_vm13, %v1693_v18, %v1697_v6  ;;  %v4170_v19 = vrot.slane %v4168_v26, 5  ;;  %v9185_v63 = vld [vmem:[#allocation2 + $0x90] sm:$0xf] }
 0x1f3   : > { %5102 = vmatmul.mubr.bf16.gmra.mrb[84].mxu1 %v6432_v3  ;;  %v4155_v24 = vor.u32 %v4154_v12, %v4151_v30  ;;  %v1703_v23 = vshll.u32 %v9157_v52, 16  ;;  %v6233_v25 = vcombine.low %v1688_v0, %v1698_v14  ;;  %v4165_v15 = vor.u32 %v4164_v1, %v4160_v37 }
 0x1f4   : > { %v1702_v7 = vrot.slane %v1700_v47, 4  ;;  %v1709_v21 = vshll.u32 %v9160_v8, 16  ;;  %v1713_v29 = vshrl.u32 %v9160_v8, 16  ;;  %v1719_v27 = vshll.u32 %v1427_v41, 16 }
 0x1f5   : > { %v4156_v42 = vrot.slane %v4155_v24, 4  ;;  %v1705_v16 = vrot.slane %v1703_v23, 5  ;;  %3841 = vmatprep.mubr.bf16.mxu0 %v6233_v25  ;;  %v4166_v40 = vrot.slane %v4165_v15, 4  ;;  %v6433_v60 = vcombine.low %v9144_v36, %v9146_v10  ;;  %v9195_v24 = vld [vmem:[#allocation2 + $0x98] sm:$0x1] }
 0x1f6   : > { %v1711_v33 = vrot.slane %v1709_v21, 5  ;;  %v4173_v6 = vshrl.u32 %v9170_v50, 16  ;;  %3842 = vmatmul.mubr.bf16.gmra.mrb[88].mxu0 %v6217_v5  ;;  %v1715_v3 = vrot.slane %v1713_v29, 4  ;;  %v1721_v59 = vrot.slane %v1719_v27, 5  ;;  %v9204_v27 = vld [vmem:[#allocation2 + $0x4c] sm:$0xf] }
 0x1f7   : > { %v4161_v51 = vsel %vm8395_vm13, %v4156_v42, %v4160_v37  ;;  %v1706_v38 = vor.u32 %v1705_v16, %v1702_v7  ;;  %v4171_v57 = vsel %vm8395_vm13, %v4166_v40, %v4170_v19  ;;  %v4176_v20 = vshll.u32 %v9170_v50, 16  ;;  %v9202_v7 = vld [vmem:[#allocation2 + $0x48] sm:$0xf] }
 0x1f8   : > { %v4175_v58 = vrot.slane %v4173_v6, 4  ;;  %v4182_v35 = vshll.u32 %v9174_v48, 16  ;;  %v6449_v36 = vcombine.low %v4161_v51, %v4171_v57  ;;  %v1716_v11 = vor.u32 %v1715_v3, %v1711_v33  ;;  %v4088_v3 = vld [vmem:[#allocation2 + $0x50] sm:$0x1] }
 0x1f9   : > { %v1707_v10 = vrot.slane %v1706_v38, 4  ;;  %v4186_v30 = vshrl.u32 %v9174_v48, 16  ;;  %v4178_v18 = vrot.slane %v4176_v20, 5  ;;  %v4192_v37 = vshll.u32 %v4087_v49, 16 }
 0x1fa   : > { %v4184_v12 = vrot.slane %v4182_v35, 5  ;;  %v6218_v26 = vcombine.low %v9157_v52, %v9160_v8  ;;  %5109 = vmatprep.mubr.bf16.mxu1 %v6449_v36  ;;  %v1717_v1 = vrot.slane %v1716_v11, 4  ;;  %v1724_v41 = vshrl.u32 %v9185_v63, 16  ;;  %v9216_v36 = vld [vmem:[#allocation2 + $0x9c] sm:$0xf] }
 0x1fb   : > { %v1712_v0 = vsel %vm8395_vm13, %v1707_v10, %v1711_v33  ;;  %v4188_v5 = vrot.slane %v4186_v30, 4  ;;  %5110 = vmatmul.mubr.bf16.gmra.mrb[88].mxu1 %v6433_v60  ;;  %v4179_v47 = vor.u32 %v4178_v18, %v4175_v58  ;;  %v4194_v14 = vrot.slane %v4192_v37, 5 }
 0x1fc   : > { %v1727_v19 = vshll.u32 %v9185_v63, 16  ;;  %v1733_v23 = vshll.u32 %v9188_v32, 16  ;;  %v1722_v52 = vsel %vm8395_vm13, %v1717_v1, %v1721_v59  ;;  %v1726_v25 = vrot.slane %v1724_v41, 4  ;;  %v9225_v41 = vld [vmem:[#allocation2 + $0xa4] sm:$0x1] }
 0x1fd   : > { %v4189_v8 = vor.u32 %v4188_v5, %v4184_v12  ;;  %v1737_v15 = vshrl.u32 %v9188_v32, 16  ;;  %v6234_v21 = vcombine.low %v1712_v0, %v1722_v52  ;;  %v4180_v42 = vrot.slane %v4179_v47, 4  ;;  %v9219_v0 = vld [vmem:[#allocation2 + $0xa0] sm:$0xf] }
 0x1fe   : > { %v1729_v16 = vrot.slane %v1727_v19, 5  ;;  %v1735_v29 = vrot.slane %v1733_v23, 5  ;;  %v1743_v60 = vshll.u32 %v9195_v24, 16  ;;  %v6434_v6 = vcombine.low %v9170_v50, %v9174_v48 }
 0x1ff   : > { %v4190_v40 = vrot.slane %v4189_v8, 4  ;;  %v1739_v33 = vrot.slane %v1737_v15, 4  ;;  %3849 = vmatprep.mubr.bf16.mxu0 %v6234_v21  ;;  %v4185_v51 = vsel %vm8395_vm13, %v4180_v42, %v4184_v12  ;;  %v4197_v59 = vshrl.u32 %v9202_v7, 16  ;;  %v9231_v8 = vld [vmem:[#allocation2 + $0x54] sm:$0xf] }
 0x200   : > { %v1730_v38 = vor.u32 %v1729_v16, %v1726_v25  ;;  %v4200_v49 = vshll.u32 %v9202_v7, 16  ;;  %3850 = vmatmul.mubr.bf16.gmra.mrb[92].mxu0 %v6218_v26  ;;  %v1745_v20 = vrot.slane %v1743_v60, 5  ;;  %v4206_v35 = vshll.u32 %v9204_v27, 16 }
 0x201   : > { %v4195_v57 = vsel %vm8395_vm13, %v4190_v40, %v4194_v14  ;;  %v1740_v58 = vor.u32 %v1739_v33, %v1735_v29  ;;  %v4199_v10 = vrot.slane %v4197_v59, 4  ;;  %v4210_v12 = vshrl.u32 %v9204_v27, 16  ;;  %v9236_v33 = vld [vmem:[#allocation2 + $0x58] sm:$0xf] }
 0x202   : > { %v6450_v50 = vcombine.low %v4185_v51, %v4195_v57  ;;  %v1731_v48 = vrot.slane %v1730_v38, 4  ;;  %v4202_v11 = vrot.slane %v4200_v49, 5  ;;  %v4208_v18 = vrot.slane %v4206_v35, 5  ;;  %v4089_v38 = vld [vmem:[#allocation2 + $0x5c] sm:$0x1] }
 0x203   : > { %v1741_v30 = vrot.slane %v1740_v58, 4  ;;  %v4216_v37 = vshll.u32 %v4088_v3, 16  ;;  %v6219_v5 = vcombine.low %v9185_v63, %v9188_v32  ;;  %v1748_v47 = vshrl.u32 %v9216_v36, 16 }
 0x204   : > { %5117 = vmatprep.mubr.bf16.mxu1 %v6450_v50  ;;  %v1736_v26 = vsel %vm8395_vm13, %v1731_v48, %v1735_v29  ;;  %v4203_v1 = vor.u32 %v4202_v11, %v4199_v10  ;;  %v4212_v19 = vrot.slane %v4210_v12, 4  ;;  %v1751_v52 = vshll.u32 %v9216_v36, 16 }
 0x205   : > { %v1746_v14 = vsel %vm8395_vm13, %v1741_v30, %v1745_v20  ;;  %5118 = vmatmul.mubr.bf16.gmra.mrb[92].mxu1 %v6434_v6  ;;  %v4218_v23 = vrot.slane %v4216_v37, 5  ;;  %v1750_v21 = vrot.slane %v1748_v47, 4  ;;  %v1757_v42 = vshll.u32 %v9219_v0, 16  ;;  %v9248_v30 = vld [vmem:[#allocation2 + $0xa8] sm:$0xf] }
 0x206   : > { %v6235_v25 = vcombine.low %v1736_v26, %v1746_v14  ;;  %v4204_v15 = vrot.slane %v4203_v1, 4  ;;  %v4213_v63 = vor.u32 %v4212_v19, %v4208_v18  ;;  %v1753_v16 = vrot.slane %v1751_v52, 5 }
 0x207   : > { %v1761_v29 = vshrl.u32 %v9219_v0, 16  ;;  %v1767_v40 = vshll.u32 %v9225_v41, 16  ;;  %v1759_v6 = vrot.slane %v1757_v42, 5  ;;  %v6435_v51 = vcombine.low %v9202_v7, %v9204_v27 }
 0x208   : > { %3857 = vmatprep.mubr.bf16.mxu0 %v6235_v25  ;;  %v4209_v60 = vsel %vm8395_vm13, %v4204_v15, %v4208_v18  ;;  %v4221_v3 = vshrl.u32 %v9231_v8, 16  ;;  %v4214_v59 = vrot.slane %v4213_v63, 4  ;;  %v1754_v49 = vor.u32 %v1753_v16, %v1750_v21  ;;  %v9250_v18 = vld [vmem:[#allocation2 + $0xac] sm:$0xf] }
 0x209   : > { %3858 = vmatmul.mubr.bf16.gmra.mrb[96].mxu0 %v6219_v5  ;;  %v1763_v57 = vrot.slane %v1761_v29, 4  ;;  %v1769_v58 = vrot.slane %v1767_v40, 5  ;;  %v4224_v35 = vshll.u32 %v9231_v8, 16  ;;  %v4230_v50 = vshll.u32 %v9236_v33, 16  ;;  %v9252_v5 = vld [vmem:[#allocation2 + $0xb0] sm:$0x1] }
 0x20a   : > { %v4223_v20 = vrot.slane %v4221_v3, 4  ;;  %v4234_v48 = vshrl.u32 %v9236_v33, 16  ;;  %v4219_v10 = vsel %vm8395_vm13, %v4214_v59, %v4218_v23  ;;  %v1755_v11 = vrot.slane %v1754_v49, 4  ;;  %v9265_v40 = vld [vmem:[#allocation2 + $0x60] sm:$0xf] }
 0x20b   : > { %v1764_v7 = vor.u32 %v1763_v57, %v1759_v6  ;;  %v4240_v27 = vshll.u32 %v4089_v38, 16  ;;  %v6451_v12 = vcombine.low %v4209_v60, %v4219_v10  ;;  %v4226_v37 = vrot.slane %v4224_v35, 5  ;;  %v9267_v3 = vld [vmem:[#allocation2 + $0x64] sm:$0xf] }
 0x20c   : > { %v4232_v26 = vrot.slane %v4230_v50, 5  ;;  %v4236_v1 = vrot.slane %v4234_v48, 4  ;;  %v1760_v47 = vsel %vm8395_vm13, %v1755_v11, %v1759_v6  ;;  %v6220_v23 = vcombine.low %v9216_v36, %v9219_v0 }
 0x20d   : > { %v1765_v14 = vrot.slane %v1764_v7, 4  ;;  %v4242_v19 = vrot.slane %v4240_v27, 5  ;;  %5125 = vmatprep.mubr.bf16.mxu1 %v6451_v12  ;;  %v4227_v52 = vor.u32 %v4226_v37, %v4223_v20  ;;  %v1772_v15 = vshrl.u32 %v9248_v30, 16  ;;  %v9277_v12 = vld [vmem:[#allocation2 + $0xb4] sm:$0xf] }
 0x20e   : > { %v4237_v25 = vor.u32 %v4236_v1, %v4232_v26  ;;  %v1775_v21 = vshll.u32 %v9248_v30, 16  ;;  %5126 = vmatmul.mubr.bf16.gmra.mrb[96].mxu1 %v6435_v51  ;;  %v1781_v63 = vshll.u32 %v9250_v18, 16  ;;  %v1785_v16 = vshrl.u32 %v9250_v18, 16 }
 0x20f   : > { %v1770_v42 = vsel %vm8395_vm13, %v1765_v14, %v1769_v58  ;;  %v1791_v29 = vshll.u32 %v9252_v5, 16  ;;  %v4228_v60 = vrot.slane %v4227_v52, 4  ;;  %v1774_v38 = vrot.slane %v1772_v15, 4  ;;  %v4090_v58 = vld [vmem:[#allocation2 + $0x68] sm:$0x1] }
 0x210   : > { %v6236_v36 = vcombine.low %v1760_v47, %v1770_v42  ;;  %v4238_v6 = vrot.slane %v4237_v25, 4  ;;  %v1777_v59 = vrot.slane %v1775_v21, 5  ;;  %v1783_v49 = vrot.slane %v1781_v63, 5  ;;  %v9285_v21 = vld [vmem:[#allocation2 + $0xbc] sm:$0x1] }
 0x211   : > { %v1787_v57 = vrot.slane %v1785_v16, 4  ;;  %v1793_v20 = vrot.slane %v1791_v29, 5  ;;  %v4233_v51 = vsel %vm8395_vm13, %v4228_v60, %v4232_v26  ;;  %v6436_v50 = vcombine.low %v9231_v8, %v9236_v33 }
 0x212   : > { %3865 = vmatprep.mubr.bf16.mxu0 %v6236_v36  ;;  %v4243_v35 = vsel %vm8395_vm13, %v4238_v6, %v4242_v19  ;;  %v4245_v48 = vshrl.u32 %v9265_v40, 16  ;;  %v1778_v11 = vor.u32 %v1777_v59, %v1774_v38  ;;  %v4248_v27 = vshll.u32 %v9265_v40, 16 }
 0x213   : > { %v6452_v10 = vcombine.low %v4233_v51, %v4243_v35  ;;  %3866 = vmatmul.mubr.bf16.gmra.mrb[100].mxu0 %v6220_v23  ;;  %v1788_v7 = vor.u32 %v1787_v57, %v1783_v49  ;;  %v4254_v1 = vshll.u32 %v9267_v3, 16  ;;  %v4258_v26 = vshrl.u32 %v9267_v3, 16  ;;  %v9283_v23 = vld [vmem:[#allocation2 + $0xb8] sm:$0xf]  ;;  %v9298_v35 = vld [vmem:[#allocation2 + $0x70] sm:$0xf] }
 0x214   : > { %v4247_v37 = vrot.slane %v4245_v48, 4  ;;  %v4264_v47 = vshll.u32 %v4090_v58, 16  ;;  %v1779_v14 = vrot.slane %v1778_v11, 4  ;;  %v4250_v8 = vrot.slane %v4248_v27, 5 }
 0x215   : > { %5133 = vmatprep.mubr.bf16.mxu1 %v6452_v10  ;;  %v1789_v19 = vrot.slane %v1788_v7, 4  ;;  %v6221_v33 = vcombine.low %v9248_v30, %v9250_v18  ;;  %v4256_v52 = vrot.slane %v4254_v1, 5  ;;  %v4260_v25 = vrot.slane %v4258_v26, 4  ;;  %v9293_v30 = vld [vmem:[#allocation2 + $0x6c] sm:$0xf] }
 0x216   : > { %v4266_v15 = vrot.slane %v4264_v47, 5  ;;  %v1796_v42 = vshrl.u32 %v9277_v12, 16  ;;  %v1784_v63 = vsel %vm8395_vm13, %v1779_v14, %v1783_v49  ;;  %5134 = vmatmul.mubr.bf16.gmra.mrb[100].mxu1 %v6436_v50  ;;  %v4251_v29 = vor.u32 %v4250_v8, %v4247_v37  ;;  %v4091_v1 = vld [vmem:[#allocation2 + $0x74] sm:$0x1] }
 0x217   : > { %v1794_v16 = vsel %vm8395_vm13, %v1789_v19, %v1793_v20  ;;  %v1799_v36 = vshll.u32 %v9277_v12, 16  ;;  %v4261_v6 = vor.u32 %v4260_v25, %v4256_v52  ;;  %v1805_v59 = vshll.u32 %v9283_v23, 16 }
 0x218   : > { %v6237_v60 = vcombine.low %v1784_v63, %v1794_v16  ;;  %v1798_v38 = vrot.slane %v1796_v42, 4  ;;  %v4252_v57 = vrot.slane %v4251_v29, 4  ;;  %v1809_v51 = vshrl.u32 %v9283_v23, 16  ;;  %v9310_v42 = vld [vmem:[#allocation2 + $0x78] sm:$0xf] }
 0x219   : > { %v1801_v58 = vrot.slane %v1799_v36, 5  ;;  %v1815_v49 = vshll.u32 %v9285_v21, 16  ;;  %v4262_v20 = vrot.slane %v4261_v6, 4  ;;  %v1807_v50 = vrot.slane %v1805_v59, 5  ;;  %v9314_v29 = vld [vmem:[#allocation2 + $0x7c] sm:$0xf] }
 0x21a   : > { %3873 = vmatprep.mubr.bf16.mxu0 %v6237_v60  ;;  %v6437_v48 = vcombine.low %v9265_v40, %v9267_v3  ;;  %v4269_v10 = vshrl.u32 %v9293_v30, 16  ;;  %v4257_v11 = vsel %vm8395_vm13, %v4252_v57, %v4256_v52  ;;  %v1811_v27 = vrot.slane %v1809_v51, 4 }
 0x21b   : > { %3874 = vmatmul.mubr.bf16.gmra.mrb[104].mxu0 %v6221_v33  ;;  %v1802_v7 = vor.u32 %v1801_v58, %v1798_v38  ;;  %v1817_v37 = vrot.slane %v1815_v49, 5  ;;  %v4267_v26 = vsel %vm8395_vm13, %v4262_v20, %v4266_v15  ;;  %v4272_v14 = vshll.u32 %v9293_v30, 16  ;;  %v9322_v58 = vld [vmem:[#allocation2 + $0x80] sm:$0x1] }
 0x21c   : > { %v4271_v47 = vrot.slane %v4269_v10, 4  ;;  %v4278_v19 = vshll.u32 %v9298_v35, 16  ;;  %v6453_v8 = vcombine.low %v4257_v11, %v4267_v26  ;;  %v1812_v3 = vor.u32 %v1811_v27, %v1807_v50  ;;  %v1819_v11 = vld [vmem:[#allocation2] sm:$0xe] }
 0x21d   : > { %v1803_v40 = vrot.slane %v1802_v7, 4  ;;  %v4282_v25 = vshrl.u32 %v9298_v35, 16  ;;  %v4274_v33 = vrot.slane %v4272_v14, 5  ;;  %v4288_v63 = vshll.u32 %v4091_v1, 16 }
 0x21e   : > { %v4280_v52 = vrot.slane %v4278_v19, 5  ;;  %v6222_v16 = vcombine.low %v9277_v12, %v9283_v23  ;;  %5141 = vmatprep.mubr.bf16.mxu1 %v6453_v8  ;;  %v1813_v36 = vrot.slane %v1812_v3, 4  ;;  %v6438_v6 = vcombine.low %v9293_v30, %v9298_v35 }
 0x21f   : > { %v1808_v15 = vsel %vm8395_vm13, %v1803_v40, %v1807_v50  ;;  %v4284_v60 = vrot.slane %v4282_v25, 4  ;;  %v9320_v38 = vpop.f32.mrb[16].mxu1  ;;  %5142 = vmatmul.mubr.bf16.gmra.mrb[104].mxu1 %v6437_v48  ;;  %v4275_v59 = vor.u32 %v4274_v33, %v4271_v47  ;;  %v4290_v57 = vrot.slane %v4288_v63, 5  ;;  %v7792_v33 = vld [vmem:[#allocation2 + $0x4] sm:$0xf] }
 0x220   : > { %v4293_v12 = vshrl.u32 %v9310_v42, 16  ;;  %v4296_v51 = vshll.u32 %v9310_v42, 16  ;;  %v9326_v49 = vpop.f32.mrb[17].mxu1  ;;  %v1818_v20 = vsel %vm8395_vm13, %v1813_v36, %v1817_v37  ;;  %v4302_v10 = vshll.u32 %v9314_v29, 16  ;;  %v1820_v36 = vld [vmem:[#allocation2 + $0xc] sm:$0xe] }
 0x221   : > { %v4285_v50 = vor.u32 %v4284_v60, %v4280_v52  ;;  %v4306_v30 = vshrl.u32 %v9314_v29, 16  ;;  %v9332_v48 = vpop.f32.mrb[18].mxu1  ;;  %v6238_v7 = vcombine.low %v1808_v15, %v1818_v20  ;;  %v4276_v27 = vrot.slane %v4275_v59, 4  ;;  %v1821_v15 = vld [vmem:[#allocation2 + $0x18] sm:$0xe] }
 0x222   : > { %v4295_v1 = vrot.slane %v4293_v12, 4  ;;  %v4298_v26 = vrot.slane %v4296_v51, 5  ;;  %v9334_v47 = vpop.f32.mrb[19].mxu1  ;;  %v4304_v19 = vrot.slane %v4302_v10, 5  ;;  %v4312_v40 = vshll.u32 %v9322_v58, 16 }
 0x223   : > { %v4286_v14 = vrot.slane %v4285_v50, 4  ;;  %v4308_v8 = vrot.slane %v4306_v30, 4  ;;  %3881 = vmatprep.mubr.bf16.mxu0 %v6238_v7  ;;  %v4281_v37 = vsel %vm8395_vm13, %v4276_v27, %v4280_v52  ;;  %v6191_v25 = vrot.slane %v1819_v11, 9  ;;  %v7793_v51 = vld [vmem:[#allocation2 + $0x8] sm:$0x1] }
 0x224   : > { %v4299_v3 = vor.u32 %v4298_v26, %v4295_v1  ;;  %v1888_v63 = vrot.slane %v7792_v33, 5  ;;  %3882 = vmatmul.mubr.bf16.gmra.mrb[108].mxu0 %v6222_v16  ;;  %v4314_v12 = vrot.slane %v4312_v40, 5  ;;  %v1891_v20 = vrot.slane %v7793_v51, 5  ;;  %v7794_v27 = vld [vmem:[#allocation2 + $0x10] sm:$0xf] }
 0x225   : > { %v4291_v60 = vsel %vm8395_vm13, %v4286_v14, %v4290_v57  ;;  %v4309_v59 = vor.u32 %v4308_v8, %v4304_v19  ;;  %v6192_v11 = vrot.slane %v1820_v36, 9  ;;  %v1895_v1 = vrot.slane %v7794_v27, 5  ;;  %v9343_v33 = vld [vmem:[#allocation2 + $0x84] sm:$0xf]  ;;  %v7795_v14 = vld [vmem:[#allocation2 + $0x1c] sm:$0xf] }
 0x226   : > { %v6454_v50 = vcombine.low %v4281_v37, %v4291_v60  ;;  %v4300_v10 = vrot.slane %v4299_v3, 4  ;;  %v1889_v30 = vsel %vm8310_vm10, %v6191_v25, %v1888_v63  ;;  %v1890_v52 = vrot.slane %v1888_v63, 4  ;;  %v7796_v40 = vld [vmem:[#allocation2 + $0x20] sm:$0x1]  ;;  %v9349_v3 = vld [vmem:[#allocation2 + $0x88] sm:$0xf] }
 0x227   : > { %v4310_v7 = vrot.slane %v4309_v59, 4  ;;  %v6193_v26 = vrot.slane %v1821_v15, 9  ;;  %v1902_v8 = vrot.slane %v7795_v14, 5  ;;  %v1905_v37 = vrot.slane %v7796_v40, 5  ;;  %v9351_v25 = vpop.f32.mrb[20].mxu1 }
 0x228   : > { %5149 = vmatprep.mubr.bf16.mxu1 %v6454_v50  ;;  %v4305_v16 = vsel %vm8395_vm13, %v4300_v10, %v4304_v19  ;;  %v1892_v57 = vsel %vm8310_vm10, %v1890_v52, %v1891_v20  ;;  %v1896_v15 = vsel %vm8310_vm10, %v6192_v11, %v1895_v1  ;;  %v1897_v19 = vrot.slane %v1895_v1, 4  ;;  %v4093_v60 = vld [vmem:[#allocation2 + $0x8c] sm:$0x1]  ;;  %v9357_v59 = vpop.f32.mrb[21].mxu1  ;;  %v1822_v11 = vld [vmem:[#allocation2 + $0x24] sm:$0xe] }
 0x229   : > { %5150 = vmatmul.mubr.bf16.gmra.mrb[108].mxu1 %v6438_v6  ;;  %v4315_v63 = vsel %vm8395_vm13, %v4310_v7, %v4314_v12  ;;  %v6239_v36 = vcombine.low %v1889_v30, %v1892_v57  ;;  %v1903_v20 = vsel %vm8310_vm10, %v6193_v26, %v1902_v8  ;;  %v1904_v50 = vrot.slane %v1902_v8, 4  ;;  %v9363_v6 = vpop.f32.mrb[22].mxu1 }
 0x22a   : > { %v6455_v51 = vcombine.low %v4305_v16, %v4315_v63  ;;  %v6439_v10 = vcombine.low %v9310_v42, %v9314_v29  ;;  %v1899_v12 = vsel %vm8310_vm10, %v1897_v19, %v1898_v53  ;;  %v4317_v30 = vshrl.u32 %v9343_v33, 16  ;;  %v9372_v27 = vpop.f32.mrb[23].mxu1  ;;  %v7768_v53 = vld [vmem:[%s10250_s4 + $0x208] sm:$0xff]   ;;  %v1823_v16 = vld [vmem:[#allocation2 + $0x30] sm:$0xe] }
 0x22b   : > { %7325 = vmatprep.mubr.bf16.mxu0 %v6239_v36  ;;  %v4320_v52 = vshll.u32 %v9343_v33, 16  ;;  %v4326_v7 = vshll.u32 %v9349_v3, 16  ;;  %v6240_v1 = vcombine.low %v1896_v15, %v1899_v12  ;;  %v1906_v42 = vsel %vm8310_vm10, %v1904_v50, %v1905_v37  ;;  %v7797_v15 = vld [vmem:[#allocation2 + $0x28] sm:$0xf]  ;;  %v7798_v37 = vld [vmem:[%s10250_s4 + $0x200] sm:$0xff]  }
 0x22c   : > { %5157 = vmatprep.mubr.bf16.mxu1 %v6455_v51  ;;  %v4330_v26 = vshrl.u32 %v9349_v3, 16  ;;  %v4336_v43 = vshll.u32 %v4093_v60, 16  ;;  %v6241_v57 = vcombine.low %v1903_v20, %v1906_v42  ;;  %v4319_v14 = vrot.slane %v4317_v30, 4  ;;  %v7799_v50 = vld [vmem:[#allocation2 + $0x2c] sm:$0x1] }
 0x22d   : > { %v4322_v8 = vrot.slane %v4320_v52, 5  ;;  %v4328_v40 = vrot.slane %v4326_v7, 5  ;;  %7326 = vmatmul.mubr.bf16.vlgmr.msra.gmra.mrb[16].mxu0 %v6240_v1  ;;  %v6194_v19 = vrot.slane %v1822_v11, 9  ;;  %v1909_v51 = vrot.slane %v7797_v15, 5  ;;  %v7800_v20 = vld [vmem:[#allocation2 + $0x34] sm:$0xf] }
 0x22e   : > { %v4332_v63 = vrot.slane %v4330_v26, 4  ;;  %v4338_v36 = vrot.slane %v4336_v43, 5  ;;  %7358 = vmatpush3.bf16.msra.mxu0 %v7798_v37  ;;  %7329 = vmatprep.mubr.bf16.mxu0 %v6241_v57  ;;  %v1912_v12 = vrot.slane %v7799_v50, 5  ;;  %v6195_v17 = vrot.slane %v1823_v16, 9  ;;  %v9383_v52 = vld [vmem:[#allocation2 + $0x90] sm:$0xf] }
 0x22f   : > { %v4323_v60 = vor.u32 %v4322_v8, %v4319_v14  ;;  %v1916_v30 = vrot.slane %v7800_v20, 5  ;;  %7359 = vmatprep.subr.bf16.mxu0 %v7768_v53  ;;  %v1910_v11 = vsel %vm8310_vm10, %v6194_v19, %v1909_v51  ;;  %v1911_v1 = vrot.slane %v1909_v51, 4  ;;  %v7801_v42 = vld [vmem:[#allocation2 + $0x38] sm:$0x1]  ;;  %v9387_v43 = vld [vmem:[#allocation2 + $0x94] sm:$0xf] }
 0x230   : > { %v4333_v7 = vor.u32 %v4332_v63, %v4328_v40  ;;  %v1919_v26 = vrot.slane %v7801_v42, 5  ;;  %v7770_v57 = vld [vmem:[%s10250_s4 + $0x210] sm:$0xff]   ;;  %v6440_v63 = vcombine.low %v9343_v33, %v9349_v3  ;;  %v9398_v51 = vld [vmem:[#allocation2 + $0x98] sm:$0x1]  ;;  %v4341_v37 = vshrl.u32 %v9383_v52, 16 }
 0x231   : > { %5158 = vmatmul.mubr.bf16.gmra.mrb[112].mxu1 %v6439_v10  ;;  %v4324_v16 = vrot.slane %v4323_v60, 4  ;;  %v1917_v14 = vsel %vm8310_vm10, %v6195_v17, %v1916_v30  ;;  %v1918_v8 = vrot.slane %v1916_v30, 4  ;;  %v1913_v19 = vsel %vm8310_vm10, %v1911_v1, %v1912_v12  ;;  %v1824_v20 = vld [vmem:[#allocation2 + $0x3c] sm:$0xe]  ;;  %v1825_v42 = vld [vmem:[#allocation2 + $0x48] sm:$0xe] }
 0x232   : > { %v4334_v15 = vrot.slane %v4333_v7, 4  ;;  %v4344_v50 = vshll.u32 %v9383_v52, 16  ;;  %v6242_v60 = vcombine.low %v1910_v11, %v1913_v19  ;;  %7360 = vmatpush3.bf16.msra.mxu0 %v7768_v53  ;;  %v4350_v33 = vshll.u32 %v9387_v43, 16  ;;  %v7772_v11 = vld [vmem:[%s10250_s4 + $0x218] sm:$0xff]  }
 0x233   : > { %v4329_v10 = vsel %vm8395_vm13, %v4324_v16, %v4328_v40  ;;  %v1920_v17 = vsel %vm8310_vm10, %v1918_v8, %v1919_v26  ;;  %v4343_v7 = vrot.slane %v4341_v37, 4  ;;  %7361 = vmatprep.subr.bf16.mxu0 %v7770_v57  ;;  %v4354_v40 = vshrl.u32 %v9387_v43, 16  ;;  %v7802_v8 = vld [vmem:[#allocation2 + $0x40] sm:$0xf] }
 0x234   : > { %v4339_v12 = vsel %vm8395_vm13, %v4334_v15, %v4338_v36  ;;  %v6243_v30 = vcombine.low %v1917_v14, %v1920_v17  ;;  %v4346_v1 = vrot.slane %v4344_v50, 5  ;;  %v4352_v22 = vrot.slane %v4350_v33, 5  ;;  %v7803_v14 = vld [vmem:[#allocation2 + $0x44] sm:$0x1]  ;;  %v9414_v33 = vld [vmem:[#allocation2 + $0x9c] sm:$0xf] }
 0x235   : > { %v6456_v28 = vcombine.low %v4329_v10, %v4339_v12  ;;  %v4360_v53 = vshll.u32 %v9398_v51, 16  ;;  %7330 = vmatmul.mubr.bf16.gmra.mrb[20].mxu0 %v6242_v60  ;;  %v6196_v16 = vrot.slane %v1824_v20, 9  ;;  %v1923_v36 = vrot.slane %v7802_v8, 5  ;;  %v7804_v10 = vld [vmem:[#allocation2 + $0x4c] sm:$0xf] }
 0x236   : > { %v4347_v26 = vor.u32 %v4346_v1, %v4343_v7  ;;  %v1926_v15 = vrot.slane %v7803_v14, 5  ;;  %7333 = vmatprep.mubr.bf16.mxu0 %v6243_v30  ;;  %v4356_v19 = vrot.slane %v4354_v40, 4  ;;  %v6197_v50 = vrot.slane %v1825_v42, 9  ;;  %7362 = vmatpush3.bf16.msra.mxu0 %v7770_v57  ;;  %v7805_v20 = vld [vmem:[#allocation2 + $0x50] sm:$0x1] }
 0x237   : > { %5165 = vmatprep.mubr.bf16.mxu1 %v6456_v28  ;;  %v4362_v37 = vrot.slane %v4360_v53, 5  ;;  %v1930_v17 = vrot.slane %v7804_v10, 5  ;;  %v1924_v2 = vsel %vm8310_vm10, %v6196_v16, %v1923_v36  ;;  %v1925_v60 = vrot.slane %v1923_v36, 4  ;;  %v9418_v1 = vld [vmem:[#allocation2 + $0xa0] sm:$0xf]  ;;  %7363 = vmatprep.subr.bf16.mxu0 %v7772_v11 }
 0x238   : > { %v4348_v12 = vrot.slane %v4347_v26, 4  ;;  %v1933_v7 = vrot.slane %v7805_v20, 5  ;;  %v4357_v28 = vor.u32 %v4356_v19, %v4352_v22  ;;  %v6441_v40 = vcombine.low %v9383_v52, %v9387_v43  ;;  %v7774_v53 = vld [vmem:[%s10250_s4 + $0x220] sm:$0xff]   ;;  %v1826_v10 = vld [vmem:[#allocation2 + $0x54] sm:$0xe] }
 0x239   : > { %5166 = vmatmul.mubr.bf16.gmra.mrb[116].mxu1 %v6440_v63  ;;  %v1931_v30 = vsel %vm8310_vm10, %v6197_v50, %v1930_v17  ;;  %v1932_v42 = vrot.slane %v1930_v17, 4  ;;  %v1927_v26 = vsel %vm8310_vm10, %v1925_v60, %v1926_v15  ;;  %v9431_v63 = vld [vmem:[#allocation2 + $0xa4] sm:$0x1]  ;;  %v4365_v16 = vshrl.u32 %v9414_v33, 16  ;;  %v9435_v36 = vpop.f32.mrb[24].mxu1 }
 0x23a   : > { %v4353_v57 = vsel %vm8395_vm13, %v4348_v12, %v4352_v22  ;;  %v4368_v8 = vshll.u32 %v9414_v33, 16  ;;  %v4358_v52 = vrot.slane %v4357_v28, 4  ;;  %v6244_v14 = vcombine.low %v1924_v2, %v1927_v26  ;;  %v9440_v22 = vpop.f32.mrb[25].mxu1  ;;  %7364 = vmatpush3.bf16.msra.mxu0 %v7772_v11  ;;  %v1827_v20 = vld [vmem:[#allocation2 + $0x60] sm:$0xe] }
 0x23b   : > { %v1934_v19 = vsel %vm8310_vm10, %v1932_v42, %v1933_v7  ;;  %v4374_v50 = vshll.u32 %v9418_v1, 16  ;;  %v4367_v15 = vrot.slane %v4365_v16, 4  ;;  %v4378_v60 = vshrl.u32 %v9418_v1, 16  ;;  %v9443_v34 = vpop.f32.mrb[26].mxu1  ;;  %7365 = vmatprep.subr.bf16.mxu0 %v7774_v53 }
 0x23c   : > { %v6245_v17 = vcombine.low %v1931_v30, %v1934_v19  ;;  %v4370_v12 = vrot.slane %v4368_v8, 5  ;;  %v4363_v2 = vsel %vm8395_vm13, %v4358_v52, %v4362_v37  ;;  %v4384_v7 = vshll.u32 %v9431_v63, 16  ;;  %v7776_v30 = vld [vmem:[%s10250_s4 + $0x228] sm:$0xff]   ;;  %v9455_v26 = vpop.f32.mrb[27].mxu1  ;;  %v7806_v52 = vld [vmem:[#allocation2 + $0x58] sm:$0xf] }
 0x23d   : > { %v4376_v28 = vrot.slane %v4374_v50, 5  ;;  %v9450_v42 = vadd.f32 %v9326_v49, %v9320_v38  ;;  %v6457_v11 = vcombine.low %v4353_v57, %v4363_v2  ;;  %7334 = vmatmul.mubr.bf16.gmra.mrb[24].mxu0 %v6244_v14  ;;  %v4380_v8 = vrot.slane %v4378_v60, 4  ;;  %v9457_v49 = vld [vmem:[#allocation2 + $0xa8] sm:$0xf]  ;;  %v9459_v14 = vld [vmem:[#allocation2 + $0xac] sm:$0xf] }
 0x23e   : > { %v4371_v16 = vor.u32 %v4370_v12, %v4367_v15  ;;  %v6198_v19 = vrot.slane %v1826_v10, 9  ;;  %7337 = vmatprep.mubr.bf16.mxu0 %v6245_v17  ;;  %v4386_v37 = vrot.slane %v4384_v7, 5  ;;  %v1937_v50 = vrot.slane %v7806_v52, 5  ;;  %7366 = vmatpush3.bf16.msra.mxu0 %v7774_v53 }
 0x23f   : > { %v1940_v56 = vrot.slane %v7807_v31, 5  ;;  %v6199_v38 = vrot.slane %v1827_v20, 9  ;;  %5173 = vmatprep.mubr.bf16.mxu1 %v6457_v11  ;;  %v4381_v46 = vor.u32 %v4380_v8, %v4376_v28  ;;  %v1944_v55 = vrot.slane %v7808_v44, 5  ;;  %7367 = vmatprep.subr.bf16.mxu0 %v7776_v30  ;;  %v1829_v8 = vld [vmem:[#allocation2 + $0x78] sm:$0xe] }
 0x240   : > { %v4372_v54 = vrot.slane %v4371_v16, 4  ;;  %v1947_v57 = vrot.slane %v7809_v45, 5  ;;  %v1938_v10 = vsel %vm8310_vm10, %v6198_v19, %v1937_v50  ;;  %v1939_v17 = vrot.slane %v1937_v50, 4  ;;  %v7778_v45 = vld [vmem:[%s10250_s4 + $0x230] sm:$0xff]   ;;  %v7780_v19 = vld [vmem:[%s10250_s4 + $0x238] sm:$0xff]  }
 0x241   : > { %5174 = vmatmul.mubr.bf16.gmra.mrb[120].mxu1 %v6441_v40  ;;  %v9465_v31 = vadd.f32 %v9334_v47, %v9332_v48  ;;  %v6442_v15 = vcombine.low %v9414_v33, %v9418_v1  ;;  %v4382_v40 = vrot.slane %v4381_v46, 4  ;;  %v1945_v53 = vsel %vm8310_vm10, %v6199_v38, %v1944_v55  ;;  %v9478_v47 = vld [vmem:[#allocation2 + $0xb0] sm:$0x1] }
 0x242   : > { %v4377_v44 = vsel %vm8395_vm13, %v4372_v54, %v4376_v28  ;;  %v1946_v12 = vrot.slane %v1944_v55, 4  ;;  %v1941_v48 = vsel %vm8310_vm10, %v1939_v17, %v1940_v56  ;;  %v4389_v33 = vshrl.u32 %v9457_v49, 16  ;;  %v1828_v28 = vld [vmem:[#allocation2 + $0x6c] sm:$0xe]  ;;  %7368 = vmatpush3.bf16.msra.mxu0 %v7776_v30 }
 0x243   : > { %v4392_v60 = vshll.u32 %v9457_v49, 16  ;;  %v4398_v20 = vshll.u32 %v9459_v14, 16  ;;  %v4387_v2 = vsel %vm8395_vm13, %v4382_v40, %v4386_v37  ;;  %v6246_v54 = vcombine.low %v1938_v10, %v1941_v48  ;;  %7369 = vmatprep.subr.bf16.mxu0 %v7778_v45  ;;  %v7810_v10 = vld [vmem:[#allocation2 + $0x70] sm:$0xf] }
 0x244   : > { %v1948_v46 = vsel %vm8310_vm10, %v1946_v12, %v1947_v57  ;;  %v4402_v55 = vshrl.u32 %v9459_v14, 16  ;;  %v6458_v56 = vcombine.low %v4377_v44, %v4387_v2  ;;  %v4391_v11 = vrot.slane %v4389_v33, 4  ;;  %v7811_v44 = vld [vmem:[#allocation2 + $0x74] sm:$0x1] }
 0x245   : > { %v6247_v7 = vcombine.low %v1945_v53, %v1948_v46  ;;  %v4394_v16 = vrot.slane %v4392_v60, 5  ;;  %7338 = vmatmul.mubr.bf16.gmra.mrb[28].mxu0 %v6246_v54  ;;  %v4400_v37 = vrot.slane %v4398_v20, 5  ;;  %v4408_v50 = vshll.u32 %v9478_v47, 16  ;;  %v9496_v53 = vld [vmem:[#allocation2 + $0xb4] sm:$0xf] }
 0x246   : > { %v4404_v52 = vrot.slane %v4402_v55, 4  ;;  %v9494_v38 = vadd.f32 %v9357_v59, %v9351_v25  ;;  %5181 = vmatprep.mubr.bf16.mxu1 %v6458_v56  ;;  %v6200_v57 = vrot.slane %v1828_v28, 9  ;;  %v1951_v17 = vrot.slane %v7810_v10, 5  ;;  %v7812_v20 = vld [vmem:[#allocation2 + $0x7c] sm:$0xf]  ;;  %7370 = vmatpush3.bf16.msra.mxu0 %v7778_v45  ;;  %v7782_v25 = vld [vmem:[%s10253_s7] sm:$0xff]  }
 0x247   : > { %7341 = vmatprep.mubr.bf16.mxu0 %v6247_v7  ;;  %v4395_v30 = vor.u32 %v4394_v16, %v4391_v11  ;;  %v1954_v40 = vrot.slane %v7811_v44, 5  ;;  %v9498_v12 = vpop.f32.mrb[28].mxu1  ;;  %v4410_v33 = vrot.slane %v4408_v50, 5  ;;  %v6201_v60 = vrot.slane %v1829_v8, 9  ;;  %v7813_v28 = vld [vmem:[#allocation2 + $0x80] sm:$0x1]  ;;  %7371 = vmatprep.subr.bf16.mxu0 %v7780_v19 }
 0x248   : > { %v4405_v48 = vor.u32 %v4404_v52, %v4400_v37  ;;  %v1958_v2 = vrot.slane %v7812_v20, 5  ;;  %v9500_v54 = vpop.f32.mrb[29].mxu1  ;;  %v1952_v46 = vsel %vm8310_vm10, %v6200_v57, %v1951_v17  ;;  %v1953_v55 = vrot.slane %v1951_v17, 4  ;;  %7405 = vmatprep.subr.bf16.mxu1 %v7782_v25  ;;  %v9525_v10 = vld [vmem:[#allocation2 + $0xbc] sm:$0x1] }
 0x249   : > { %5182 = vmatmul.mubr.bf16.gmra.mrb[124].mxu1 %v6442_v15  ;;  %v4396_v59 = vrot.slane %v4395_v30, 4  ;;  %v1961_v56 = vrot.slane %v7813_v28, 5  ;;  %v9507_v7 = vpop.f32.mrb[30].mxu1  ;;  %v9513_v8 = vadd.f32 %v9372_v27, %v9363_v6  ;;  %v9515_v15 = vld [vmem:[#allocation2 + $0xb8] sm:$0xf]  ;;  %v6443_v57 = vcombine.low %v9457_v49, %v9459_v14 }
 0x24a   : > { %v4406_v11 = vrot.slane %v4405_v48, 4  ;;  %v1959_v16 = vsel %vm8310_vm10, %v6201_v60, %v1958_v2  ;;  %v1960_v45 = vrot.slane %v1958_v2, 4  ;;  %v9517_v52 = vpop.f32.mrb[31].mxu1  ;;  %v1955_v30 = vsel %vm8310_vm10, %v1953_v55, %v1954_v40  ;;  %7406 = vmatpush3.bf16.msra.mxu1 %v7782_v25  ;;  %v1830_v48 = vld [vmem:[#allocation2 + $0x84] sm:$0xe]  ;;  %7372 = vmatpush3.bf16.msra.mxu0 %v7780_v19 }
 0x24b   : > { %v4401_v50 = vsel %vm8395_vm13, %v4396_v59, %v4400_v37  ;;  %v4413_v17 = vshrl.u32 %v9496_v53, 16  ;;  %v6248_v27 = vcombine.low %v1952_v46, %v1955_v30  ;;  %v4416_v37 = vshll.u32 %v9496_v53, 16  ;;  %v1831_v2 = vld [vmem:[#allocation2 + $0x90] sm:$0xe]  ;;  %v7814_v28 = vld [vmem:[#allocation2 + $0x88] sm:$0xf] }
 0x24c   : > { %v4411_v6 = vsel %vm8395_vm13, %v4406_v11, %v4410_v33  ;;  %v1962_v44 = vsel %vm8310_vm10, %v1960_v45, %v1961_v56  ;;  %v4422_v49 = vshll.u32 %v9515_v15, 16  ;;  %v4426_v25 = vshrl.u32 %v9515_v15, 16  ;;  %v7815_v11 = vld [vmem:[#allocation2 + $0x8c] sm:$0x1] }
 0x24d   : > { %v6459_v40 = vcombine.low %v4401_v50, %v4411_v6  ;;  %v6249_v60 = vcombine.low %v1959_v16, %v1962_v44  ;;  %v4415_v20 = vrot.slane %v4413_v17, 4  ;;  %7342 = vmatmul.mubr.bf16.gmra.mrb[32].mxu0 %v6248_v27  ;;  %v4418_v59 = vrot.slane %v4416_v37, 5  ;;  %v9540_v6 = vld [vmem:[#allocation2 + $0xc0] sm:$0xf] }
 0x24e   : > { %v4432_v33 = vshll.u32 %v9525_v10, 16  ;;  %v9538_v46 = vadd.f32 %v9440_v22, %v9435_v36  ;;  %v4424_v55 = vrot.slane %v4422_v49, 5  ;;  %v6202_v19 = vrot.slane %v1830_v48, 9 }
 0x24f   : > { %5189 = vmatprep.mubr.bf16.mxu1 %v6459_v40  ;;  %7345 = vmatprep.mubr.bf16.mxu0 %v6249_v60  ;;  %v1965_v56 = vrot.slane %v7814_v28, 5  ;;  %v1968_v16 = vrot.slane %v7815_v11, 5  ;;  %v4419_v45 = vor.u32 %v4418_v59, %v4415_v20  ;;  %v4428_v50 = vrot.slane %v4426_v25, 4  ;;  %v9552_v20 = vld [vmem:[#allocation2 + $0xc4] sm:$0xf] }
 0x250   : > { %v4434_v30 = vrot.slane %v4432_v33, 5  ;;  %v6203_v17 = vrot.slane %v1831_v2, 9  ;;  %v1972_v22 = vrot.slane %v9188_v32, 5  ;;  %v1975_v44 = vrot.slane %v9195_v24, 5  ;;  %v9558_v2 = vld [vmem:[#allocation2 + $0xc8] sm:$0x1] }
 0x251   : > { %5190 = vmatmul.mubr.bf16.gmra.mrb[128].mxu1 %v6443_v57  ;;  %v1966_v27 = vsel %vm8310_vm10, %v6202_v19, %v1965_v56  ;;  %v1967_v36 = vrot.slane %v1965_v56, 4  ;;  %v4420_v37 = vrot.slane %v4419_v45, 4  ;;  %v4429_v48 = vor.u32 %v4428_v50, %v4424_v55 }
 0x252   : > { %v9548_v40 = vadd.f32 %v9455_v26, %v9443_v34  ;;  %v6444_v60 = vcombine.low %v9496_v53, %v9515_v15  ;;  %v1973_v49 = vsel %vm8310_vm10, %v6203_v17, %v1972_v22  ;;  %v1974_v32 = vrot.slane %v1972_v22, 4  ;;  %v6821_v59 = vpop.f32.mrb[32].mxu1 }
 0x253   : > { %v1969_v57 = vsel %vm8310_vm10, %v1967_v36, %v1968_v16  ;;  %v4437_v24 = vshrl.u32 %v9540_v6, 16  ;;  %v4425_v34 = vsel %vm8395_vm13, %v4420_v37, %v4424_v55  ;;  %v4430_v26 = vrot.slane %v4429_v48, 4  ;;  %v6822_v33 = vpop.f32.mrb[33].mxu1  ;;  %v1832_v16 = vld [vmem:[#allocation2 + $0x9c] sm:$0xe] }
 0x254   : > { %v6250_v25 = vcombine.low %v1966_v27, %v1969_v57  ;;  %v4440_v53 = vshll.u32 %v9540_v6, 16  ;;  %v1976_v19 = vsel %vm8310_vm10, %v1974_v32, %v1975_v44  ;;  %v4446_v56 = vshll.u32 %v9552_v20, 16  ;;  %v6824_v45 = vpop.f32.mrb[34].mxu1  ;;  %v1833_v36 = vld [vmem:[#allocation2 + $0xa8] sm:$0xe] }
 0x255   : > { %v4439_v28 = vrot.slane %v4437_v24, 4  ;;  %v4450_v11 = vshrl.u32 %v9552_v20, 16  ;;  %v4435_v50 = vsel %vm8395_vm13, %v4430_v26, %v4434_v30  ;;  %v6251_v55 = vcombine.low %v1973_v49, %v1976_v19  ;;  %v6825_v22 = vpop.f32.mrb[35].mxu1 }
 0x256   : > { %7346 = vmatmul.mubr.bf16.gmra.mrb[36].mxu0 %v6250_v25  ;;  %v4442_v17 = vrot.slane %v4440_v53, 5  ;;  %v4456_v27 = vshll.u32 %v9558_v2, 16  ;;  %v6460_v37 = vcombine.low %v4425_v34, %v4435_v50  ;;  %v4448_v48 = vrot.slane %v4446_v56, 5  ;;  %v4484_v50 = vld [vmem:[#allocation2 + $0x18] sm:$0xe] }
 0x257   : > { %v4452_v44 = vrot.slane %v4450_v11, 4  ;;  %v9573_v57 = vadd.f32 %v9500_v54, %v9498_v12  ;;  %7349 = vmatprep.mubr.bf16.mxu0 %v6251_v55  ;;  %v6204_v13 = vrot.slane %v1832_v16, 9  ;;  %v1979_v30 = vrot.slane %v9219_v0, 5  ;;  %v7783_v0 = vld [vmem:[%s10253_s7 + $0x8] sm:$0xff]  }
 0x258   : > { %v4443_v32 = vor.u32 %v4442_v17, %v4439_v28  ;;  %v4458_v24 = vrot.slane %v4456_v27, 5  ;;  %5197 = vmatprep.mubr.bf16.mxu1 %v6460_v37  ;;  %v1982_v26 = vrot.slane %v9225_v41, 5  ;;  %v6205_v25 = vrot.slane %v1833_v36, 9  ;;  %v1834_v28 = vld [vmem:[#allocation2 + $0xb4] sm:$0xe]  ;;  %7407 = vmatprep.subr.bf16.mxu1 %v7783_v0 }
 0x259   : > { %v4453_v49 = vor.u32 %v4452_v44, %v4448_v48  ;;  %v1986_v53 = vrot.slane %v9250_v18, 5  ;;  %5198 = vmatmul.mubr.bf16.gmra.mrb[132].mxu1 %v6444_v60  ;;  %v1980_v19 = vsel %vm8310_vm10, %v6204_v13, %v1979_v30  ;;  %v1981_v12 = vrot.slane %v1979_v30, 4  ;;  %v9600_v36 = vld [vmem:[#allocation2 + $0xcc] sm:$0xf] }
 0x25a   : > { %v4444_v34 = vrot.slane %v4443_v32, 4  ;;  %v1989_v54 = vrot.slane %v9252_v5, 5  ;;  %v9588_v18 = vadd.f32 %v9517_v52, %v9507_v7  ;;  %v9594_v16 = vadd.f32 %v6822_v33, %v6821_v59  ;;  %7408 = vmatpush3.bf16.msra.mxu1 %v7783_v0  ;;  %v9604_v32 = vld [vmem:[#allocation2 + $0xd0] sm:$0xf] }
 0x25b   : > { %v4454_v56 = vrot.slane %v4453_v49, 4  ;;  %v1987_v41 = vsel %vm8310_vm10, %v6205_v25, %v1986_v53  ;;  %v1988_v11 = vrot.slane %v1986_v53, 4  ;;  %v6827_v60 = vpop.f32.mrb[36].mxu1  ;;  %v1983_v5 = vsel %vm8310_vm10, %v1981_v12, %v1982_v26  ;;  %v7816_v26 = vld [vmem:[#allocation2 + $0x1c] sm:$0xf] }
 0x25c   : > { %v4449_v13 = vsel %vm8395_vm13, %v4444_v34, %v4448_v48  ;;  %v6828_v55 = vpop.f32.mrb[37].mxu1  ;;  %v6252_v27 = vcombine.low %v1980_v19, %v1983_v5  ;;  %v6206_v52 = vrot.slane %v1834_v28, 9  ;;  %v1993_v59 = vrot.slane %v9283_v23, 5  ;;  %v9610_v34 = vld [vmem:[#allocation2 + $0xd4] sm:$0x1] }
 0x25d   : > { %v4459_v17 = vsel %vm8395_vm13, %v4454_v56, %v4458_v24  ;;  %v1990_v7 = vsel %vm8310_vm10, %v1988_v11, %v1989_v54  ;;  %v6830_v37 = vpop.f32.mrb[38].mxu1  ;;  %v1996_v33 = vrot.slane %v9285_v21, 5  ;;  %v6445_v24 = vcombine.low %v9540_v6, %v9552_v20  ;;  %v7817_v23 = vld [vmem:[#allocation2 + $0x20] sm:$0x1] }
 0x25e   : > { %v6461_v48 = vcombine.low %v4449_v13, %v4459_v17  ;;  %v6253_v44 = vcombine.low %v1987_v41, %v1990_v7  ;;  %v6831_v30 = vpop.f32.mrb[39].mxu1  ;;  %7350 = vmatmul.mubr.bf16.gmra.mrb[40].mxu0 %v6252_v27  ;;  %v6415_v49 = vrot.slane %v4484_v50, 9  ;;  %v4550_v25 = vrot.slane %v7816_v26, 5 }
 0x25f   : > { %v9608_v53 = vadd.f32 %v6825_v22, %v6824_v45  ;;  %v1995_v19 = vrot.slane %v1993_v59, 4  ;;  %v4553_v12 = vrot.slane %v7817_v23, 5  ;;  %v4461_v21 = vshrl.u32 %v9600_v36, 16 }
 0x260   : > { %5205 = vmatprep.mubr.bf16.mxu1 %v6461_v48  ;;  %7353 = vmatprep.mubr.bf16.mxu0 %v6253_v44  ;;  %v4464_v54 = vshll.u32 %v9600_v36, 16  ;;  %v1994_v28 = vsel %vm8310_vm10, %v6206_v52, %v1993_v59  ;;  %v4552_v6 = vrot.slane %v4550_v25, 4  ;;  %v4470_v0 = vshll.u32 %v9604_v32, 16 }
 0x261   : > { %v4474_v45 = vshrl.u32 %v9604_v32, 16  ;;  %5206 = vmatmul.mubr.bf16.gmra.mrb[136].mxu1 %v6445_v24  ;;  %v1997_v22 = vsel %vm8310_vm10, %v1995_v19, %v1996_v33  ;;  %v4463_v56 = vrot.slane %v4461_v21, 4  ;;  %v4480_v11 = vshll.u32 %v9610_v34, 16  ;;  %v7818_v33 = vld [vmem:[#allocation2 + $0x28] sm:$0xf] }
 0x262   : > { %v4466_v41 = vrot.slane %v4464_v54, 5  ;;  %v4554_v13 = vsel %vm8310_vm10, %v4552_v6, %v4553_v12  ;;  %v4472_v5 = vrot.slane %v4470_v0, 5  ;;  %v6254_v27 = vcombine.low %v1994_v28, %v1997_v22  ;;  %v7819_v54 = vld [vmem:[#allocation2 + $0x34] sm:$0xf]  ;;  %v4485_v28 = vld [vmem:[#allocation2 + $0x24] sm:$0xe] }
 0x263   : > { %v4476_v50 = vrot.slane %v4474_v45, 4  ;;  %v6833_v17 = vpop.f32.mrb[40].mxu1  ;;  %v4551_v7 = vsel %vm8310_vm10, %v6415_v49, %v4550_v25  ;;  %v4482_v59 = vrot.slane %v4480_v11, 5  ;;  %v9625_v24 = vadd.f32 %v6828_v55, %v6827_v60  ;;  %v7820_v49 = vld [vmem:[#allocation2 + $0x2c] sm:$0x1] }
 0x264   : > { %v4467_v52 = vor.u32 %v4466_v41, %v4463_v56  ;;  %v6834_v48 = vpop.f32.mrb[41].mxu1  ;;  %v4557_v26 = vrot.slane %v7818_v33, 5  ;;  %v6463_v23 = vcombine.low %v4551_v7, %v4554_v13  ;;  %v4564_v12 = vrot.slane %v7819_v54, 5  ;;  %v4486_v55 = vld [vmem:[#allocation2 + $0x30] sm:$0xe] }
 0x265   : > { %v4477_v44 = vor.u32 %v4476_v50, %v4472_v5  ;;  %v6836_v19 = vpop.f32.mrb[42].mxu1  ;;  %v9627_v22 = vadd.f32 %v6831_v30, %v6830_v37  ;;  %v4560_v25 = vrot.slane %v7820_v49, 5  ;;  %v9631_v41 = vadd.f32 %v6834_v48, %v6833_v17  ;;  %v7821_v50 = vld [vmem:[#allocation2 + $0x38] sm:$0x1]  ;;  %v7822_v37 = vld [vmem:[#allocation2 + $0x40] sm:$0xf] }
 0x266   : > { %v4468_v21 = vrot.slane %v4467_v52, 4  ;;  %v6837_v6 = vpop.f32.mrb[43].mxu1  ;;  %7354 = vmatmul.mubr.bf16.gmra.mrb[44].mxu0 %v6254_v27  ;;  %v4559_v45 = vrot.slane %v4557_v26, 4  ;;  %v4566_v56 = vrot.slane %v4564_v12, 4  ;;  %v6446_v13 = vcombine.low %v9600_v36, %v9604_v32  ;;  %v7823_v48 = vld [vmem:[#allocation2 + $0x4c] sm:$0xf] }
 0x267   : > { %v4478_v0 = vrot.slane %v4477_v44, 4  ;;  %7373 = vmatprep.mubr.bf16.mxu0 %v6463_v23  ;;  %v4567_v27 = vrot.slane %v7821_v50, 5  ;;  %v4571_v30 = vrot.slane %v7822_v37, 5  ;;  %v6416_v52 = vrot.slane %v4485_v28, 9  ;;  %v7784_v23 = vld [vmem:[%s10253_s7 + $0x10] sm:$0xff]  }
 0x268   : > { %v4473_v60 = vsel %vm8395_vm13, %v4468_v21, %v4472_v5  ;;  %v4561_v44 = vsel %vm8310_vm10, %v4559_v45, %v4560_v25  ;;  %v6417_v5 = vrot.slane %v4486_v55, 9  ;;  %v9643_v36 = vadd.f32 %v6837_v6, %v6836_v19  ;;  %v7824_v49 = vld [vmem:[#allocation2 + $0x58] sm:$0xf]  ;;  %7409 = vmatprep.subr.bf16.mxu1 %v7784_v23  ;;  %v7825_v6 = vld [vmem:[#allocation2 + $0x44] sm:$0x1] }
 0x269   : > { %v4483_v11 = vsel %vm8395_vm13, %v4478_v0, %v4482_v59  ;;  %v4568_v17 = vsel %vm8310_vm10, %v4566_v56, %v4567_v27  ;;  %v4558_v39 = vsel %vm8310_vm10, %v6416_v52, %v4557_v26  ;;  %v4578_v59 = vrot.slane %v7823_v48, 5  ;;  %v4487_v0 = vld [vmem:[#allocation2 + $0x3c] sm:$0xe]  ;;  %v4488_v56 = vld [vmem:[#allocation2 + $0x48] sm:$0xe]  ;;  %7410 = vmatpush3.bf16.msra.mxu1 %v7784_v23 }
 0x26a   : > { %v6462_v7 = vcombine.low %v4473_v60, %v4483_v11  ;;  %v6464_v21 = vcombine.low %v4558_v39, %v4561_v44  ;;  %v4565_v54 = vsel %vm8310_vm10, %v6417_v5, %v4564_v12  ;;  %v4573_v28 = vrot.slane %v4571_v30, 4  ;;  %v4489_v37 = vld [vmem:[#allocation2 + $0x54] sm:$0xe]  ;;  %v7827_v5 = vld [vmem:[#allocation2 + $0x50] sm:$0x1] }
 0x26b   : > { %v4585_v25 = vrot.slane %v7824_v49, 5  ;;  %v6465_v26 = vcombine.low %v4565_v54, %v4568_v17  ;;  %v4574_v55 = vrot.slane %v7825_v6, 5  ;;  %v4580_v11 = vrot.slane %v4578_v59, 4  ;;  %v4490_v39 = vld [vmem:[#allocation2 + $0x60] sm:$0xe] }
 0x26c   : > { %5213 = vmatprep.mubr.bf16.mxu1 %v6462_v7  ;;  %v6839_v33 = vpop.f32.mrb[44].mxu1  ;;  %v6418_v12 = vrot.slane %v4487_v0, 9  ;;  %v4581_v17 = vrot.slane %v7827_v5, 5  ;;  %v6420_v0 = vrot.slane %v4489_v37, 9  ;;  %v6421_v6 = vrot.slane %v4490_v39, 9 }
 0x26d   : > { %5214 = vmatmul.mubr.bf16.gmra.mrb[140].mxu1 %v6446_v13  ;;  %v6840_v45 = vpop.f32.mrb[45].mxu1  ;;  %v7826_v13 = vld [vmem:[#allocation2 + $0x64] sm:$0xf]  ;;  %v4587_v7 = vrot.slane %v4585_v25, 4  ;;  %v4575_v44 = vsel %vm8310_vm10, %v4573_v28, %v4574_v55 }
 0x26e   : > { %v9650_v60 = vadd.f32 %v6840_v45, %v6839_v33  ;;  %v6842_v19 = vpop.f32.mrb[46].mxu1  ;;  %7374 = vmatmul.mubr.bf16.vlgmr.msra.gmra.mrb[16].mxu0 %v6464_v21  ;;  %v4592_v50 = vrot.slane %v7826_v13, 5  ;;  %v4572_v48 = vsel %vm8310_vm10, %v6418_v12, %v4571_v30  ;;  %v6419_v33 = vrot.slane %v4488_v56, 9  ;;  %v7828_v21 = vld [vmem:[#allocation2 + $0x5c] sm:$0x1] }
 0x26f   : > { %v6843_v27 = vpop.f32.mrb[47].mxu1  ;;  %7377 = vmatprep.mubr.bf16.mxu0 %v6465_v26  ;;  %v4588_v54 = vrot.slane %v7828_v21, 5  ;;  %v4491_v45 = vld [vmem:[#allocation2 + $0x6c] sm:$0xe]  ;;  %v4582_v23 = vsel %vm8310_vm10, %v4580_v11, %v4581_v17  ;;  %v4599_v26 = vrot.slane %v9298_v35, 5  ;;  %v4586_v56 = vsel %vm8310_vm10, %v6420_v0, %v4585_v25 }
 0x270   : > { %v9652_v52 = vadd.f32 %v6843_v27, %v6842_v19  ;;  %v4594_v49 = vrot.slane %v4592_v50, 4  ;;  %v6466_v19 = vcombine.low %v4572_v48, %v4575_v44  ;;  %v4579_v30 = vsel %vm8310_vm10, %v6419_v33, %v4578_v59  ;;  %v7829_v27 = vld [vmem:[#allocation2 + $0x68] sm:$0x1]  ;;  %v9673_v21 = vld [vmem:[#allocation2 + $0x78] sm:$0xe] }
 0x271   : > { %v9663_v28 = vsel %vm8310_vm10, %v4587_v7, %v4588_v54  ;;  %v4595_v11 = vrot.slane %v7829_v27, 5  ;;  %v6422_v5 = vrot.slane %v4491_v45, 9  ;;  %v6467_v35 = vcombine.low %v4579_v30, %v4582_v23  ;;  %v4495_v59 = vld [vmem:[#allocation2 + $0x9c] sm:$0xe]  ;;  %v7830_v23 = vld [vmem:[#allocation2 + $0x74] sm:$0x1] }
 0x272   : > { %v4593_v44 = vsel %vm8310_vm10, %v6421_v6, %v4592_v50  ;;  %v6468_v25 = vcombine.low %v4586_v56, %v9663_v28  ;;  %v4601_v45 = vrot.slane %v4599_v26, 4  ;;  %v4602_v0 = vrot.slane %v7830_v23, 5 }
 0x273   : > { %v6933_v55 = vpop.f32.mrb[48].mxu0  ;;  %v4596_v33 = vsel %vm8310_vm10, %v4594_v49, %v4595_v11  ;;  %v9686_v28 = vsel %vm8310_vm10, %v6422_v5, %v4599_v26  ;;  %v6423_v49 = vrot.slane %v9673_v21, 9  ;;  %v4609_v56 = vrot.slane %v9322_v58, 5  ;;  %v4497_v11 = vld [vmem:[#allocation2 + $0xb4] sm:$0xe] }
 0x274   : > { %v6845_v13 = vpop.f32.mrb[48].mxu1  ;;  %v6934_v12 = vpop.f32.mrb[49].mxu0  ;;  %v6426_v27 = vrot.slane %v4495_v59, 9  ;;  %v4634_v5 = vrot.slane %v9459_v14, 5  ;;  %v4498_v58 = vld [vmem:[#allocation2 + $0xc0] sm:$0xe] }
 0x275   : > { %v6846_v37 = vpop.f32.mrb[49].mxu1  ;;  %v6935_v7 = vadd.f32 %v6934_v12, %v6933_v55  ;;  %v6936_v17 = vpop.f32.mrb[50].mxu0  ;;  %v4606_v55 = vrot.slane %v9314_v29, 5  ;;  %v6469_v12 = vcombine.low %v4593_v44, %v4596_v33  ;;  %v4630_v29 = vrot.slane %v9431_v63, 5 }
 0x276   : > { %v9671_v39 = vadd.f32 %v6846_v37, %v6845_v13  ;;  %v6848_v48 = vpop.f32.mrb[50].mxu1  ;;  %7378 = vmatmul.mubr.bf16.gmra.mrb[20].mxu0 %v6466_v19  ;;  %v6937_v54 = vpop.f32.mrb[51].mxu0  ;;  %v4496_v19 = vld [vmem:[#allocation2 + $0xa8] sm:$0xe]  ;;  %v4627_v37 = vrot.slane %v9418_v1, 5  ;;  %v6428_v1 = vrot.slane %v4497_v11, 9 }
 0x277   : > { %v6849_v30 = vpop.f32.mrb[51].mxu1  ;;  %7381 = vmatprep.mubr.bf16.mxu0 %v6467_v35  ;;  %v9679_v50 = vadd.f32 %v6935_v7, %v9450_v42  ;;  %v6938_v6 = vadd.f32 %v6937_v54, %v6936_v17  ;;  %v9697_v35 = vsel %vm8310_vm10, %v4601_v45, %v4602_v0  ;;  %v6427_v26 = vrot.slane %v4496_v19, 9 }
 0x278   : > { %v9682_v13 = vadd.f32 %v6849_v30, %v6848_v48  ;;  %v4637_v7 = vrot.slane %v9478_v47, 5  ;;  %v4608_v17 = vrot.slane %v4606_v55, 4  ;;  %v4629_v44 = vrot.slane %v4627_v37, 4 }
 0x279   : > { %v9691_v42 = vadd.f32 %v6938_v6, %v9465_v31  ;;  %v9703_v31 = vsel %vm8310_vm10, %v6426_v27, %v4627_v37  ;;  %v9707_v63 = vsel %vm8310_vm10, %v6427_v26, %v4634_v5  ;;  %v4636_v59 = vrot.slane %v4634_v5, 4  ;;  %v7785_v6 = vld [vmem:[%s10253_s7 + $0x18] sm:$0xff]  }
 0x27a   : > { %v4641_v33 = vrot.slane %v9515_v15, 5  ;;  %v4644_v14 = vrot.slane %v9525_v10, 5  ;;  %v9713_v23 = vsel %vm8310_vm10, %v4629_v44, %v4630_v29  ;;  %v6429_v0 = vrot.slane %v4498_v58, 9  ;;  %7411 = vmatprep.subr.bf16.mxu1 %v7785_v6 }
 0x27b   : > { %v6939_v48 = vpop.f32.mrb[52].mxu0  ;;  %v4648_v30 = vrot.slane %v9552_v20, 5  ;;  %v6474_v15 = vcombine.low %v9703_v31, %v9713_v23  ;;  %v9723_v10 = vsel %vm8310_vm10, %v4636_v59, %v4637_v7  ;;  %7412 = vmatpush3.bf16.msra.mxu1 %v7785_v6 }
 0x27c   : > { %v6940_v21 = vpop.f32.mrb[53].mxu0  ;;  %v9727_v11 = vsel %vm8310_vm10, %v6428_v1, %v4641_v33  ;;  %v4643_v37 = vrot.slane %v4641_v33, 4  ;;  %v6475_v5 = vcombine.low %v9707_v63, %v9723_v10  ;;  %v4493_v1 = vld [vmem:[#allocation2 + $0x84] sm:$0xe]  ;;  %v4658_v63 = vrot.slane %v9610_v34, 5 }
 0x27d   : > { %v6941_v47 = vadd.f32 %v6940_v21, %v6939_v48  ;;  %v6942_v54 = vpop.f32.mrb[54].mxu0  ;;  %v6851_v45 = vpop.f32.mrb[52].mxu1  ;;  %v9742_v48 = vsel %vm8310_vm10, %v6429_v0, %v4648_v30  ;;  %v4613_v21 = vrot.slane %v9349_v3, 5  ;;  %v6470_v0 = vcombine.low %v9686_v28, %v9697_v35 }
 0x27e   : > { %7382 = vmatmul.mubr.bf16.gmra.mrb[24].mxu0 %v6468_v25  ;;  %v6943_v19 = vpop.f32.mrb[55].mxu0  ;;  %v6852_v27 = vpop.f32.mrb[53].mxu1  ;;  %v9738_v7 = vsel %vm8310_vm10, %v4643_v37, %v4644_v14  ;;  %v4607_v14 = vsel %vm8310_vm10, %v6423_v49, %v4606_v55 }
 0x27f   : > { %7385 = vmatprep.mubr.bf16.mxu0 %v6469_v12  ;;  %v9730_v20 = vadd.f32 %v6941_v47, %v9494_v38  ;;  %v6944_v29 = vadd.f32 %v6943_v19, %v6942_v54  ;;  %v9732_v25 = vadd.f32 %v6852_v27, %v6851_v45  ;;  %v6854_v26 = vpop.f32.mrb[54].mxu1  ;;  %v4650_v12 = vrot.slane %v4648_v30, 4  ;;  %v4494_v54 = vld [vmem:[#allocation2 + $0x90] sm:$0xe]  ;;  %v7831_v19 = vld [vmem:[#allocation2 + $0x8c] sm:$0x1] }
 0x280   : > { %v6855_v58 = vpop.f32.mrb[55].mxu1  ;;  %v4651_v38 = vrot.slane %v9558_v2, 5  ;;  %v6476_v33 = vcombine.low %v9727_v11, %v9738_v7  ;;  %v4610_v47 = vsel %vm8310_vm10, %v4608_v17, %v4609_v56  ;;  %v4620_v2 = vrot.slane %v9387_v43, 5 }
 0x281   : > { %v9746_v44 = vadd.f32 %v6944_v29, %v9513_v8  ;;  %v9749_v59 = vadd.f32 %v6855_v58, %v6854_v26  ;;  %v6424_v30 = vrot.slane %v4493_v1, 9  ;;  %v6471_v55 = vcombine.low %v4607_v14, %v4610_v47 }
 0x282   : > { %v9760_v8 = vsel %vm8310_vm10, %v4650_v12, %v4651_v38  ;;  %v4615_v49 = vrot.slane %v4613_v21, 4  ;;  %v4616_v56 = vrot.slane %v7831_v19, 5  ;;  %v6425_v37 = vrot.slane %v4494_v54, 9 }
 0x283   : > { %v6945_v3 = vpop.f32.mrb[56].mxu0  ;;  %v6477_v45 = vcombine.low %v9742_v48, %v9760_v8  ;;  %v4622_v29 = vrot.slane %v4620_v2, 4  ;;  %v4623_v26 = vrot.slane %v9398_v51, 5  ;;  %v4614_v47 = vsel %vm8310_vm10, %v6424_v30, %v4613_v21  ;;  %v7786_v30 = vld [vmem:[%s10253_s7 + $0x20] sm:$0xff]  }
 0x284   : > { %v6946_v6 = vpop.f32.mrb[57].mxu0  ;;  %v4617_v54 = vsel %vm8310_vm10, %v4615_v49, %v4616_v56  ;;  %7413 = vmatprep.subr.bf16.mxu1 %v7786_v30 }
 0x285   : > { %v6947_v17 = vadd.f32 %v6946_v6, %v6945_v3  ;;  %v6948_v43 = vpop.f32.mrb[58].mxu0  ;;  %7414 = vmatpush3.bf16.msra.mxu1 %v7786_v30 }
 0x286   : > { %v6857_v27 = vpop.f32.mrb[56].mxu1  ;;  %7386 = vmatmul.mubr.bf16.gmra.mrb[28].mxu0 %v6470_v0  ;;  %v6949_v58 = vpop.f32.mrb[59].mxu0  ;;  %v4624_v0 = vsel %vm8310_vm10, %v4622_v29, %v4623_v26 }
 0x287   : > { %v6858_v12 = vpop.f32.mrb[57].mxu1  ;;  %7389 = vmatprep.mubr.bf16.mxu0 %v6471_v55  ;;  %v9768_v38 = vadd.f32 %v6947_v17, %v9538_v46  ;;  %v6950_v28 = vadd.f32 %v6949_v58, %v6948_v43  ;;  %v4621_v46 = vsel %vm8310_vm10, %v6425_v37, %v4620_v2  ;;  %v6472_v55 = vcombine.low %v4614_v47, %v4617_v54 }
 0x288   : > { %v9770_v35 = vadd.f32 %v6858_v12, %v6857_v27  ;;  %v6860_v1 = vpop.f32.mrb[58].mxu1  ;;  %v6473_v17 = vcombine.low %v4621_v46, %v4624_v0  ;;  %v4655_v0 = vrot.slane %v9604_v32, 5  ;;  %v7787_v32 = vld [vmem:[%s10253_s7 + $0x28] sm:$0xff]  }
 0x289   : > { %v6861_v14 = vpop.f32.mrb[59].mxu1  ;;  %v9777_v3 = vadd.f32 %v6950_v28, %v9548_v40  ;;  %7415 = vmatprep.subr.bf16.mxu1 %v7787_v32 }
 0x28a   : > { %v9779_v51 = vadd.f32 %v6861_v14, %v6860_v1  ;;  %7416 = vmatpush3.bf16.msra.mxu1 %v7787_v32 }
 0x28b   : > { %v6951_v6 = vpop.f32.mrb[60].mxu0 }
 0x28c   : > { %v6952_v19 = vpop.f32.mrb[61].mxu0 }
 0x28d   : > { %v6953_v43 = vadd.f32 %v6952_v19, %v6951_v6  ;;  %v6954_v21 = vpop.f32.mrb[62].mxu0 }
 0x28e   : > { %7390 = vmatmul.mubr.bf16.gmra.mrb[32].mxu0 %v6472_v55  ;;  %v6955_v40 = vpop.f32.mrb[63].mxu0  ;;  %v4499_v55 = vld [vmem:[#allocation2 + $0xcc] sm:$0xe] }
 0x28f   : > { %7393 = vmatprep.mubr.bf16.mxu0 %v6473_v17  ;;  %v9789_v49 = vadd.f32 %v6953_v43, %v9573_v57  ;;  %v6956_v2 = vadd.f32 %v6955_v40, %v6954_v21  ;;  %v6863_v56 = vpop.f32.mrb[60].mxu1  ;;  %v4657_v43 = vrot.slane %v4655_v0, 4 }
 0x290   : > { %v6864_v27 = vpop.f32.mrb[61].mxu1 }
 0x291   : > { %v9792_v37 = vadd.f32 %v6956_v2, %v9588_v18  ;;  %v9794_v29 = vadd.f32 %v6864_v27, %v6863_v56  ;;  %v6866_v26 = vpop.f32.mrb[62].mxu1  ;;  %v4659_v34 = vsel %vm8310_vm10, %v4657_v43, %v4658_v63 }
 0x292   : > { %v6867_v58 = vpop.f32.mrb[63].mxu1 }
 0x293   : > { %v9796_v12 = vadd.f32 %v6867_v58, %v6866_v26 }
 0x294   : > { %v6957_v28 = vpop.f32.mrb[64].mxu0 }
 0x295   : > { %v6958_v1 = vpop.f32.mrb[65].mxu0 }
 0x296   : > { %v6959_v14 = vadd.f32 %v6958_v1, %v6957_v28  ;;  %v6960_v47 = vpop.f32.mrb[66].mxu0  ;;  %7394 = vmatmul.mubr.bf16.gmra.mrb[36].mxu0 %v6474_v15  ;;  %v6430_v15 = vrot.slane %v4499_v55, 9 }
 0x297   : > { %v6961_v57 = vpop.f32.mrb[67].mxu0  ;;  %7397 = vmatprep.mubr.bf16.mxu0 %v6475_v5 }
 0x298   : > { %v9805_v18 = vadd.f32 %v6959_v14, %v9594_v16  ;;  %v6962_v54 = vadd.f32 %v6961_v57, %v6960_v47  ;;  %v6869_v46 = vpop.f32.mrb[64].mxu1  ;;  %v4656_v5 = vsel %vm8310_vm10, %v6430_v15, %v4655_v0 }
 0x299   : > { %v6870_v6 = vpop.f32.mrb[65].mxu1 }
 0x29a   : > { %v9809_v19 = vadd.f32 %v6962_v54, %v9608_v53  ;;  %v9811_v17 = vadd.f32 %v6870_v6, %v6869_v46  ;;  %v6872_v31 = vpop.f32.mrb[66].mxu1 }
 0x29b   : > { %v6873_v23 = vpop.f32.mrb[67].mxu1 }
 0x29c   : > { %v9814_v10 = vadd.f32 %v6873_v23, %v6872_v31  ;;  %v7788_v31 = vld [vmem:[%s10253_s7 + $0x30] sm:$0xff]  }
 0x29d   : > { %v6963_v16 = vpop.f32.mrb[68].mxu0  ;;  %7417 = vmatprep.subr.bf16.mxu1 %v7788_v31 }
 0x29e   : > { %7398 = vmatmul.mubr.bf16.gmra.mrb[40].mxu0 %v6476_v33  ;;  %v6964_v53 = vpop.f32.mrb[69].mxu0  ;;  %v6478_v33 = vcombine.low %v4656_v5, %v4659_v34  ;;  %7418 = vmatpush3.bf16.msra.mxu1 %v7788_v31 }
 0x29f   : > { %7401 = vmatprep.mubr.bf16.mxu0 %v6477_v45  ;;  %v6965_v21 = vadd.f32 %v6964_v53, %v6963_v16  ;;  %v6966_v30 = vpop.f32.mrb[70].mxu0 }
 0x2a0   : > { %v6967_v40 = vpop.f32.mrb[71].mxu0 }
 0x2a1   : > { %v9830_v2 = vadd.f32 %v6965_v21, %v9625_v24  ;;  %v6968_v11 = vadd.f32 %v6967_v40, %v6966_v30 }
 0x2a2   : > { %v6875_v7 = vpop.f32.mrb[68].mxu1 }
 0x2a3   : > { %v6876_v56 = vpop.f32.mrb[69].mxu1  ;;  %v9833_v48 = vadd.f32 %v6968_v11, %v9627_v22 }
 0x2a4   : > { %v9835_v8 = vadd.f32 %v6876_v56, %v6875_v7  ;;  %v6878_v45 = vpop.f32.mrb[70].mxu1 }
 0x2a5   : > { %v6879_v61 = vpop.f32.mrb[71].mxu1  ;;  %v6969_v26 = vpop.f32.mrb[72].mxu0 }
 0x2a6   : > { %v9837_v27 = vadd.f32 %v6879_v61, %v6878_v45  ;;  %7402 = vmatmul.mubr.bf16.gmra.mrb[44].mxu0 %v6478_v33  ;;  %v6970_v58 = vpop.f32.mrb[73].mxu0 }
 0x2a7   : > { %v6971_v28 = vadd.f32 %v6970_v58, %v6969_v26  ;;  %v6972_v1 = vpop.f32.mrb[74].mxu0 }
 0x2a8   : > { %v6973_v24 = vpop.f32.mrb[75].mxu0 }
 0x2a9   : > { %v9840_v14 = vadd.f32 %v6971_v28, %v9631_v41  ;;  %v6974_v47 = vadd.f32 %v6973_v24, %v6972_v1 }
 0x2aa   : > { %v6881_v57 = vpop.f32.mrb[72].mxu1 }
 0x2ab   : > { %v6882_v54 = vpop.f32.mrb[73].mxu1  ;;  %v9843_v22 = vadd.f32 %v6974_v47, %v9643_v36 }
 0x2ac   : > { %v9845_v46 = vadd.f32 %v6882_v54, %v6881_v57  ;;  %v6884_v0 = vpop.f32.mrb[74].mxu1  ;;  %v7789_v54 = vld [vmem:[%s10253_s7 + $0x38] sm:$0xff]  }
 0x2ad   : > { %v6885_v6 = vpop.f32.mrb[75].mxu1  ;;  %7419 = vmatprep.subr.bf16.mxu1 %v7789_v54 }
 0x2ae   : > { %v9847_v55 = vadd.f32 %v6885_v6, %v6884_v0  ;;  %7420 = vmatpush3.bf16.msra.mxu1 %v7789_v54 }
 0x2af   : > { %v6975_v23 = vpop.f32.mrb[76].mxu0 }
 0x2b0   : > { %v6976_v15 = vpop.f32.mrb[77].mxu0 }
 0x2b1   : > { %v6977_v41 = vadd.f32 %v6976_v15, %v6975_v23  ;;  %v6978_v43 = vpop.f32.mrb[78].mxu0 }
 0x2b2   : > { %v6979_v63 = vpop.f32.mrb[79].mxu0 }
 0x2b3   : > { %v9853_v36 = vadd.f32 %v6977_v41, %v9650_v60  ;;  %v6980_v16 = vadd.f32 %v6979_v63, %v6978_v43  ;;  %v6887_v32 = vpop.f32.mrb[76].mxu1 }
 0x2b4   : > { %v6888_v53 = vpop.f32.mrb[77].mxu1 }
 0x2b5   : > { %v9856_v5 = vadd.f32 %v6980_v16, %v9652_v52  ;;  %v9858_v34 = vadd.f32 %v6888_v53, %v6887_v32  ;;  %v6890_v21 = vpop.f32.mrb[78].mxu1 }
 0x2b6   : > { %v6891_v30 = vpop.f32.mrb[79].mxu1 }
 0x2b7   : > { %v9860_v40 = vadd.f32 %v6891_v30, %v6890_v21 }
 0x2b8   : > { %v6981_v11 = vpop.f32.mrb[80].mxu0 }
 0x2b9   : > { %v6982_v7 = vpop.f32.mrb[81].mxu0 }
 0x2ba   : > { %v6983_v33 = vadd.f32 %v6982_v7, %v6981_v11  ;;  %v6984_v56 = vpop.f32.mrb[82].mxu0 }
 0x2bb   : > { %v6985_v45 = vpop.f32.mrb[83].mxu0 }
 0x2bc   : > { %v9863_v60 = vadd.f32 %v6983_v33, %v9671_v39  ;;  %v6986_v61 = vadd.f32 %v6985_v45, %v6984_v56  ;;  %v7069_v26 = vpop.f32.mrb[80].mxu1 }
 0x2bd   : > { %v7070_v58 = vpop.f32.mrb[81].mxu1 }
 0x2be   : > { %v9866_v52 = vadd.f32 %v6986_v61, %v9682_v13  ;;  %v7071_v28 = vadd.f32 %v7070_v58, %v7069_v26  ;;  %v7072_v1 = vpop.f32.mrb[82].mxu1 }
 0x2bf   : > { %v7073_v24 = vpop.f32.mrb[83].mxu1 }
 0x2c0   : > { %v7074_v47 = vadd.f32 %v7073_v24, %v7072_v1  ;;  %v9878_v53 = vadd.f32 %v9679_v50, %v7071_v28 }
 0x2c1   : > { %v6987_v57 = vpop.f32.mrb[84].mxu0 }
 0x2c2   : > { %v6988_v0 = vpop.f32.mrb[85].mxu0 }
 0x2c3   : > { %v6989_v6 = vadd.f32 %v6988_v0, %v6987_v57  ;;  %v6990_v31 = vpop.f32.mrb[86].mxu0 }
 0x2c4   : > { %v6991_v39 = vpop.f32.mrb[87].mxu0 }
 0x2c5   : > { %v9872_v23 = vadd.f32 %v6989_v6, %v9732_v25  ;;  %v6992_v13 = vadd.f32 %v6991_v39, %v6990_v31 }
 0x2c6   : > { %v7075_v15 = vpop.f32.mrb[84].mxu1 }
 0x2c7   : > { %v7076_v41 = vpop.f32.mrb[85].mxu1  ;;  %v9875_v43 = vadd.f32 %v6992_v13, %v9749_v59  ;;  %v9887_v59 = vadd.f32 %v9691_v42, %v7074_v47 }
 0x2c8   : > { %v7077_v63 = vadd.f32 %v7076_v41, %v7075_v15  ;;  %v7078_v16 = vpop.f32.mrb[86].mxu1 }
 0x2c9   : > { %v7079_v32 = vpop.f32.mrb[87].mxu1  ;;  %v6993_v30 = vpop.f32.mrb[88].mxu0 }
 0x2ca   : > { %v7080_v21 = vadd.f32 %v7079_v32, %v7078_v16  ;;  %v9881_v11 = vadd.f32 %v9730_v20, %v7077_v63  ;;  %v6994_v7 = vpop.f32.mrb[89].mxu0 }
 0x2cb   : > { %v6995_v25 = vadd.f32 %v6994_v7, %v6993_v30  ;;  %v6996_v33 = vpop.f32.mrb[90].mxu0 }
 0x2cc   : > { %v9884_v56 = vadd.f32 %v9746_v44, %v7080_v21  ;;  %v6997_v45 = vpop.f32.mrb[91].mxu0 }
 0x2cd   : > { %v9890_v61 = vadd.f32 %v6995_v25, %v9770_v35  ;;  %v6998_v50 = vadd.f32 %v6997_v45, %v6996_v33 }
 0x2ce   : > { %v7081_v26 = vpop.f32.mrb[88].mxu1 }
 0x2cf   : > { %v9893_v58 = vadd.f32 %v6998_v50, %v9779_v51  ;;  %v7082_v20 = vpop.f32.mrb[89].mxu1 }
 0x2d0   : > { %v7083_v28 = vadd.f32 %v7082_v20, %v7081_v26  ;;  %v7084_v1 = vpop.f32.mrb[90].mxu1 }
 0x2d1   : > { %v7085_v24 = vpop.f32.mrb[91].mxu1 }
 0x2d2   : > { %v7086_v57 = vadd.f32 %v7085_v24, %v7084_v1  ;;  %v9896_v44 = vadd.f32 %v9768_v38, %v7083_v28 }
 0x2d3   : > { %v6999_v54 = vpop.f32.mrb[92].mxu0 }
 0x2d4   : > { %v7000_v0 = vpop.f32.mrb[93].mxu0  ;;  %v9899_v42 = vadd.f32 %v9777_v3, %v7086_v57 }
 0x2d5   : > { %v7001_v35 = vadd.f32 %v7000_v0, %v6999_v54  ;;  %v7002_v47 = vpop.f32.mrb[94].mxu0 }
 0x2d6   : > { %v7003_v6 = vpop.f32.mrb[95].mxu0 }
 0x2d7   : > { %v9902_v31 = vadd.f32 %v7001_v35, %v9794_v29  ;;  %v7004_v51 = vadd.f32 %v7003_v6, %v7002_v47 }
 0x2d8   : > { %v7087_v39 = vpop.f32.mrb[92].mxu1 }
 0x2d9   : > { %v7088_v13 = vpop.f32.mrb[93].mxu1  ;;  %v9905_v15 = vadd.f32 %v7004_v51, %v9796_v12 }
 0x2da   : > { %v7089_v41 = vadd.f32 %v7088_v13, %v7087_v39  ;;  %v7090_v38 = vpop.f32.mrb[94].mxu1 }
 0x2db   : > { %v7091_v63 = vpop.f32.mrb[95].mxu1 }
 0x2dc   : > { %v7092_v16 = vadd.f32 %v7091_v63, %v7090_v38  ;;  %v7005_v32 = vpop.f32.mrb[96].mxu0  ;;  %v9908_v3 = vadd.f32 %v9789_v49, %v7089_v41 }
 0x2dd   : > { %v7006_v21 = vpop.f32.mrb[97].mxu0 }
 0x2de   : > { %v7007_v30 = vadd.f32 %v7006_v21, %v7005_v32  ;;  %v7008_v7 = vpop.f32.mrb[98].mxu0  ;;  %v9911_v29 = vadd.f32 %v9792_v37, %v7092_v16 }
 0x2df   : > { %v7009_v25 = vpop.f32.mrb[99].mxu0 }
 0x2e0   : > { %v9914_v33 = vadd.f32 %v7007_v30, %v9811_v17  ;;  %v7010_v12 = vadd.f32 %v7009_v25, %v7008_v7 }
 0x2e1   : > { %v7093_v50 = vpop.f32.mrb[96].mxu1 }
 0x2e2   : > { %v9917_v45 = vadd.f32 %v7010_v12, %v9814_v10  ;;  %v7094_v26 = vpop.f32.mrb[97].mxu1 }
 0x2e3   : > { %v7095_v20 = vadd.f32 %v7094_v26, %v7093_v50  ;;  %v7096_v28 = vpop.f32.mrb[98].mxu1 }
 0x2e4   : > { %v7097_v49 = vpop.f32.mrb[99].mxu1 }
 0x2e5   : > { %v7098_v1 = vadd.f32 %v7097_v49, %v7096_v28  ;;  %v9920_v57 = vadd.f32 %v9805_v18, %v7095_v20 }
 0x2e6   : > { %v7011_v24 = vpop.f32.mrb[100].mxu0 }
 0x2e7   : > { %v7012_v37 = vpop.f32.mrb[101].mxu0  ;;  %v9923_v17 = vadd.f32 %v9809_v19, %v7098_v1 }
 0x2e8   : > { %v7013_v54 = vadd.f32 %v7012_v37, %v7011_v24  ;;  %v7014_v0 = vpop.f32.mrb[102].mxu0 }
 0x2e9   : > { %v7015_v35 = vpop.f32.mrb[103].mxu0  ;;  %v7099_v6 = vpop.f32.mrb[100].mxu1 }
 0x2ea   : > { %v9926_v10 = vadd.f32 %v7013_v54, %v9835_v8  ;;  %v7016_v47 = vadd.f32 %v7015_v35, %v7014_v0  ;;  %v7100_v51 = vpop.f32.mrb[101].mxu1 }
 0x2eb   : > { %v7101_v13 = vadd.f32 %v7100_v51, %v7099_v6  ;;  %v7102_v41 = vpop.f32.mrb[102].mxu1 }
 0x2ec   : > { %v9929_v39 = vadd.f32 %v7016_v47, %v9837_v27  ;;  %v7103_v18 = vpop.f32.mrb[103].mxu1 }
 0x2ed   : > { %v7104_v38 = vadd.f32 %v7103_v18, %v7102_v41  ;;  %v9932_v16 = vadd.f32 %v9830_v2, %v7101_v13 }
 0x2ee   : > { %v7017_v63 = vpop.f32.mrb[104].mxu0 }
 0x2ef   : > { %v7018_v19 = vpop.f32.mrb[105].mxu0  ;;  %v9935_v8 = vadd.f32 %v9833_v48, %v7104_v38 }
 0x2f0   : > { %v7019_v32 = vadd.f32 %v7018_v19, %v7017_v63  ;;  %v7020_v21 = vpop.f32.mrb[106].mxu0 }
 0x2f1   : > { %v7021_v30 = vpop.f32.mrb[107].mxu0 }
 0x2f2   : > { %v9938_v7 = vadd.f32 %v7019_v32, %v9845_v46  ;;  %v7022_v27 = vadd.f32 %v7021_v30, %v7020_v21  ;;  %v7105_v25 = vpop.f32.mrb[104].mxu1 }
 0x2f3   : > { %v7106_v50 = vpop.f32.mrb[105].mxu1 }
 0x2f4   : > { %v9941_v12 = vadd.f32 %v7022_v27, %v9847_v55  ;;  %v7107_v26 = vadd.f32 %v7106_v50, %v7105_v25  ;;  %v7108_v20 = vpop.f32.mrb[106].mxu1 }
 0x2f5   : > { %v7109_v2 = vpop.f32.mrb[107].mxu1 }
 0x2f6   : > { %v7110_v28 = vadd.f32 %v7109_v2, %v7108_v20  ;;  %v9944_v49 = vadd.f32 %v9840_v14, %v7107_v26 }
 0x2f7   : > { %v7023_v1 = vpop.f32.mrb[108].mxu0 }
 0x2f8   : > { %v7024_v48 = vpop.f32.mrb[109].mxu0  ;;  %v9947_v24 = vadd.f32 %v9843_v22, %v7110_v28 }
 0x2f9   : > { %v7025_v46 = vadd.f32 %v7024_v48, %v7023_v1  ;;  %v7026_v37 = vpop.f32.mrb[110].mxu0 }
 0x2fa   : > { %v7027_v54 = vpop.f32.mrb[111].mxu0 }
 0x2fb   : > { %v9950_v0 = vadd.f32 %v7025_v46, %v9858_v34  ;;  %v7028_v55 = vadd.f32 %v7027_v54, %v7026_v37 }
 0x2fc   : > { %v7111_v35 = vpop.f32.mrb[108].mxu1 }
 0x2fd   : > { %v7112_v47 = vpop.f32.mrb[109].mxu1  ;;  %v9953_v6 = vadd.f32 %v7028_v55, %v9860_v40 }
 0x2fe   : > { %v7113_v51 = vadd.f32 %v7112_v47, %v7111_v35  ;;  %v7114_v14 = vpop.f32.mrb[110].mxu1 }
 0x2ff   : > { %v7115_v13 = vpop.f32.mrb[111].mxu1 }
 0x300   : > { %v7116_v41 = vadd.f32 %v7115_v13, %v7114_v14  ;;  %v9956_v18 = vadd.f32 %v9853_v36, %v7113_v51 }
 0x302   : > { %v9959_v22 = vadd.f32 %v9856_v5, %v7116_v41 }
 0x304   : > { %v7117_v38 = vpop.f32.mrb[112].mxu1 }
 0x305   : > { %v7118_v63 = vpop.f32.mrb[113].mxu1 }
 0x306   : > { %v7119_v34 = vadd.f32 %v7118_v63, %v7117_v38  ;;  %v7120_v19 = vpop.f32.mrb[114].mxu1 }
 0x307   : > { %v7121_v32 = vpop.f32.mrb[115].mxu1 }
 0x308   : > { %v7122_v21 = vadd.f32 %v7121_v32, %v7120_v19  ;;  %v9962_v30 = vadd.f32 %v9863_v60, %v7119_v34 }
 0x30a   : > { %v9965_v40 = vadd.f32 %v9866_v52, %v7122_v21 }
 0x30c   : > { %v7123_v27 = vpop.f32.mrb[116].mxu1 }
 0x30d   : > { %v7124_v25 = vpop.f32.mrb[117].mxu1 }
 0x30e   : > { %v7125_v50 = vadd.f32 %v7124_v25, %v7123_v27  ;;  %v7126_v36 = vpop.f32.mrb[118].mxu1 }
 0x30f   : > { %v7127_v26 = vpop.f32.mrb[119].mxu1 }
 0x310   : > { %v7128_v20 = vadd.f32 %v7127_v26, %v7126_v36  ;;  %v9968_v5 = vadd.f32 %v9872_v23, %v7125_v50 }
 0x312   : > { %v9971_v2 = vadd.f32 %v9875_v43, %v7128_v20 }
 0x314   : > { %v7129_v28 = vpop.f32.mrb[120].mxu1 }
 0x315   : > { %v7130_v1 = vpop.f32.mrb[121].mxu1 }
 0x316   : > { %v7131_v48 = vadd.f32 %v7130_v1, %v7129_v28  ;;  %v7132_v60 = vpop.f32.mrb[122].mxu1 }
 0x317   : > { %v7133_v46 = vpop.f32.mrb[123].mxu1 }
 0x318   : > { %v7134_v37 = vadd.f32 %v7133_v46, %v7132_v60  ;;  %v9974_v52 = vadd.f32 %v9890_v61, %v7131_v48 }
 0x31a   : > { %v9977_v54 = vadd.f32 %v9893_v58, %v7134_v37 }
 0x31c   : > { %v7135_v55 = vpop.f32.mrb[124].mxu1 }
 0x31d   : > { %v7136_v35 = vpop.f32.mrb[125].mxu1 }
 0x31e   : > { %v7137_v47 = vadd.f32 %v7136_v35, %v7135_v55  ;;  %v7138_v23 = vpop.f32.mrb[126].mxu1 }
 0x31f   : > { %v7139_v51 = vpop.f32.mrb[127].mxu1 }
 0x320   : > { %v7140_v14 = vadd.f32 %v7139_v51, %v7138_v23  ;;  %v9980_v43 = vadd.f32 %v9902_v31, %v7137_v47 }
 0x322   : > { %v9983_v13 = vadd.f32 %v9905_v15, %v7140_v14 }
 0x324   : > { %v7141_v41 = vpop.f32.mrb[128].mxu1 }
 0x325   : > { %v7142_v38 = vpop.f32.mrb[129].mxu1 }
 0x326   : > { %v7143_v63 = vadd.f32 %v7142_v38, %v7141_v41  ;;  %v7144_v61 = vpop.f32.mrb[130].mxu1 }
 0x327   : > { %v7145_v34 = vpop.f32.mrb[131].mxu1 }
 0x328   : > { %v7146_v19 = vadd.f32 %v7145_v34, %v7144_v61  ;;  %v9986_v58 = vadd.f32 %v9914_v33, %v7143_v63 }
 0x32a   : > { %v9989_v32 = vadd.f32 %v9917_v45, %v7146_v19 }
 0x32c   : > { %v7147_v21 = vpop.f32.mrb[132].mxu1 }
 0x32d   : > { %v7148_v27 = vpop.f32.mrb[133].mxu1 }
 0x32e   : > { %v7149_v25 = vadd.f32 %v7148_v27, %v7147_v21  ;;  %v7150_v31 = vpop.f32.mrb[134].mxu1 }
 0x32f   : > { %v7151_v50 = vpop.f32.mrb[135].mxu1 }
 0x330   : > { %v7152_v36 = vadd.f32 %v7151_v50, %v7150_v31  ;;  %v9992_v15 = vadd.f32 %v9926_v10, %v7149_v25 }
 0x332   : > { %v9995_v26 = vadd.f32 %v9929_v39, %v7152_v36  ;;  %v10006_v39 = vld [vmem:[%s10251_s5] ss:$0 sm:$0xff] }
 0x334   : > { %v7153_v20 = vpop.f32.mrb[136].mxu1 }
 0x335   : > { %v7154_v28 = vpop.f32.mrb[137].mxu1 }
 0x336   : > { %v7155_v1 = vadd.f32 %v7154_v28, %v7153_v20  ;;  %v7156_v33 = vpop.f32.mrb[138].mxu1 }
 0x337   : > { %v7157_v48 = vpop.f32.mrb[139].mxu1 }
 0x338   : > { %v7158_v60 = vadd.f32 %v7157_v48, %v7156_v33  ;;  %v9998_v45 = vadd.f32 %v9938_v7, %v7155_v1  ;;  %v10012_v7 = vld [vmem:[%s10252_s6] ss:$0 sm:$0xff] }
 0x33a   : > { %v10001_v46 = vadd.f32 %v9941_v12, %v7158_v60 }
 0x340   : > { %v7159_v37 = vpop.f32.mrb[140].mxu1 }
 0x341   : > { %v7160_v55 = vpop.f32.mrb[141].mxu1  ;;  %v7375_v47 = vpop.f32.mrb[16].mxu0 }
 0x342   : > { %v7161_v35 = vadd.f32 %v7160_v55, %v7159_v37  ;;  %v7162_v10 = vpop.f32.mrb[142].mxu1  ;;  %v7471_v51 = vadd.f32 %v9881_v11, %v7375_v47  ;;  %v5256_v14 = vpop.f32.mrb[17].mxu0 }
 0x343   : > { %v7163_v23 = vpop.f32.mrb[143].mxu1  ;;  %v7474_v12 = vadd.f32 %v9878_v53, %v5256_v14  ;;  %v7376_v38 = vpop.f32.mrb[18].mxu0 }
 0x344   : > { %v7164_v41 = vadd.f32 %v7163_v23, %v7162_v10  ;;  %v10016_v63 = vadd.f32 %v9950_v0, %v7161_v35  ;;  %v5424_v61 = vmul.f32 %v7471_v51, %v10006_v39  ;;  %v7477_v34 = vadd.f32 %v9884_v56, %v7376_v38  ;;  %v5259_v19 = vpop.f32.mrb[19].mxu0 }
 0x345   : > { %v5422_v11 = vmul.f32 %v7474_v12, %v10006_v39  ;;  %v7480_v21 = vadd.f32 %v9887_v59, %v5259_v19 }
 0x346   : > { %v10023_v27 = vadd.f32 %v9953_v6, %v7164_v41  ;;  %v5463_v25 = vadd.f32 %v10012_v7, %v5424_v61  ;;  %v5425_v53 = vmul.f32 %v7477_v34, %v10006_v39 }
 0x347   : > { %v5461_v31 = vadd.f32 %v10012_v7, %v5422_v11  ;;  %v5423_v0 = vmul.f32 %v7480_v21, %v10006_v39 }
 0x348   : > { %v5464_v50 = vadd.f32 %v10012_v7, %v5425_v53  ;;  %v5495_v20 = vmax.f32 %v5463_v25, 0.0 }
 0x349   : > { %v5462_v56 = vadd.f32 %v10012_v7, %v5423_v0  ;;  %v7379_v36 = vpop.f32.mrb[20].mxu0  ;;  %v5493_v6 = vmax.f32 %v5461_v31, 0.0 }
 0x34a   : > { %v5496_v28 = vmax.f32 %v5464_v50, 0.0  ;;  %v7483_v59 = vadd.f32 %v9908_v3, %v7379_v36  ;;  %v5272_v1 = vpop.f32.mrb[21].mxu0 }
 0x34b   : > { %v5494_v33 = vmax.f32 %v5462_v56, 0.0  ;;  %v7486_v48 = vadd.f32 %v9896_v44, %v5272_v1  ;;  %v7380_v60 = vpop.f32.mrb[22].mxu0 }
 0x34c   : > { %v5526_v37 = vpack.c.bf16 %v5496_v28, %v5495_v20  ;;  %v5428_v55 = vmul.f32 %v7483_v59, %v10006_v39  ;;  %v7489_v35 = vadd.f32 %v9911_v29, %v7380_v60  ;;  %v5275_v10 = vpop.f32.mrb[23].mxu0 }
 0x34d   : > { %v5426_v47 = vmul.f32 %v7486_v48, %v10006_v39  ;;  %v7492_v23 = vadd.f32 %v9899_v42, %v5275_v10  ;;  %v5525_v51 = vpack.c.bf16 %v5494_v33, %v5493_v6 }
 0x34e   : > { %v5467_v14 = vadd.f32 %v10012_v7, %v5428_v55  ;;  %v5429_v3 = vmul.f32 %v7489_v35, %v10006_v39 }
 0x34f   : > { %v5465_v41 = vadd.f32 %v10012_v7, %v5426_v47  ;;  %v5427_v44 = vmul.f32 %v7492_v23, %v10006_v39  ;;  %7421 = vmatprep.mubr.bf16.mxu1 %v5525_v51 }
 0x350   : > { %v5468_v12 = vadd.f32 %v10012_v7, %v5429_v3  ;;  %7422 = vmatmul.mubr.bf16.vlgmr.msra.gmra.mrb[144].mxu1 %v5526_v37  ;;  %v5499_v61 = vmax.f32 %v5467_v14, 0.0 }
 0x351   : > { %v5466_v29 = vadd.f32 %v10012_v7, %v5427_v44  ;;  %v7383_v38 = vpop.f32.mrb[24].mxu0  ;;  %v5497_v11 = vmax.f32 %v5465_v41, 0.0 }
 0x352   : > { %v5500_v34 = vmax.f32 %v5468_v12, 0.0  ;;  %v7495_v42 = vadd.f32 %v9932_v16, %v7383_v38  ;;  %v5288_v19 = vpop.f32.mrb[25].mxu0 }
 0x353   : > { %v5498_v21 = vmax.f32 %v5466_v29, 0.0  ;;  %v7498_v25 = vadd.f32 %v9920_v57, %v5288_v19  ;;  %v7384_v53 = vpop.f32.mrb[26].mxu0 }
 0x354   : > { %v5432_v31 = vmul.f32 %v7495_v42, %v10006_v39  ;;  %v7501_v0 = vadd.f32 %v9935_v8, %v7384_v53  ;;  %v5291_v50 = vpop.f32.mrb[27].mxu0  ;;  %v5528_v56 = vpack.c.bf16 %v5500_v34, %v5499_v61 }
 0x355   : > { %v5430_v36 = vmul.f32 %v7498_v25, %v10006_v39  ;;  %v7504_v20 = vadd.f32 %v9923_v17, %v5291_v50  ;;  %v5527_v28 = vpack.c.bf16 %v5498_v21, %v5497_v11 }
 0x356   : > { %v5471_v59 = vadd.f32 %v10012_v7, %v5432_v31  ;;  %v5433_v16 = vmul.f32 %v7501_v0, %v10006_v39 }
 0x357   : > { %v5469_v1 = vadd.f32 %v10012_v7, %v5430_v36  ;;  %v5431_v57 = vmul.f32 %v7504_v20, %v10006_v39  ;;  %7425 = vmatprep.mubr.bf16.mxu1 %v5527_v28 }
 0x358   : > { %v5472_v6 = vadd.f32 %v10012_v7, %v5433_v16  ;;  %7426 = vmatmul.mubr.bf16.gmra.mrb[148].mxu1 %v5528_v56  ;;  %v5503_v48 = vmax.f32 %v5471_v59, 0.0 }
 0x359   : > { %v5470_v8 = vadd.f32 %v10012_v7, %v5431_v57  ;;  %v7387_v33 = vpop.f32.mrb[28].mxu0  ;;  %v5501_v55 = vmax.f32 %v5469_v1, 0.0 }
 0x35a   : > { %v5504_v60 = vmax.f32 %v5472_v6, 0.0  ;;  %v7507_v17 = vadd.f32 %v9956_v18, %v7387_v33  ;;  %v5304_v37 = vpop.f32.mrb[29].mxu0 }
 0x35b   : > { %v5502_v35 = vmax.f32 %v5470_v8, 0.0  ;;  %v7510_v10 = vadd.f32 %v9944_v49, %v5304_v37  ;;  %v7388_v47 = vpop.f32.mrb[30].mxu0 }
 0x35c   : > { %v5436_v23 = vmul.f32 %v7507_v17, %v10006_v39  ;;  %v7513_v51 = vadd.f32 %v9959_v22, %v7388_v47  ;;  %v5307_v14 = vpop.f32.mrb[31].mxu0  ;;  %v5530_v3 = vpack.c.bf16 %v5504_v60, %v5503_v48 }
 0x35d   : > { %v5434_v41 = vmul.f32 %v7510_v10, %v10006_v39  ;;  %v7516_v44 = vadd.f32 %v9947_v24, %v5307_v14  ;;  %v5529_v12 = vpack.c.bf16 %v5502_v35, %v5501_v55 }
 0x35e   : > { %v5475_v29 = vadd.f32 %v10012_v7, %v5436_v23  ;;  %v5437_v18 = vmul.f32 %v7513_v51, %v10006_v39 }
 0x35f   : > { %v5473_v38 = vadd.f32 %v10012_v7, %v5434_v41  ;;  %v5435_v49 = vmul.f32 %v7516_v44, %v10006_v39  ;;  %7429 = vmatprep.mubr.bf16.mxu1 %v5529_v12 }
 0x360   : > { %v5476_v61 = vadd.f32 %v10012_v7, %v5437_v18  ;;  %7430 = vmatmul.mubr.bf16.gmra.mrb[152].mxu1 %v5530_v3  ;;  %v5507_v42 = vmax.f32 %v5475_v29, 0.0 }
 0x361   : > { %v5474_v22 = vadd.f32 %v10012_v7, %v5435_v49  ;;  %v7391_v34 = vpop.f32.mrb[32].mxu0  ;;  %v5505_v21 = vmax.f32 %v5473_v38, 0.0 }
 0x362   : > { %v5508_v19 = vmax.f32 %v5476_v61, 0.0  ;;  %v7519_v24 = vadd.f32 %v9968_v5, %v7391_v34  ;;  %v5320_v11 = vpop.f32.mrb[33].mxu0 }
 0x363   : > { %v5506_v25 = vmax.f32 %v5474_v22, 0.0  ;;  %v7522_v53 = vadd.f32 %v9962_v30, %v5320_v11  ;;  %v7392_v31 = vpop.f32.mrb[34].mxu0 }
 0x364   : > { %v5440_v0 = vmul.f32 %v7519_v24, %v10006_v39  ;;  %v7525_v50 = vadd.f32 %v9971_v2, %v7392_v31  ;;  %v5323_v56 = vpop.f32.mrb[35].mxu0  ;;  %v5532_v36 = vpack.c.bf16 %v5508_v19, %v5507_v42 }
 0x365   : > { %v5438_v20 = vmul.f32 %v7522_v53, %v10006_v39  ;;  %v7528_v28 = vadd.f32 %v9965_v40, %v5323_v56  ;;  %v5531_v59 = vpack.c.bf16 %v5506_v25, %v5505_v21 }
 0x366   : > { %v5479_v16 = vadd.f32 %v10012_v7, %v5440_v0  ;;  %v5441_v5 = vmul.f32 %v7525_v50, %v10006_v39 }
 0x367   : > { %v5477_v1 = vadd.f32 %v10012_v7, %v5438_v20  ;;  %v5439_v30 = vmul.f32 %v7528_v28, %v10006_v39  ;;  %7433 = vmatprep.mubr.bf16.mxu1 %v5531_v59 }
 0x368   : > { %v5480_v57 = vadd.f32 %v10012_v7, %v5441_v5  ;;  %7434 = vmatmul.mubr.bf16.gmra.mrb[156].mxu1 %v5532_v36  ;;  %v5511_v8 = vmax.f32 %v5479_v16, 0.0 }
 0x369   : > { %v5478_v2 = vadd.f32 %v10012_v7, %v5439_v30  ;;  %v7395_v6 = vpop.f32.mrb[36].mxu0  ;;  %v5509_v60 = vmax.f32 %v5477_v1, 0.0 }
 0x36a   : > { %v5512_v33 = vmax.f32 %v5480_v57, 0.0  ;;  %v7531_v40 = vadd.f32 %v9980_v43, %v7395_v6  ;;  %v5336_v48 = vpop.f32.mrb[37].mxu0 }
 0x36b   : > { %v5510_v17 = vmax.f32 %v5478_v2, 0.0  ;;  %v7534_v37 = vadd.f32 %v9974_v52, %v5336_v48  ;;  %v7396_v55 = vpop.f32.mrb[38].mxu0 }
 0x36c   : > { %v5444_v35 = vmul.f32 %v7531_v40, %v10006_v39  ;;  %v7537_v10 = vadd.f32 %v9983_v13, %v7396_v55  ;;  %v5339_v47 = vpop.f32.mrb[39].mxu0  ;;  %v5534_v23 = vpack.c.bf16 %v5512_v33, %v5511_v8 }
 0x36d   : > { %v5442_v51 = vmul.f32 %v7534_v37, %v10006_v39  ;;  %v7540_v14 = vadd.f32 %v9977_v54, %v5339_v47  ;;  %v5533_v3 = vpack.c.bf16 %v5510_v17, %v5509_v60 }
 0x36e   : > { %v5483_v41 = vadd.f32 %v10012_v7, %v5444_v35  ;;  %v5445_v43 = vmul.f32 %v7537_v10, %v10006_v39 }
 0x36f   : > { %v5481_v44 = vadd.f32 %v10012_v7, %v5442_v51  ;;  %v5443_v52 = vmul.f32 %v7540_v14, %v10006_v39  ;;  %7437 = vmatprep.mubr.bf16.mxu1 %v5533_v3  ;;  %v10119_v51 = vld [vmem:[%s10254_s8] ss:$0 sm:$0xff] }
 0x370   : > { %v5484_v12 = vadd.f32 %v10012_v7, %v5445_v43  ;;  %7438 = vmatmul.mubr.bf16.gmra.mrb[160].mxu1 %v5534_v23  ;;  %v5515_v18 = vmax.f32 %v5483_v41, 0.0 }
 0x371   : > { %v5482_v13 = vadd.f32 %v10012_v7, %v5443_v52  ;;  %v7399_v29 = vpop.f32.mrb[40].mxu0  ;;  %v5513_v61 = vmax.f32 %v5481_v44, 0.0 }
 0x372   : > { %v5516_v38 = vmax.f32 %v5484_v12, 0.0  ;;  %v7543_v54 = vadd.f32 %v9992_v15, %v7399_v29  ;;  %v5352_v49 = vpop.f32.mrb[41].mxu0 }
 0x373   : > { %v5514_v22 = vmax.f32 %v5482_v13, 0.0  ;;  %v7546_v34 = vadd.f32 %v9986_v58, %v5352_v49  ;;  %v7400_v42 = vpop.f32.mrb[42].mxu0 }
 0x374   : > { %v5448_v19 = vmul.f32 %v7543_v54, %v10006_v39  ;;  %v7549_v24 = vadd.f32 %v9995_v26, %v7400_v42  ;;  %v5355_v11 = vpop.f32.mrb[43].mxu0  ;;  %v5536_v21 = vpack.c.bf16 %v5516_v38, %v5515_v18 }
 0x375   : > { %v5446_v25 = vmul.f32 %v7546_v34, %v10006_v39  ;;  %v7552_v53 = vadd.f32 %v9989_v32, %v5355_v11  ;;  %v5535_v31 = vpack.c.bf16 %v5514_v22, %v5513_v61  ;;  %v10331_v22 = vld [vmem:[#allocation6_spill] sm:$0xff] }
 0x376   : > { %v5487_v0 = vadd.f32 %v10012_v7, %v5448_v19  ;;  %v5449_v15 = vmul.f32 %v7549_v24, %v10006_v39 }
 0x377   : > { %v5485_v50 = vadd.f32 %v10012_v7, %v5446_v25  ;;  %v5447_v58 = vmul.f32 %v7552_v53, %v10006_v39  ;;  %7441 = vmatprep.mubr.bf16.mxu1 %v5535_v31 }
 0x378   : > { %v5488_v56 = vadd.f32 %v10012_v7, %v5449_v15  ;;  %7442 = vmatmul.mubr.bf16.gmra.mrb[164].mxu1 %v5536_v21  ;;  %v5519_v20 = vmax.f32 %v5487_v0, 0.0 }
 0x379   : > { %v5486_v26 = vadd.f32 %v10012_v7, %v5447_v58  ;;  %v7403_v36 = vpop.f32.mrb[44].mxu0  ;;  %v5517_v16 = vmax.f32 %v5485_v50, 0.0 }
 0x37a   : > { %v5520_v28 = vmax.f32 %v5488_v56, 0.0  ;;  %v7555_v32 = vadd.f32 %v10016_v63, %v7403_v36  ;;  %v5368_v59 = vpop.f32.mrb[45].mxu0 }
 0x37b   : > { %v5518_v5 = vmax.f32 %v5486_v26, 0.0  ;;  %v7558_v1 = vadd.f32 %v9998_v45, %v5368_v59  ;;  %v7404_v30 = vpop.f32.mrb[46].mxu0  ;;  %v10332_v26 = vld [vmem:[#allocation8_spill] sm:$0xff] }
 0x37c   : > { %v5452_v57 = vmul.f32 %v7555_v32, %v10006_v39  ;;  %v7561_v2 = vadd.f32 %v10023_v27, %v7404_v30  ;;  %v5371_v6 = vpop.f32.mrb[47].mxu0  ;;  %v5538_v8 = vpack.c.bf16 %v5520_v28, %v5519_v20  ;;  %v10333_v28 = vld [vmem:[#allocation9_spill] sm:$0xff] }
 0x37d   : > { %v5450_v33 = vmul.f32 %v7558_v1, %v10006_v39  ;;  %v7564_v40 = vadd.f32 %v10001_v46, %v5371_v6  ;;  %v5537_v48 = vpack.c.bf16 %v5518_v5, %v5517_v16  ;;  %v10334_v16 = vld [vmem:[#allocation10_spill] sm:$0xff]  ;;  %v10335_v1 = vld [vmem:[#allocation11_spill] sm:$0xff] }
 0x37e   : > { %v5491_v60 = vadd.f32 %v10012_v7, %v5452_v57  ;;  %v5453_v63 = vmul.f32 %v7561_v2, %v10006_v39 }
 0x37f   : > { %v5489_v17 = vadd.f32 %v10012_v7, %v5450_v33  ;;  %v5451_v45 = vmul.f32 %v7564_v40, %v10006_v39  ;;  %7445 = vmatprep.mubr.bf16.mxu1 %v5537_v48 }
 0x380   : > { %v5492_v37 = vadd.f32 %v10012_v7, %v5453_v63  ;;  %7446 = vmatmul.mubr.bf16.gmra.mrb[168].mxu1 %v5538_v8  ;;  %v5523_v55 = vmax.f32 %v5491_v60, 0.0 }
 0x381   : > { %v5490_v27 = vadd.f32 %v10012_v7, %v5451_v45  ;;  %v5521_v10 = vmax.f32 %v5489_v17, 0.0  ;;  %v10124_v7 = vld [vmem:[%s10255_s9] ss:$0 sm:$0xff] }
 0x382   : > { %v5524_v35 = vmax.f32 %v5492_v37, 0.0 }
 0x383   : > { %v5522_v46 = vmax.f32 %v5490_v27, 0.0 }
 0x384   : > { %v5540_v47 = vpack.c.bf16 %v5524_v35, %v5523_v55 }
 0x385   : > { %v5539_v23 = vpack.c.bf16 %v5522_v46, %v5521_v10  ;;  %v10336_v46 = vld [vmem:[#allocation12_spill] sm:$0xff] }
 0x387   : > { %7449 = vmatprep.mubr.bf16.mxu1 %v5539_v23 }
 0x388   : > { %7450 = vmatmul.mubr.bf16.gmra.mrb[172].mxu1 %v5540_v47 }
 0x423   : > { %v7423_v39 = vpop.f32.mrb[144].mxu1 }
 0x424   : > { %v5775_v14 = vmul.f32 %v7423_v39, %v10119_v51  ;;  %v5639_v3 = vpop.f32.mrb[145].mxu1  ;;  %v10337_v39 = vld [vmem:[#allocation13_spill] sm:$0xff] }
 0x425   : > { %v5773_v41 = vmul.f32 %v10119_v51, %v5639_v3  ;;  %v7424_v43 = vpop.f32.mrb[146].mxu1 }
 0x426   : > { %v5814_v44 = vadd.f32 %v10124_v7, %v5775_v14  ;;  %v5776_v52 = vmul.f32 %v7424_v43, %v10119_v51  ;;  %v5642_v12 = vpop.f32.mrb[147].mxu1 }
 0x427   : > { %v5812_v13 = vadd.f32 %v10124_v7, %v5773_v41  ;;  %v5774_v29 = vmul.f32 %v10119_v51, %v5642_v12  ;;  %v10338_v41 = vld [vmem:[#allocation14_spill] sm:$0xff] }
 0x428   : > { %v5846_v18 = vadd.f32 %v5814_v44, %v8043_v62  ;;  %v5815_v38 = vadd.f32 %v10124_v7, %v5776_v52  ;;  %v10339_v44 = vld [vmem:[#allocation15_spill] sm:$0xff] }
 0x429   : > { %v5844_v54 = vadd.f32 %v5812_v13, %v8051_v4  ;;  %v5813_v49 = vadd.f32 %v10124_v7, %v5774_v29 }
 0x42a   : > { %v5847_v61 = vadd.f32 %v5815_v38, %v8061_v9  ;;  %v5878_v19 = vmax.f32 %v5846_v18, 0.0 }
 0x42b   : > { %v5845_v34 = vadd.f32 %v5813_v49, %v10331_v22  ;;  %v7427_v42 = vpop.f32.mrb[148].mxu1  ;;  %v5876_v25 = vmax.f32 %v5844_v54, 0.0 }
 0x42c   : > { %v5879_v24 = vmax.f32 %v5847_v61, 0.0  ;;  %v5779_v11 = vmul.f32 %v7427_v42, %v10119_v51  ;;  %v5655_v21 = vpop.f32.mrb[149].mxu1 }
 0x42d   : > { %v5877_v62 = vmax.f32 %v5845_v34, 0.0  ;;  %v5777_v4 = vmul.f32 %v10119_v51, %v5655_v21  ;;  %v7428_v9 = vpop.f32.mrb[150].mxu1 }
 0x42e   : > { %v6670_v53 = vpack.c.bf16 %v5879_v24, %v5878_v19  ;;  %v5818_v31 = vadd.f32 %v10124_v7, %v5779_v11  ;;  %v5780_v0 = vmul.f32 %v7428_v9, %v10119_v51  ;;  %v5658_v15 = vpop.f32.mrb[151].mxu1 }
 0x42f   : > { %v6665_v50 = vpack.c.bf16 %v5877_v62, %v5876_v25  ;;  %v5816_v58 = vadd.f32 %v10124_v7, %v5777_v4  ;;  %v5778_v56 = vmul.f32 %v10119_v51, %v5658_v15  ;;  %v10340_v62 = vld [vmem:[#allocation16_spill] sm:$0xff]  ;;  %v10342_v15 = vld [vmem:[#allocation18_spill] sm:$0xff] }
 0x430   : > { %6742 = vst [vmem:[%s10142_s19 + $0x8] sm:$0xff] %v6670_v53   ;;  %v5850_v36 = vadd.f32 %v5818_v31, %v10332_v26  ;;  %v5819_v20 = vadd.f32 %v10124_v7, %v5780_v0  ;;  %v10341_v53 = vld [vmem:[#allocation17_spill] sm:$0xff] }
 0x431   : > { %6666 = vst [vmem:[%s10142_s19] sm:$0xff] %v6665_v50   ;;  %v5848_v32 = vadd.f32 %v5816_v58, %v10333_v28  ;;  %v5817_v59 = vadd.f32 %v10124_v7, %v5778_v56  ;;  %v10343_v58 = vld [vmem:[#allocation19_spill] sm:$0xff] }
 0x432   : > { %v5851_v5 = vadd.f32 %v5819_v20, %v10334_v16  ;;  %v5882_v2 = vmax.f32 %v5850_v36, 0.0 }
 0x433   : > { %v5849_v30 = vadd.f32 %v5817_v59, %v10335_v1  ;;  %v7431_v57 = vpop.f32.mrb[152].mxu1  ;;  %v5880_v40 = vmax.f32 %v5848_v32, 0.0 }
 0x434   : > { %v5883_v6 = vmax.f32 %v5851_v5, 0.0  ;;  %v5783_v8 = vmul.f32 %v7431_v57, %v10119_v51  ;;  %v5671_v33 = vpop.f32.mrb[153].mxu1 }
 0x435   : > { %v5881_v48 = vmax.f32 %v5849_v30, 0.0  ;;  %v5781_v60 = vmul.f32 %v10119_v51, %v5671_v33  ;;  %v7432_v63 = vpop.f32.mrb[154].mxu1 }
 0x436   : > { %v6680_v17 = vpack.c.bf16 %v5883_v6, %v5882_v2  ;;  %v5822_v45 = vadd.f32 %v10124_v7, %v5783_v8  ;;  %v5784_v37 = vmul.f32 %v7432_v63, %v10119_v51  ;;  %v5674_v27 = vpop.f32.mrb[155].mxu1 }
 0x437   : > { %v6675_v55 = vpack.c.bf16 %v5881_v48, %v5880_v40  ;;  %v5820_v35 = vadd.f32 %v10124_v7, %v5781_v60  ;;  %v5782_v10 = vmul.f32 %v10119_v51, %v5674_v27  ;;  %v10344_v48 = vld [vmem:[#allocation3_spill] sm:$0xff]  ;;  %v10346_v27 = vld [vmem:[#allocation5_spill] sm:$0xff] }
 0x438   : > { %6744 = vst [vmem:[%s10142_s19 + $0x18] sm:$0xff] %v6680_v17   ;;  %v5854_v47 = vadd.f32 %v5822_v45, %v10336_v46  ;;  %v5823_v23 = vadd.f32 %v10124_v7, %v5784_v37  ;;  %v10345_v17 = vld [vmem:[#allocation4_spill] sm:$0xff] }
 0x439   : > { %6743 = vst [vmem:[%s10142_s19 + $0x10] sm:$0xff] %v6675_v55   ;;  %v5852_v14 = vadd.f32 %v5820_v35, %v10337_v39  ;;  %v5821_v3 = vadd.f32 %v10124_v7, %v5782_v10  ;;  %v10347_v35 = vld [vmem:[#allocation7_spill] sm:$0xff] }
 0x43a   : > { %v5855_v43 = vadd.f32 %v5823_v23, %v10338_v41  ;;  %v5886_v13 = vmax.f32 %v5854_v47, 0.0 }
 0x43b   : > { %v5853_v52 = vadd.f32 %v5821_v3, %v10339_v44  ;;  %v7435_v12 = vpop.f32.mrb[156].mxu1  ;;  %v5884_v54 = vmax.f32 %v5852_v14, 0.0 }
 0x43c   : > { %v5887_v29 = vmax.f32 %v5855_v43, 0.0  ;;  %v5787_v18 = vmul.f32 %v7435_v12, %v10119_v51  ;;  %v5687_v38 = vpop.f32.mrb[157].mxu1 }
 0x43d   : > { %v5885_v49 = vmax.f32 %v5853_v52, 0.0  ;;  %v5785_v61 = vmul.f32 %v10119_v51, %v5687_v38  ;;  %v7436_v22 = vpop.f32.mrb[158].mxu1 }
 0x43e   : > { %v6690_v34 = vpack.c.bf16 %v5887_v29, %v5886_v13  ;;  %v5826_v42 = vadd.f32 %v10124_v7, %v5787_v18  ;;  %v5788_v19 = vmul.f32 %v7436_v22, %v10119_v51  ;;  %v5690_v24 = vpop.f32.mrb[159].mxu1 }
 0x43f   : > { %v6685_v11 = vpack.c.bf16 %v5885_v49, %v5884_v54  ;;  %v5824_v21 = vadd.f32 %v10124_v7, %v5785_v61  ;;  %v5786_v25 = vmul.f32 %v10119_v51, %v5690_v24  ;;  %v10348_v49 = vld [vmem:[#allocation20_spill] sm:$0xff]  ;;  %v10350_v24 = vld [vmem:[#allocation22_spill] sm:$0xff] }
 0x440   : > { %6746 = vst [vmem:[%s10142_s19 + $0x28] sm:$0xff] %v6690_v34   ;;  %v5858_v4 = vadd.f32 %v5826_v42, %v10340_v62  ;;  %v5827_v9 = vadd.f32 %v10124_v7, %v5788_v19  ;;  %v10349_v34 = vld [vmem:[#allocation21_spill] sm:$0xff] }
 0x441   : > { %6745 = vst [vmem:[%s10142_s19 + $0x20] sm:$0xff] %v6685_v11   ;;  %v5856_v31 = vadd.f32 %v5824_v21, %v10341_v53  ;;  %v5825_v0 = vadd.f32 %v10124_v7, %v5786_v25  ;;  %v10351_v21 = vld [vmem:[#allocation23_spill] sm:$0xff] }
 0x442   : > { %v5859_v50 = vadd.f32 %v5827_v9, %v10342_v15  ;;  %v5890_v36 = vmax.f32 %v5858_v4, 0.0 }
 0x443   : > { %v5857_v56 = vadd.f32 %v5825_v0, %v10343_v58  ;;  %v7439_v26 = vpop.f32.mrb[160].mxu1  ;;  %v5888_v59 = vmax.f32 %v5856_v31, 0.0 }
 0x444   : > { %v5891_v20 = vmax.f32 %v5859_v50, 0.0  ;;  %v5791_v28 = vmul.f32 %v7439_v26, %v10119_v51  ;;  %v5703_v32 = vpop.f32.mrb[161].mxu1 }
 0x445   : > { %v5889_v16 = vmax.f32 %v5857_v56, 0.0  ;;  %v5789_v5 = vmul.f32 %v10119_v51, %v5703_v32  ;;  %v7440_v1 = vpop.f32.mrb[162].mxu1 }
 0x446   : > { %v6700_v30 = vpack.c.bf16 %v5891_v20, %v5890_v36  ;;  %v5830_v57 = vadd.f32 %v10124_v7, %v5791_v28  ;;  %v5792_v2 = vmul.f32 %v7440_v1, %v10119_v51  ;;  %v5706_v6 = vpop.f32.mrb[163].mxu1 }
 0x447   : > { %v6695_v8 = vpack.c.bf16 %v5889_v16, %v5888_v59  ;;  %v5828_v33 = vadd.f32 %v10124_v7, %v5789_v5  ;;  %v5790_v40 = vmul.f32 %v10119_v51, %v5706_v6  ;;  %v10352_v16 = vld [vmem:[#allocation24_spill] sm:$0xff]  ;;  %v10354_v6 = vld [vmem:[#allocation26_spill] sm:$0xff] }
 0x448   : > { %6748 = vst [vmem:[%s10142_s19 + $0x38] sm:$0xff] %v6700_v30   ;;  %v5862_v60 = vadd.f32 %v5830_v57, %v10344_v48  ;;  %v5831_v63 = vadd.f32 %v10124_v7, %v5792_v2  ;;  %v10353_v30 = vld [vmem:[#allocation25_spill] sm:$0xff] }
 0x449   : > { %6747 = vst [vmem:[%s10142_s19 + $0x30] sm:$0xff] %v6695_v8   ;;  %v5860_v45 = vadd.f32 %v5828_v33, %v10345_v17  ;;  %v5829_v37 = vadd.f32 %v10124_v7, %v5790_v40  ;;  %v10355_v33 = vld [vmem:[#allocation27_spill] sm:$0xff] }
 0x44a   : > { %v5863_v55 = vadd.f32 %v5831_v63, %v10346_v27  ;;  %v5894_v47 = vmax.f32 %v5862_v60, 0.0 }
 0x44b   : > { %v5861_v10 = vadd.f32 %v5829_v37, %v10347_v35  ;;  %v7443_v46 = vpop.f32.mrb[164].mxu1  ;;  %v5892_v3 = vmax.f32 %v5860_v45, 0.0 }
 0x44c   : > { %v5895_v23 = vmax.f32 %v5863_v55, 0.0  ;;  %v5795_v39 = vmul.f32 %v7443_v46, %v10119_v51  ;;  %v5719_v14 = vpop.f32.mrb[165].mxu1 }
 0x44d   : > { %v5893_v41 = vmax.f32 %v5861_v10, 0.0  ;;  %v5793_v43 = vmul.f32 %v10119_v51, %v5719_v14  ;;  %v7444_v44 = vpop.f32.mrb[166].mxu1 }
 0x44e   : > { %v6710_v52 = vpack.c.bf16 %v5895_v23, %v5894_v47  ;;  %v5834_v12 = vadd.f32 %v10124_v7, %v5795_v39  ;;  %v5796_v13 = vmul.f32 %v7444_v44, %v10119_v51  ;;  %v5722_v29 = vpop.f32.mrb[167].mxu1 }
 0x44f   : > { %v6705_v18 = vpack.c.bf16 %v5893_v41, %v5892_v3  ;;  %v5832_v38 = vadd.f32 %v10124_v7, %v5793_v43  ;;  %v5794_v54 = vmul.f32 %v10119_v51, %v5722_v29  ;;  %v10356_v41 = vld [vmem:[#allocation28_spill] sm:$0xff]  ;;  %v10358_v29 = vld [vmem:[#allocation30_spill] sm:$0xff] }
 0x450   : > { %6750 = vst [vmem:[%s10142_s19 + $0x48] sm:$0xff] %v6710_v52   ;;  %v5866_v61 = vadd.f32 %v5834_v12, %v10348_v49  ;;  %v5835_v22 = vadd.f32 %v10124_v7, %v5796_v13  ;;  %v10357_v52 = vld [vmem:[#allocation29_spill] sm:$0xff] }
 0x451   : > { %6749 = vst [vmem:[%s10142_s19 + $0x40] sm:$0xff] %v6705_v18   ;;  %v5864_v42 = vadd.f32 %v5832_v38, %v10349_v34  ;;  %v5833_v19 = vadd.f32 %v10124_v7, %v5794_v54  ;;  %v10359_v38 = vld [vmem:[#allocation31_spill] sm:$0xff] }
 0x452   : > { %v5867_v11 = vadd.f32 %v5835_v22, %v10350_v24  ;;  %v5898_v4 = vmax.f32 %v5866_v61, 0.0 }
 0x453   : > { %v5865_v25 = vadd.f32 %v5833_v19, %v10351_v21  ;;  %v7447_v62 = vpop.f32.mrb[168].mxu1  ;;  %v5896_v0 = vmax.f32 %v5864_v42, 0.0 }
 0x454   : > { %v5899_v9 = vmax.f32 %v5867_v11, 0.0  ;;  %v5799_v53 = vmul.f32 %v7447_v62, %v10119_v51  ;;  %v5735_v31 = vpop.f32.mrb[169].mxu1 }
 0x455   : > { %v5897_v15 = vmax.f32 %v5865_v25, 0.0  ;;  %v5797_v50 = vmul.f32 %v10119_v51, %v5735_v31  ;;  %v7448_v58 = vpop.f32.mrb[170].mxu1 }
 0x456   : > { %v6720_v56 = vpack.c.bf16 %v5899_v9, %v5898_v4  ;;  %v5838_v26 = vadd.f32 %v10124_v7, %v5799_v53  ;;  %v5800_v36 = vmul.f32 %v7448_v58, %v10119_v51  ;;  %v5738_v20 = vpop.f32.mrb[171].mxu1 }
 0x457   : > { %v6715_v28 = vpack.c.bf16 %v5897_v15, %v5896_v0  ;;  %v5836_v32 = vadd.f32 %v10124_v7, %v5797_v50  ;;  %v5798_v59 = vmul.f32 %v10119_v51, %v5738_v20 }
 0x458   : > { %6752 = vst [vmem:[%s10142_s19 + $0x58] sm:$0xff] %v6720_v56   ;;  %v5870_v5 = vadd.f32 %v5838_v26, %v10352_v16  ;;  %v5839_v1 = vadd.f32 %v10124_v7, %v5800_v36 }
 0x459   : > { %6751 = vst [vmem:[%s10142_s19 + $0x50] sm:$0xff] %v6715_v28   ;;  %v5868_v57 = vadd.f32 %v5836_v32, %v10353_v30  ;;  %v5837_v2 = vadd.f32 %v10124_v7, %v5798_v59 }
 0x45a   : > { %v5871_v8 = vadd.f32 %v5839_v1, %v10354_v6  ;;  %v5902_v60 = vmax.f32 %v5870_v5, 0.0 }
 0x45b   : > { %v5869_v40 = vadd.f32 %v5837_v2, %v10355_v33  ;;  %v7451_v48 = vpop.f32.mrb[172].mxu1  ;;  %v5900_v37 = vmax.f32 %v5868_v57, 0.0 }
 0x45c   : > { %v5903_v63 = vmax.f32 %v5871_v8, 0.0  ;;  %v5803_v17 = vmul.f32 %v7451_v48, %v10119_v51  ;;  %v5751_v45 = vpop.f32.mrb[173].mxu1 }
 0x45d   : > { %v5901_v27 = vmax.f32 %v5869_v40, 0.0  ;;  %v5801_v55 = vmul.f32 %v10119_v51, %v5751_v45  ;;  %v7452_v35 = vpop.f32.mrb[174].mxu1 }
 0x45e   : > { %v6730_v10 = vpack.c.bf16 %v5903_v63, %v5902_v60  ;;  %v5842_v46 = vadd.f32 %v10124_v7, %v5803_v17  ;;  %v5804_v47 = vmul.f32 %v7452_v35, %v10119_v51  ;;  %v5754_v23 = vpop.f32.mrb[175].mxu1 }
 0x45f   : > { %v6725_v39 = vpack.c.bf16 %v5901_v27, %v5900_v37  ;;  %v5840_v14 = vadd.f32 %v10124_v7, %v5801_v55  ;;  %v5802_v3 = vmul.f32 %v10119_v51, %v5754_v23 }
 0x460   : > { %6754 = vst [vmem:[%s10142_s19 + $0x68] sm:$0xff] %v6730_v10   ;;  %v5874_v43 = vadd.f32 %v5842_v46, %v10356_v41  ;;  %v5843_v44 = vadd.f32 %v10124_v7, %v5804_v47 }
 0x461   : > { %6753 = vst [vmem:[%s10142_s19 + $0x60] sm:$0xff] %v6725_v39   ;;  %v5872_v12 = vadd.f32 %v5840_v14, %v10357_v52  ;;  %v5841_v13 = vadd.f32 %v10124_v7, %v5802_v3 }
 0x462   : > { %v5875_v18 = vadd.f32 %v5843_v44, %v10358_v29  ;;  %v5906_v49 = vmax.f32 %v5874_v43, 0.0 }
 0x463   : > { %v5873_v54 = vadd.f32 %v5841_v13, %v10359_v38  ;;  %v5904_v22 = vmax.f32 %v5872_v12, 0.0 }
 0x464   : > { %v5907_v61 = vmax.f32 %v5875_v18, 0.0 }
 0x465   : > { %v5905_v34 = vmax.f32 %v5873_v54, 0.0 }
 0x466   : > { %v6740_v51 = vpack.c.bf16 %v5907_v61, %v5906_v49 }
 0x467   : > { %v6735_v42 = vpack.c.bf16 %v5905_v34, %v5904_v22 }
 0x468   : > { %6756 = vst [vmem:[%s10142_s19 + $0x78] sm:$0xff] %v6740_v51  }
 0x469   : > { %6755 = vst [vmem:[%s10142_s19 + $0x70] sm:$0xff] %v6735_v42  }
 0x46a PF: > { %s20_s13 = sadd.s32 1, %s7838_s13  }
 0x46b   : > { %p17_p5 = scmp.ge.s32.totalorder %s20_s13, 4  }
 0x46d   :  { %19 = sbr.rel (!%p17_p5) target bundleno = 1 (0x1), region = 94 }

</bundles_post_ra>
